<compile_context>
chip_gen: v5e
topology: v5e:2x2
jax: 0.10.0
libtpu: 0.0.40
codegen_flags: <defaults>
</compile_context>

<pallas_src>
import numpy as np
import jax
import jax.numpy as jnp
from jax.experimental import pallas as pl
from jax.experimental.pallas import tpu as pltpu

KS_INHIB = 5            # LATERAL_INHIBITION_KERNEL_SIZE
PAD_I = KS_INHIB // 2   # depthwise DoG conv halo (2)
KS_SPAT = 7             # spatial-attention conv kernel
PAD_S = KS_SPAT // 2    # spatial-attention conv halo (3)
REDUCTION = 8           # ATTENTION_REDUCTION_RATIO
INHIB_STRENGTH = 0.3    # INHIBITION_STRENGTH


# ----------------------- kernel A: per-image statistics ----------------------
def stats_kernel(x_ref, wsp_ref, gap_ref, sa_ref, avg_ref, max_ref):
    """Per image: GAP over (H, W) and the pre-BatchNorm 7x7 spatial-attention
    conv on channel-avg / channel-max maps (lane-dense: W on the lane axis)."""
    _, H, W, _ = x_ref.shape

    x = x_ref[0].astype(jnp.float32)                    # (H, W, C), C on lanes

    # Channel-attention GAP; the 1x1-conv MLP runs batched in the JAX glue.
    gsum = jnp.sum(x, axis=(0, 1))                      # (C,)
    gap_ref[0] = (gsum * (1.0 / (H * W)))[None, :]      # (1, C)

    # Zero-padded channel-avg / channel-max maps live in VMEM scratch so the
    # halo padding never touches HBM and taps are plain ref-slice loads.
    avg_ref[...] = jnp.zeros_like(avg_ref)
    max_ref[...] = jnp.zeros_like(max_ref)
    avg_ref[PAD_S:PAD_S + H, PAD_S:PAD_S + W] = jnp.mean(x, axis=-1)
    max_ref[PAD_S:PAD_S + H, PAD_S:PAD_S + W] = jnp.max(x, axis=-1)

    # 49-tap shift-and-accumulate 7x7 conv; weights are SMEM scalars.
    acc_a = wsp_ref[0] * avg_ref[0:H, 0:W]
    acc_m = wsp_ref[1] * max_ref[0:H, 0:W]
    for t in range(1, KS_SPAT * KS_SPAT):
        di, dj = t // KS_SPAT, t % KS_SPAT
        acc_a = acc_a + wsp_ref[2 * t] * avg_ref[di:di + H, dj:dj + W]
        acc_m = acc_m + wsp_ref[2 * t + 1] * max_ref[di:di + H, dj:dj + W]
    sa_ref[0] = acc_a + acc_m                           # (H, W), lane-dense


# ----------------------- kernel B: per-pixel application ---------------------
def apply_kernel(x_ref, ca2_ref, sag_ref, dog2_ref, o_ref, xpad_ref):
    """out = x + x*ca2*sa_gate + depthwise5x5(x, dog2).  All scalar folds
    ((1-g)*alpha into dog2, gamma*g into ca2, BN+sigmoid into sa_gate) were
    done once in the wrapper glue."""
    _, H, W, _ = x_ref.shape

    # Re-pad the block into VMEM scratch (no HBM pad pass in the wrapper).
    xpad_ref[...] = jnp.zeros_like(xpad_ref)
    xpad_ref[PAD_I:PAD_I + H, PAD_I:PAD_I + W, :] = x_ref[0].astype(jnp.float32)

    # LateralInhibition: depthwise 5x5 DoG conv; taps read straight from the
    # scratch ref (vlds hidden under the VALU-bound FMA stream).
    conv = dog2_ref[0] * xpad_ref[0:H, 0:W, :]
    for t in range(1, KS_INHIB * KS_INHIB):
        di, dj = t // KS_INHIB, t % KS_INHIB
        conv = conv + dog2_ref[t] * xpad_ref[di:di + H, dj:dj + W, :]

    x = x_ref[0].astype(jnp.float32)                    # (H, W, CB)
    refined = x * ca2_ref[0] * sag_ref[0]               # (1,CB), (H,W,1) bcast
    o_ref[0] = (x + refined + conv).astype(o_ref.dtype)


# ---------------------------------- wrapper ----------------------------------
def bio_inspired_block(x, params):
    """x: (N, C, H, W) float32 (NCHW, like the PyTorch module)."""
    N, C, H, W = x.shape
    sc = params["scalars"]
    alpha, gamma, mixing, b_sp, bn_w, bn_b, bn_eps = (sc[i] for i in range(7))

    # Channels-on-lanes layout; the two transposes are the only extra HBM
    # passes (padding is handled inside the kernels via VMEM scratch).
    x_nhwc = jnp.transpose(x, (0, 2, 3, 1))

    smem = pl.BlockSpec(memory_space=pltpu.MemorySpace.SMEM)

    # ---- kernel A: GAP + pre-BN spatial map, gridded over images -----------
    gap, sa_pre = pl.pallas_call(
        stats_kernel,
        out_shape=(jax.ShapeDtypeStruct((N, 1, C), jnp.float32),
                   jax.ShapeDtypeStruct((N, H, W), jnp.float32)),
        grid=(N,),
        in_specs=[
            pl.BlockSpec((1, H, W, C), lambda n: (n, 0, 0, 0)),
            smem,                                  # wsp: 98 scalar tap weights
        ],
        out_specs=(pl.BlockSpec((1, 1, C), lambda n: (n, 0, 0)),
                   pl.BlockSpec((1, H, W), lambda n: (n, 0, 0))),
        scratch_shapes=[
            pltpu.VMEM((H + 2 * PAD_S, W + 2 * PAD_S), jnp.float32),
            pltpu.VMEM((H + 2 * PAD_S, W + 2 * PAD_S), jnp.float32),
        ],
        compiler_params=pltpu.CompilerParams(dimension_semantics=("parallel",)),
    )(x_nhwc, params["wsp"])

    # ---- glue: batched channel-attention MLP, BN batch stats, scalar folds --
    h1 = jnp.maximum(gap[:, 0, :] @ params["w1t"] + params["b1"], 0.0)   # (N,Cr)
    ca = jax.nn.sigmoid(h1 @ params["w2t"] + params["b2"])               # (N,C)

    sa_b = sa_pre + b_sp                          # 7x7 conv bias
    mu = jnp.mean(sa_b)                           # BatchNorm2d(1) training mode
    var = jnp.mean(jnp.square(sa_b - mu))         # biased var, as in torch BN
    sa_gate = jax.nn.sigmoid((sa_b - mu) * jax.lax.rsqrt(var + bn_eps) * bn_w
                             + bn_b)[..., None].astype(jnp.float32)     # (N,H,W,1)

    g = jax.nn.sigmoid(mixing)
    ca2 = ((gamma * g) * ca).reshape(N, 1, C).astype(jnp.float32)        # (N,1,C)
    dog2 = ((1.0 - g) * alpha * params["dog"]).astype(jnp.float32)       # (25,)

    # ---- kernel B: per-pixel apply, gridded over (batch, channel blocks) ---
    CB = C if C <= 128 else 128
    out_nhwc = pl.pallas_call(
        apply_kernel,
        out_shape=jax.ShapeDtypeStruct((N, H, W, C), x.dtype),
        grid=(N, pl.cdiv(C, CB)),
        in_specs=[
            pl.BlockSpec((1, H, W, CB), lambda n, c: (n, 0, 0, c)),
            pl.BlockSpec((1, 1, CB), lambda n, c: (n, 0, c)),
            pl.BlockSpec((1, H, W, 1), lambda n, c: (n, 0, 0, 0)),
            smem,                                  # dog2: 25 scalar tap weights
        ],
        out_specs=pl.BlockSpec((1, H, W, CB), lambda n, c: (n, 0, 0, c)),
        scratch_shapes=[
            pltpu.VMEM((H + 2 * PAD_I, W + 2 * PAD_I, CB), jnp.float32),
        ],
        compiler_params=pltpu.CompilerParams(
            dimension_semantics=("parallel", "parallel")),
    )(x_nhwc, ca2, sa_gate, dog2)

    return jnp.transpose(out_nhwc, (0, 3, 1, 2))  # back to NCHW


# ----------------------------- parameter set-up ------------------------------
def make_dog_kernel(ks=KS_INHIB, strength=INHIB_STRENGTH):
    cs, ss = ks / 6.0, ks / 3.0
    g = np.linspace(-(ks // 2), ks // 2, ks)
    xg, yg = np.meshgrid(g, g, indexing="ij")
    dist = xg ** 2 + yg ** 2
    center = np.exp(-dist / (2.0 * cs ** 2))
    surround = np.exp(-dist / (2.0 * ss ** 2))
    dog = center - strength * surround
    dog = dog / np.abs(dog).sum()
    return jnp.asarray(dog.reshape(-1), jnp.float32)   # (25,)


def make_params(C, key):
    Cr = C // REDUCTION
    k1, k2, k3, k4, k5, k6 = jax.random.split(key, 6)
    w1t = jax.random.normal(k1, (C, Cr), jnp.float32) * 0.2    # Conv2d(C,Cr,1) w^T
    b1 = jax.random.normal(k2, (1, Cr), jnp.float32) * 0.1
    w2t = jax.random.normal(k3, (Cr, C), jnp.float32) * 0.2    # Conv2d(Cr,C,1) w^T
    b2 = jax.random.normal(k4, (1, C), jnp.float32) * 0.1
    wsp = jax.random.normal(k5, (2, KS_SPAT, KS_SPAT), jnp.float32) * 0.05
    b_sp = jax.random.normal(k6, (), jnp.float32) * 0.05
    scalars = jnp.concatenate([
        jnp.array([1.0, 1.0, 0.5], jnp.float32),       # alpha, gamma, mixing
        b_sp.reshape(1),                               # spatial conv bias
        jnp.array([1.0, 0.0, 1e-5], jnp.float32),      # bn_weight, bn_bias, bn_eps
    ])
    return {
        "w1t": w1t, "b1": b1, "w2t": w2t, "b2": b2,
        "dog": make_dog_kernel(),
        # (98,): per-tap interleaved [avg_w, max_w] of the Conv2d(2,1,7) kernel
        "wsp": jnp.transpose(wsp, (1, 2, 0)).reshape(-1),
        "scalars": scalars,
    }


# ----------------------------- pure-JAX reference ----------------------------
def reference(x, p):
    N, C, H, W = x.shape
    xp = jnp.pad(x, ((0, 0), (0, 0), (PAD_S, PAD_S), (PAD_S, PAD_S)))
    sc = p["scalars"]
    alpha, gamma, mixing, b_sp, bn_w, bn_b, bn_eps = (sc[i] for i in range(7))

    conv = jnp.zeros_like(x)
    off = PAD_S - PAD_I
    for di in range(KS_INHIB):
        for dj in range(KS_INHIB):
            conv = conv + p["dog"][di * KS_INHIB + dj] * \
                xp[:, :, off + di:off + di + H, off + dj:off + dj + W]
    inhib_out = x + alpha * conv

    gap = jnp.mean(x, axis=(2, 3))
    h1 = jnp.maximum(gap @ p["w1t"] + p["b1"], 0.0)
    ca = jax.nn.sigmoid(h1 @ p["w2t"] + p["b2"])
    feature_refined = x * ca[:, :, None, None]

    avg_p = jnp.mean(xp, axis=1)
    max_p = jnp.max(xp, axis=1)
    sa = jnp.zeros((N, H, W), jnp.float32) + b_sp
    for di in range(KS_SPAT):
        for dj in range(KS_SPAT):
            t = di * KS_SPAT + dj
            sa = sa + p["wsp"][2 * t] * avg_p[:, di:di + H, dj:dj + W]
            sa = sa + p["wsp"][2 * t + 1] * max_p[:, di:di + H, dj:dj + W]
    mu = jnp.mean(sa)
    var = jnp.mean((sa - mu) ** 2)
    sa = jax.nn.sigmoid((sa - mu) * jax.lax.rsqrt(var + bn_eps) * bn_w + bn_b)[:, None]

    attn_out = x + gamma * (feature_refined * sa)
    g = jax.nn.sigmoid(mixing)
    return g * attn_out + (1.0 - g) * inhib_out


# ------------------------------------ main ------------------------------------
if __name__ == "__main__":
    N, C, H, W = 2, 16, 16, 16
    key = jax.random.PRNGKey(0)
    k_x, k_p = jax.random.split(key)
    x = jax.random.normal(k_x, (N, C, H, W), jnp.float32)
    params = make_params(C, k_p)

    fwd = jax.jit(bio_inspired_block)
    out = jax.block_until_ready(fwd(x, params))

    ref = jax.block_until_ready(reference(x, params))
    np.testing.assert_allclose(np.asarray(out), np.asarray(ref), rtol=1e-3, atol=1e-3)

    print("KERNEL_OK")
</pallas_src>

<mosaic_0001>
module attributes {stable_mosaic.version = 11 : i64} {
  func.func @stats_kernel(%arg0: i32, %arg1: memref<1x16x16x16xf32, #tpu.memory_space<vmem>>, %arg2: memref<98xf32, #tpu.memory_space<smem>>, %arg3: memref<1x1x16xf32, #tpu.memory_space<vmem>>, %arg4: memref<1x16x16xf32, #tpu.memory_space<vmem>>, %arg5: memref<22x22xf32, #tpu.memory_space<vmem>>, %arg6: memref<22x22xf32, #tpu.memory_space<vmem>>) attributes {dimension_semantics = [#tpu.dimension_semantics<parallel>], iteration_bounds = array<i64: 2>, scalar_prefetch = 0 : i64, scratch_operands = 2 : i64, tpu.core_type = #tpu.core_type<tc>, window_params = [{transform_indices = @transform_0, window_bounds = array<i64: 1, 16, 16, 16>}, {transform_indices = @transform_1, window_bounds = array<i64: 98>}, {transform_indices = @transform_2, window_bounds = array<i64: 1, 1, 16>}, {transform_indices = @transform_3, window_bounds = array<i64: 1, 16, 16>}]} {
    %c0 = arith.constant 0 : index
    %c0_0 = arith.constant 0 : index
    %c0_1 = arith.constant 0 : index
    %c0_2 = arith.constant 0 : index
    %0 = vector.load %arg1[%c0, %c0_0, %c0_1, %c0_2] : memref<1x16x16x16xf32, #tpu.memory_space<vmem>>, vector<1x16x16x16xf32>
    %1 = vector.shape_cast %0 : vector<1x16x16x16xf32> to vector<16x16x16xf32>
    %cst = arith.constant dense<0.000000e+00> : vector<16xf32>
    %2 = vector.multi_reduction <add>, %1, %cst [0, 1] : vector<16x16x16xf32> to vector<16xf32>
    %cst_3 = arith.constant 3.906250e-03 : f32
    %3 = vector.broadcast %cst_3 : f32 to vector<16xf32>
    %4 = arith.mulf %2, %3 : vector<16xf32>
    %5 = vector.shape_cast %4 : vector<16xf32> to vector<1x16xf32>
    %c0_4 = arith.constant 0 : index
    %c0_5 = arith.constant 0 : index
    %c0_6 = arith.constant 0 : index
    %6 = vector.load %arg3[%c0_4, %c0_5, %c0_6] : memref<1x1x16xf32, #tpu.memory_space<vmem>>, vector<1x1x16xf32>
    %7 = vector.shape_cast %6 : vector<1x1x16xf32> to vector<1x16xf32>
    %8 = vector.shape_cast %5 : vector<1x16xf32> to vector<1x1x16xf32>
    tpu.vector_store %arg3[%c0_4, %c0_5, %c0_6], %8 {strides = array<i32>} : memref<1x1x16xf32, #tpu.memory_space<vmem>>, vector<1x1x16xf32>,
    %cst_7 = arith.constant 0.000000e+00 : f32
    %9 = vector.broadcast %cst_7 : f32 to vector<22x22xf32>
    %c0_8 = arith.constant 0 : index
    %c0_9 = arith.constant 0 : index
    %10 = vector.load %arg5[%c0_8, %c0_9] : memref<22x22xf32, #tpu.memory_space<vmem>>, vector<22x22xf32>
    tpu.vector_store %arg5[%c0_8, %c0_9], %9 {strides = array<i32>} : memref<22x22xf32, #tpu.memory_space<vmem>>, vector<22x22xf32>,
    %cst_10 = arith.constant 0.000000e+00 : f32
    %11 = vector.broadcast %cst_10 : f32 to vector<22x22xf32>
    %c0_11 = arith.constant 0 : index
    %c0_12 = arith.constant 0 : index
    %12 = vector.load %arg6[%c0_11, %c0_12] : memref<22x22xf32, #tpu.memory_space<vmem>>, vector<22x22xf32>
    tpu.vector_store %arg6[%c0_11, %c0_12], %11 {strides = array<i32>} : memref<22x22xf32, #tpu.memory_space<vmem>>, vector<22x22xf32>,
    %cst_13 = arith.constant dense<0.000000e+00> : vector<16x16xf32>
    %13 = vector.multi_reduction <add>, %1, %cst_13 [2] : vector<16x16x16xf32> to vector<16x16xf32>
    %cst_14 = arith.constant 1.600000e+01 : f32
    %14 = vector.broadcast %cst_14 : f32 to vector<16x16xf32>
    %15 = arith.divf %13, %14 : vector<16x16xf32>
    %c3 = arith.constant 3 : index
    %c3_15 = arith.constant 3 : index
    %16 = vector.load %arg5[%c3, %c3_15] : memref<22x22xf32, #tpu.memory_space<vmem>>, vector<16x16xf32>
    tpu.vector_store %arg5[%c3, %c3_15], %15 {strides = array<i32>} : memref<22x22xf32, #tpu.memory_space<vmem>>, vector<16x16xf32>,
    %cst_16 = arith.constant dense<0xFF800000> : vector<16x16xf32>
    %17 = vector.multi_reduction <maximumf>, %1, %cst_16 [2] : vector<16x16x16xf32> to vector<16x16xf32>
    %c3_17 = arith.constant 3 : index
    %c3_18 = arith.constant 3 : index
    %18 = vector.load %arg6[%c3_17, %c3_18] : memref<22x22xf32, #tpu.memory_space<vmem>>, vector<16x16xf32>
    tpu.vector_store %arg6[%c3_17, %c3_18], %17 {strides = array<i32>} : memref<22x22xf32, #tpu.memory_space<vmem>>, vector<16x16xf32>,
    %c0_19 = arith.constant 0 : index
    %19 = memref.load %arg2[%c0_19] : memref<98xf32, #tpu.memory_space<smem>>
    %c0_20 = arith.constant 0 : index
    %c0_21 = arith.constant 0 : index
    %20 = vector.load %arg5[%c0_20, %c0_21] : memref<22x22xf32, #tpu.memory_space<vmem>>, vector<16x16xf32>
    %21 = vector.broadcast %19 : f32 to vector<16x16xf32>
    %22 = arith.mulf %21, %20 : vector<16x16xf32>
    %c1 = arith.constant 1 : index
    %23 = memref.load %arg2[%c1] : memref<98xf32, #tpu.memory_space<smem>>
    %c0_22 = arith.constant 0 : index
    %c0_23 = arith.constant 0 : index
    %24 = vector.load %arg6[%c0_22, %c0_23] : memref<22x22xf32, #tpu.memory_space<vmem>>, vector<16x16xf32>
    %25 = vector.broadcast %23 : f32 to vector<16x16xf32>
    %26 = arith.mulf %25, %24 : vector<16x16xf32>
    %c2 = arith.constant 2 : index
    %27 = memref.load %arg2[%c2] : memref<98xf32, #tpu.memory_space<smem>>
    %c0_24 = arith.constant 0 : index
    %c1_25 = arith.constant 1 : index
    %28 = vector.load %arg5[%c0_24, %c1_25] : memref<22x22xf32, #tpu.memory_space<vmem>>, vector<16x16xf32>
    %29 = vector.broadcast %27 : f32 to vector<16x16xf32>
    %30 = arith.mulf %29, %28 : vector<16x16xf32>
    %31 = arith.addf %22, %30 : vector<16x16xf32>
    %c3_26 = arith.constant 3 : index
    %32 = memref.load %arg2[%c3_26] : memref<98xf32, #tpu.memory_space<smem>>
    %c0_27 = arith.constant 0 : index
    %c1_28 = arith.constant 1 : index
    %33 = vector.load %arg6[%c0_27, %c1_28] : memref<22x22xf32, #tpu.memory_space<vmem>>, vector<16x16xf32>
    %34 = vector.broadcast %32 : f32 to vector<16x16xf32>
    %35 = arith.mulf %34, %33 : vector<16x16xf32>
    %36 = arith.addf %26, %35 : vector<16x16xf32>
    %c4 = arith.constant 4 : index
    %37 = memref.load %arg2[%c4] : memref<98xf32, #tpu.memory_space<smem>>
    %c0_29 = arith.constant 0 : index
    %c2_30 = arith.constant 2 : index
    %38 = vector.load %arg5[%c0_29, %c2_30] : memref<22x22xf32, #tpu.memory_space<vmem>>, vector<16x16xf32>
    %39 = vector.broadcast %37 : f32 to vector<16x16xf32>
    %40 = arith.mulf %39, %38 : vector<16x16xf32>
    %41 = arith.addf %31, %40 : vector<16x16xf32>
    %c5 = arith.constant 5 : index
    %42 = memref.load %arg2[%c5] : memref<98xf32, #tpu.memory_space<smem>>
    %c0_31 = arith.constant 0 : index
    %c2_32 = arith.constant 2 : index
    %43 = vector.load %arg6[%c0_31, %c2_32] : memref<22x22xf32, #tpu.memory_space<vmem>>, vector<16x16xf32>
    %44 = vector.broadcast %42 : f32 to vector<16x16xf32>
    %45 = arith.mulf %44, %43 : vector<16x16xf32>
    %46 = arith.addf %36, %45 : vector<16x16xf32>
    %c6 = arith.constant 6 : index
    %47 = memref.load %arg2[%c6] : memref<98xf32, #tpu.memory_space<smem>>
    %c0_33 = arith.constant 0 : index
    %c3_34 = arith.constant 3 : index
    %48 = vector.load %arg5[%c0_33, %c3_34] : memref<22x22xf32, #tpu.memory_space<vmem>>, vector<16x16xf32>
    %49 = vector.broadcast %47 : f32 to vector<16x16xf32>
    %50 = arith.mulf %49, %48 : vector<16x16xf32>
    %51 = arith.addf %41, %50 : vector<16x16xf32>
    %c7 = arith.constant 7 : index
    %52 = memref.load %arg2[%c7] : memref<98xf32, #tpu.memory_space<smem>>
    %c0_35 = arith.constant 0 : index
    %c3_36 = arith.constant 3 : index
    %53 = vector.load %arg6[%c0_35, %c3_36] : memref<22x22xf32, #tpu.memory_space<vmem>>, vector<16x16xf32>
    %54 = vector.broadcast %52 : f32 to vector<16x16xf32>
    %55 = arith.mulf %54, %53 : vector<16x16xf32>
    %56 = arith.addf %46, %55 : vector<16x16xf32>
    %c8 = arith.constant 8 : index
    %57 = memref.load %arg2[%c8] : memref<98xf32, #tpu.memory_space<smem>>
    %c0_37 = arith.constant 0 : index
    %c4_38 = arith.constant 4 : index
    %58 = vector.load %arg5[%c0_37, %c4_38] : memref<22x22xf32, #tpu.memory_space<vmem>>, vector<16x16xf32>
    %59 = vector.broadcast %57 : f32 to vector<16x16xf32>
    %60 = arith.mulf %59, %58 : vector<16x16xf32>
    %61 = arith.addf %51, %60 : vector<16x16xf32>
    %c9 = arith.constant 9 : index
    %62 = memref.load %arg2[%c9] : memref<98xf32, #tpu.memory_space<smem>>
    %c0_39 = arith.constant 0 : index
    %c4_40 = arith.constant 4 : index
    %63 = vector.load %arg6[%c0_39, %c4_40] : memref<22x22xf32, #tpu.memory_space<vmem>>, vector<16x16xf32>
    %64 = vector.broadcast %62 : f32 to vector<16x16xf32>
    %65 = arith.mulf %64, %63 : vector<16x16xf32>
    %66 = arith.addf %56, %65 : vector<16x16xf32>
    %c10 = arith.constant 10 : index
    %67 = memref.load %arg2[%c10] : memref<98xf32, #tpu.memory_space<smem>>
    %c0_41 = arith.constant 0 : index
    %c5_42 = arith.constant 5 : index
    %68 = vector.load %arg5[%c0_41, %c5_42] : memref<22x22xf32, #tpu.memory_space<vmem>>, vector<16x16xf32>
    %69 = vector.broadcast %67 : f32 to vector<16x16xf32>
    %70 = arith.mulf %69, %68 : vector<16x16xf32>
    %71 = arith.addf %61, %70 : vector<16x16xf32>
    %c11 = arith.constant 11 : index
    %72 = memref.load %arg2[%c11] : memref<98xf32, #tpu.memory_space<smem>>
    %c0_43 = arith.constant 0 : index
    %c5_44 = arith.constant 5 : index
    %73 = vector.load %arg6[%c0_43, %c5_44] : memref<22x22xf32, #tpu.memory_space<vmem>>, vector<16x16xf32>
    %74 = vector.broadcast %72 : f32 to vector<16x16xf32>
    %75 = arith.mulf %74, %73 : vector<16x16xf32>
    %76 = arith.addf %66, %75 : vector<16x16xf32>
    %c12 = arith.constant 12 : index
    %77 = memref.load %arg2[%c12] : memref<98xf32, #tpu.memory_space<smem>>
    %c0_45 = arith.constant 0 : index
    %c6_46 = arith.constant 6 : index
    %78 = vector.load %arg5[%c0_45, %c6_46] : memref<22x22xf32, #tpu.memory_space<vmem>>, vector<16x16xf32>
    %79 = vector.broadcast %77 : f32 to vector<16x16xf32>
    %80 = arith.mulf %79, %78 : vector<16x16xf32>
    %81 = arith.addf %71, %80 : vector<16x16xf32>
    %c13 = arith.constant 13 : index
    %82 = memref.load %arg2[%c13] : memref<98xf32, #tpu.memory_space<smem>>
    %c0_47 = arith.constant 0 : index
    %c6_48 = arith.constant 6 : index
    %83 = vector.load %arg6[%c0_47, %c6_48] : memref<22x22xf32, #tpu.memory_space<vmem>>, vector<16x16xf32>
    %84 = vector.broadcast %82 : f32 to vector<16x16xf32>
    %85 = arith.mulf %84, %83 : vector<16x16xf32>
    %86 = arith.addf %76, %85 : vector<16x16xf32>
    %c14 = arith.constant 14 : index
    %87 = memref.load %arg2[%c14] : memref<98xf32, #tpu.memory_space<smem>>
    %c1_49 = arith.constant 1 : index
    %c0_50 = arith.constant 0 : index
    %88 = vector.load %arg5[%c1_49, %c0_50] : memref<22x22xf32, #tpu.memory_space<vmem>>, vector<16x16xf32>
    %89 = vector.broadcast %87 : f32 to vector<16x16xf32>
    %90 = arith.mulf %89, %88 : vector<16x16xf32>
    %91 = arith.addf %81, %90 : vector<16x16xf32>
    %c15 = arith.constant 15 : index
    %92 = memref.load %arg2[%c15] : memref<98xf32, #tpu.memory_space<smem>>
    %c1_51 = arith.constant 1 : index
    %c0_52 = arith.constant 0 : index
    %93 = vector.load %arg6[%c1_51, %c0_52] : memref<22x22xf32, #tpu.memory_space<vmem>>, vector<16x16xf32>
    %94 = vector.broadcast %92 : f32 to vector<16x16xf32>
    %95 = arith.mulf %94, %93 : vector<16x16xf32>
    %96 = arith.addf %86, %95 : vector<16x16xf32>
    %c16 = arith.constant 16 : index
    %97 = memref.load %arg2[%c16] : memref<98xf32, #tpu.memory_space<smem>>
    %c1_53 = arith.constant 1 : index
    %c1_54 = arith.constant 1 : index
    %98 = vector.load %arg5[%c1_53, %c1_54] : memref<22x22xf32, #tpu.memory_space<vmem>>, vector<16x16xf32>
    %99 = vector.broadcast %97 : f32 to vector<16x16xf32>
    %100 = arith.mulf %99, %98 : vector<16x16xf32>
    %101 = arith.addf %91, %100 : vector<16x16xf32>
    %c17 = arith.constant 17 : index
    %102 = memref.load %arg2[%c17] : memref<98xf32, #tpu.memory_space<smem>>
    %c1_55 = arith.constant 1 : index
    %c1_56 = arith.constant 1 : index
    %103 = vector.load %arg6[%c1_55, %c1_56] : memref<22x22xf32, #tpu.memory_space<vmem>>, vector<16x16xf32>
    %104 = vector.broadcast %102 : f32 to vector<16x16xf32>
    %105 = arith.mulf %104, %103 : vector<16x16xf32>
    %106 = arith.addf %96, %105 : vector<16x16xf32>
    %c18 = arith.constant 18 : index
    %107 = memref.load %arg2[%c18] : memref<98xf32, #tpu.memory_space<smem>>
    %c1_57 = arith.constant 1 : index
    %c2_58 = arith.constant 2 : index
    %108 = vector.load %arg5[%c1_57, %c2_58] : memref<22x22xf32, #tpu.memory_space<vmem>>, vector<16x16xf32>
    %109 = vector.broadcast %107 : f32 to vector<16x16xf32>
    %110 = arith.mulf %109, %108 : vector<16x16xf32>
    %111 = arith.addf %101, %110 : vector<16x16xf32>
    %c19 = arith.constant 19 : index
    %112 = memref.load %arg2[%c19] : memref<98xf32, #tpu.memory_space<smem>>
    %c1_59 = arith.constant 1 : index
    %c2_60 = arith.constant 2 : index
    %113 = vector.load %arg6[%c1_59, %c2_60] : memref<22x22xf32, #tpu.memory_space<vmem>>, vector<16x16xf32>
    %114 = vector.broadcast %112 : f32 to vector<16x16xf32>
    %115 = arith.mulf %114, %113 : vector<16x16xf32>
    %116 = arith.addf %106, %115 : vector<16x16xf32>
    %c20 = arith.constant 20 : index
    %117 = memref.load %arg2[%c20] : memref<98xf32, #tpu.memory_space<smem>>
    %c1_61 = arith.constant 1 : index
    %c3_62 = arith.constant 3 : index
    %118 = vector.load %arg5[%c1_61, %c3_62] : memref<22x22xf32, #tpu.memory_space<vmem>>, vector<16x16xf32>
    %119 = vector.broadcast %117 : f32 to vector<16x16xf32>
    %120 = arith.mulf %119, %118 : vector<16x16xf32>
    %121 = arith.addf %111, %120 : vector<16x16xf32>
    %c21 = arith.constant 21 : index
    %122 = memref.load %arg2[%c21] : memref<98xf32, #tpu.memory_space<smem>>
    %c1_63 = arith.constant 1 : index
    %c3_64 = arith.constant 3 : index
    %123 = vector.load %arg6[%c1_63, %c3_64] : memref<22x22xf32, #tpu.memory_space<vmem>>, vector<16x16xf32>
    %124 = vector.broadcast %122 : f32 to vector<16x16xf32>
    %125 = arith.mulf %124, %123 : vector<16x16xf32>
    %126 = arith.addf %116, %125 : vector<16x16xf32>
    %c22 = arith.constant 22 : index
    %127 = memref.load %arg2[%c22] : memref<98xf32, #tpu.memory_space<smem>>
    %c1_65 = arith.constant 1 : index
    %c4_66 = arith.constant 4 : index
    %128 = vector.load %arg5[%c1_65, %c4_66] : memref<22x22xf32, #tpu.memory_space<vmem>>, vector<16x16xf32>
    %129 = vector.broadcast %127 : f32 to vector<16x16xf32>
    %130 = arith.mulf %129, %128 : vector<16x16xf32>
    %131 = arith.addf %121, %130 : vector<16x16xf32>
    %c23 = arith.constant 23 : index
    %132 = memref.load %arg2[%c23] : memref<98xf32, #tpu.memory_space<smem>>
    %c1_67 = arith.constant 1 : index
    %c4_68 = arith.constant 4 : index
    %133 = vector.load %arg6[%c1_67, %c4_68] : memref<22x22xf32, #tpu.memory_space<vmem>>, vector<16x16xf32>
    %134 = vector.broadcast %132 : f32 to vector<16x16xf32>
    %135 = arith.mulf %134, %133 : vector<16x16xf32>
    %136 = arith.addf %126, %135 : vector<16x16xf32>
    %c24 = arith.constant 24 : index
    %137 = memref.load %arg2[%c24] : memref<98xf32, #tpu.memory_space<smem>>
    %c1_69 = arith.constant 1 : index
    %c5_70 = arith.constant 5 : index
    %138 = vector.load %arg5[%c1_69, %c5_70] : memref<22x22xf32, #tpu.memory_space<vmem>>, vector<16x16xf32>
    %139 = vector.broadcast %137 : f32 to vector<16x16xf32>
    %140 = arith.mulf %139, %138 : vector<16x16xf32>
    %141 = arith.addf %131, %140 : vector<16x16xf32>
    %c25 = arith.constant 25 : index
    %142 = memref.load %arg2[%c25] : memref<98xf32, #tpu.memory_space<smem>>
    %c1_71 = arith.constant 1 : index
    %c5_72 = arith.constant 5 : index
    %143 = vector.load %arg6[%c1_71, %c5_72] : memref<22x22xf32, #tpu.memory_space<vmem>>, vector<16x16xf32>
    %144 = vector.broadcast %142 : f32 to vector<16x16xf32>
    %145 = arith.mulf %144, %143 : vector<16x16xf32>
    %146 = arith.addf %136, %145 : vector<16x16xf32>
    %c26 = arith.constant 26 : index
    %147 = memref.load %arg2[%c26] : memref<98xf32, #tpu.memory_space<smem>>
    %c1_73 = arith.constant 1 : index
    %c6_74 = arith.constant 6 : index
    %148 = vector.load %arg5[%c1_73, %c6_74] : memref<22x22xf32, #tpu.memory_space<vmem>>, vector<16x16xf32>
    %149 = vector.broadcast %147 : f32 to vector<16x16xf32>
    %150 = arith.mulf %149, %148 : vector<16x16xf32>
    %151 = arith.addf %141, %150 : vector<16x16xf32>
    %c27 = arith.constant 27 : index
    %152 = memref.load %arg2[%c27] : memref<98xf32, #tpu.memory_space<smem>>
    %c1_75 = arith.constant 1 : index
    %c6_76 = arith.constant 6 : index
    %153 = vector.load %arg6[%c1_75, %c6_76] : memref<22x22xf32, #tpu.memory_space<vmem>>, vector<16x16xf32>
    %154 = vector.broadcast %152 : f32 to vector<16x16xf32>
    %155 = arith.mulf %154, %153 : vector<16x16xf32>
    %156 = arith.addf %146, %155 : vector<16x16xf32>
    %c28 = arith.constant 28 : index
    %157 = memref.load %arg2[%c28] : memref<98xf32, #tpu.memory_space<smem>>
    %c2_77 = arith.constant 2 : index
    %c0_78 = arith.constant 0 : index
    %158 = vector.load %arg5[%c2_77, %c0_78] : memref<22x22xf32, #tpu.memory_space<vmem>>, vector<16x16xf32>
    %159 = vector.broadcast %157 : f32 to vector<16x16xf32>
    %160 = arith.mulf %159, %158 : vector<16x16xf32>
    %161 = arith.addf %151, %160 : vector<16x16xf32>
    %c29 = arith.constant 29 : index
    %162 = memref.load %arg2[%c29] : memref<98xf32, #tpu.memory_space<smem>>
    %c2_79 = arith.constant 2 : index
    %c0_80 = arith.constant 0 : index
    %163 = vector.load %arg6[%c2_79, %c0_80] : memref<22x22xf32, #tpu.memory_space<vmem>>, vector<16x16xf32>
    %164 = vector.broadcast %162 : f32 to vector<16x16xf32>
    %165 = arith.mulf %164, %163 : vector<16x16xf32>
    %166 = arith.addf %156, %165 : vector<16x16xf32>
    %c30 = arith.constant 30 : index
    %167 = memref.load %arg2[%c30] : memref<98xf32, #tpu.memory_space<smem>>
    %c2_81 = arith.constant 2 : index
    %c1_82 = arith.constant 1 : index
    %168 = vector.load %arg5[%c2_81, %c1_82] : memref<22x22xf32, #tpu.memory_space<vmem>>, vector<16x16xf32>
    %169 = vector.broadcast %167 : f32 to vector<16x16xf32>
    %170 = arith.mulf %169, %168 : vector<16x16xf32>
    %171 = arith.addf %161, %170 : vector<16x16xf32>
    %c31 = arith.constant 31 : index
    %172 = memref.load %arg2[%c31] : memref<98xf32, #tpu.memory_space<smem>>
    %c2_83 = arith.constant 2 : index
    %c1_84 = arith.constant 1 : index
    %173 = vector.load %arg6[%c2_83, %c1_84] : memref<22x22xf32, #tpu.memory_space<vmem>>, vector<16x16xf32>
    %174 = vector.broadcast %172 : f32 to vector<16x16xf32>
    %175 = arith.mulf %174, %173 : vector<16x16xf32>
    %176 = arith.addf %166, %175 : vector<16x16xf32>
    %c32 = arith.constant 32 : index
    %177 = memref.load %arg2[%c32] : memref<98xf32, #tpu.memory_space<smem>>
    %c2_85 = arith.constant 2 : index
    %c2_86 = arith.constant 2 : index
    %178 = vector.load %arg5[%c2_85, %c2_86] : memref<22x22xf32, #tpu.memory_space<vmem>>, vector<16x16xf32>
    %179 = vector.broadcast %177 : f32 to vector<16x16xf32>
    %180 = arith.mulf %179, %178 : vector<16x16xf32>
    %181 = arith.addf %171, %180 : vector<16x16xf32>
    %c33 = arith.constant 33 : index
    %182 = memref.load %arg2[%c33] : memref<98xf32, #tpu.memory_space<smem>>
    %c2_87 = arith.constant 2 : index
    %c2_88 = arith.constant 2 : index
    %183 = vector.load %arg6[%c2_87, %c2_88] : memref<22x22xf32, #tpu.memory_space<vmem>>, vector<16x16xf32>
    %184 = vector.broadcast %182 : f32 to vector<16x16xf32>
    %185 = arith.mulf %184, %183 : vector<16x16xf32>
    %186 = arith.addf %176, %185 : vector<16x16xf32>
    %c34 = arith.constant 34 : index
    %187 = memref.load %arg2[%c34] : memref<98xf32, #tpu.memory_space<smem>>
    %c2_89 = arith.constant 2 : index
    %c3_90 = arith.constant 3 : index
    %188 = vector.load %arg5[%c2_89, %c3_90] : memref<22x22xf32, #tpu.memory_space<vmem>>, vector<16x16xf32>
    %189 = vector.broadcast %187 : f32 to vector<16x16xf32>
    %190 = arith.mulf %189, %188 : vector<16x16xf32>
    %191 = arith.addf %181, %190 : vector<16x16xf32>
    %c35 = arith.constant 35 : index
    %192 = memref.load %arg2[%c35] : memref<98xf32, #tpu.memory_space<smem>>
    %c2_91 = arith.constant 2 : index
    %c3_92 = arith.constant 3 : index
    %193 = vector.load %arg6[%c2_91, %c3_92] : memref<22x22xf32, #tpu.memory_space<vmem>>, vector<16x16xf32>
    %194 = vector.broadcast %192 : f32 to vector<16x16xf32>
    %195 = arith.mulf %194, %193 : vector<16x16xf32>
    %196 = arith.addf %186, %195 : vector<16x16xf32>
    %c36 = arith.constant 36 : index
    %197 = memref.load %arg2[%c36] : memref<98xf32, #tpu.memory_space<smem>>
    %c2_93 = arith.constant 2 : index
    %c4_94 = arith.constant 4 : index
    %198 = vector.load %arg5[%c2_93, %c4_94] : memref<22x22xf32, #tpu.memory_space<vmem>>, vector<16x16xf32>
    %199 = vector.broadcast %197 : f32 to vector<16x16xf32>
    %200 = arith.mulf %199, %198 : vector<16x16xf32>
    %201 = arith.addf %191, %200 : vector<16x16xf32>
    %c37 = arith.constant 37 : index
    %202 = memref.load %arg2[%c37] : memref<98xf32, #tpu.memory_space<smem>>
    %c2_95 = arith.constant 2 : index
    %c4_96 = arith.constant 4 : index
    %203 = vector.load %arg6[%c2_95, %c4_96] : memref<22x22xf32, #tpu.memory_space<vmem>>, vector<16x16xf32>
    %204 = vector.broadcast %202 : f32 to vector<16x16xf32>
    %205 = arith.mulf %204, %203 : vector<16x16xf32>
    %206 = arith.addf %196, %205 : vector<16x16xf32>
    %c38 = arith.constant 38 : index
    %207 = memref.load %arg2[%c38] : memref<98xf32, #tpu.memory_space<smem>>
    %c2_97 = arith.constant 2 : index
    %c5_98 = arith.constant 5 : index
    %208 = vector.load %arg5[%c2_97, %c5_98] : memref<22x22xf32, #tpu.memory_space<vmem>>, vector<16x16xf32>
    %209 = vector.broadcast %207 : f32 to vector<16x16xf32>
    %210 = arith.mulf %209, %208 : vector<16x16xf32>
    %211 = arith.addf %201, %210 : vector<16x16xf32>
    %c39 = arith.constant 39 : index
    %212 = memref.load %arg2[%c39] : memref<98xf32, #tpu.memory_space<smem>>
    %c2_99 = arith.constant 2 : index
    %c5_100 = arith.constant 5 : index
    %213 = vector.load %arg6[%c2_99, %c5_100] : memref<22x22xf32, #tpu.memory_space<vmem>>, vector<16x16xf32>
    %214 = vector.broadcast %212 : f32 to vector<16x16xf32>
    %215 = arith.mulf %214, %213 : vector<16x16xf32>
    %216 = arith.addf %206, %215 : vector<16x16xf32>
    %c40 = arith.constant 40 : index
    %217 = memref.load %arg2[%c40] : memref<98xf32, #tpu.memory_space<smem>>
    %c2_101 = arith.constant 2 : index
    %c6_102 = arith.constant 6 : index
    %218 = vector.load %arg5[%c2_101, %c6_102] : memref<22x22xf32, #tpu.memory_space<vmem>>, vector<16x16xf32>
    %219 = vector.broadcast %217 : f32 to vector<16x16xf32>
    %220 = arith.mulf %219, %218 : vector<16x16xf32>
    %221 = arith.addf %211, %220 : vector<16x16xf32>
    %c41 = arith.constant 41 : index
    %222 = memref.load %arg2[%c41] : memref<98xf32, #tpu.memory_space<smem>>
    %c2_103 = arith.constant 2 : index
    %c6_104 = arith.constant 6 : index
    %223 = vector.load %arg6[%c2_103, %c6_104] : memref<22x22xf32, #tpu.memory_space<vmem>>, vector<16x16xf32>
    %224 = vector.broadcast %222 : f32 to vector<16x16xf32>
    %225 = arith.mulf %224, %223 : vector<16x16xf32>
    %226 = arith.addf %216, %225 : vector<16x16xf32>
    %c42 = arith.constant 42 : index
    %227 = memref.load %arg2[%c42] : memref<98xf32, #tpu.memory_space<smem>>
    %c3_105 = arith.constant 3 : index
    %c0_106 = arith.constant 0 : index
    %228 = vector.load %arg5[%c3_105, %c0_106] : memref<22x22xf32, #tpu.memory_space<vmem>>, vector<16x16xf32>
    %229 = vector.broadcast %227 : f32 to vector<16x16xf32>
    %230 = arith.mulf %229, %228 : vector<16x16xf32>
    %231 = arith.addf %221, %230 : vector<16x16xf32>
    %c43 = arith.constant 43 : index
    %232 = memref.load %arg2[%c43] : memref<98xf32, #tpu.memory_space<smem>>
    %c3_107 = arith.constant 3 : index
    %c0_108 = arith.constant 0 : index
    %233 = vector.load %arg6[%c3_107, %c0_108] : memref<22x22xf32, #tpu.memory_space<vmem>>, vector<16x16xf32>
    %234 = vector.broadcast %232 : f32 to vector<16x16xf32>
    %235 = arith.mulf %234, %233 : vector<16x16xf32>
    %236 = arith.addf %226, %235 : vector<16x16xf32>
    %c44 = arith.constant 44 : index
    %237 = memref.load %arg2[%c44] : memref<98xf32, #tpu.memory_space<smem>>
    %c3_109 = arith.constant 3 : index
    %c1_110 = arith.constant 1 : index
    %238 = vector.load %arg5[%c3_109, %c1_110] : memref<22x22xf32, #tpu.memory_space<vmem>>, vector<16x16xf32>
    %239 = vector.broadcast %237 : f32 to vector<16x16xf32>
    %240 = arith.mulf %239, %238 : vector<16x16xf32>
    %241 = arith.addf %231, %240 : vector<16x16xf32>
    %c45 = arith.constant 45 : index
    %242 = memref.load %arg2[%c45] : memref<98xf32, #tpu.memory_space<smem>>
    %c3_111 = arith.constant 3 : index
    %c1_112 = arith.constant 1 : index
    %243 = vector.load %arg6[%c3_111, %c1_112] : memref<22x22xf32, #tpu.memory_space<vmem>>, vector<16x16xf32>
    %244 = vector.broadcast %242 : f32 to vector<16x16xf32>
    %245 = arith.mulf %244, %243 : vector<16x16xf32>
    %246 = arith.addf %236, %245 : vector<16x16xf32>
    %c46 = arith.constant 46 : index
    %247 = memref.load %arg2[%c46] : memref<98xf32, #tpu.memory_space<smem>>
    %c3_113 = arith.constant 3 : index
    %c2_114 = arith.constant 2 : index
    %248 = vector.load %arg5[%c3_113, %c2_114] : memref<22x22xf32, #tpu.memory_space<vmem>>, vector<16x16xf32>
    %249 = vector.broadcast %247 : f32 to vector<16x16xf32>
    %250 = arith.mulf %249, %248 : vector<16x16xf32>
    %251 = arith.addf %241, %250 : vector<16x16xf32>
    %c47 = arith.constant 47 : index
    %252 = memref.load %arg2[%c47] : memref<98xf32, #tpu.memory_space<smem>>
    %c3_115 = arith.constant 3 : index
    %c2_116 = arith.constant 2 : index
    %253 = vector.load %arg6[%c3_115, %c2_116] : memref<22x22xf32, #tpu.memory_space<vmem>>, vector<16x16xf32>
    %254 = vector.broadcast %252 : f32 to vector<16x16xf32>
    %255 = arith.mulf %254, %253 : vector<16x16xf32>
    %256 = arith.addf %246, %255 : vector<16x16xf32>
    %c48 = arith.constant 48 : index
    %257 = memref.load %arg2[%c48] : memref<98xf32, #tpu.memory_space<smem>>
    %c3_117 = arith.constant 3 : index
    %c3_118 = arith.constant 3 : index
    %258 = vector.load %arg5[%c3_117, %c3_118] : memref<22x22xf32, #tpu.memory_space<vmem>>, vector<16x16xf32>
    %259 = vector.broadcast %257 : f32 to vector<16x16xf32>
    %260 = arith.mulf %259, %258 : vector<16x16xf32>
    %261 = arith.addf %251, %260 : vector<16x16xf32>
    %c49 = arith.constant 49 : index
    %262 = memref.load %arg2[%c49] : memref<98xf32, #tpu.memory_space<smem>>
    %c3_119 = arith.constant 3 : index
    %c3_120 = arith.constant 3 : index
    %263 = vector.load %arg6[%c3_119, %c3_120] : memref<22x22xf32, #tpu.memory_space<vmem>>, vector<16x16xf32>
    %264 = vector.broadcast %262 : f32 to vector<16x16xf32>
    %265 = arith.mulf %264, %263 : vector<16x16xf32>
    %266 = arith.addf %256, %265 : vector<16x16xf32>
    %c50 = arith.constant 50 : index
    %267 = memref.load %arg2[%c50] : memref<98xf32, #tpu.memory_space<smem>>
    %c3_121 = arith.constant 3 : index
    %c4_122 = arith.constant 4 : index
    %268 = vector.load %arg5[%c3_121, %c4_122] : memref<22x22xf32, #tpu.memory_space<vmem>>, vector<16x16xf32>
    %269 = vector.broadcast %267 : f32 to vector<16x16xf32>
    %270 = arith.mulf %269, %268 : vector<16x16xf32>
    %271 = arith.addf %261, %270 : vector<16x16xf32>
    %c51 = arith.constant 51 : index
    %272 = memref.load %arg2[%c51] : memref<98xf32, #tpu.memory_space<smem>>
    %c3_123 = arith.constant 3 : index
    %c4_124 = arith.constant 4 : index
    %273 = vector.load %arg6[%c3_123, %c4_124] : memref<22x22xf32, #tpu.memory_space<vmem>>, vector<16x16xf32>
    %274 = vector.broadcast %272 : f32 to vector<16x16xf32>
    %275 = arith.mulf %274, %273 : vector<16x16xf32>
    %276 = arith.addf %266, %275 : vector<16x16xf32>
    %c52 = arith.constant 52 : index
    %277 = memref.load %arg2[%c52] : memref<98xf32, #tpu.memory_space<smem>>
    %c3_125 = arith.constant 3 : index
    %c5_126 = arith.constant 5 : index
    %278 = vector.load %arg5[%c3_125, %c5_126] : memref<22x22xf32, #tpu.memory_space<vmem>>, vector<16x16xf32>
    %279 = vector.broadcast %277 : f32 to vector<16x16xf32>
    %280 = arith.mulf %279, %278 : vector<16x16xf32>
    %281 = arith.addf %271, %280 : vector<16x16xf32>
    %c53 = arith.constant 53 : index
    %282 = memref.load %arg2[%c53] : memref<98xf32, #tpu.memory_space<smem>>
    %c3_127 = arith.constant 3 : index
    %c5_128 = arith.constant 5 : index
    %283 = vector.load %arg6[%c3_127, %c5_128] : memref<22x22xf32, #tpu.memory_space<vmem>>, vector<16x16xf32>
    %284 = vector.broadcast %282 : f32 to vector<16x16xf32>
    %285 = arith.mulf %284, %283 : vector<16x16xf32>
    %286 = arith.addf %276, %285 : vector<16x16xf32>
    %c54 = arith.constant 54 : index
    %287 = memref.load %arg2[%c54] : memref<98xf32, #tpu.memory_space<smem>>
    %c3_129 = arith.constant 3 : index
    %c6_130 = arith.constant 6 : index
    %288 = vector.load %arg5[%c3_129, %c6_130] : memref<22x22xf32, #tpu.memory_space<vmem>>, vector<16x16xf32>
    %289 = vector.broadcast %287 : f32 to vector<16x16xf32>
    %290 = arith.mulf %289, %288 : vector<16x16xf32>
    %291 = arith.addf %281, %290 : vector<16x16xf32>
    %c55 = arith.constant 55 : index
    %292 = memref.load %arg2[%c55] : memref<98xf32, #tpu.memory_space<smem>>
    %c3_131 = arith.constant 3 : index
    %c6_132 = arith.constant 6 : index
    %293 = vector.load %arg6[%c3_131, %c6_132] : memref<22x22xf32, #tpu.memory_space<vmem>>, vector<16x16xf32>
    %294 = vector.broadcast %292 : f32 to vector<16x16xf32>
    %295 = arith.mulf %294, %293 : vector<16x16xf32>
    %296 = arith.addf %286, %295 : vector<16x16xf32>
    %c56 = arith.constant 56 : index
    %297 = memref.load %arg2[%c56] : memref<98xf32, #tpu.memory_space<smem>>
    %c4_133 = arith.constant 4 : index
    %c0_134 = arith.constant 0 : index
    %298 = vector.load %arg5[%c4_133, %c0_134] : memref<22x22xf32, #tpu.memory_space<vmem>>, vector<16x16xf32>
    %299 = vector.broadcast %297 : f32 to vector<16x16xf32>
    %300 = arith.mulf %299, %298 : vector<16x16xf32>
    %301 = arith.addf %291, %300 : vector<16x16xf32>
    %c57 = arith.constant 57 : index
    %302 = memref.load %arg2[%c57] : memref<98xf32, #tpu.memory_space<smem>>
    %c4_135 = arith.constant 4 : index
    %c0_136 = arith.constant 0 : index
    %303 = vector.load %arg6[%c4_135, %c0_136] : memref<22x22xf32, #tpu.memory_space<vmem>>, vector<16x16xf32>
    %304 = vector.broadcast %302 : f32 to vector<16x16xf32>
    %305 = arith.mulf %304, %303 : vector<16x16xf32>
    %306 = arith.addf %296, %305 : vector<16x16xf32>
    %c58 = arith.constant 58 : index
    %307 = memref.load %arg2[%c58] : memref<98xf32, #tpu.memory_space<smem>>
    %c4_137 = arith.constant 4 : index
    %c1_138 = arith.constant 1 : index
    %308 = vector.load %arg5[%c4_137, %c1_138] : memref<22x22xf32, #tpu.memory_space<vmem>>, vector<16x16xf32>
    %309 = vector.broadcast %307 : f32 to vector<16x16xf32>
    %310 = arith.mulf %309, %308 : vector<16x16xf32>
    %311 = arith.addf %301, %310 : vector<16x16xf32>
    %c59 = arith.constant 59 : index
    %312 = memref.load %arg2[%c59] : memref<98xf32, #tpu.memory_space<smem>>
    %c4_139 = arith.constant 4 : index
    %c1_140 = arith.constant 1 : index
    %313 = vector.load %arg6[%c4_139, %c1_140] : memref<22x22xf32, #tpu.memory_space<vmem>>, vector<16x16xf32>
    %314 = vector.broadcast %312 : f32 to vector<16x16xf32>
    %315 = arith.mulf %314, %313 : vector<16x16xf32>
    %316 = arith.addf %306, %315 : vector<16x16xf32>
    %c60 = arith.constant 60 : index
    %317 = memref.load %arg2[%c60] : memref<98xf32, #tpu.memory_space<smem>>
    %c4_141 = arith.constant 4 : index
    %c2_142 = arith.constant 2 : index
    %318 = vector.load %arg5[%c4_141, %c2_142] : memref<22x22xf32, #tpu.memory_space<vmem>>, vector<16x16xf32>
    %319 = vector.broadcast %317 : f32 to vector<16x16xf32>
    %320 = arith.mulf %319, %318 : vector<16x16xf32>
    %321 = arith.addf %311, %320 : vector<16x16xf32>
    %c61 = arith.constant 61 : index
    %322 = memref.load %arg2[%c61] : memref<98xf32, #tpu.memory_space<smem>>
    %c4_143 = arith.constant 4 : index
    %c2_144 = arith.constant 2 : index
    %323 = vector.load %arg6[%c4_143, %c2_144] : memref<22x22xf32, #tpu.memory_space<vmem>>, vector<16x16xf32>
    %324 = vector.broadcast %322 : f32 to vector<16x16xf32>
    %325 = arith.mulf %324, %323 : vector<16x16xf32>
    %326 = arith.addf %316, %325 : vector<16x16xf32>
    %c62 = arith.constant 62 : index
    %327 = memref.load %arg2[%c62] : memref<98xf32, #tpu.memory_space<smem>>
    %c4_145 = arith.constant 4 : index
    %c3_146 = arith.constant 3 : index
    %328 = vector.load %arg5[%c4_145, %c3_146] : memref<22x22xf32, #tpu.memory_space<vmem>>, vector<16x16xf32>
    %329 = vector.broadcast %327 : f32 to vector<16x16xf32>
    %330 = arith.mulf %329, %328 : vector<16x16xf32>
    %331 = arith.addf %321, %330 : vector<16x16xf32>
    %c63 = arith.constant 63 : index
    %332 = memref.load %arg2[%c63] : memref<98xf32, #tpu.memory_space<smem>>
    %c4_147 = arith.constant 4 : index
    %c3_148 = arith.constant 3 : index
    %333 = vector.load %arg6[%c4_147, %c3_148] : memref<22x22xf32, #tpu.memory_space<vmem>>, vector<16x16xf32>
    %334 = vector.broadcast %332 : f32 to vector<16x16xf32>
    %335 = arith.mulf %334, %333 : vector<16x16xf32>
    %336 = arith.addf %326, %335 : vector<16x16xf32>
    %c64 = arith.constant 64 : index
    %337 = memref.load %arg2[%c64] : memref<98xf32, #tpu.memory_space<smem>>
    %c4_149 = arith.constant 4 : index
    %c4_150 = arith.constant 4 : index
    %338 = vector.load %arg5[%c4_149, %c4_150] : memref<22x22xf32, #tpu.memory_space<vmem>>, vector<16x16xf32>
    %339 = vector.broadcast %337 : f32 to vector<16x16xf32>
    %340 = arith.mulf %339, %338 : vector<16x16xf32>
    %341 = arith.addf %331, %340 : vector<16x16xf32>
    %c65 = arith.constant 65 : index
    %342 = memref.load %arg2[%c65] : memref<98xf32, #tpu.memory_space<smem>>
    %c4_151 = arith.constant 4 : index
    %c4_152 = arith.constant 4 : index
    %343 = vector.load %arg6[%c4_151, %c4_152] : memref<22x22xf32, #tpu.memory_space<vmem>>, vector<16x16xf32>
    %344 = vector.broadcast %342 : f32 to vector<16x16xf32>
    %345 = arith.mulf %344, %343 : vector<16x16xf32>
    %346 = arith.addf %336, %345 : vector<16x16xf32>
    %c66 = arith.constant 66 : index
    %347 = memref.load %arg2[%c66] : memref<98xf32, #tpu.memory_space<smem>>
    %c4_153 = arith.constant 4 : index
    %c5_154 = arith.constant 5 : index
    %348 = vector.load %arg5[%c4_153, %c5_154] : memref<22x22xf32, #tpu.memory_space<vmem>>, vector<16x16xf32>
    %349 = vector.broadcast %347 : f32 to vector<16x16xf32>
    %350 = arith.mulf %349, %348 : vector<16x16xf32>
    %351 = arith.addf %341, %350 : vector<16x16xf32>
    %c67 = arith.constant 67 : index
    %352 = memref.load %arg2[%c67] : memref<98xf32, #tpu.memory_space<smem>>
    %c4_155 = arith.constant 4 : index
    %c5_156 = arith.constant 5 : index
    %353 = vector.load %arg6[%c4_155, %c5_156] : memref<22x22xf32, #tpu.memory_space<vmem>>, vector<16x16xf32>
    %354 = vector.broadcast %352 : f32 to vector<16x16xf32>
    %355 = arith.mulf %354, %353 : vector<16x16xf32>
    %356 = arith.addf %346, %355 : vector<16x16xf32>
    %c68 = arith.constant 68 : index
    %357 = memref.load %arg2[%c68] : memref<98xf32, #tpu.memory_space<smem>>
    %c4_157 = arith.constant 4 : index
    %c6_158 = arith.constant 6 : index
    %358 = vector.load %arg5[%c4_157, %c6_158] : memref<22x22xf32, #tpu.memory_space<vmem>>, vector<16x16xf32>
    %359 = vector.broadcast %357 : f32 to vector<16x16xf32>
    %360 = arith.mulf %359, %358 : vector<16x16xf32>
    %361 = arith.addf %351, %360 : vector<16x16xf32>
    %c69 = arith.constant 69 : index
    %362 = memref.load %arg2[%c69] : memref<98xf32, #tpu.memory_space<smem>>
    %c4_159 = arith.constant 4 : index
    %c6_160 = arith.constant 6 : index
    %363 = vector.load %arg6[%c4_159, %c6_160] : memref<22x22xf32, #tpu.memory_space<vmem>>, vector<16x16xf32>
    %364 = vector.broadcast %362 : f32 to vector<16x16xf32>
    %365 = arith.mulf %364, %363 : vector<16x16xf32>
    %366 = arith.addf %356, %365 : vector<16x16xf32>
    %c70 = arith.constant 70 : index
    %367 = memref.load %arg2[%c70] : memref<98xf32, #tpu.memory_space<smem>>
    %c5_161 = arith.constant 5 : index
    %c0_162 = arith.constant 0 : index
    %368 = vector.load %arg5[%c5_161, %c0_162] : memref<22x22xf32, #tpu.memory_space<vmem>>, vector<16x16xf32>
    %369 = vector.broadcast %367 : f32 to vector<16x16xf32>
    %370 = arith.mulf %369, %368 : vector<16x16xf32>
    %371 = arith.addf %361, %370 : vector<16x16xf32>
    %c71 = arith.constant 71 : index
    %372 = memref.load %arg2[%c71] : memref<98xf32, #tpu.memory_space<smem>>
    %c5_163 = arith.constant 5 : index
    %c0_164 = arith.constant 0 : index
    %373 = vector.load %arg6[%c5_163, %c0_164] : memref<22x22xf32, #tpu.memory_space<vmem>>, vector<16x16xf32>
    %374 = vector.broadcast %372 : f32 to vector<16x16xf32>
    %375 = arith.mulf %374, %373 : vector<16x16xf32>
    %376 = arith.addf %366, %375 : vector<16x16xf32>
    %c72 = arith.constant 72 : index
    %377 = memref.load %arg2[%c72] : memref<98xf32, #tpu.memory_space<smem>>
    %c5_165 = arith.constant 5 : index
    %c1_166 = arith.constant 1 : index
    %378 = vector.load %arg5[%c5_165, %c1_166] : memref<22x22xf32, #tpu.memory_space<vmem>>, vector<16x16xf32>
    %379 = vector.broadcast %377 : f32 to vector<16x16xf32>
    %380 = arith.mulf %379, %378 : vector<16x16xf32>
    %381 = arith.addf %371, %380 : vector<16x16xf32>
    %c73 = arith.constant 73 : index
    %382 = memref.load %arg2[%c73] : memref<98xf32, #tpu.memory_space<smem>>
    %c5_167 = arith.constant 5 : index
    %c1_168 = arith.constant 1 : index
    %383 = vector.load %arg6[%c5_167, %c1_168] : memref<22x22xf32, #tpu.memory_space<vmem>>, vector<16x16xf32>
    %384 = vector.broadcast %382 : f32 to vector<16x16xf32>
    %385 = arith.mulf %384, %383 : vector<16x16xf32>
    %386 = arith.addf %376, %385 : vector<16x16xf32>
    %c74 = arith.constant 74 : index
    %387 = memref.load %arg2[%c74] : memref<98xf32, #tpu.memory_space<smem>>
    %c5_169 = arith.constant 5 : index
    %c2_170 = arith.constant 2 : index
    %388 = vector.load %arg5[%c5_169, %c2_170] : memref<22x22xf32, #tpu.memory_space<vmem>>, vector<16x16xf32>
    %389 = vector.broadcast %387 : f32 to vector<16x16xf32>
    %390 = arith.mulf %389, %388 : vector<16x16xf32>
    %391 = arith.addf %381, %390 : vector<16x16xf32>
    %c75 = arith.constant 75 : index
    %392 = memref.load %arg2[%c75] : memref<98xf32, #tpu.memory_space<smem>>
    %c5_171 = arith.constant 5 : index
    %c2_172 = arith.constant 2 : index
    %393 = vector.load %arg6[%c5_171, %c2_172] : memref<22x22xf32, #tpu.memory_space<vmem>>, vector<16x16xf32>
    %394 = vector.broadcast %392 : f32 to vector<16x16xf32>
    %395 = arith.mulf %394, %393 : vector<16x16xf32>
    %396 = arith.addf %386, %395 : vector<16x16xf32>
    %c76 = arith.constant 76 : index
    %397 = memref.load %arg2[%c76] : memref<98xf32, #tpu.memory_space<smem>>
    %c5_173 = arith.constant 5 : index
    %c3_174 = arith.constant 3 : index
    %398 = vector.load %arg5[%c5_173, %c3_174] : memref<22x22xf32, #tpu.memory_space<vmem>>, vector<16x16xf32>
    %399 = vector.broadcast %397 : f32 to vector<16x16xf32>
    %400 = arith.mulf %399, %398 : vector<16x16xf32>
    %401 = arith.addf %391, %400 : vector<16x16xf32>
    %c77 = arith.constant 77 : index
    %402 = memref.load %arg2[%c77] : memref<98xf32, #tpu.memory_space<smem>>
    %c5_175 = arith.constant 5 : index
    %c3_176 = arith.constant 3 : index
    %403 = vector.load %arg6[%c5_175, %c3_176] : memref<22x22xf32, #tpu.memory_space<vmem>>, vector<16x16xf32>
    %404 = vector.broadcast %402 : f32 to vector<16x16xf32>
    %405 = arith.mulf %404, %403 : vector<16x16xf32>
    %406 = arith.addf %396, %405 : vector<16x16xf32>
    %c78 = arith.constant 78 : index
    %407 = memref.load %arg2[%c78] : memref<98xf32, #tpu.memory_space<smem>>
    %c5_177 = arith.constant 5 : index
    %c4_178 = arith.constant 4 : index
    %408 = vector.load %arg5[%c5_177, %c4_178] : memref<22x22xf32, #tpu.memory_space<vmem>>, vector<16x16xf32>
    %409 = vector.broadcast %407 : f32 to vector<16x16xf32>
    %410 = arith.mulf %409, %408 : vector<16x16xf32>
    %411 = arith.addf %401, %410 : vector<16x16xf32>
    %c79 = arith.constant 79 : index
    %412 = memref.load %arg2[%c79] : memref<98xf32, #tpu.memory_space<smem>>
    %c5_179 = arith.constant 5 : index
    %c4_180 = arith.constant 4 : index
    %413 = vector.load %arg6[%c5_179, %c4_180] : memref<22x22xf32, #tpu.memory_space<vmem>>, vector<16x16xf32>
    %414 = vector.broadcast %412 : f32 to vector<16x16xf32>
    %415 = arith.mulf %414, %413 : vector<16x16xf32>
    %416 = arith.addf %406, %415 : vector<16x16xf32>
    %c80 = arith.constant 80 : index
    %417 = memref.load %arg2[%c80] : memref<98xf32, #tpu.memory_space<smem>>
    %c5_181 = arith.constant 5 : index
    %c5_182 = arith.constant 5 : index
    %418 = vector.load %arg5[%c5_181, %c5_182] : memref<22x22xf32, #tpu.memory_space<vmem>>, vector<16x16xf32>
    %419 = vector.broadcast %417 : f32 to vector<16x16xf32>
    %420 = arith.mulf %419, %418 : vector<16x16xf32>
    %421 = arith.addf %411, %420 : vector<16x16xf32>
    %c81 = arith.constant 81 : index
    %422 = memref.load %arg2[%c81] : memref<98xf32, #tpu.memory_space<smem>>
    %c5_183 = arith.constant 5 : index
    %c5_184 = arith.constant 5 : index
    %423 = vector.load %arg6[%c5_183, %c5_184] : memref<22x22xf32, #tpu.memory_space<vmem>>, vector<16x16xf32>
    %424 = vector.broadcast %422 : f32 to vector<16x16xf32>
    %425 = arith.mulf %424, %423 : vector<16x16xf32>
    %426 = arith.addf %416, %425 : vector<16x16xf32>
    %c82 = arith.constant 82 : index
    %427 = memref.load %arg2[%c82] : memref<98xf32, #tpu.memory_space<smem>>
    %c5_185 = arith.constant 5 : index
    %c6_186 = arith.constant 6 : index
    %428 = vector.load %arg5[%c5_185, %c6_186] : memref<22x22xf32, #tpu.memory_space<vmem>>, vector<16x16xf32>
    %429 = vector.broadcast %427 : f32 to vector<16x16xf32>
    %430 = arith.mulf %429, %428 : vector<16x16xf32>
    %431 = arith.addf %421, %430 : vector<16x16xf32>
    %c83 = arith.constant 83 : index
    %432 = memref.load %arg2[%c83] : memref<98xf32, #tpu.memory_space<smem>>
    %c5_187 = arith.constant 5 : index
    %c6_188 = arith.constant 6 : index
    %433 = vector.load %arg6[%c5_187, %c6_188] : memref<22x22xf32, #tpu.memory_space<vmem>>, vector<16x16xf32>
    %434 = vector.broadcast %432 : f32 to vector<16x16xf32>
    %435 = arith.mulf %434, %433 : vector<16x16xf32>
    %436 = arith.addf %426, %435 : vector<16x16xf32>
    %c84 = arith.constant 84 : index
    %437 = memref.load %arg2[%c84] : memref<98xf32, #tpu.memory_space<smem>>
    %c6_189 = arith.constant 6 : index
    %c0_190 = arith.constant 0 : index
    %438 = vector.load %arg5[%c6_189, %c0_190] : memref<22x22xf32, #tpu.memory_space<vmem>>, vector<16x16xf32>
    %439 = vector.broadcast %437 : f32 to vector<16x16xf32>
    %440 = arith.mulf %439, %438 : vector<16x16xf32>
    %441 = arith.addf %431, %440 : vector<16x16xf32>
    %c85 = arith.constant 85 : index
    %442 = memref.load %arg2[%c85] : memref<98xf32, #tpu.memory_space<smem>>
    %c6_191 = arith.constant 6 : index
    %c0_192 = arith.constant 0 : index
    %443 = vector.load %arg6[%c6_191, %c0_192] : memref<22x22xf32, #tpu.memory_space<vmem>>, vector<16x16xf32>
    %444 = vector.broadcast %442 : f32 to vector<16x16xf32>
    %445 = arith.mulf %444, %443 : vector<16x16xf32>
    %446 = arith.addf %436, %445 : vector<16x16xf32>
    %c86 = arith.constant 86 : index
    %447 = memref.load %arg2[%c86] : memref<98xf32, #tpu.memory_space<smem>>
    %c6_193 = arith.constant 6 : index
    %c1_194 = arith.constant 1 : index
    %448 = vector.load %arg5[%c6_193, %c1_194] : memref<22x22xf32, #tpu.memory_space<vmem>>, vector<16x16xf32>
    %449 = vector.broadcast %447 : f32 to vector<16x16xf32>
    %450 = arith.mulf %449, %448 : vector<16x16xf32>
    %451 = arith.addf %441, %450 : vector<16x16xf32>
    %c87 = arith.constant 87 : index
    %452 = memref.load %arg2[%c87] : memref<98xf32, #tpu.memory_space<smem>>
    %c6_195 = arith.constant 6 : index
    %c1_196 = arith.constant 1 : index
    %453 = vector.load %arg6[%c6_195, %c1_196] : memref<22x22xf32, #tpu.memory_space<vmem>>, vector<16x16xf32>
    %454 = vector.broadcast %452 : f32 to vector<16x16xf32>
    %455 = arith.mulf %454, %453 : vector<16x16xf32>
    %456 = arith.addf %446, %455 : vector<16x16xf32>
    %c88 = arith.constant 88 : index
    %457 = memref.load %arg2[%c88] : memref<98xf32, #tpu.memory_space<smem>>
    %c6_197 = arith.constant 6 : index
    %c2_198 = arith.constant 2 : index
    %458 = vector.load %arg5[%c6_197, %c2_198] : memref<22x22xf32, #tpu.memory_space<vmem>>, vector<16x16xf32>
    %459 = vector.broadcast %457 : f32 to vector<16x16xf32>
    %460 = arith.mulf %459, %458 : vector<16x16xf32>
    %461 = arith.addf %451, %460 : vector<16x16xf32>
    %c89 = arith.constant 89 : index
    %462 = memref.load %arg2[%c89] : memref<98xf32, #tpu.memory_space<smem>>
    %c6_199 = arith.constant 6 : index
    %c2_200 = arith.constant 2 : index
    %463 = vector.load %arg6[%c6_199, %c2_200] : memref<22x22xf32, #tpu.memory_space<vmem>>, vector<16x16xf32>
    %464 = vector.broadcast %462 : f32 to vector<16x16xf32>
    %465 = arith.mulf %464, %463 : vector<16x16xf32>
    %466 = arith.addf %456, %465 : vector<16x16xf32>
    %c90 = arith.constant 90 : index
    %467 = memref.load %arg2[%c90] : memref<98xf32, #tpu.memory_space<smem>>
    %c6_201 = arith.constant 6 : index
    %c3_202 = arith.constant 3 : index
    %468 = vector.load %arg5[%c6_201, %c3_202] : memref<22x22xf32, #tpu.memory_space<vmem>>, vector<16x16xf32>
    %469 = vector.broadcast %467 : f32 to vector<16x16xf32>
    %470 = arith.mulf %469, %468 : vector<16x16xf32>
    %471 = arith.addf %461, %470 : vector<16x16xf32>
    %c91 = arith.constant 91 : index
    %472 = memref.load %arg2[%c91] : memref<98xf32, #tpu.memory_space<smem>>
    %c6_203 = arith.constant 6 : index
    %c3_204 = arith.constant 3 : index
    %473 = vector.load %arg6[%c6_203, %c3_204] : memref<22x22xf32, #tpu.memory_space<vmem>>, vector<16x16xf32>
    %474 = vector.broadcast %472 : f32 to vector<16x16xf32>
    %475 = arith.mulf %474, %473 : vector<16x16xf32>
    %476 = arith.addf %466, %475 : vector<16x16xf32>
    %c92 = arith.constant 92 : index
    %477 = memref.load %arg2[%c92] : memref<98xf32, #tpu.memory_space<smem>>
    %c6_205 = arith.constant 6 : index
    %c4_206 = arith.constant 4 : index
    %478 = vector.load %arg5[%c6_205, %c4_206] : memref<22x22xf32, #tpu.memory_space<vmem>>, vector<16x16xf32>
    %479 = vector.broadcast %477 : f32 to vector<16x16xf32>
    %480 = arith.mulf %479, %478 : vector<16x16xf32>
    %481 = arith.addf %471, %480 : vector<16x16xf32>
    %c93 = arith.constant 93 : index
    %482 = memref.load %arg2[%c93] : memref<98xf32, #tpu.memory_space<smem>>
    %c6_207 = arith.constant 6 : index
    %c4_208 = arith.constant 4 : index
    %483 = vector.load %arg6[%c6_207, %c4_208] : memref<22x22xf32, #tpu.memory_space<vmem>>, vector<16x16xf32>
    %484 = vector.broadcast %482 : f32 to vector<16x16xf32>
    %485 = arith.mulf %484, %483 : vector<16x16xf32>
    %486 = arith.addf %476, %485 : vector<16x16xf32>
    %c94 = arith.constant 94 : index
    %487 = memref.load %arg2[%c94] : memref<98xf32, #tpu.memory_space<smem>>
    %c6_209 = arith.constant 6 : index
    %c5_210 = arith.constant 5 : index
    %488 = vector.load %arg5[%c6_209, %c5_210] : memref<22x22xf32, #tpu.memory_space<vmem>>, vector<16x16xf32>
    %489 = vector.broadcast %487 : f32 to vector<16x16xf32>
    %490 = arith.mulf %489, %488 : vector<16x16xf32>
    %491 = arith.addf %481, %490 : vector<16x16xf32>
    %c95 = arith.constant 95 : index
    %492 = memref.load %arg2[%c95] : memref<98xf32, #tpu.memory_space<smem>>
    %c6_211 = arith.constant 6 : index
    %c5_212 = arith.constant 5 : index
    %493 = vector.load %arg6[%c6_211, %c5_212] : memref<22x22xf32, #tpu.memory_space<vmem>>, vector<16x16xf32>
    %494 = vector.broadcast %492 : f32 to vector<16x16xf32>
    %495 = arith.mulf %494, %493 : vector<16x16xf32>
    %496 = arith.addf %486, %495 : vector<16x16xf32>
    %c96 = arith.constant 96 : index
    %497 = memref.load %arg2[%c96] : memref<98xf32, #tpu.memory_space<smem>>
    %c6_213 = arith.constant 6 : index
    %c6_214 = arith.constant 6 : index
    %498 = vector.load %arg5[%c6_213, %c6_214] : memref<22x22xf32, #tpu.memory_space<vmem>>, vector<16x16xf32>
    %499 = vector.broadcast %497 : f32 to vector<16x16xf32>
    %500 = arith.mulf %499, %498 : vector<16x16xf32>
    %501 = arith.addf %491, %500 : vector<16x16xf32>
    %c97 = arith.constant 97 : index
    %502 = memref.load %arg2[%c97] : memref<98xf32, #tpu.memory_space<smem>>
    %c6_215 = arith.constant 6 : index
    %c6_216 = arith.constant 6 : index
    %503 = vector.load %arg6[%c6_215, %c6_216] : memref<22x22xf32, #tpu.memory_space<vmem>>, vector<16x16xf32>
    %504 = vector.broadcast %502 : f32 to vector<16x16xf32>
    %505 = arith.mulf %504, %503 : vector<16x16xf32>
    %506 = arith.addf %496, %505 : vector<16x16xf32>
    %507 = arith.addf %501, %506 : vector<16x16xf32>
    %c0_217 = arith.constant 0 : index
    %c0_218 = arith.constant 0 : index
    %c0_219 = arith.constant 0 : index
    %508 = vector.load %arg4[%c0_217, %c0_218, %c0_219] : memref<1x16x16xf32, #tpu.memory_space<vmem>>, vector<1x16x16xf32>
    %509 = vector.shape_cast %508 : vector<1x16x16xf32> to vector<16x16xf32>
    %510 = vector.shape_cast %507 : vector<16x16xf32> to vector<1x16x16xf32>
    tpu.vector_store %arg4[%c0_217, %c0_218, %c0_219], %510 {strides = array<i32>} : memref<1x16x16xf32, #tpu.memory_space<vmem>>, vector<1x16x16xf32>,
    return
  }
  func.func @transform_0(%arg0: i32) -> (i32, i32, i32, i32) {
    %c0_i32 = arith.constant 0 : i32
    %c0_i32_0 = arith.constant 0 : i32
    %c0_i32_1 = arith.constant 0 : i32
    %c0_i32_2 = arith.constant 0 : i32
    return %arg0, %c0_i32, %c0_i32_0, %c0_i32_1 : i32, i32, i32, i32
  }
  func.func @transform_1(%arg0: i32) -> i32 {
    %c0_i32 = arith.constant 0 : i32
    %c0_i32_0 = arith.constant 0 : i32
    return %c0_i32 : i32
  }
  func.func @transform_2(%arg0: i32) -> (i32, i32, i32) {
    %c0_i32 = arith.constant 0 : i32
    %c0_i32_0 = arith.constant 0 : i32
    %c0_i32_1 = arith.constant 0 : i32
    return %arg0, %c0_i32, %c0_i32_0 : i32, i32, i32
  }
  func.func @transform_3(%arg0: i32) -> (i32, i32, i32) {
    %c0_i32 = arith.constant 0 : i32
    %c0_i32_0 = arith.constant 0 : i32
    %c0_i32_1 = arith.constant 0 : i32
    return %arg0, %c0_i32, %c0_i32_0 : i32, i32, i32
  }
}

module attributes {stable_mosaic.version = 11 : i64} {
  func.func @apply_kernel(%arg0: i32, %arg1: i32, %arg2: memref<1x16x16x16xf32, #tpu.memory_space<vmem>>, %arg3: memref<1x1x16xf32, #tpu.memory_space<vmem>>, %arg4: memref<1x16x16x1xf32, #tpu.memory_space<vmem>>, %arg5: memref<25xf32, #tpu.memory_space<smem>>, %arg6: memref<1x16x16x16xf32, #tpu.memory_space<vmem>>, %arg7: memref<20x20x16xf32, #tpu.memory_space<vmem>>) attributes {dimension_semantics = [#tpu.dimension_semantics<parallel>, #tpu.dimension_semantics<parallel>], iteration_bounds = array<i64: 2, 1>, scalar_prefetch = 0 : i64, scratch_operands = 1 : i64, tpu.core_type = #tpu.core_type<tc>, window_params = [{transform_indices = @transform_0, window_bounds = array<i64: 1, 16, 16, 16>}, {transform_indices = @transform_1, window_bounds = array<i64: 1, 1, 16>}, {transform_indices = @transform_2, window_bounds = array<i64: 1, 16, 16, 1>}, {transform_indices = @transform_3, window_bounds = array<i64: 25>}, {transform_indices = @transform_4, window_bounds = array<i64: 1, 16, 16, 16>}]} {
    %cst = arith.constant 0.000000e+00 : f32
    %0 = vector.broadcast %cst : f32 to vector<20x20x16xf32>
    %c0 = arith.constant 0 : index
    %c0_0 = arith.constant 0 : index
    %c0_1 = arith.constant 0 : index
    %1 = vector.load %arg7[%c0, %c0_0, %c0_1] : memref<20x20x16xf32, #tpu.memory_space<vmem>>, vector<20x20x16xf32>
    tpu.vector_store %arg7[%c0, %c0_0, %c0_1], %0 {strides = array<i32>} : memref<20x20x16xf32, #tpu.memory_space<vmem>>, vector<20x20x16xf32>,
    %c0_2 = arith.constant 0 : index
    %c0_3 = arith.constant 0 : index
    %c0_4 = arith.constant 0 : index
    %c0_5 = arith.constant 0 : index
    %2 = vector.load %arg2[%c0_2, %c0_3, %c0_4, %c0_5] : memref<1x16x16x16xf32, #tpu.memory_space<vmem>>, vector<1x16x16x16xf32>
    %3 = vector.shape_cast %2 : vector<1x16x16x16xf32> to vector<16x16x16xf32>
    %c2 = arith.constant 2 : index
    %c2_6 = arith.constant 2 : index
    %c0_7 = arith.constant 0 : index
    %4 = vector.load %arg7[%c2, %c2_6, %c0_7] : memref<20x20x16xf32, #tpu.memory_space<vmem>>, vector<16x16x16xf32>
    tpu.vector_store %arg7[%c2, %c2_6, %c0_7], %3 {strides = array<i32>} : memref<20x20x16xf32, #tpu.memory_space<vmem>>, vector<16x16x16xf32>,
    %c0_8 = arith.constant 0 : index
    %5 = memref.load %arg5[%c0_8] : memref<25xf32, #tpu.memory_space<smem>>
    %c0_9 = arith.constant 0 : index
    %c0_10 = arith.constant 0 : index
    %c0_11 = arith.constant 0 : index
    %6 = vector.load %arg7[%c0_9, %c0_10, %c0_11] : memref<20x20x16xf32, #tpu.memory_space<vmem>>, vector<16x16x16xf32>
    %7 = vector.broadcast %5 : f32 to vector<16x16x16xf32>
    %8 = arith.mulf %7, %6 : vector<16x16x16xf32>
    %c1 = arith.constant 1 : index
    %9 = memref.load %arg5[%c1] : memref<25xf32, #tpu.memory_space<smem>>
    %c0_12 = arith.constant 0 : index
    %c1_13 = arith.constant 1 : index
    %c0_14 = arith.constant 0 : index
    %10 = vector.load %arg7[%c0_12, %c1_13, %c0_14] : memref<20x20x16xf32, #tpu.memory_space<vmem>>, vector<16x16x16xf32>
    %11 = vector.broadcast %9 : f32 to vector<16x16x16xf32>
    %12 = arith.mulf %11, %10 : vector<16x16x16xf32>
    %13 = arith.addf %8, %12 : vector<16x16x16xf32>
    %c2_15 = arith.constant 2 : index
    %14 = memref.load %arg5[%c2_15] : memref<25xf32, #tpu.memory_space<smem>>
    %c0_16 = arith.constant 0 : index
    %c2_17 = arith.constant 2 : index
    %c0_18 = arith.constant 0 : index
    %15 = vector.load %arg7[%c0_16, %c2_17, %c0_18] : memref<20x20x16xf32, #tpu.memory_space<vmem>>, vector<16x16x16xf32>
    %16 = vector.broadcast %14 : f32 to vector<16x16x16xf32>
    %17 = arith.mulf %16, %15 : vector<16x16x16xf32>
    %18 = arith.addf %13, %17 : vector<16x16x16xf32>
    %c3 = arith.constant 3 : index
    %19 = memref.load %arg5[%c3] : memref<25xf32, #tpu.memory_space<smem>>
    %c0_19 = arith.constant 0 : index
    %c3_20 = arith.constant 3 : index
    %c0_21 = arith.constant 0 : index
    %20 = vector.load %arg7[%c0_19, %c3_20, %c0_21] : memref<20x20x16xf32, #tpu.memory_space<vmem>>, vector<16x16x16xf32>
    %21 = vector.broadcast %19 : f32 to vector<16x16x16xf32>
    %22 = arith.mulf %21, %20 : vector<16x16x16xf32>
    %23 = arith.addf %18, %22 : vector<16x16x16xf32>
    %c4 = arith.constant 4 : index
    %24 = memref.load %arg5[%c4] : memref<25xf32, #tpu.memory_space<smem>>
    %c0_22 = arith.constant 0 : index
    %c4_23 = arith.constant 4 : index
    %c0_24 = arith.constant 0 : index
    %25 = vector.load %arg7[%c0_22, %c4_23, %c0_24] : memref<20x20x16xf32, #tpu.memory_space<vmem>>, vector<16x16x16xf32>
    %26 = vector.broadcast %24 : f32 to vector<16x16x16xf32>
    %27 = arith.mulf %26, %25 : vector<16x16x16xf32>
    %28 = arith.addf %23, %27 : vector<16x16x16xf32>
    %c5 = arith.constant 5 : index
    %29 = memref.load %arg5[%c5] : memref<25xf32, #tpu.memory_space<smem>>
    %c1_25 = arith.constant 1 : index
    %c0_26 = arith.constant 0 : index
    %c0_27 = arith.constant 0 : index
    %30 = vector.load %arg7[%c1_25, %c0_26, %c0_27] : memref<20x20x16xf32, #tpu.memory_space<vmem>>, vector<16x16x16xf32>
    %31 = vector.broadcast %29 : f32 to vector<16x16x16xf32>
    %32 = arith.mulf %31, %30 : vector<16x16x16xf32>
    %33 = arith.addf %28, %32 : vector<16x16x16xf32>
    %c6 = arith.constant 6 : index
    %34 = memref.load %arg5[%c6] : memref<25xf32, #tpu.memory_space<smem>>
    %c1_28 = arith.constant 1 : index
    %c1_29 = arith.constant 1 : index
    %c0_30 = arith.constant 0 : index
    %35 = vector.load %arg7[%c1_28, %c1_29, %c0_30] : memref<20x20x16xf32, #tpu.memory_space<vmem>>, vector<16x16x16xf32>
    %36 = vector.broadcast %34 : f32 to vector<16x16x16xf32>
    %37 = arith.mulf %36, %35 : vector<16x16x16xf32>
    %38 = arith.addf %33, %37 : vector<16x16x16xf32>
    %c7 = arith.constant 7 : index
    %39 = memref.load %arg5[%c7] : memref<25xf32, #tpu.memory_space<smem>>
    %c1_31 = arith.constant 1 : index
    %c2_32 = arith.constant 2 : index
    %c0_33 = arith.constant 0 : index
    %40 = vector.load %arg7[%c1_31, %c2_32, %c0_33] : memref<20x20x16xf32, #tpu.memory_space<vmem>>, vector<16x16x16xf32>
    %41 = vector.broadcast %39 : f32 to vector<16x16x16xf32>
    %42 = arith.mulf %41, %40 : vector<16x16x16xf32>
    %43 = arith.addf %38, %42 : vector<16x16x16xf32>
    %c8 = arith.constant 8 : index
    %44 = memref.load %arg5[%c8] : memref<25xf32, #tpu.memory_space<smem>>
    %c1_34 = arith.constant 1 : index
    %c3_35 = arith.constant 3 : index
    %c0_36 = arith.constant 0 : index
    %45 = vector.load %arg7[%c1_34, %c3_35, %c0_36] : memref<20x20x16xf32, #tpu.memory_space<vmem>>, vector<16x16x16xf32>
    %46 = vector.broadcast %44 : f32 to vector<16x16x16xf32>
    %47 = arith.mulf %46, %45 : vector<16x16x16xf32>
    %48 = arith.addf %43, %47 : vector<16x16x16xf32>
    %c9 = arith.constant 9 : index
    %49 = memref.load %arg5[%c9] : memref<25xf32, #tpu.memory_space<smem>>
    %c1_37 = arith.constant 1 : index
    %c4_38 = arith.constant 4 : index
    %c0_39 = arith.constant 0 : index
    %50 = vector.load %arg7[%c1_37, %c4_38, %c0_39] : memref<20x20x16xf32, #tpu.memory_space<vmem>>, vector<16x16x16xf32>
    %51 = vector.broadcast %49 : f32 to vector<16x16x16xf32>
    %52 = arith.mulf %51, %50 : vector<16x16x16xf32>
    %53 = arith.addf %48, %52 : vector<16x16x16xf32>
    %c10 = arith.constant 10 : index
    %54 = memref.load %arg5[%c10] : memref<25xf32, #tpu.memory_space<smem>>
    %c2_40 = arith.constant 2 : index
    %c0_41 = arith.constant 0 : index
    %c0_42 = arith.constant 0 : index
    %55 = vector.load %arg7[%c2_40, %c0_41, %c0_42] : memref<20x20x16xf32, #tpu.memory_space<vmem>>, vector<16x16x16xf32>
    %56 = vector.broadcast %54 : f32 to vector<16x16x16xf32>
    %57 = arith.mulf %56, %55 : vector<16x16x16xf32>
    %58 = arith.addf %53, %57 : vector<16x16x16xf32>
    %c11 = arith.constant 11 : index
    %59 = memref.load %arg5[%c11] : memref<25xf32, #tpu.memory_space<smem>>
    %c2_43 = arith.constant 2 : index
    %c1_44 = arith.constant 1 : index
    %c0_45 = arith.constant 0 : index
    %60 = vector.load %arg7[%c2_43, %c1_44, %c0_45] : memref<20x20x16xf32, #tpu.memory_space<vmem>>, vector<16x16x16xf32>
    %61 = vector.broadcast %59 : f32 to vector<16x16x16xf32>
    %62 = arith.mulf %61, %60 : vector<16x16x16xf32>
    %63 = arith.addf %58, %62 : vector<16x16x16xf32>
    %c12 = arith.constant 12 : index
    %64 = memref.load %arg5[%c12] : memref<25xf32, #tpu.memory_space<smem>>
    %c2_46 = arith.constant 2 : index
    %c2_47 = arith.constant 2 : index
    %c0_48 = arith.constant 0 : index
    %65 = vector.load %arg7[%c2_46, %c2_47, %c0_48] : memref<20x20x16xf32, #tpu.memory_space<vmem>>, vector<16x16x16xf32>
    %66 = vector.broadcast %64 : f32 to vector<16x16x16xf32>
    %67 = arith.mulf %66, %65 : vector<16x16x16xf32>
    %68 = arith.addf %63, %67 : vector<16x16x16xf32>
    %c13 = arith.constant 13 : index
    %69 = memref.load %arg5[%c13] : memref<25xf32, #tpu.memory_space<smem>>
    %c2_49 = arith.constant 2 : index
    %c3_50 = arith.constant 3 : index
    %c0_51 = arith.constant 0 : index
    %70 = vector.load %arg7[%c2_49, %c3_50, %c0_51] : memref<20x20x16xf32, #tpu.memory_space<vmem>>, vector<16x16x16xf32>
    %71 = vector.broadcast %69 : f32 to vector<16x16x16xf32>
    %72 = arith.mulf %71, %70 : vector<16x16x16xf32>
    %73 = arith.addf %68, %72 : vector<16x16x16xf32>
    %c14 = arith.constant 14 : index
    %74 = memref.load %arg5[%c14] : memref<25xf32, #tpu.memory_space<smem>>
    %c2_52 = arith.constant 2 : index
    %c4_53 = arith.constant 4 : index
    %c0_54 = arith.constant 0 : index
    %75 = vector.load %arg7[%c2_52, %c4_53, %c0_54] : memref<20x20x16xf32, #tpu.memory_space<vmem>>, vector<16x16x16xf32>
    %76 = vector.broadcast %74 : f32 to vector<16x16x16xf32>
    %77 = arith.mulf %76, %75 : vector<16x16x16xf32>
    %78 = arith.addf %73, %77 : vector<16x16x16xf32>
    %c15 = arith.constant 15 : index
    %79 = memref.load %arg5[%c15] : memref<25xf32, #tpu.memory_space<smem>>
    %c3_55 = arith.constant 3 : index
    %c0_56 = arith.constant 0 : index
    %c0_57 = arith.constant 0 : index
    %80 = vector.load %arg7[%c3_55, %c0_56, %c0_57] : memref<20x20x16xf32, #tpu.memory_space<vmem>>, vector<16x16x16xf32>
    %81 = vector.broadcast %79 : f32 to vector<16x16x16xf32>
    %82 = arith.mulf %81, %80 : vector<16x16x16xf32>
    %83 = arith.addf %78, %82 : vector<16x16x16xf32>
    %c16 = arith.constant 16 : index
    %84 = memref.load %arg5[%c16] : memref<25xf32, #tpu.memory_space<smem>>
    %c3_58 = arith.constant 3 : index
    %c1_59 = arith.constant 1 : index
    %c0_60 = arith.constant 0 : index
    %85 = vector.load %arg7[%c3_58, %c1_59, %c0_60] : memref<20x20x16xf32, #tpu.memory_space<vmem>>, vector<16x16x16xf32>
    %86 = vector.broadcast %84 : f32 to vector<16x16x16xf32>
    %87 = arith.mulf %86, %85 : vector<16x16x16xf32>
    %88 = arith.addf %83, %87 : vector<16x16x16xf32>
    %c17 = arith.constant 17 : index
    %89 = memref.load %arg5[%c17] : memref<25xf32, #tpu.memory_space<smem>>
    %c3_61 = arith.constant 3 : index
    %c2_62 = arith.constant 2 : index
    %c0_63 = arith.constant 0 : index
    %90 = vector.load %arg7[%c3_61, %c2_62, %c0_63] : memref<20x20x16xf32, #tpu.memory_space<vmem>>, vector<16x16x16xf32>
    %91 = vector.broadcast %89 : f32 to vector<16x16x16xf32>
    %92 = arith.mulf %91, %90 : vector<16x16x16xf32>
    %93 = arith.addf %88, %92 : vector<16x16x16xf32>
    %c18 = arith.constant 18 : index
    %94 = memref.load %arg5[%c18] : memref<25xf32, #tpu.memory_space<smem>>
    %c3_64 = arith.constant 3 : index
    %c3_65 = arith.constant 3 : index
    %c0_66 = arith.constant 0 : index
    %95 = vector.load %arg7[%c3_64, %c3_65, %c0_66] : memref<20x20x16xf32, #tpu.memory_space<vmem>>, vector<16x16x16xf32>
    %96 = vector.broadcast %94 : f32 to vector<16x16x16xf32>
    %97 = arith.mulf %96, %95 : vector<16x16x16xf32>
    %98 = arith.addf %93, %97 : vector<16x16x16xf32>
    %c19 = arith.constant 19 : index
    %99 = memref.load %arg5[%c19] : memref<25xf32, #tpu.memory_space<smem>>
    %c3_67 = arith.constant 3 : index
    %c4_68 = arith.constant 4 : index
    %c0_69 = arith.constant 0 : index
    %100 = vector.load %arg7[%c3_67, %c4_68, %c0_69] : memref<20x20x16xf32, #tpu.memory_space<vmem>>, vector<16x16x16xf32>
    %101 = vector.broadcast %99 : f32 to vector<16x16x16xf32>
    %102 = arith.mulf %101, %100 : vector<16x16x16xf32>
    %103 = arith.addf %98, %102 : vector<16x16x16xf32>
    %c20 = arith.constant 20 : index
    %104 = memref.load %arg5[%c20] : memref<25xf32, #tpu.memory_space<smem>>
    %c4_70 = arith.constant 4 : index
    %c0_71 = arith.constant 0 : index
    %c0_72 = arith.constant 0 : index
    %105 = vector.load %arg7[%c4_70, %c0_71, %c0_72] : memref<20x20x16xf32, #tpu.memory_space<vmem>>, vector<16x16x16xf32>
    %106 = vector.broadcast %104 : f32 to vector<16x16x16xf32>
    %107 = arith.mulf %106, %105 : vector<16x16x16xf32>
    %108 = arith.addf %103, %107 : vector<16x16x16xf32>
    %c21 = arith.constant 21 : index
    %109 = memref.load %arg5[%c21] : memref<25xf32, #tpu.memory_space<smem>>
    %c4_73 = arith.constant 4 : index
    %c1_74 = arith.constant 1 : index
    %c0_75 = arith.constant 0 : index
    %110 = vector.load %arg7[%c4_73, %c1_74, %c0_75] : memref<20x20x16xf32, #tpu.memory_space<vmem>>, vector<16x16x16xf32>
    %111 = vector.broadcast %109 : f32 to vector<16x16x16xf32>
    %112 = arith.mulf %111, %110 : vector<16x16x16xf32>
    %113 = arith.addf %108, %112 : vector<16x16x16xf32>
    %c22 = arith.constant 22 : index
    %114 = memref.load %arg5[%c22] : memref<25xf32, #tpu.memory_space<smem>>
    %c4_76 = arith.constant 4 : index
    %c2_77 = arith.constant 2 : index
    %c0_78 = arith.constant 0 : index
    %115 = vector.load %arg7[%c4_76, %c2_77, %c0_78] : memref<20x20x16xf32, #tpu.memory_space<vmem>>, vector<16x16x16xf32>
    %116 = vector.broadcast %114 : f32 to vector<16x16x16xf32>
    %117 = arith.mulf %116, %115 : vector<16x16x16xf32>
    %118 = arith.addf %113, %117 : vector<16x16x16xf32>
    %c23 = arith.constant 23 : index
    %119 = memref.load %arg5[%c23] : memref<25xf32, #tpu.memory_space<smem>>
    %c4_79 = arith.constant 4 : index
    %c3_80 = arith.constant 3 : index
    %c0_81 = arith.constant 0 : index
    %120 = vector.load %arg7[%c4_79, %c3_80, %c0_81] : memref<20x20x16xf32, #tpu.memory_space<vmem>>, vector<16x16x16xf32>
    %121 = vector.broadcast %119 : f32 to vector<16x16x16xf32>
    %122 = arith.mulf %121, %120 : vector<16x16x16xf32>
    %123 = arith.addf %118, %122 : vector<16x16x16xf32>
    %c24 = arith.constant 24 : index
    %124 = memref.load %arg5[%c24] : memref<25xf32, #tpu.memory_space<smem>>
    %c4_82 = arith.constant 4 : index
    %c4_83 = arith.constant 4 : index
    %c0_84 = arith.constant 0 : index
    %125 = vector.load %arg7[%c4_82, %c4_83, %c0_84] : memref<20x20x16xf32, #tpu.memory_space<vmem>>, vector<16x16x16xf32>
    %126 = vector.broadcast %124 : f32 to vector<16x16x16xf32>
    %127 = arith.mulf %126, %125 : vector<16x16x16xf32>
    %128 = arith.addf %123, %127 : vector<16x16x16xf32>
    %c0_85 = arith.constant 0 : index
    %c0_86 = arith.constant 0 : index
    %c0_87 = arith.constant 0 : index
    %c0_88 = arith.constant 0 : index
    %129 = vector.load %arg2[%c0_85, %c0_86, %c0_87, %c0_88] : memref<1x16x16x16xf32, #tpu.memory_space<vmem>>, vector<1x16x16x16xf32>
    %130 = vector.shape_cast %129 : vector<1x16x16x16xf32> to vector<16x16x16xf32>
    %c0_89 = arith.constant 0 : index
    %c0_90 = arith.constant 0 : index
    %c0_91 = arith.constant 0 : index
    %131 = vector.load %arg3[%c0_89, %c0_90, %c0_91] : memref<1x1x16xf32, #tpu.memory_space<vmem>>, vector<1x1x16xf32>
    %132 = vector.shape_cast %131 : vector<1x1x16xf32> to vector<1x16xf32>
    %133 = vector.shape_cast %132 : vector<1x16xf32> to vector<1x1x16xf32>
    %134 = vector.broadcast %133 : vector<1x1x16xf32> to vector<16x16x16xf32>
    %135 = arith.mulf %130, %134 : vector<16x16x16xf32>
    %c0_92 = arith.constant 0 : index
    %c0_93 = arith.constant 0 : index
    %c0_94 = arith.constant 0 : index
    %c0_95 = arith.constant 0 : index
    %136 = vector.load %arg4[%c0_92, %c0_93, %c0_94, %c0_95] : memref<1x16x16x1xf32, #tpu.memory_space<vmem>>, vector<1x16x16x1xf32>
    %137 = vector.shape_cast %136 : vector<1x16x16x1xf32> to vector<16x16x1xf32>
    %138 = vector.broadcast %137 : vector<16x16x1xf32> to vector<16x16x16xf32>
    %139 = arith.mulf %135, %138 : vector<16x16x16xf32>
    %140 = arith.addf %130, %139 : vector<16x16x16xf32>
    %141 = arith.addf %140, %128 : vector<16x16x16xf32>
    %c0_96 = arith.constant 0 : index
    %c0_97 = arith.constant 0 : index
    %c0_98 = arith.constant 0 : index
    %c0_99 = arith.constant 0 : index
    %142 = vector.load %arg6[%c0_96, %c0_97, %c0_98, %c0_99] : memref<1x16x16x16xf32, #tpu.memory_space<vmem>>, vector<1x16x16x16xf32>
    %143 = vector.shape_cast %142 : vector<1x16x16x16xf32> to vector<16x16x16xf32>
    %144 = vector.shape_cast %141 : vector<16x16x16xf32> to vector<1x16x16x16xf32>
    tpu.vector_store %arg6[%c0_96, %c0_97, %c0_98, %c0_99], %144 {strides = array<i32>} : memref<1x16x16x16xf32, #tpu.memory_space<vmem>>, vector<1x16x16x16xf32>,
    return
  }
  func.func @transform_0(%arg0: i32, %arg1: i32) -> (i32, i32, i32, i32) {
    %c0_i32 = arith.constant 0 : i32
    %c0_i32_0 = arith.constant 0 : i32
    %c0_i32_1 = arith.constant 0 : i32
    return %arg0, %c0_i32, %c0_i32_0, %arg1 : i32, i32, i32, i32
  }
  func.func @transform_1(%arg0: i32, %arg1: i32) -> (i32, i32, i32) {
    %c0_i32 = arith.constant 0 : i32
    %c0_i32_0 = arith.constant 0 : i32
    return %arg0, %c0_i32, %arg1 : i32, i32, i32
  }
  func.func @transform_2(%arg0: i32, %arg1: i32) -> (i32, i32, i32, i32) {
    %c0_i32 = arith.constant 0 : i32
    %c0_i32_0 = arith.constant 0 : i32
    %c0_i32_1 = arith.constant 0 : i32
    %c0_i32_2 = arith.constant 0 : i32
    return %arg0, %c0_i32, %c0_i32_0, %c0_i32_1 : i32, i32, i32, i32
  }
  func.func @transform_3(%arg0: i32, %arg1: i32) -> i32 {
    %c0_i32 = arith.constant 0 : i32
    %c0_i32_0 = arith.constant 0 : i32
    return %c0_i32 : i32
  }
  func.func @transform_4(%arg0: i32, %arg1: i32) -> (i32, i32, i32, i32) {
    %c0_i32 = arith.constant 0 : i32
    %c0_i32_0 = arith.constant 0 : i32
    %c0_i32_1 = arith.constant 0 : i32
    return %arg0, %c0_i32, %c0_i32_0, %arg1 : i32, i32, i32, i32
  }
}

</mosaic_0001>

<bundles_post_ra>
// kernel: bio_inspired_block.2
= control target key start
LH: loop header
LB: loop body
LE: loop exit
PB: predicated region body
PF: predicated region fallthrough
CT: control target
= control target key end

     0   :  { %9 = vsyncpa [#allocation5], 0  ;;  %s2292_s12 = smov 0   ;;  %s3423_s0 = inlined_call_operand.vmem [shape: f32[2,16,16,16], index: 0, kind: input, shape index: {}]   ;;  %s3424_s1 = inlined_call_operand.vmem [shape: f32[98], index: 1, kind: input, shape index: {}]   ;;  %s3425_s2 = inlined_call_operand.vmem [shape: f32[2,1,16], index: 2, kind: output, shape index: {0}]   ;;  %s3426_s3 = inlined_call_operand.vmem [shape: f32[2,16,16], index: 3, kind: output, shape index: {1}]  }
   0x1 LB: > { %s2095_s13 = sadd.s32 4294967295, %s2261_s12   ;;  %p2097_p0 = scmp.ge.s32.totalorder %s2261_s12, 1  ;;  %s2261_s12 = sphi %s2292_s12, %s15_s12  }
   0x2   : > { %p119_p1 = scmp.lt.s32.totalorder %s2261_s12, 3  ;;  %s131_s16 = sshll.u32 %s3424_s1, 4  ;;  %s132_s16 = int_to_ptr.vmem [resolvable:$true] %s131_s16 }
   0x3   : > { %p2215_p3 = scmp.eq.s32.totalorder %s2095_s13, 0  ;;  %s2263_s17 = smov [#allocation4]  }
   0x4   : > { %p120_p2 = pnand %p2097_p0, %p119_p1 }
   0x6   : > { %p2211_p4 = pneg %p120_p2  ;;  %152 = sbr.rel (%p120_p2) target bundleno = 864 (0x360), region = 28 }
   0x8   : > { %p2212_p5 = pnand %p2215_p3, %p2211_p4 }
   0xa   : > { %2214 = dma.vmem_to_smem (!%p2212_p5), %s132_s16, 16, %s2263_s17, [#allocation5]  }
   0xb   : > { %2256 = dma.done.wait (%p2215_p3), [#allocation5], 16  }
   0xc   : > { %2258 = vsyncadd (%p2215_p3), [#allocation5], 4294967280 }
   0xd   : > { %159 = sfence }
   0xe   : > { %p181_p6 = scmp.lt.s32.totalorder %s2095_s13, 1  ;;  %vm226_vm0 = vcmask 130048   ;;  %vm297_vm1 = vcmask 122880   ;;  %vm299_vm2 = vcmask 179200   ;;  %vm448_vm4 = vcmask 154712   ;;  %s2599_s25 = sld [smem:[#allocation4 + $0x2]] }
   0xf   : > { %vm495_vm5 = vcmask 1041409   ;;  %vm497_vm6 = vcmask 1042434   ;;  %vm499_vm7 = vcmask 1043459   ;;  %vm501_vm8 = vcmask 1044484   ;;  %s2608_s26 = sld [smem:[#allocation4 + $0x4]]  ;;  %s2266_s27 = smov 127  }
  0x10   : > { %s3428_s13 = smov (!%p181_p6, %s2095_s13), 1  ;;  %vm503_vm9 = vcmask 1045509   ;;  %vm505_vm10 = vcmask 1046534   ;;  %vm507_vm11 = vcmask 1047559   ;;  %vm518_vm12 = vcmask 154648   ;;  %s2267_s28 = smov 126  }
  0x11   : > { %s2205_s18 = sshll.u32 %s3428_s13, 8  ;;  %s188_s24 = scalar_lea.vmem %s3425_s2, %s3428_s13  ;;  %vm302_vm13 = vcmask 177152  }
  0x12   : > { %s2309_s21 = scalar_lea.vmem %s3423_s0, %s2205_s18  ;;  %s2698_s29 = sld [smem:[#allocation4 + $0x3]] }
  0x13   : > { %v2312_v0 = vld [vmem:[%s2309_s21 + $0x20] sm:$0xff]  ;;  %v2315_v1 = vld [vmem:[%s2309_s21 + $0x10] sm:$0xff]  ;;  %v2327_v6 = vld [vmem:[%s2309_s21 + $0x8] sm:$0xff]  ;;  %s2710_s30 = sld [smem:[#allocation4 + $0x6]]  ;;  %s2268_s4 = smov 125  }
  0x14   : > { %v2318_v2 = vld [vmem:[%s2309_s21] sm:$0xff]  ;;  %v234_v3 = vsel %vm226_vm0, %v2312_v0, 0.0  ;;  %v230_v4 = vsel %vm226_vm0, %v2315_v1, 0.0  ;;  %v228_v7 = vsel %vm226_vm0, %v2327_v6, 0.0  ;;  %v2332_v8 = vld [vmem:[%s2309_s21 + $0x18] sm:$0xff]  ;;  %v2335_v10 = vld [vmem:[%s2309_s21 + $0x28] sm:$0xff] }
  0x15   : > { %v227_v5 = vsel %vm226_vm0, %v2318_v2, 0.0  ;;  %315 = vadd.xlane.f32.xlu2 %v234_v3  ;;  %311 = vadd.xlane.f32.xlu1 %v230_v4  ;;  %v232_v12 = vsel %vm226_vm0, %v2332_v8, 0.0  ;;  %v236_v13 = vsel %vm226_vm0, %v2335_v10, 0.0  ;;  %v2342_v15 = vld [vmem:[%s2309_s21 + $0x30] sm:$0xff]  ;;  %v2345_v17 = vld [vmem:[%s2309_s21 + $0x38] sm:$0xff]  ;;  %v2348_v19 = vld [vmem:[%s2309_s21 + $0x40] sm:$0xff] }
  0x16   : > { %307 = vadd.xlane.f32.xlu0 %v227_v5  ;;  %v229_v9 = vadd.f32 %v228_v7, %v227_v5  ;;  %v238_v20 = vsel %vm226_vm0, %v2342_v15, 0.0  ;;  %v240_v22 = vsel %vm226_vm0, %v2345_v17, 0.0  ;;  %v242_v23 = vsel %vm226_vm0, %v2348_v19, 0.0  ;;  %v2357_v25 = vld [vmem:[%s2309_s21 + $0x48] sm:$0xff]  ;;  %v2360_v26 = vld [vmem:[%s2309_s21 + $0x50] sm:$0xff]  ;;  %v2365_v29 = vld [vmem:[%s2309_s21 + $0x58] sm:$0xff] }
  0x17   : > { %v244_v28 = vsel %vm226_vm0, %v2357_v25, 0.0  ;;  %v246_v31 = vsel %vm226_vm0, %v2360_v26, 0.0  ;;  %v2370_v33 = vld [vmem:[%s2309_s21 + $0x60] sm:$0xff]  ;;  %v248_v34 = vsel %vm226_vm0, %v2365_v29, 0.0  ;;  %v2375_v35 = vld [vmem:[%s2309_s21 + $0x68] sm:$0xff]  ;;  %v2380_v38 = vld [vmem:[%s2309_s21 + $0x70] sm:$0xff] }
  0x18   : > { %v231_v11 = vadd.f32 %v230_v4, %v229_v9  ;;  %v250_v37 = vsel %vm226_vm0, %v2370_v33, 0.0  ;;  %v252_v40 = vsel %vm226_vm0, %v2375_v35, 0.0  ;;  %v2385_v42 = vld [vmem:[%s2309_s21 + $0x78] sm:$0xff]  ;;  %v254_v43 = vsel %vm226_vm0, %v2380_v38, 0.0  ;;  %v2390_v44 = vld [vmem:[%s2309_s21 + $0x80] sm:$0xff]  ;;  %v2395_v47 = vld [vmem:[%s2309_s21 + $0x88] sm:$0xff] }
  0x19   : > { %v256_v46 = vsel %vm226_vm0, %v2385_v42, 0.0  ;;  %v258_v49 = vsel %vm226_vm0, %v2390_v44, 0.0  ;;  %v2400_v51 = vld [vmem:[%s2309_s21 + $0x90] sm:$0xff]  ;;  %v260_v52 = vsel %vm226_vm0, %v2395_v47, 0.0  ;;  %v2405_v53 = vld [vmem:[%s2309_s21 + $0x98] sm:$0xff]  ;;  %v2410_v56 = vld [vmem:[%s2309_s21 + $0xa0] sm:$0xff] }
  0x1a   : > { %v233_v14 = vadd.f32 %v232_v12, %v231_v11  ;;  %v262_v55 = vsel %vm226_vm0, %v2400_v51, 0.0  ;;  %v264_v58 = vsel %vm226_vm0, %v2405_v53, 0.0  ;;  %v2415_v60 = vld [vmem:[%s2309_s21 + $0xa8] sm:$0xff]  ;;  %v266_v61 = vsel %vm226_vm0, %v2410_v56, 0.0  ;;  %v2420_v62 = vld [vmem:[%s2309_s21 + $0xb0] sm:$0xff]  ;;  %v2425_v4 = vld [vmem:[%s2309_s21 + $0xb8] sm:$0xff] }
  0x1b   : > { %v2430_v11 = vld [vmem:[%s2309_s21 + $0xc0] sm:$0xff]  ;;  %s2112_s5 = sld [smem:[#allocation4 + $0x7]]  ;;  %s2269_s10 = smov 124  }
  0x1c   : > { %v235_v16 = vadd.f32 %v234_v3, %v233_v14  ;;  %v268_v3 = vsel %vm226_vm0, %v2415_v60, 0.0  ;;  %s2110_s6 = sld [smem:[#allocation4 + $0x5]]  ;;  %s2270_s14 = smov 123  }
  0x1d   : > { %317 = vadd.xlane.f32.xlu2 %v236_v13  ;;  %313 = vadd.xlane.f32.xlu1 %v232_v12  ;;  %v272_v12 = vsel %vm226_vm0, %v2425_v4, 0.0  ;;  %s2753_s7 = sld [smem:[#allocation4 + $0x9]]  ;;  %s2271_s17 = smov 122  }
  0x1e   : > { %309 = vadd.xlane.f32.xlu0 %v228_v7  ;;  %v237_v18 = vadd.f32 %v236_v13, %v235_v16  ;;  %v270_v7 = vsel %vm226_vm0, %v2420_v62, 0.0  ;;  %v2435_v13 = vld [vmem:[%s2309_s21 + $0xc8] sm:$0xff]  ;;  %v274_v16 = vsel %vm226_vm0, %v2430_v11, 0.0  ;;  %s2115_s8 = sld [smem:[#allocation4 + $0xa]] }
  0x1f   : > { %s2113_s9 = sld [smem:[#allocation4 + $0x8]] }
  0x20   : > { %v239_v21 = vadd.f32 %v238_v20, %v237_v18  ;;  %v2440_v18 = vld [vmem:[%s2309_s21 + $0xd0] sm:$0xff]  ;;  %s2772_s11 = sld [smem:[#allocation4 + $0xc]] }
  0x21   : > { %s2118_s15 = sld [smem:[#allocation4 + $0xd]] }
  0x22   : > { %v241_v24 = vadd.f32 %v240_v22, %v239_v21  ;;  %v276_v21 = vsel %vm226_vm0, %v2435_v13, 0.0  ;;  %s2116_s16 = sld [smem:[#allocation4 + $0xb]] }
  0x23   : > { %s2789_s18 = sld [smem:[#allocation4 + $0x11]] }
  0x24   : > { %v243_v27 = vadd.f32 %v242_v23, %v241_v24  ;;  %v278_v24 = vsel %vm226_vm0, %v2440_v18, 0.0  ;;  %s2123_s19 = sld [smem:[#allocation4 + $0x12]] }
  0x25   : > { %323 = vadd.xlane.f32.xlu2 %v242_v23  ;;  %321 = vadd.xlane.f32.xlu1 %v240_v22  ;;  %v2445_v23 = vld [vmem:[%s2309_s21 + $0xd8] sm:$0xff]  ;;  %s2121_s20 = sld [smem:[#allocation4 + $0x10]] }
  0x26   : > { %319 = vadd.xlane.f32.xlu0 %v238_v20  ;;  %v245_v30 = vadd.f32 %v244_v28, %v243_v27  ;;  %v2450_v27 = vld [vmem:[%s2309_s21 + $0xe0] sm:$0xff]  ;;  %s2126_s22 = sld [smem:[#allocation4 + $0x15]] }
  0x27   : > { %s2124_s23 = sld [smem:[#allocation4 + $0x13]] }
  0x28   : > { %v247_v32 = vadd.f32 %v246_v31, %v245_v30  ;;  %v280_v30 = vsel %vm226_vm0, %v2445_v23, 0.0 }
  0x2a   : > { %v249_v36 = vadd.f32 %v248_v34, %v247_v32 }
  0x2c   : > { %v251_v39 = vadd.f32 %v250_v37, %v249_v36 }
  0x2d   : > { %329 = vadd.xlane.f32.xlu2 %v248_v34  ;;  %327 = vadd.xlane.f32.xlu1 %v246_v31  ;;  %v2455_v31 = vld [vmem:[%s2309_s21 + $0xe8] sm:$0xff]  ;;  %v282_v34 = vsel %vm226_vm0, %v2450_v27, 0.0 }
  0x2e   : > { %325 = vadd.xlane.f32.xlu0 %v244_v28  ;;  %v253_v41 = vadd.f32 %v252_v40, %v251_v39  ;;  %v284_v39 = vsel %vm226_vm0, %v2455_v31, 0.0 }
  0x30   : > { %v255_v45 = vadd.f32 %v254_v43, %v253_v41 }
  0x32   : > { %v257_v48 = vadd.f32 %v256_v46, %v255_v45 }
  0x34   : > { %v259_v50 = vadd.f32 %v258_v49, %v257_v48 }
  0x35   : > { %335 = vadd.xlane.f32.xlu2 %v254_v43  ;;  %333 = vadd.xlane.f32.xlu1 %v252_v40  ;;  %v2465_v40 = vld [vmem:[%s2309_s21 + $0xf8] sm:$0xff] }
  0x36   : > { %331 = vadd.xlane.f32.xlu0 %v250_v37  ;;  %v261_v54 = vadd.f32 %v260_v52, %v259_v50  ;;  %v2460_v37 = vld [vmem:[%s2309_s21 + $0xf0] sm:$0xff]  ;;  %s2808_s21 = sld [smem:[#allocation4 + $0x14]] }
  0x37   : > { %v286_v43 = vsel %vm226_vm0, %v2460_v37, 0.0 }
  0x38   : > { %v263_v57 = vadd.f32 %v262_v55, %v261_v54 }
  0x3a   : > { %v265_v59 = vadd.f32 %v264_v58, %v263_v57 }
  0x3c   : > { %v267_v63 = vadd.f32 %v266_v61, %v265_v59  ;;  %v521_v59 = vsel %vm226_vm0, %v2318_v2, -inf  ;;  %v539_v2 = vsel %vm226_vm0, %v2342_v15, -inf  ;;  %v551_v15 = vsel %vm226_vm0, %v2360_v26, -inf }
  0x3d   : > { %341 = vadd.xlane.f32.xlu2 %v260_v52  ;;  %339 = vadd.xlane.f32.xlu1 %v258_v49 }
  0x3e   : > { %337 = vadd.xlane.f32.xlu0 %v256_v46  ;;  %v269_v5 = vadd.f32 %v268_v3, %v267_v63  ;;  %v288_v46 = vsel %vm226_vm0, %v2465_v40, 0.0  ;;  %v530_v63 = vsel %vm226_vm0, %v2332_v8, -inf  ;;  %v542_v8 = vsel %vm226_vm0, %v2345_v17, -inf }
  0x40   : > { %v271_v9 = vadd.f32 %v270_v7, %v269_v5  ;;  %v536_v5 = vsel %vm226_vm0, %v2335_v10, -inf  ;;  %v554_v10 = vsel %vm226_vm0, %v2365_v29, -inf  ;;  %v566_v29 = vsel %vm226_vm0, %v2385_v42, -inf }
  0x41   : > { %v569_v42 = vsel %vm226_vm0, %v2390_v44, -inf  ;;  %v581_v44 = vsel %vm226_vm0, %v2410_v56, -inf }
  0x42   : > { %v273_v14 = vadd.f32 %v272_v12, %v271_v9 }
  0x44   : > { %v275_v20 = vadd.f32 %v274_v16, %v273_v14 }
  0x45   : > { %347 = vadd.xlane.f32.xlu2 %v266_v61  ;;  %345 = vadd.xlane.f32.xlu1 %v264_v58  ;;  %v527_v61 = vsel %vm226_vm0, %v2315_v1, -inf  ;;  %v545_v1 = vsel %vm226_vm0, %v2348_v19, -inf  ;;  %v2264_v19 = vmov 16.0  }
  0x46   : > { %343 = vadd.xlane.f32.xlu0 %v262_v55  ;;  %v277_v22 = vadd.f32 %v276_v21, %v275_v20  ;;  %2234 = vrcp.f32 %v2264_v19 }
  0x48   : > { %v279_v28 = vadd.f32 %v278_v24, %v277_v22  ;;  %v572_v22 = vsel %vm226_vm0, %v2395_v47, -inf }
  0x4a   : > { %v281_v32 = vadd.f32 %v280_v30, %v279_v28 }
  0x4c   : > { %v283_v36 = vadd.f32 %v282_v34, %v281_v32  ;;  %v2235_v14 = vpop.eup %2234 }
  0x4d   : > { %353 = vadd.xlane.f32.xlu2 %v272_v12  ;;  %351 = vadd.xlane.f32.xlu1 %v270_v7  ;;  %v533_v7 = vsel %vm226_vm0, %v2312_v0, -inf  ;;  %v557_v0 = vsel %vm226_vm0, %v2370_v33, -inf  ;;  %v563_v12 = vsel %vm226_vm0, %v2380_v38, -inf  ;;  %v560_v33 = vsel %vm226_vm0, %v2375_v35, -inf }
  0x4e   : > { %349 = vadd.xlane.f32.xlu0 %v268_v3  ;;  %v285_v41 = vadd.f32 %v284_v39, %v283_v36  ;;  %v524_v3 = vsel %vm226_vm0, %v2327_v6, -inf  ;;  %v548_v6 = vsel %vm226_vm0, %v2357_v25, -inf  ;;  %v372_v26 = vmul.f32 16.0, %v2235_v14 }
  0x4f   : > { %v575_v38 = vsel %vm226_vm0, %v2400_v51, -inf  ;;  %v2265_v35 = vmov 0.0   ;;  %v442_v51 = vlaneseq  ;;  %vm376_vm3 = vweird.f32 %v2235_v14 }
  0x50   : > { %v287_v45 = vadd.f32 %v286_v43, %v285_v41  ;;  %300 = vst.msk [vmem:[#allocation2] sm:$0xff] %vm299_vm2, %v2265_v35 }
  0x51   : > { %301 = vst.msk [vmem:[#allocation2 + $0x8] sm:$0xff] %vm299_vm2, %v2265_v35  ;;  %v443_v41 = vand.u32 127, %v442_v51 }
  0x52   : > { %v289_v48 = vadd.f32 %v288_v46, %v287_v45  ;;  %304 = vst.msk [vmem:[#allocation3] sm:$0xff] %vm299_vm2, %v2265_v35 }
  0x53   : > { %305 = vst.msk [vmem:[#allocation3 + $0x8] sm:$0xff] %vm299_vm2, %v2265_v35 }
  0x54   : > { %v290_v49 = vrot.slane %v289_v48, 4  ;;  %303 = vst.msk [vmem:[#allocation2 + $0x10] sm:$0x3f] %vm302_vm13, %v2265_v35 }
  0x55   : > { %359 = vadd.xlane.f32.xlu2 %v278_v24  ;;  %357 = vadd.xlane.f32.xlu1 %v276_v21  ;;  %v373_v24 = vsub.f32 1.0, %v372_v26  ;;  %306 = vst.msk [vmem:[#allocation3 + $0x10] sm:$0x3f] %vm302_vm13, %v2265_v35 }
  0x56   : > { %355 = vadd.xlane.f32.xlu0 %v274_v16  ;;  %v291_v50 = vadd.f32 %v290_v49, %v289_v48  ;;  %v2526_v49 = vadd.s32 4294967285, %v443_v41 }
  0x57   : > { %v374_v28 = vmul.f32 %v2235_v14, %v373_v24 }
  0x58   : > { %v292_v52 = vrot.slane %v291_v50, 2 }
  0x59   : > { %v375_v36 = vadd.f32 %v2235_v14, %v374_v28 }
  0x5a   : > { %v293_v54 = vadd.f32 %v292_v52, %v291_v50  ;;  %v2530_v52 = vadd.s32 4294967293, %v443_v41 }
  0x5c   : > { %v294_v55 = vrot.slane %v293_v54, 1 }
  0x5d   : > { %365 = vadd.xlane.f32.xlu2 %v284_v39  ;;  %363 = vadd.xlane.f32.xlu1 %v282_v34  ;;  %v584_v34 = vsel %vm226_vm0, %v2415_v60, -inf  ;;  %v578_v39 = vsel %vm226_vm0, %v2405_v53, -inf  ;;  %v590_v53 = vsel %vm226_vm0, %v2425_v4, -inf }
  0x5e   : > { %361 = vadd.xlane.f32.xlu0 %v280_v30  ;;  %v295_v57 = vadd.f32 %v294_v55, %v293_v54  ;;  %v593_v54 = vsel %vm226_vm0, %v2430_v11, -inf }
  0x60   : > { %v296_v58 = vmul.f32 0.00390625, %v295_v57  ;;  %v587_v57 = vsel %vm226_vm0, %v2420_v62, -inf }
  0x62   : > { %298 = vst.msk [vmem:[%s188_s24] sm:$0x1] %vm297_vm1, %v296_v58  ;;  %s2827_s24 = sld [smem:[#allocation4 + $0x17]] }
  0x65   : > { %369 = vadd.xlane.f32.xlu1 %v288_v46  ;;  %522 = vmax.xlane.f32.xlu2 %v521_v59 }
  0x66   : > { %367 = vadd.xlane.f32.xlu0 %v286_v43  ;;  %v2523_v43 = vsel %vm376_vm3, %v2235_v14, %v375_v36  ;;  %v611_v36 = vsel %vm226_vm0, %v2460_v37, -inf }
  0x6d   : > { %528 = vmax.xlane.f32.xlu1 %v527_v61  ;;  %531 = vmax.xlane.f32.xlu2 %v530_v63 }
  0x6e   : > { %525 = vmax.xlane.f32.xlu0 %v524_v3 }
  0x75   : > { %537 = vmax.xlane.f32.xlu1 %v536_v5  ;;  %540 = vmax.xlane.f32.xlu2 %v539_v2 }
  0x76   : > { %534 = vmax.xlane.f32.xlu0 %v533_v7 }
  0x7d   : > { %546 = vmax.xlane.f32.xlu1 %v545_v1  ;;  %549 = vmax.xlane.f32.xlu2 %v548_v6 }
  0x7e   : > { %543 = vmax.xlane.f32.xlu0 %v542_v8  ;;  %v599_v8 = vsel %vm226_vm0, %v2440_v18, -inf }
  0x85   : > { %555 = vmax.xlane.f32.xlu1 %v554_v10  ;;  %558 = vmax.xlane.f32.xlu2 %v557_v0  ;;  %v596_v10 = vsel %vm226_vm0, %v2435_v13, -inf }
  0x86   : > { %552 = vmax.xlane.f32.xlu0 %v551_v15 }
  0x88   : > { %v316_v25 = vpop.xlane.xlu2 %315  ;;  %v312_v9 = vpop.xlane.xlu1 %311 }
  0x89   : > { %v308_v17 = vpop.xlane.xlu0 %307  ;;  %v380_v45 = vmul.f32 %v2523_v43, %v312_v9  ;;  %v382_v58 = vmul.f32 %v2523_v43, %v316_v25  ;;  %v602_v9 = vsel %vm226_vm0, %v2445_v23, -inf }
  0x8a   : > { %v378_v55 = vmul.f32 %v2523_v43, %v308_v17 }
  0x8b   : > { %v450_v59 = vperm.slane %v380_v45, %v2530_v52  ;;  %v453_v7 = vperm.slane %v382_v58, %v2530_v52 }
  0x8c   : > { %v445_v62 = vperm.slane %v378_v55, %v2530_v52 }
  0x8d   : > { %564 = vmax.xlane.f32.xlu1 %v563_v12  ;;  %567 = vmax.xlane.f32.xlu2 %v566_v29 }
  0x8e   : > { %561 = vmax.xlane.f32.xlu0 %v560_v33 }
  0x90   : > { %v318_v16 = vpop.xlane.xlu2 %317  ;;  %v314_v20 = vpop.xlane.xlu1 %313 }
  0x91   : > { %v310_v21 = vpop.xlane.xlu0 %309  ;;  %v381_v56 = vmul.f32 %v2523_v43, %v314_v20  ;;  %v383_v61 = vmul.f32 %v2523_v43, %v318_v16 }
  0x92   : > { %v379_v60 = vmul.f32 %v2523_v43, %v310_v21 }
  0x93   : > { %v451_v63 = vperm.slane %v381_v56, %v2526_v49  ;;  %v454_v0 = vperm.slane %v383_v61, %v2526_v49  ;;  %v605_v56 = vsel %vm226_vm0, %v2450_v27, -inf }
  0x94   : > { %v447_v3 = vperm.slane %v379_v60, %v2526_v49 }
  0x95   : > { %573 = vmax.xlane.f32.xlu1 %v572_v22  ;;  %576 = vmax.xlane.f32.xlu2 %v575_v38  ;;  %v452_v15 = vsel %vm448_vm4, %v451_v63, %v450_v59  ;;  %v455_v16 = vsel %vm448_vm4, %v454_v0, %v453_v7 }
  0x96   : > { %570 = vmax.xlane.f32.xlu0 %v569_v42  ;;  %v449_v19 = vsel %vm448_vm4, %v447_v3, %v445_v62 }
  0x97   : > { %v496_v23 = vsel %vm495_vm5, %v452_v15, %v449_v19 }
  0x98   : > { %v324_v30 = vpop.xlane.xlu2 %323  ;;  %v322_v32 = vpop.xlane.xlu1 %321 }
  0x99   : > { %v320_v47 = vpop.xlane.xlu0 %319  ;;  %v385_v4 = vmul.f32 %v2523_v43, %v322_v32  ;;  %v386_v5 = vmul.f32 %v2523_v43, %v324_v30  ;;  %v498_v30 = vsel %vm497_vm6, %v455_v16, %v496_v23  ;;  %v756_v23 = vstv %s2608_s26  ;;  %s2127_s26 = sld [smem:[#allocation4 + $0x16]] }
  0x9a   : > { %v384_v11 = vmul.f32 %v2523_v43, %v320_v47 }
  0x9b   : > { %v457_v17 = vperm.slane %v385_v4, %v2526_v49  ;;  %v459_v13 = vperm.slane %v386_v5, %v2530_v52  ;;  %v728_v4 = vstv %s2599_s25  ;;  %s2129_s25 = sld [smem:[#allocation4 + $0x18]] }
  0x9c   : > { %v456_v12 = vperm.slane %v384_v11, %v2530_v52 }
  0x9d   : > { %582 = vmax.xlane.f32.xlu1 %v581_v44  ;;  %585 = vmax.xlane.f32.xlu2 %v584_v34  ;;  %v608_v34 = vsel %vm226_vm0, %v2455_v31, -inf }
  0x9e   : > { %579 = vmax.xlane.f32.xlu0 %v578_v39  ;;  %v458_v20 = vsel %vm448_vm4, %v457_v17, %v456_v12 }
  0x9f   : > { %v500_v51 = vsel %vm499_vm7, %v458_v20, %v498_v30 }
  0xa0   : > { %v330_v46 = vpop.xlane.xlu2 %329  ;;  %v328_v48 = vpop.xlane.xlu1 %327 }
  0xa1   : > { %v326_v50 = vpop.xlane.xlu0 %325  ;;  %v389_v29 = vmul.f32 %v2523_v43, %v330_v46  ;;  %v388_v18 = vmul.f32 %v2523_v43, %v328_v48 }
  0xa2   : > { %v387_v2 = vmul.f32 %v2523_v43, %v326_v50 }
  0xa3   : > { %v463_v21 = vperm.slane %v389_v29, %v2526_v49  ;;  %v462_v22 = vperm.slane %v388_v18, %v2530_v52 }
  0xa4   : > { %v460_v33 = vperm.slane %v387_v2, %v2526_v49 }
  0xa5   : > { %591 = vmax.xlane.f32.xlu1 %v590_v53  ;;  %594 = vmax.xlane.f32.xlu2 %v593_v54  ;;  %v464_v39 = vsel %vm448_vm4, %v463_v21, %v462_v22 }
  0xa6   : > { %588 = vmax.xlane.f32.xlu0 %v587_v57  ;;  %v461_v24 = vsel %vm448_vm4, %v460_v33, %v459_v13  ;;  %v614_v57 = vsel %vm226_vm0, %v2465_v40, -inf }
  0xa7   : > { %v502_v41 = vsel %vm501_vm8, %v461_v24, %v500_v51 }
  0xa8   : > { %v336_v1 = vpop.xlane.xlu2 %335  ;;  %v334_v6 = vpop.xlane.xlu1 %333  ;;  %v504_v60 = vsel %vm503_vm9, %v464_v39, %v502_v41 }
  0xa9   : > { %v332_v25 = vpop.xlane.xlu0 %331  ;;  %v391_v14 = vmul.f32 %v2523_v43, %v334_v6  ;;  %v392_v38 = vmul.f32 %v2523_v43, %v336_v1 }
  0xaa   : > { %v390_v26 = vmul.f32 %v2523_v43, %v332_v25 }
  0xab   : > { %v466_v42 = vperm.slane %v391_v14, %v2526_v49  ;;  %v468_v45 = vperm.slane %v392_v38, %v2530_v52 }
  0xac   : > { %v465_v28 = vperm.slane %v390_v26, %v2530_v52 }
  0xad   : > { %600 = vmax.xlane.f32.xlu1 %v599_v8  ;;  %603 = vmax.xlane.f32.xlu2 %v602_v9 }
  0xae   : > { %597 = vmax.xlane.f32.xlu0 %v596_v10  ;;  %v467_v48 = vsel %vm448_vm4, %v466_v42, %v465_v28 }
  0xaf   : > { %v506_v37 = vsel %vm505_vm10, %v467_v48, %v504_v60 }
  0xb0   : > { %v342_v32 = vpop.xlane.xlu2 %341  ;;  %v340_v47 = vpop.xlane.xlu1 %339 }
  0xb1   : > { %v338_v44 = vpop.xlane.xlu0 %337  ;;  %v395_v11 = vmul.f32 %v2523_v43, %v342_v32  ;;  %v394_v40 = vmul.f32 %v2523_v43, %v340_v47 }
  0xb2   : > { %v393_v46 = vmul.f32 %v2523_v43, %v338_v44 }
  0xb3   : > { %v472_v8 = vperm.slane %v395_v11, %v2526_v49  ;;  %v471_v10 = vperm.slane %v394_v40, %v2530_v52 }
  0xb4   : > { %v469_v31 = vperm.slane %v393_v46, %v2526_v49 }
  0xb5   : > { %609 = vmax.xlane.f32.xlu1 %v608_v34  ;;  %612 = vmax.xlane.f32.xlu2 %v611_v36  ;;  %v473_v14 = vsel %vm448_vm4, %v472_v8, %v471_v10 }
  0xb6   : > { %v470_v50 = vsel %vm448_vm4, %v469_v31, %v468_v45  ;;  %606 = vmax.xlane.f32.xlu0 %v605_v56 }
  0xb7   : > { %v508_v53 = vsel %vm507_vm11, %v470_v50, %v506_v37 }
  0xb8   : > { %519 = vst.msk [vmem:[#allocation2 + $0x3] sm:$0xff] %vm518_vm12, %v508_v53  ;;  %v348_v54 = vpop.xlane.xlu2 %347  ;;  %v346_v55 = vpop.xlane.xlu1 %345 }
  0xb9   : > { %v344_v27 = vpop.xlane.xlu0 %343  ;;  %v397_v62 = vmul.f32 %v2523_v43, %v346_v55  ;;  %v398_v7 = vmul.f32 %v2523_v43, %v348_v54 }
  0xba   : > { %v396_v5 = vmul.f32 %v2523_v43, %v344_v27 }
  0xbb   : > { %v475_v0 = vperm.slane %v397_v62, %v2526_v49  ;;  %v477_v19 = vperm.slane %v398_v7, %v2530_v52 }
  0xbc   : > { %v474_v15 = vperm.slane %v396_v5, %v2530_v52 }
  0xbe   : > { %615 = vmax.xlane.f32.xlu0 %v614_v57  ;;  %v476_v26 = vsel %vm448_vm4, %v475_v0, %v474_v15 }
  0xbf   : > { %v2606_v2 = vld [vmem:[#allocation2] sm:$0xff]  ;;  %v509_v44 = vsel %vm495_vm5, %v476_v26, %v473_v14 }
  0xc0   : > { %v354_v58 = vpop.xlane.xlu2 %353  ;;  %v352_v59 = vpop.xlane.xlu1 %351  ;;  %v729_v6 = vmul.f32 %v728_v4, %v2606_v2  ;;  %v757_v51 = vmul.f32 %v756_v23, %v2606_v2 }
  0xc1   : > { %v350_v61 = vpop.xlane.xlu0 %349  ;;  %v401_v25 = vmul.f32 %v2523_v43, %v354_v58  ;;  %v400_v9 = vmul.f32 %v2523_v43, %v352_v59 }
  0xc2   : > { %v399_v1 = vmul.f32 %v2523_v43, %v350_v61 }
  0xc3   : > { %v481_v20 = vperm.slane %v401_v25, %v2526_v49  ;;  %v480_v21 = vperm.slane %v400_v9, %v2530_v52 }
  0xc4   : > { %v478_v17 = vperm.slane %v399_v1, %v2526_v49 }
  0xc5   : > { %v482_v34 = vsel %vm448_vm4, %v481_v20, %v480_v21 }
  0xc6   : > { %v479_v22 = vsel %vm448_vm4, %v478_v17, %v477_v19 }
  0xc7   : > { %v510_v36 = vsel %vm497_vm6, %v479_v22, %v509_v44 }
  0xc8   : > { %v360_v63 = vpop.xlane.xlu2 %359  ;;  %v358_v3 = vpop.xlane.xlu1 %357  ;;  %v511_v31 = vsel %vm499_vm7, %v482_v34, %v510_v36 }
  0xc9   : > { %v356_v35 = vpop.xlane.xlu0 %355  ;;  %v403_v12 = vmul.f32 %v2523_v43, %v358_v3  ;;  %v404_v18 = vmul.f32 %v2523_v43, %v360_v63 }
  0xca   : > { %v402_v29 = vmul.f32 %v2523_v43, %v356_v35 }
  0xcb   : > { %v484_v24 = vperm.slane %v403_v12, %v2526_v49  ;;  %v486_v32 = vperm.slane %v404_v18, %v2530_v52 }
  0xcc   : > { %v483_v42 = vperm.slane %v402_v29, %v2530_v52 }
  0xce   : > { %733 = vrot.lane.b32.xlu1 %v729_v6, %s2266_s27  ;;  %v485_v39 = vsel %vm448_vm4, %v484_v24, %v483_v42 }
  0xcf   : > { %v512_v50 = vsel %vm501_vm8, %v485_v39, %v511_v31 }
  0xd0   : > { %v366_v13 = vpop.xlane.xlu2 %365  ;;  %v364_v33 = vpop.xlane.xlu1 %363 }
  0xd1   : > { %v362_v16 = vpop.xlane.xlu0 %361  ;;  %v407_v28 = vmul.f32 %v2523_v43, %v366_v13  ;;  %v406_v30 = vmul.f32 %v2523_v43, %v364_v33 }
  0xd2   : > { %v405_v38 = vmul.f32 %v2523_v43, %v362_v16 }
  0xd3   : > { %v490_v41 = vperm.slane %v407_v28, %v2526_v49  ;;  %v489_v45 = vperm.slane %v406_v30, %v2530_v52 }
  0xd4   : > { %v487_v47 = vperm.slane %v405_v38, %v2526_v49 }
  0xd5   : > { %v491_v54 = vsel %vm448_vm4, %v490_v41, %v489_v45 }
  0xd6   : > { %761 = vrot.lane.b32.xlu1 %v757_v51, %s2267_s28  ;;  %v488_v46 = vsel %vm448_vm4, %v487_v47, %v486_v32 }
  0xd7   : > { %v513_v55 = vsel %vm503_vm9, %v488_v46, %v512_v50  ;;  %v742_v50 = vstv %s2698_s29  ;;  %s2842_s29 = sld [smem:[#allocation4 + $0x1a]] }
  0xd8   : > { %v370_v48 = vpop.xlane.xlu1 %369  ;;  %v523_v56 = vpop.xlane.xlu2 %522  ;;  %v514_v58 = vsel %vm505_vm10, %v491_v54, %v513_v55 }
  0xd9   : > { %v409_v60 = vmul.f32 %v2523_v43, %v370_v48  ;;  %v368_v37 = vpop.xlane.xlu0 %367  ;;  %v649_v8 = vperm.slane %v523_v56, %v2530_v52 }
  0xda   : > { %v408_v53 = vmul.f32 %v2523_v43, %v368_v37 }
  0xdb   : > { %v493_v27 = vperm.slane %v409_v60, %v2526_v49 }
  0xdc   : > { %v492_v57 = vperm.slane %v408_v53, %v2530_v52 }
  0xde   : > { %v494_v59 = vsel %vm448_vm4, %v493_v27, %v492_v57 }
  0xdf   : > { %v515_v61 = vsel %vm507_vm11, %v494_v59, %v514_v58 }
  0xe0   : > { %520 = vst.msk [vmem:[#allocation2 + $0xb] sm:$0xff] %vm518_vm12, %v515_v61  ;;  %v529_v63 = vpop.xlane.xlu1 %528  ;;  %v532_v3 = vpop.xlane.xlu2 %531 }
  0xe1   : > { %v526_v11 = vpop.xlane.xlu0 %525  ;;  %v652_v10 = vperm.slane %v529_v63, %v2530_v52  ;;  %v653_v0 = vperm.slane %v532_v3, %v2526_v49  ;;  %v784_v3 = vstv %s2710_s30  ;;  %s2132_s30 = sld [smem:[#allocation4 + $0x1b]] }
  0xe2   : > { %v650_v15 = vperm.slane %v526_v11, %v2526_v49  ;;  %v785_v11 = vmul.f32 %v784_v3, %v2606_v2 }
  0xe3   : > { %v654_v18 = vsel %vm448_vm4, %v653_v0, %v652_v10 }
  0xe4   : > { %v651_v13 = vsel %vm448_vm4, %v650_v15, %v649_v8 }
  0xe5   : > { %v697_v22 = vsel %vm495_vm5, %v654_v18, %v651_v13 }
  0xe7   : > { %v2663_v43 = vld [vmem:[#allocation2 + $0x8] sm:$0xff] }
  0xe8   : > { %v538_v40 = vpop.xlane.xlu1 %537  ;;  %v541_v62 = vpop.xlane.xlu2 %540  ;;  %v730_v5 = vmul.f32 %v728_v4, %v2663_v43  ;;  %v758_v58 = vmul.f32 %v756_v23, %v2663_v43 }
  0xe9   : > { %v535_v35 = vpop.xlane.xlu0 %534  ;;  %v656_v19 = vperm.slane %v538_v40, %v2526_v49  ;;  %v658_v17 = vperm.slane %v541_v62, %v2530_v52 }
  0xea   : > { %735 = vrot.lane.b32.xlu2 %v730_v5, %s2266_s27  ;;  %v655_v25 = vperm.slane %v535_v35, %v2530_v52 }
  0xec   : > { %v657_v33 = vsel %vm448_vm4, %v656_v19, %v655_v25 }
  0xed   : > { %v698_v38 = vsel %vm497_vm6, %v657_v33, %v697_v22 }
  0xf0   : > { %v547_v7 = vpop.xlane.xlu1 %546  ;;  %v550_v1 = vpop.xlane.xlu2 %549 }
  0xf1   : > { %v544_v6 = vpop.xlane.xlu0 %543  ;;  %v661_v14 = vperm.slane %v547_v7, %v2530_v52  ;;  %v662_v26 = vperm.slane %v550_v1, %v2526_v49 }
  0xf2   : > { %v659_v12 = vperm.slane %v544_v6, %v2526_v49 }
  0xf3   : > { %v663_v42 = vsel %vm448_vm4, %v662_v26, %v661_v14 }
  0xf4   : > { %v660_v16 = vsel %vm448_vm4, %v659_v12, %v658_v17 }
  0xf5   : > { %v699_v24 = vsel %vm499_vm7, %v660_v16, %v698_v38 }
  0xf6   : > { %v700_v39 = vsel %vm501_vm8, %v663_v42, %v699_v24 }
  0xf8   : > { %v556_v9 = vpop.xlane.xlu1 %555  ;;  %v559_v4 = vpop.xlane.xlu2 %558 }
  0xf9   : > { %v553_v29 = vpop.xlane.xlu0 %552  ;;  %v665_v20 = vperm.slane %v556_v9, %v2526_v49  ;;  %v667_v28 = vperm.slane %v559_v4, %v2530_v52 }
  0xfa   : > { %v664_v21 = vperm.slane %v553_v29, %v2530_v52 }
  0xfc   : > { %v666_v47 = vsel %vm448_vm4, %v665_v20, %v664_v21 }
  0xfd   : > { %v701_v45 = vsel %vm503_vm9, %v666_v47, %v700_v39  ;;  %v770_v39 = vstv %s2110_s6  ;;  %s2863_s6 = sld [smem:[#allocation4 + $0x1f]] }
 0x100   : > { %v565_v30 = vpop.xlane.xlu1 %564  ;;  %v568_v32 = vpop.xlane.xlu2 %567 }
 0x101   : > { %v670_v51 = vperm.slane %v565_v30, %v2530_v52  ;;  %v562_v44 = vpop.xlane.xlu0 %561  ;;  %v671_v34 = vperm.slane %v568_v32, %v2526_v49 }
 0x102   : > { %v668_v36 = vperm.slane %v562_v44, %v2526_v49 }
 0x103   : > { %v672_v41 = vsel %vm448_vm4, %v671_v34, %v670_v51 }
 0x104   : > { %v669_v46 = vsel %vm448_vm4, %v668_v36, %v667_v28  ;;  %v798_v36 = vstv %s2112_s5  ;;  %s2130_s5 = sld [smem:[#allocation4 + $0x19]] }
 0x105   : > { %v702_v48 = vsel %vm505_vm10, %v669_v46, %v701_v45  ;;  %v826_v46 = vstv %s2753_s7  ;;  %s2137_s7 = sld [smem:[#allocation4 + $0x20]] }
 0x106   : > { %v703_v56 = vsel %vm507_vm11, %v672_v41, %v702_v48 }
 0x107   : > { %713 = vst.msk [vmem:[#allocation3 + $0x3] sm:$0xff] %vm518_vm12, %v703_v56 }
 0x108   : > { %v574_v31 = vpop.xlane.xlu1 %573  ;;  %v577_v60 = vpop.xlane.xlu2 %576 }
 0x109   : > { %v571_v37 = vpop.xlane.xlu0 %570  ;;  %v676_v5 = vperm.slane %v577_v60, %v2530_v52  ;;  %v674_v23 = vperm.slane %v574_v31, %v2526_v49  ;;  %v840_v60 = vstv %s2115_s8  ;;  %s2135_s8 = sld [smem:[#allocation4 + $0x1e]] }
 0x10a   : > { %v673_v1 = vperm.slane %v571_v37, %v2530_v52  ;;  %v812_v37 = vstv %s2113_s9  ;;  %s2886_s9 = sld [smem:[#allocation4 + $0x22]] }
 0x10c   : > { %v675_v4 = vsel %vm448_vm4, %v674_v23, %v673_v1  ;;  %v2806_v1 = vld [vmem:[#allocation2 + $0x9] sm:$0xff] }
 0x10e   : > { %v2704_v53 = vld [vmem:[#allocation3] sm:$0xff] }
 0x10f   : > { %v743_v54 = vmul.f32 %v742_v50, %v2704_v53  ;;  %v827_v48 = vmul.f32 %v826_v46, %v2704_v53  ;;  %v799_v56 = vmul.f32 %v798_v36, %v2704_v53  ;;  %v771_v31 = vmul.f32 %v770_v39, %v2704_v53 }
 0x110   : > { %v583_v55 = vpop.xlane.xlu1 %582  ;;  %v586_v57 = vpop.xlane.xlu2 %585 }
 0x111   : > { %747 = vrot.lane.b32.xlu0 %v743_v54, %s2266_s27  ;;  %v580_v27 = vpop.xlane.xlu0 %579  ;;  %v679_v6 = vperm.slane %v583_v55, %v2530_v52  ;;  %v680_v8 = vperm.slane %v586_v57, %v2526_v49  ;;  %v814_v54 = vmul.f32 %v812_v37, %v2663_v43  ;;  %v786_v55 = vmul.f32 %v784_v3, %v2663_v43 }
 0x112   : > { %v677_v35 = vperm.slane %v580_v27, %v2526_v49  ;;  %v868_v27 = vstv %s2772_s11  ;;  %s715_s11 = sld [smem:[#allocation4]] }
 0x113   : > { %v681_v29 = vsel %vm448_vm4, %v680_v8, %v679_v6  ;;  %v869_v57 = vmul.f32 %v868_v27, %v2606_v2  ;;  %v940_v6 = vstv %s2123_s19  ;;  %v912_v8 = vstv %s2121_s20  ;;  %s2924_s19 = sld [smem:[#allocation4 + $0x1]] }
 0x114   : > { %v678_v10 = vsel %vm448_vm4, %v677_v35, %v676_v5  ;;  %v926_v5 = vstv %s2789_s18  ;;  %s2919_s18 = sld [smem:[#allocation4 + $0x25]] }
 0x115   : > { %v704_v12 = vsel %vm495_vm5, %v678_v10, %v675_v4  ;;  %v942_v10 = vmul.f32 %v940_v6, %v2806_v1  ;;  %s2934_s20 = sld [smem:[#allocation4 + $0xe]] }
 0x116   : > { %v705_v21 = vsel %vm497_vm6, %v681_v29, %v704_v12  ;;  %v982_v29 = vstv %s2126_s22  ;;  %s2942_s22 = sld [smem:[#allocation4 + $0x24]] }
 0x118   : > { %v592_v59 = vpop.xlane.xlu1 %591  ;;  %v595_v63 = vpop.xlane.xlu2 %594 }
 0x119   : > { %763 = vrot.lane.b32.xlu0 %v758_v58, %s2267_s28  ;;  %v589_v61 = vpop.xlane.xlu0 %588  ;;  %v683_v0 = vperm.slane %v592_v59, %v2526_v49  ;;  %v685_v19 = vperm.slane %v595_v63, %v2530_v52  ;;  %v841_v58 = vmul.f32 %v840_v60, %v2606_v2  ;;  %v813_v59 = vmul.f32 %v812_v37, %v2606_v2 }
 0x11a   : > { %v682_v15 = vperm.slane %v589_v61, %v2530_v52  ;;  %v882_v61 = vstv %s2118_s15  ;;  %v854_v63 = vstv %s2116_s16  ;;  %v1110_v37 = vstv %s2863_s6  ;;  %s2899_s15 = sld [smem:[#allocation4 + $0x23]] }
 0x11b   : > { %v855_v23 = vmul.f32 %v854_v63, %v2704_v53  ;;  %s2901_s16 = sld [smem:[#allocation4 + $0x21]] }
 0x11c   : > { %v684_v18 = vsel %vm448_vm4, %v683_v0, %v682_v15  ;;  %v914_v0 = vmul.f32 %v912_v8, %v2806_v1  ;;  %v870_v15 = vmul.f32 %v868_v27, %v2663_v43  ;;  %s3021_s6 = sld [smem:[#allocation4 + $0x30]] }
 0x11d   : > { %v706_v22 = vsel %vm499_vm7, %v684_v18, %v705_v21  ;;  %v954_v18 = vstv %s2124_s23  ;;  %s2956_s23 = sld [smem:[#allocation4 + $0x28]] }
 0x120   : > { %v601_v40 = vpop.xlane.xlu1 %600  ;;  %v604_v7 = vpop.xlane.xlu2 %603 }
 0x121   : > { %789 = vrot.lane.b32.xlu0 %v785_v11, %s2268_s4  ;;  %v598_v62 = vpop.xlane.xlu0 %597  ;;  %v688_v13 = vperm.slane %v601_v40, %v2530_v52  ;;  %v689_v33 = vperm.slane %v604_v7, %v2526_v49  ;;  %v883_v7 = vmul.f32 %v882_v61, %v2704_v53 }
 0x122   : > { %v686_v25 = vperm.slane %v598_v62, %v2526_v49  ;;  %v2797_v62 = vld [vmem:[#allocation3 + $0x1] sm:$0xff] }
 0x123   : > { %v690_v24 = vsel %vm448_vm4, %v689_v33, %v688_v13  ;;  %v927_v35 = vmul.f32 %v926_v5, %v2797_v62  ;;  %v955_v21 = vmul.f32 %v954_v18, %v2797_v62 }
 0x124   : > { %v687_v14 = vsel %vm448_vm4, %v686_v25, %v685_v19  ;;  %v2816_v19 = vld [vmem:[#allocation2 + $0x1] sm:$0xff]  ;;  %v968_v25 = vstv %s2808_s21  ;;  %s2940_s21 = sld [smem:[#allocation4 + $0x26]] }
 0x125   : > { %v707_v38 = vsel %vm501_vm8, %v687_v14, %v706_v22  ;;  %v941_v4 = vmul.f32 %v940_v6, %v2816_v19  ;;  %v1024_v22 = vstv %s2129_s25  ;;  %v1152_v6 = vstv %s2886_s9  ;;  %s2980_s25 = sld [smem:[#allocation4 + $0x29]] }
 0x126   : > { %v708_v47 = vsel %vm503_vm9, %v690_v24, %v707_v38  ;;  %v996_v38 = vstv %s2127_s26  ;;  %v1026_v24 = vmul.f32 %v1024_v22, %v2806_v1  ;;  %s2983_s26 = sld [smem:[#allocation4 + $0x27]] }
 0x127   : > { %s3046_s9 = sld [smem:[#allocation4 + $0x33]] }
 0x128   : > { %v610_v17 = vpop.xlane.xlu1 %609  ;;  %v613_v20 = vpop.xlane.xlu2 %612 }
 0x129   : > { %v607_v9 = vpop.xlane.xlu0 %606  ;;  %v692_v26 = vperm.slane %v610_v17, %v2526_v49  ;;  %v694_v42 = vperm.slane %v613_v20, %v2530_v52  ;;  %v913_v17 = vmul.f32 %v912_v8, %v2816_v19  ;;  %v983_v20 = vmul.f32 %v982_v29, %v2797_v62 }
 0x12a   : > { %v691_v16 = vperm.slane %v607_v9, %v2530_v52  ;;  %v969_v9 = vmul.f32 %v968_v25, %v2816_v19 }
 0x12c   : > { %v693_v28 = vsel %vm448_vm4, %v692_v26, %v691_v16  ;;  %v1010_v26 = vstv %s2827_s24  ;;  %s2960_s24 = sld [smem:[#allocation4 + $0xf]] }
 0x12d   : > { %v709_v51 = vsel %vm505_vm10, %v693_v28, %v708_v47  ;;  %v1011_v16 = vmul.f32 %v1010_v26, %v2797_v62  ;;  %v970_v28 = vmul.f32 %v968_v25, %v2806_v1 }
 0x131   : > { %v616_v30 = vpop.xlane.xlu0 %615 }
 0x132   : > { %v695_v32 = vperm.slane %v616_v30, %v2526_v49 }
 0x134   : > { %v696_v44 = vsel %vm448_vm4, %v695_v32, %v694_v42  ;;  %v998_v42 = vmul.f32 %v996_v38, %v2806_v1  ;;  %v1052_v32 = vstv %s2842_s29  ;;  %s2994_s29 = sld [smem:[#allocation4 + $0x2d]] }
 0x135   : > { %v710_v34 = vsel %vm507_vm11, %v696_v44, %v709_v51  ;;  %v1053_v51 = vmul.f32 %v1052_v32, %v2816_v19  ;;  %v1025_v44 = vmul.f32 %v1024_v22, %v2816_v19 }
 0x136   : > { %714 = vst.msk [vmem:[#allocation3 + $0xb] sm:$0xff] %vm518_vm12, %v710_v34  ;;  %v997_v34 = vmul.f32 %v996_v38, %v2816_v19 }
 0x13d   : > { %v2755_v52 = vld [vmem:[#allocation3 + $0x8] sm:$0xff] }
 0x13e   : > { %v800_v49 = vmul.f32 %v798_v36, %v2755_v52  ;;  %v772_v41 = vmul.f32 %v770_v39, %v2755_v52  ;;  %v744_v45 = vmul.f32 %v742_v50, %v2755_v52  ;;  %v842_v50 = vmul.f32 %v840_v60, %v2663_v43  ;;  %v2825_v12 = vld [vmem:[#allocation3 + $0x9] sm:$0xff] }
 0x13f   : > { %v884_v3 = vmul.f32 %v882_v61, %v2755_v52  ;;  %v856_v11 = vmul.f32 %v854_v63, %v2755_v52  ;;  %v828_v40 = vmul.f32 %v826_v46, %v2755_v52  ;;  %v984_v13 = vmul.f32 %v982_v29, %v2825_v12  ;;  %v2875_v60 = vld [vmem:[#allocation3 + $0x2] sm:$0xff] }
 0x140   : > { %805 = vrot.lane.b32.xlu0 %v800_v49, %s2268_s4  ;;  %777 = vrot.lane.b32.xlu1 %v772_v41, %s2267_s28  ;;  %v956_v33 = vmul.f32 %v954_v18, %v2825_v12  ;;  %v928_v14 = vmul.f32 %v926_v5, %v2825_v12  ;;  %v1066_v39 = vstv %s2132_s30  ;;  %v1038_v49 = vstv %s2130_s5  ;;  %s3009_s30 = sld [smem:[#allocation4 + $0x2e]] }
 0x141   : > { %749 = vrot.lane.b32.xlu2 %v744_v45, %s2266_s27  ;;  %v1068_v41 = vmul.f32 %v1066_v39, %v2825_v12  ;;  %v1040_v45 = vmul.f32 %v1038_v49, %v2825_v12  ;;  %v1012_v46 = vmul.f32 %v1010_v26, %v2825_v12  ;;  %v1124_v61 = vstv %s2137_s7  ;;  %s3011_s5 = sld [smem:[#allocation4 + $0x2c]] }
 0x142   : > { %v1096_v63 = vstv %s2135_s8  ;;  %v1166_v29 = vstv %s2899_s15  ;;  %v1138_v18 = vstv %s2901_s16  ;;  %s3034_s7 = sld [smem:[#allocation4 + $0x31]] }
 0x143   : > { %s3036_s8 = sld [smem:[#allocation4 + $0x2f]] }
 0x144   : > { %v2850_v30 = vpop.permute.xlu2 %735  ;;  %s3057_s15 = sld [smem:[#allocation4 + $0x34]] }
 0x145   : > { %s3059_s16 = sld [smem:[#allocation4 + $0x32]] }
 0x148   : > { %831 = vrot.lane.b32.xlu0 %v827_v48, %s2269_s10  ;;  %803 = vrot.lane.b32.xlu1 %v799_v56, %s2268_s4  ;;  %v2868_v48 = vpop.permute.xlu1 %733 }
 0x149   : > { %775 = vrot.lane.b32.xlu2 %v771_v31, %s2267_s28 }
 0x150   : > { %847 = vrot.lane.b32.xlu0 %v842_v50, %s2270_s14  ;;  %819 = vrot.lane.b32.xlu1 %v814_v54, %s2269_s10  ;;  %v1111_v50 = vmul.f32 %v1110_v37, %v2875_v60  ;;  %v1067_v54 = vmul.f32 %v1066_v39, %v2797_v62  ;;  %v762_v27 = vpop.permute.xlu1 %761 }
 0x151   : > { %791 = vrot.lane.b32.xlu2 %v786_v55, %s2268_s4  ;;  %v1039_v55 = vmul.f32 %v1038_v49, %v2797_v62  ;;  %v1139_v49 = vmul.f32 %v1138_v18, %v2875_v60 }
 0x158   : > { %873 = vrot.lane.b32.xlu0 %v869_v57, %s2271_s17  ;;  %845 = vrot.lane.b32.xlu1 %v841_v58, %s2270_s14 }
 0x159   : > { %817 = vrot.lane.b32.xlu2 %v813_v59, %s2269_s10  ;;  %v2884_v59 = vld [vmem:[#allocation2 + $0xa] sm:$0xff] }
 0x160   : > { %889 = vrot.lane.b32.xlu0 %v884_v3, %s2271_s17  ;;  %861 = vrot.lane.b32.xlu1 %v856_v11, %s2270_s14  ;;  %v1126_v3 = vmul.f32 %v1124_v61, %v2884_v59  ;;  %v1098_v11 = vmul.f32 %v1096_v63, %v2884_v59 }
 0x161   : > { %833 = vrot.lane.b32.xlu2 %v828_v40, %s2269_s10  ;;  %v1054_v40 = vmul.f32 %v1052_v32, %v2806_v1 }
 0x168   : > { %931 = vrot.lane.b32.xlu0 %v927_v35, %s2266_s27  ;;  %887 = vrot.lane.b32.xlu1 %v883_v7, %s2271_s17 }
 0x169   : > { %859 = vrot.lane.b32.xlu2 %v855_v23, %s2270_s14  ;;  %v2896_v23 = vld [vmem:[#allocation2 + $0x2] sm:$0xff] }
 0x16a   : > { %v1153_v8 = vmul.f32 %v1152_v6, %v2896_v23 }
 0x170   : > { %947 = vrot.lane.b32.xlu0 %v942_v10, %s2267_s28  ;;  %919 = vrot.lane.b32.xlu1 %v914_v0, %s2266_s27  ;;  %v1125_v10 = vmul.f32 %v1124_v61, %v2896_v23  ;;  %v1097_v0 = vmul.f32 %v1096_v63, %v2896_v23  ;;  %v1180_v63 = vstv %s2942_s22  ;;  %s3097_s22 = sld [smem:[#allocation4 + $0x3b]] }
 0x171   : > { %875 = vrot.lane.b32.xlu2 %v870_v15, %s2271_s17 }
 0x178   : > { %973 = vrot.lane.b32.xlu0 %v969_v9, %s2268_s4  ;;  %945 = vrot.lane.b32.xlu1 %v941_v4, %s2267_s28  ;;  %v2917_v4 = vld [vmem:[#allocation3 + $0xa] sm:$0xff] }
 0x179   : > { %917 = vrot.lane.b32.xlu2 %v913_v17, %s2266_s27  ;;  %v718_v17 = vstv %s715_s11  ;;  %v1112_v26 = vmul.f32 %v1110_v37, %v2917_v4  ;;  %s2133_s11 = sld [smem:[#allocation4 + $0x1c]] }
 0x180   : > { %989 = vrot.lane.b32.xlu0 %v984_v13, %s2268_s4  ;;  %961 = vrot.lane.b32.xlu1 %v956_v33, %s2267_s28  ;;  %v720_v13 = vmul.f32 %v718_v17, %v2663_v43  ;;  %v1168_v33 = vmul.f32 %v1166_v29, %v2917_v4 }
 0x181   : > { %933 = vrot.lane.b32.xlu2 %v928_v14, %s2266_s27  ;;  %v1140_v14 = vmul.f32 %v1138_v18, %v2917_v4 }
 0x183   : > { %v2853_v47 = vpop.permute.xlu0 %747 }
 0x188   : > { %1015 = vrot.lane.b32.xlu0 %v1011_v16, %s2269_s10  ;;  %987 = vrot.lane.b32.xlu1 %v983_v20, %s2268_s4  ;;  %v740_v16 = vadd.f32 %v2850_v30, %v720_v13  ;;  %v719_v20 = vmul.f32 %v718_v17, %v2606_v2  ;;  %v724_v2 = vstv %s2924_s19  ;;  %v906_v13 = vstv %s2960_s24  ;;  %s3071_s19 = sld [smem:[#allocation4 + $0x1d]] }
 0x189   : > { %959 = vrot.lane.b32.xlu2 %v955_v21, %s2267_s28  ;;  %v726_v39 = vmul.f32 %v724_v2, %v2755_v52  ;;  %s3114_s24 = sld [smem:[#allocation4 + $0x3a]] }
 0x18a   : > { %v739_v38 = vadd.f32 %v2868_v48, %v719_v20 }
 0x18b   : > { %v764_v56 = vpop.permute.xlu0 %763 }
 0x18c   : > { %v768_v43 = vadd.f32 %v764_v56, %v740_v16  ;;  %v767_v30 = vadd.f32 %v762_v27, %v739_v38  ;;  %v898_v56 = vstv %s2934_s20  ;;  %s3085_s20 = sld [smem:[#allocation4 + $0x37]] }
 0x190   : > { %1031 = vrot.lane.b32.xlu0 %v1026_v24, %s2270_s14  ;;  %1003 = vrot.lane.b32.xlu1 %v998_v42, %s2269_s10  ;;  %v1194_v42 = vstv %s2919_s18  ;;  %s3069_s18 = sld [smem:[#allocation4 + $0x36]] }
 0x191   : > { %975 = vrot.lane.b32.xlu2 %v970_v28, %s2268_s4 }
 0x193   : > { %v790_v57 = vpop.permute.xlu0 %789 }
 0x198   : > { %1057 = vrot.lane.b32.xlu0 %v1053_v51, %s2271_s17  ;;  %1029 = vrot.lane.b32.xlu1 %v1025_v44, %s2270_s14  ;;  %v1195_v51 = vmul.f32 %v1194_v42, %v2875_v60  ;;  %v1167_v44 = vmul.f32 %v1166_v29, %v2875_v60  ;;  %v1236_v29 = vstv %s2956_s23  ;;  %s3109_s23 = sld [smem:[#allocation4 + $0x3c]] }
 0x199   : > { %1001 = vrot.lane.b32.xlu2 %v997_v34, %s2269_s10  ;;  %v795_v34 = vadd.f32 %v790_v57, %v767_v30  ;;  %v1208_v57 = vstv %s2940_s21  ;;  %v1222_v30 = vstv %s2983_s26  ;;  %s3088_s21 = sld [smem:[#allocation4 + $0x35]] }
 0x19a   : > { %s3134_s26 = sld [smem:[#allocation4 + $0x3f]] }
 0x19b   : > { %v2861_v36 = vpop.permute.xlu2 %749 }
 0x1a0   : > { %1073 = vrot.lane.b32.xlu0 %v1068_v41, %s2271_s17  ;;  %1045 = vrot.lane.b32.xlu1 %v1040_v45, %s2270_s14  ;;  %v754_v41 = vadd.f32 %v2861_v36, %v726_v39  ;;  %v725_v36 = vmul.f32 %v724_v2, %v2704_v53 }
 0x1a1   : > { %1017 = vrot.lane.b32.xlu2 %v1012_v46, %s2269_s10 }
 0x1a3   : > { %v2873_v31 = vpop.permute.xlu2 %775 }
 0x1a8   : > { %1115 = vrot.lane.b32.xlu0 %v1111_v50, %s2266_s27  ;;  %1071 = vrot.lane.b32.xlu1 %v1067_v54, %s2271_s17 }
 0x1a9   : > { %1043 = vrot.lane.b32.xlu2 %v1039_v55, %s2270_s14  ;;  %v900_v55 = vmul.f32 %v898_v56, %v2806_v1 }
 0x1ab   : > { %v792_v58 = vpop.permute.xlu2 %791 }
 0x1ac   : > { %v796_v28 = vadd.f32 %v792_v58, %v768_v43  ;;  %v899_v58 = vmul.f32 %v898_v56, %v2816_v19  ;;  %v907_v43 = vmul.f32 %v906_v13, %v2797_v62  ;;  %v1223_v56 = vmul.f32 %v1222_v30, %v2875_v60 }
 0x1b0   : > { %1131 = vrot.lane.b32.xlu0 %v1126_v3, %s2267_s28  ;;  %1103 = vrot.lane.b32.xlu1 %v1098_v11, %s2266_s27  ;;  %v1210_v11 = vmul.f32 %v1208_v57, %v2884_v59 }
 0x1b1   : > { %1059 = vrot.lane.b32.xlu2 %v1054_v40, %s2271_s17  ;;  %v1182_v40 = vmul.f32 %v1180_v63, %v2884_v59 }
 0x1b2   : > { %v778_v5 = vpop.permute.xlu1 %777  ;;  %v2894_v35 = vpop.permute.xlu0 %805 }
 0x1b3   : > { %v818_v7 = vpop.permute.xlu2 %817  ;;  %v782_v50 = vadd.f32 %v778_v5, %v754_v41  ;;  %v753_v5 = vadd.f32 %v2853_v47, %v725_v36  ;;  %v1294_v41 = vstv %s2994_s29  ;;  %v1308_v36 = vstv %s3009_s30  ;;  %s3139_s29 = sld [smem:[#allocation4 + $0x3d]] }
 0x1b4   : > { %v823_v45 = vadd.f32 %v818_v7, %v795_v34  ;;  %s3151_s30 = sld [smem:[#allocation4 + $0x41]] }
 0x1b5   : > { %v810_v1 = vadd.f32 %v2894_v35, %v782_v50  ;;  %v781_v53 = vadd.f32 %v2873_v31, %v753_v5  ;;  %v1237_v31 = vmul.f32 %v1236_v29, %v2896_v23 }
 0x1b8   : > { %1157 = vrot.lane.b32.xlu0 %v1153_v8, %s2268_s4  ;;  %1129 = vrot.lane.b32.xlu1 %v1125_v10, %s2267_s28  ;;  %v1154_v8 = vmul.f32 %v1152_v6, %v2884_v59  ;;  %v908_v6 = vmul.f32 %v906_v13, %v2825_v12  ;;  %v3044_v13 = vld [vmem:[#allocation3 + $0xb] sm:$0xff] }
 0x1b9   : > { %1101 = vrot.lane.b32.xlu2 %v1097_v0, %s2266_s27 }
 0x1ba   : > { %v2911_v15 = vpop.permute.xlu1 %803  ;;  %v2913_v25 = vpop.permute.xlu0 %831 }
 0x1bb   : > { %v2915_v9 = vpop.permute.xlu2 %833  ;;  %v809_v47 = vadd.f32 %v2911_v15, %v781_v53 }
 0x1bc   : > { %v838_v19 = vadd.f32 %v2915_v9, %v810_v1  ;;  %v1209_v9 = vmul.f32 %v1208_v57, %v2896_v23 }
 0x1c0   : > { %1173 = vrot.lane.b32.xlu0 %v1168_v33, %s2268_s4  ;;  %1145 = vrot.lane.b32.xlu1 %v1140_v14, %s2267_s28  ;;  %v837_v14 = vadd.f32 %v2913_v25, %v809_v47 }
 0x1c1   : > { %1117 = vrot.lane.b32.xlu2 %v1112_v26, %s2266_s27  ;;  %v1181_v26 = vmul.f32 %v1180_v63, %v2896_v23 }
 0x1c2   : > { %v820_v21 = vpop.permute.xlu1 %819  ;;  %v848_v22 = vpop.permute.xlu0 %847 }
 0x1c3   : > { %v2937_v24 = vpop.permute.xlu2 %859  ;;  %v824_v32 = vadd.f32 %v820_v21, %v796_v28  ;;  %v1250_v28 = vstv %s2980_s25  ;;  %s3126_s25 = sld [smem:[#allocation4 + $0x3e]] }
 0x1c4   : > { %v865_v12 = vadd.f32 %v2937_v24, %v837_v14  ;;  %v1252_v2 = vmul.f32 %v1250_v28, %v2917_v4 }
 0x1c5   : > { %v852_v46 = vadd.f32 %v848_v22, %v824_v32  ;;  %v1224_v32 = vmul.f32 %v1222_v30, %v2917_v4 }
 0x1c8   : > { %1199 = vrot.lane.b32.xlu0 %v1195_v51, %s2269_s10  ;;  %1171 = vrot.lane.b32.xlu1 %v1167_v44, %s2268_s4  ;;  %v1196_v51 = vmul.f32 %v1194_v42, %v2917_v4 }
 0x1c9   : > { %1143 = vrot.lane.b32.xlu2 %v1139_v49, %s2267_s28  ;;  %v3006_v49 = vld [vmem:[#allocation3 + $0x3] sm:$0xff] }
 0x1ca   : > { %v846_v48 = vpop.permute.xlu1 %845  ;;  %v874_v37 = vpop.permute.xlu0 %873  ;;  %v1295_v42 = vmul.f32 %v1294_v41, %v3006_v49 }
 0x1cb   : > { %v851_v54 = vadd.f32 %v846_v48, %v823_v45  ;;  %v876_v52 = vpop.permute.xlu2 %875  ;;  %v1251_v48 = vmul.f32 %v1250_v28, %v2875_v60 }
 0x1cc   : > { %v880_v27 = vadd.f32 %v876_v52, %v852_v46 }
 0x1cd   : > { %v879_v61 = vadd.f32 %v874_v37, %v851_v54 }
 0x1ce   : > { %v902_v3 = vadd.f32 %v900_v55, %v880_v27  ;;  %v3019_v55 = vld [vmem:[#allocation2 + $0xb] sm:$0xff] }
 0x1cf   : > { %v901_v7 = vadd.f32 %v899_v58, %v879_v61  ;;  %v1280_v58 = vstv %s3011_s5  ;;  %v1310_v61 = vmul.f32 %v1308_v36, %v3019_v55  ;;  %s2147_s5 = sld [smem:[#allocation4 + $0x2a]] }
 0x1d0   : > { %1215 = vrot.lane.b32.xlu0 %v1210_v11, %s2270_s14  ;;  %1187 = vrot.lane.b32.xlu1 %v1182_v40, %s2269_s10  ;;  %v1282_v63 = vmul.f32 %v1280_v58, %v3019_v55 }
 0x1d1   : > { %1159 = vrot.lane.b32.xlu2 %v1154_v8, %s2268_s4  ;;  %v1336_v8 = vstv %s3021_s6  ;;  %s3159_s6 = sld [smem:[#allocation4 + $0x42]] }
 0x1d2   : > { %v862_v10 = vpop.permute.xlu1 %861  ;;  %v890_v0 = vpop.permute.xlu0 %889 }
 0x1d3   : > { %v866_v17 = vadd.f32 %v862_v10, %v838_v19  ;;  %v918_v35 = vpop.permute.xlu2 %917 }
 0x1d4   : > { %v923_v18 = vadd.f32 %v918_v35, %v901_v7  ;;  %v3031_v7 = vld [vmem:[#allocation2 + $0x3] sm:$0xff] }
 0x1d5   : > { %v894_v33 = vadd.f32 %v890_v0, %v866_v17  ;;  %v1337_v10 = vmul.f32 %v1336_v8, %v3031_v7  ;;  %v1309_v0 = vmul.f32 %v1308_v36, %v3031_v7  ;;  %v1281_v47 = vmul.f32 %v1280_v58, %v3031_v7 }
 0x1d6   : > { %v1090_v36 = vstv %s3071_s19  ;;  %s3213_s19 = sld [smem:[#allocation4 + $0x48]] }
 0x1d7   : > { %v910_v15 = vadd.f32 %v908_v6, %v894_v33 }
 0x1d8   : > { %1241 = vrot.lane.b32.xlu0 %v1237_v31, %s2271_s17  ;;  %1213 = vrot.lane.b32.xlu1 %v1209_v9, %s2270_s14  ;;  %v1350_v31 = vstv %s3034_s7  ;;  %v1322_v9 = vstv %s3036_s8  ;;  %s3162_s7 = sld [smem:[#allocation4 + $0x40]] }
 0x1d9   : > { %1185 = vrot.lane.b32.xlu2 %v1181_v26, %s2269_s10  ;;  %v1352_v14 = vmul.f32 %v1350_v31, %v3044_v13  ;;  %v1296_v26 = vmul.f32 %v1294_v41, %v3044_v13  ;;  %v1351_v28 = vmul.f32 %v1350_v31, %v3006_v49  ;;  %v1323_v30 = vmul.f32 %v1322_v9, %v3006_v49  ;;  %s3172_s8 = sld [smem:[#allocation4 + $0x44]] }
 0x1da   : > { %v888_v16 = vpop.permute.xlu1 %887  ;;  %v932_v20 = vpop.permute.xlu0 %931  ;;  %v1392_v41 = vstv %s3057_s15  ;;  %s3187_s15 = sld [smem:[#allocation4 + $0x43]] }
 0x1db   : > { %v893_v21 = vadd.f32 %v888_v16, %v865_v12  ;;  %v934_v22 = vpop.permute.xlu2 %933 }
 0x1dc   : > { %v938_v25 = vadd.f32 %v934_v22, %v910_v15  ;;  %v1324_v15 = vmul.f32 %v1322_v9, %v3044_v13  ;;  %v3111_v9 = vld [vmem:[#allocation3 + $0x4] sm:$0xff] }
 0x1dd   : > { %v909_v38 = vadd.f32 %v907_v43, %v893_v21  ;;  %v1378_v21 = vstv %s3046_s9  ;;  %s3174_s9 = sld [smem:[#allocation4 + $0x2b]] }
 0x1df   : > { %v937_v24 = vadd.f32 %v932_v20, %v909_v38  ;;  %v1379_v38 = vmul.f32 %v1378_v21, %v3006_v49 }
 0x1e0   : > { %1257 = vrot.lane.b32.xlu0 %v1252_v2, %s2271_s17  ;;  %1229 = vrot.lane.b32.xlu1 %v1224_v32, %s2270_s14 }
 0x1e1   : > { %1201 = vrot.lane.b32.xlu2 %v1196_v51, %s2269_s10 }
 0x1e2   : > { %v920_v62 = vpop.permute.xlu1 %919  ;;  %v948_v44 = vpop.permute.xlu0 %947 }
 0x1e3   : > { %v924_v34 = vadd.f32 %v920_v62, %v902_v3  ;;  %v960_v39 = vpop.permute.xlu2 %959  ;;  %v1238_v3 = vmul.f32 %v1236_v29, %v2884_v59 }
 0x1e4   : > { %v965_v45 = vadd.f32 %v960_v39, %v937_v24  ;;  %v1082_v24 = vstv %s2133_s11  ;;  %s3184_s11 = sld [smem:[#allocation4 + $0x45]] }
 0x1e5   : > { %v952_v46 = vadd.f32 %v948_v44, %v924_v34  ;;  %v1084_v34 = vmul.f32 %v1082_v24, %v2884_v59 }
 0x1e8   : > { %1299 = vrot.lane.b32.xlu0 %v1295_v42, %s2266_s27  ;;  %1255 = vrot.lane.b32.xlu1 %v1251_v48, %s2271_s17  ;;  %v1394_v42 = vmul.f32 %v1392_v41, %v3019_v55 }
 0x1e9   : > { %1227 = vrot.lane.b32.xlu2 %v1223_v56, %s2270_s14 }
 0x1ea   : > { %v946_v37 = vpop.permute.xlu1 %945  ;;  %v974_v50 = vpop.permute.xlu0 %973 }
 0x1eb   : > { %v951_v54 = vadd.f32 %v946_v37, %v923_v18  ;;  %v976_v52 = vpop.permute.xlu2 %975  ;;  %v1338_v37 = vmul.f32 %v1336_v8, %v3019_v55 }
 0x1ec   : > { %v980_v27 = vadd.f32 %v976_v52, %v952_v46  ;;  %v1083_v46 = vmul.f32 %v1082_v24, %v2896_v23 }
 0x1ed   : > { %v979_v57 = vadd.f32 %v974_v50, %v951_v54 }
 0x1f0   : > { %1315 = vrot.lane.b32.xlu0 %v1310_v61, %s2267_s28  ;;  %1287 = vrot.lane.b32.xlu1 %v1282_v63, %s2266_s27  ;;  %v1092_v61 = vmul.f32 %v1090_v36, %v2917_v4 }
 0x1f1   : > { %1243 = vrot.lane.b32.xlu2 %v1238_v3, %s2271_s17  ;;  %v1393_v3 = vmul.f32 %v1392_v41, %v3031_v7 }
 0x1f2   : > { %v962_v11 = vpop.permute.xlu1 %961  ;;  %v990_v40 = vpop.permute.xlu0 %989 }
 0x1f3   : > { %v966_v5 = vadd.f32 %v962_v11, %v938_v25  ;;  %v1002_v1 = vpop.permute.xlu2 %1001 }
 0x1f4   : > { %v1007_v53 = vadd.f32 %v1002_v1, %v979_v57  ;;  %v1420_v57 = vstv %s3069_s18  ;;  %s3208_s18 = sld [smem:[#allocation4 + $0x4a]] }
 0x1f5   : > { %v994_v19 = vadd.f32 %v990_v40, %v966_v5  ;;  %v1421_v63 = vmul.f32 %v1420_v57, %v3031_v7 }
 0x1f8   : > { %1341 = vrot.lane.b32.xlu0 %v1337_v10, %s2268_s4  ;;  %1313 = vrot.lane.b32.xlu1 %v1309_v0, %s2267_s28  ;;  %v1434_v0 = vstv %s3085_s20  ;;  %s3225_s20 = sld [smem:[#allocation4 + $0x4c]] }
 0x1f9   : > { %1285 = vrot.lane.b32.xlu2 %v1281_v47, %s2266_s27  ;;  %v1406_v47 = vstv %s3088_s21  ;;  %s3233_s21 = sld [smem:[#allocation4 + $0x4d]] }
 0x1fa   : > { %v988_v17 = vpop.permute.xlu1 %987  ;;  %v1016_v35 = vpop.permute.xlu0 %1015 }
 0x1fb   : > { %v993_v29 = vadd.f32 %v988_v17, %v965_v45  ;;  %v1018_v18 = vpop.permute.xlu2 %1017  ;;  %v1364_v45 = vstv %s3059_s16  ;;  %v1436_v17 = vmul.f32 %v1434_v0, %v3044_v13  ;;  %s3200_s16 = sld [smem:[#allocation4 + $0x49]] }
 0x1fc   : > { %v1022_v6 = vadd.f32 %v1018_v18, %v994_v19  ;;  %v1366_v48 = vmul.f32 %v1364_v45, %v3019_v55  ;;  %v1365_v11 = vmul.f32 %v1364_v45, %v3031_v7  ;;  %v1380_v18 = vmul.f32 %v1378_v21, %v3044_v13  ;;  %v3136_v45 = vld [vmem:[#allocation2 + $0x4] sm:$0xff] }
 0x1fd   : > { %v1021_v33 = vadd.f32 %v1016_v35, %v993_v29  ;;  %v1408_v35 = vmul.f32 %v1406_v47, %v3044_v13 }
 0x200   : > { %1357 = vrot.lane.b32.xlu0 %v1352_v14, %s2268_s4  ;;  %1329 = vrot.lane.b32.xlu1 %v1324_v15, %s2267_s28  ;;  %v1478_v14 = vstv %s3097_s22  ;;  %s3238_s22 = sld [smem:[#allocation4 + $0x4b]] }
 0x201   : > { %1301 = vrot.lane.b32.xlu2 %v1296_v26, %s2266_s27 }
 0x202   : > { %v1004_v12 = vpop.permute.xlu1 %1003  ;;  %v1032_v16 = vpop.permute.xlu0 %1031 }
 0x203   : > { %v1008_v20 = vadd.f32 %v1004_v12, %v980_v27  ;;  %v1044_v43 = vpop.permute.xlu2 %1043  ;;  %v1479_v12 = vmul.f32 %v1478_v14, %v3111_v9 }
 0x204   : > { %v1049_v22 = vadd.f32 %v1044_v43, %v1021_v33 }
 0x205   : > { %v1036_v25 = vadd.f32 %v1032_v16, %v1008_v20  ;;  %v1435_v16 = vmul.f32 %v1434_v0, %v3006_v49  ;;  %v1407_v20 = vmul.f32 %v1406_v47, %v3006_v49 }
 0x208   : > { %1383 = vrot.lane.b32.xlu0 %v1379_v38, %s2269_s10  ;;  %1355 = vrot.lane.b32.xlu1 %v1351_v28, %s2268_s4  ;;  %v3122_v38 = vld [vmem:[#allocation2 + $0xc] sm:$0xff]  ;;  %v1492_v28 = vstv %s3109_s23  ;;  %s3250_s23 = sld [smem:[#allocation4 + $0x4f]] }
 0x209   : > { %1327 = vrot.lane.b32.xlu2 %v1323_v30, %s2267_s28  ;;  %v1464_v30 = vstv %s3114_s24  ;;  %v1494_v24 = vmul.f32 %v1492_v28, %v3122_v38  ;;  %s2161_s24 = sld [smem:[#allocation4 + $0x38]] }
 0x20a   : > { %v1030_v2 = vpop.permute.xlu1 %1029  ;;  %v1058_v32 = vpop.permute.xlu0 %1057 }
 0x20b   : > { %v1035_v51 = vadd.f32 %v1030_v2, %v1007_v53  ;;  %v1060_v62 = vpop.permute.xlu2 %1059  ;;  %v1091_v53 = vmul.f32 %v1090_v36, %v2875_v60  ;;  %v1506_v36 = vstv %s3139_s29  ;;  %s3269_s29 = sld [smem:[#allocation4 + $0x39]] }
 0x20c   : > { %v1064_v44 = vadd.f32 %v1060_v62, %v1036_v25  ;;  %v1422_v62 = vmul.f32 %v1420_v57, %v3019_v55  ;;  %v3147_v57 = vld [vmem:[#allocation3 + $0xc] sm:$0xff]  ;;  %v1507_v47 = vmul.f32 %v1506_v36, %v3111_v9 }
 0x20d   : > { %v1063_v39 = vadd.f32 %v1058_v32, %v1035_v51  ;;  %v1466_v51 = vmul.f32 %v1464_v30, %v3122_v38 }
 0x20e   : > { %v1086_v56 = vadd.f32 %v1084_v34, %v1064_v44 }
 0x20f   : > { %v1085_v50 = vadd.f32 %v1083_v46, %v1063_v39  ;;  %v1520_v46 = vstv %s3126_s25  ;;  %s3258_s25 = sld [smem:[#allocation4 + $0x50]] }
 0x210   : > { %1399 = vrot.lane.b32.xlu0 %v1394_v42, %s2270_s14  ;;  %1371 = vrot.lane.b32.xlu1 %v1366_v48, %s2269_s10 }
 0x211   : > { %1343 = vrot.lane.b32.xlu2 %v1338_v37, %s2268_s4  ;;  %v1493_v37 = vmul.f32 %v1492_v28, %v3136_v45  ;;  %v1604_v28 = vstv %s3172_s8  ;;  %s3307_s8 = sld [smem:[#allocation4 + $0x56]] }
 0x212   : > { %v1046_v59 = vpop.permute.xlu1 %1045  ;;  %v1074_v54 = vpop.permute.xlu0 %1073 }
 0x213   : > { %v1050_v52 = vadd.f32 %v1046_v59, %v1022_v6  ;;  %v1102_v27 = vpop.permute.xlu2 %1101 }
 0x214   : > { %v1107_v23 = vadd.f32 %v1102_v27, %v1085_v50  ;;  %v1465_v50 = vmul.f32 %v1464_v30, %v3136_v45 }
 0x215   : > { %v1078_v58 = vadd.f32 %v1074_v54, %v1050_v52 }
 0x217   : > { %v1094_v40 = vadd.f32 %v1092_v61, %v1078_v58 }
 0x218   : > { %1425 = vrot.lane.b32.xlu0 %v1421_v63, %s2271_s17  ;;  %1397 = vrot.lane.b32.xlu1 %v1393_v3, %s2270_s14  ;;  %v1508_v3 = vmul.f32 %v1506_v36, %v3147_v57 }
 0x219   : > { %1369 = vrot.lane.b32.xlu2 %v1365_v11, %s2269_s10  ;;  %v1480_v11 = vmul.f32 %v1478_v14, %v3147_v57 }
 0x21a   : > { %v1072_v5 = vpop.permute.xlu1 %1071  ;;  %v1116_v4 = vpop.permute.xlu0 %1115 }
 0x21b   : > { %v1077_v1 = vadd.f32 %v1072_v5, %v1049_v22  ;;  %v1118_v8 = vpop.permute.xlu2 %1117 }
 0x21c   : > { %v1122_v19 = vadd.f32 %v1118_v8, %v1094_v40  ;;  %v1562_v8 = vstv %s3151_s30  ;;  %s3273_s30 = sld [smem:[#allocation4 + $0x52]] }
 0x21d   : > { %v1093_v10 = vadd.f32 %v1091_v53, %v1077_v1 }
 0x21f   : > { %v1121_v29 = vadd.f32 %v1116_v4, %v1093_v10  ;;  %v1563_v10 = vmul.f32 %v1562_v8, %v3111_v9 }
 0x220   : > { %1441 = vrot.lane.b32.xlu0 %v1436_v17, %s2271_s17  ;;  %1413 = vrot.lane.b32.xlu1 %v1408_v35, %s2270_s14 }
 0x221   : > { %1385 = vrot.lane.b32.xlu2 %v1380_v18, %s2269_s10 }
 0x222   : > { %v1104_v60 = vpop.permute.xlu1 %1103  ;;  %v1132_v6 = vpop.permute.xlu0 %1131 }
 0x223   : > { %v1108_v33 = vadd.f32 %v1104_v60, %v1086_v56  ;;  %v1144_v31 = vpop.permute.xlu2 %1143  ;;  %v1521_v56 = vmul.f32 %v1520_v46, %v3136_v45 }
 0x224   : > { %v1149_v15 = vadd.f32 %v1144_v31, %v1121_v29  ;;  %v1266_v29 = vstv %s2147_s5  ;;  %s3284_s5 = sld [smem:[#allocation4 + $0x53]] }
 0x225   : > { %v1136_v26 = vadd.f32 %v1132_v6, %v1108_v33  ;;  %v1576_v6 = vstv %s3159_s6  ;;  %v1548_v33 = vstv %s3162_s7  ;;  %v1268_v14 = vmul.f32 %v1266_v29, %v3019_v55  ;;  %s3287_s6 = sld [smem:[#allocation4 + $0x51]] }
 0x226   : > { %s3299_s7 = sld [smem:[#allocation4 + $0x57]] }
 0x228   : > { %1483 = vrot.lane.b32.xlu0 %v1479_v12, %s2266_s27  ;;  %1439 = vrot.lane.b32.xlu1 %v1435_v16, %s2271_s17  ;;  %v1578_v12 = vmul.f32 %v1576_v6, %v3122_v38  ;;  %v1550_v16 = vmul.f32 %v1548_v33, %v3122_v38 }
 0x229   : > { %1411 = vrot.lane.b32.xlu2 %v1407_v20, %s2270_s14 }
 0x22a   : > { %v1130_v43 = vpop.permute.xlu1 %1129  ;;  %v1158_v21 = vpop.permute.xlu0 %1157 }
 0x22b   : > { %v1135_v22 = vadd.f32 %v1130_v43, %v1107_v23  ;;  %v1160_v25 = vpop.permute.xlu2 %1159  ;;  %v1534_v23 = vstv %s3134_s26  ;;  %v1522_v43 = vmul.f32 %v1520_v46, %v3122_v38  ;;  %s3261_s26 = sld [smem:[#allocation4 + $0x4e]] }
 0x22c   : > { %v1164_v2 = vadd.f32 %v1160_v25, %v1136_v26  ;;  %v1536_v63 = vmul.f32 %v1534_v23, %v3147_v57  ;;  %v1535_v0 = vmul.f32 %v1534_v23, %v3111_v9  ;;  %v1267_v26 = vmul.f32 %v1266_v29, %v3031_v7 }
 0x22d   : > { %v1163_v32 = vadd.f32 %v1158_v21, %v1135_v22 }
 0x230   : > { %1499 = vrot.lane.b32.xlu0 %v1494_v24, %s2267_s28  ;;  %1471 = vrot.lane.b32.xlu1 %v1466_v51, %s2266_s27  ;;  %v1605_v51 = vmul.f32 %v1604_v28, %v3136_v45 }
 0x231   : > { %1427 = vrot.lane.b32.xlu2 %v1422_v62, %s2271_s17  ;;  %v1577_v62 = vmul.f32 %v1576_v6, %v3136_v45 }
 0x232   : > { %v1146_v44 = vpop.permute.xlu1 %1145  ;;  %v1174_v34 = vpop.permute.xlu0 %1173 }
 0x233   : > { %v1150_v39 = vadd.f32 %v1146_v44, %v1122_v19  ;;  %v1186_v41 = vpop.permute.xlu2 %1185  ;;  %v1549_v44 = vmul.f32 %v1548_v33, %v3136_v45 }
 0x234   : > { %v1191_v42 = vadd.f32 %v1186_v41, %v1163_v32 }
 0x235   : > { %v1178_v48 = vadd.f32 %v1174_v34, %v1150_v39 }
 0x238   : > { %1525 = vrot.lane.b32.xlu0 %v1521_v56, %s2268_s4  ;;  %1497 = vrot.lane.b32.xlu1 %v1493_v37, %s2267_s28  ;;  %v1590_v56 = vstv %s3187_s15  ;;  %s3332_s15 = sld [smem:[#allocation4 + $0x59]] }
 0x239   : > { %1469 = vrot.lane.b32.xlu2 %v1465_v50, %s2266_s27 }
 0x23a   : > { %v1172_v59 = vpop.permute.xlu1 %1171  ;;  %v1200_v54 = vpop.permute.xlu0 %1199 }
 0x23b   : > { %v1177_v52 = vadd.f32 %v1172_v59, %v1149_v15  ;;  %v1202_v27 = vpop.permute.xlu2 %1201 }
 0x23c   : > { %v1206_v58 = vadd.f32 %v1202_v27, %v1178_v48  ;;  %v1564_v27 = vmul.f32 %v1562_v8, %v3147_v57 }
 0x23d   : > { %v1205_v61 = vadd.f32 %v1200_v54, %v1177_v52  ;;  %v1592_v54 = vmul.f32 %v1590_v56, %v3147_v57 }
 0x240   : > { %1541 = vrot.lane.b32.xlu0 %v1536_v63, %s2268_s4  ;;  %1513 = vrot.lane.b32.xlu1 %v1508_v3, %s2267_s28  ;;  %v1662_v63 = vstv %s3200_s16  ;;  %s3337_s16 = sld [smem:[#allocation4 + $0x5b]] }
 0x241   : > { %1485 = vrot.lane.b32.xlu2 %v1480_v11, %s2266_s27 }
 0x242   : > { %v1188_v40 = vpop.permute.xlu1 %1187  ;;  %v1216_v5 = vpop.permute.xlu0 %1215 }
 0x243   : > { %v1192_v4 = vadd.f32 %v1188_v40, %v1164_v2  ;;  %v1228_v1 = vpop.permute.xlu2 %1227  ;;  %v1274_v2 = vstv %s3174_s9  ;;  %s3312_s9 = sld [smem:[#allocation4 + $0x58]] }
 0x244   : > { %v1233_v53 = vadd.f32 %v1228_v1, %v1205_v61  ;;  %v1276_v24 = vmul.f32 %v1274_v2, %v3044_v13  ;;  %v1275_v48 = vmul.f32 %v1274_v2, %v3006_v49  ;;  %v1618_v13 = vstv %s3184_s11  ;;  %v3210_v61 = vld [vmem:[#allocation3 + $0x5] sm:$0xff]  ;;  %s3324_s11 = sld [smem:[#allocation4 + $0x5a]] }
 0x245   : > { %v1220_v19 = vadd.f32 %v1216_v5, %v1192_v4  ;;  %v1620_v59 = vmul.f32 %v1618_v13, %v3147_v57  ;;  %v1663_v40 = vmul.f32 %v1662_v63, %v3210_v61  ;;  %v1619_v5 = vmul.f32 %v1618_v13, %v3111_v9 }
 0x246   : > { %v1591_v4 = vmul.f32 %v1590_v56, %v3111_v9  ;;  %v1690_v2 = vstv %s3238_s22  ;;  %s3372_s22 = sld [smem:[#allocation4 + $0x60]] }
 0x248   : > { %1567 = vrot.lane.b32.xlu0 %v1563_v10, %s2269_s10  ;;  %1539 = vrot.lane.b32.xlu1 %v1535_v0, %s2268_s4  ;;  %v3221_v10 = vld [vmem:[#allocation2 + $0xd] sm:$0xff]  ;;  %v1676_v0 = vstv %s3208_s18  ;;  %s3349_s18 = sld [smem:[#allocation4 + $0x5d]] }
 0x249   : > { %1511 = vrot.lane.b32.xlu2 %v1507_v47, %s2267_s28  ;;  %v1648_v47 = vstv %s3213_s19  ;;  %v1678_v29 = vmul.f32 %v1676_v0, %v3221_v10  ;;  %s2175_s19 = sld [smem:[#allocation4 + $0x46]] }
 0x24a   : > { %v1214_v17 = vpop.permute.xlu1 %1213  ;;  %v1242_v35 = vpop.permute.xlu0 %1241 }
 0x24b   : > { %v1219_v18 = vadd.f32 %v1214_v17, %v1191_v42  ;;  %v1244_v60 = vpop.permute.xlu2 %1243 }
 0x24c   : > { %v1248_v31 = vadd.f32 %v1244_v60, %v1220_v19  ;;  %v1606_v60 = vmul.f32 %v1604_v28, %v3122_v38  ;;  %v3246_v28 = vld [vmem:[#allocation3 + $0xd] sm:$0xff] }
 0x24d   : > { %v1247_v15 = vadd.f32 %v1242_v35, %v1219_v18  ;;  %v1650_v18 = vmul.f32 %v1648_v47, %v3221_v10 }
 0x24e   : > { %v1270_v20 = vadd.f32 %v1268_v14, %v1248_v31 }
 0x24f   : > { %v1269_v21 = vadd.f32 %v1267_v26, %v1247_v15  ;;  %v3235_v15 = vld [vmem:[#allocation2 + $0x5] sm:$0xff]  ;;  %v1704_v26 = vstv %s3225_s20  ;;  %s3357_s20 = sld [smem:[#allocation4 + $0x5c]] }
 0x250   : > { %1583 = vrot.lane.b32.xlu0 %v1578_v12, %s2270_s14  ;;  %1555 = vrot.lane.b32.xlu1 %v1550_v16, %s2269_s10 }
 0x251   : > { %1527 = vrot.lane.b32.xlu2 %v1522_v43, %s2268_s4  ;;  %v1677_v43 = vmul.f32 %v1676_v0, %v3235_v15 }
 0x252   : > { %v1230_v55 = vpop.permute.xlu1 %1229  ;;  %v1258_v22 = vpop.permute.xlu0 %1257 }
 0x253   : > { %v1234_v7 = vadd.f32 %v1230_v55, %v1206_v58  ;;  %v1286_v25 = vpop.permute.xlu2 %1285 }
 0x254   : > { %v1291_v30 = vadd.f32 %v1286_v25, %v1269_v21  ;;  %v1649_v21 = vmul.f32 %v1648_v47, %v3235_v15  ;;  %v1788_v47 = vstv %s3273_s30 }
 0x255   : > { %v1262_v32 = vadd.f32 %v1258_v22, %v1234_v7 }
 0x257   : > { %v1278_v34 = vadd.f32 %v1276_v24, %v1262_v32 }
 0x258   : > { %1609 = vrot.lane.b32.xlu0 %v1605_v51, %s2271_s17  ;;  %1581 = vrot.lane.b32.xlu1 %v1577_v62, %s2270_s14  ;;  %v1692_v62 = vmul.f32 %v1690_v2, %v3246_v28 }
 0x259   : > { %1553 = vrot.lane.b32.xlu2 %v1549_v44, %s2269_s10  ;;  %v1664_v44 = vmul.f32 %v1662_v63, %v3246_v28 }
 0x25a   : > { %v1256_v39 = vpop.permute.xlu1 %1255  ;;  %v1300_v41 = vpop.permute.xlu0 %1299 }
 0x25b   : > { %v1261_v46 = vadd.f32 %v1256_v39, %v1233_v53  ;;  %v1302_v42 = vpop.permute.xlu2 %1301 }
 0x25c   : > { %v1306_v37 = vadd.f32 %v1302_v42, %v1278_v34  ;;  %v1746_v42 = vstv %s3250_s23  ;;  %s3386_s23 = sld [smem:[#allocation4 + $0x61]] }
 0x25d   : > { %v1277_v50 = vadd.f32 %v1275_v48, %v1261_v46  ;;  %v1747_v56 = vmul.f32 %v1746_v42, %v3210_v61 }
 0x25f   : > { %v1305_v52 = vadd.f32 %v1300_v41, %v1277_v50  ;;  %v1691_v50 = vmul.f32 %v1690_v2, %v3210_v61 }
 0x260   : > { %1625 = vrot.lane.b32.xlu0 %v1620_v59, %s2271_s17  ;;  %1597 = vrot.lane.b32.xlu1 %v1592_v54, %s2270_s14  ;;  %v1450_v59 = vstv %s2161_s24 }
 0x261   : > { %1569 = vrot.lane.b32.xlu2 %v1564_v27, %s2269_s10  ;;  %v1452_v63 = vmul.f32 %v1450_v59, %v3122_v38 }
 0x262   : > { %v1288_v49 = vpop.permute.xlu1 %1287  ;;  %v1316_v23 = vpop.permute.xlu0 %1315 }
 0x263   : > { %v1292_v36 = vadd.f32 %v1288_v49, %v1270_v20  ;;  %v1328_v58 = vpop.permute.xlu2 %1327  ;;  %v1705_v20 = vmul.f32 %v1704_v26, %v3235_v15 }
 0x264   : > { %v1333_v3 = vadd.f32 %v1328_v58, %v1305_v52 }
 0x265   : > { %v1320_v11 = vadd.f32 %v1316_v23, %v1292_v36  ;;  %v1760_v23 = vstv %s3258_s25  ;;  %v1732_v36 = vstv %s3261_s26 }
 0x268   : > { %1667 = vrot.lane.b32.xlu0 %v1663_v40, %s2266_s27  ;;  %1623 = vrot.lane.b32.xlu1 %v1619_v5, %s2271_s17  ;;  %v1762_v40 = vmul.f32 %v1760_v23, %v3221_v10  ;;  %v1734_v5 = vmul.f32 %v1732_v36, %v3221_v10 }
 0x269   : > { %1595 = vrot.lane.b32.xlu2 %v1591_v4, %s2270_s14 }
 0x26a   : > { %v1314_v1 = vpop.permute.xlu1 %1313  ;;  %v1342_v8 = vpop.permute.xlu0 %1341 }
 0x26b   : > { %v1319_v53 = vadd.f32 %v1314_v1, %v1291_v30  ;;  %v1344_v19 = vpop.permute.xlu2 %1343  ;;  %v1718_v30 = vstv %s3233_s21  ;;  %v1706_v1 = vmul.f32 %v1704_v26, %v3221_v10  ;;  %s3360_s21 = sld [smem:[#allocation4 + $0x5e]] }
 0x26c   : > { %v1348_v17 = vadd.f32 %v1344_v19, %v1320_v11  ;;  %v1720_v51 = vmul.f32 %v1718_v30, %v3246_v28  ;;  %v1451_v11 = vmul.f32 %v1450_v59, %v3136_v45  ;;  %v1458_v19 = vstv %s3269_s29 }
 0x26d   : > { %v1347_v35 = vadd.f32 %v1342_v8, %v1319_v53 }
 0x270   : > { %1683 = vrot.lane.b32.xlu0 %v1678_v29, %s2267_s28  ;;  %1655 = vrot.lane.b32.xlu1 %v1650_v18, %s2266_s27  ;;  %v1460_v29 = vmul.f32 %v1458_v19, %v3147_v57  ;;  %v1789_v18 = vmul.f32 %v1788_v47, %v3235_v15  ;;  %v1802_v57 = vstv %s3284_s5 }
 0x271   : > { %1611 = vrot.lane.b32.xlu2 %v1606_v60, %s2271_s17  ;;  %v1761_v60 = vmul.f32 %v1760_v23, %v3235_v15 }
 0x272   : > { %v1330_v6 = vpop.permute.xlu1 %1329  ;;  %v1358_v33 = vpop.permute.xlu0 %1357 }
 0x273   : > { %v1334_v31 = vadd.f32 %v1330_v6, %v1306_v37  ;;  %v1370_v14 = vpop.permute.xlu2 %1369  ;;  %v1719_v37 = vmul.f32 %v1718_v30, %v3210_v61  ;;  %v1733_v6 = vmul.f32 %v1732_v36, %v3235_v15 }
 0x274   : > { %v1375_v12 = vadd.f32 %v1370_v14, %v1347_v35 }
 0x275   : > { %v1362_v16 = vadd.f32 %v1358_v33, %v1334_v31 }
 0x278   : > { %1709 = vrot.lane.b32.xlu0 %v1705_v20, %s2268_s4  ;;  %1681 = vrot.lane.b32.xlu1 %v1677_v43, %s2267_s28  ;;  %v1774_v20 = vstv %s3287_s6 }
 0x279   : > { %1653 = vrot.lane.b32.xlu2 %v1649_v21, %s2266_s27 }
 0x27a   : > { %v1356_v55 = vpop.permute.xlu1 %1355  ;;  %v1384_v22 = vpop.permute.xlu0 %1383 }
 0x27b   : > { %v1361_v7 = vadd.f32 %v1356_v55, %v1333_v3  ;;  %v1386_v25 = vpop.permute.xlu2 %1385  ;;  %v1804_v55 = vmul.f32 %v1802_v57, %v3246_v28 }
 0x27c   : > { %v1390_v32 = vadd.f32 %v1386_v25, %v1362_v16  ;;  %v1459_v16 = vmul.f32 %v1458_v19, %v3111_v9  ;;  %v1748_v25 = vmul.f32 %v1746_v42, %v3246_v28 }
 0x27d   : > { %v1389_v24 = vadd.f32 %v1384_v22, %v1361_v7  ;;  %v1776_v22 = vmul.f32 %v1774_v20, %v3246_v28 }
 0x280   : > { %1725 = vrot.lane.b32.xlu0 %v1720_v51, %s2268_s4  ;;  %1697 = vrot.lane.b32.xlu1 %v1692_v62, %s2267_s28  ;;  %v1846_v51 = vstv %s3299_s7 }
 0x281   : > { %1669 = vrot.lane.b32.xlu2 %v1664_v44, %s2266_s27 }
 0x282   : > { %v1372_v34 = vpop.permute.xlu1 %1371  ;;  %v1400_v39 = vpop.permute.xlu0 %1399 }
 0x283   : > { %v1376_v41 = vadd.f32 %v1372_v34, %v1348_v17  ;;  %v1412_v46 = vpop.permute.xlu2 %1411 }
 0x284   : > { %v1417_v48 = vadd.f32 %v1412_v46, %v1389_v24  ;;  %v3309_v24 = vld [vmem:[#allocation3 + $0x6] sm:$0xff] }
 0x285   : > { %v1404_v13 = vadd.f32 %v1400_v39, %v1376_v41  ;;  %v1847_v34 = vmul.f32 %v1846_v51, %v3309_v24  ;;  %v1803_v39 = vmul.f32 %v1802_v57, %v3210_v61  ;;  %v1775_v41 = vmul.f32 %v1774_v20, %v3210_v61 }
 0x288   : > { %1751 = vrot.lane.b32.xlu0 %v1747_v56, %s2269_s10  ;;  %1723 = vrot.lane.b32.xlu1 %v1719_v37, %s2268_s4  ;;  %v3320_v56 = vld [vmem:[#allocation2 + $0xe] sm:$0xff]  ;;  %v1832_v37 = vstv %s3307_s8 }
 0x289   : > { %1695 = vrot.lane.b32.xlu2 %v1691_v50, %s2267_s28  ;;  %v1860_v50 = vstv %s3312_s9 }
 0x28a   : > { %v1398_v54 = vpop.permute.xlu1 %1397  ;;  %v1426_v52 = vpop.permute.xlu0 %1425 }
 0x28b   : > { %v1403_v27 = vadd.f32 %v1398_v54, %v1375_v12  ;;  %v1428_v49 = vpop.permute.xlu2 %1427 }
 0x28c   : > { %v1432_v58 = vadd.f32 %v1428_v49, %v1404_v13  ;;  %v1790_v49 = vmul.f32 %v1788_v47, %v3221_v10  ;;  %v1874_v47 = vstv %s3332_s15 }
 0x28d   : > { %v1431_v3 = vadd.f32 %v1426_v52, %v1403_v27  ;;  %v1834_v52 = vmul.f32 %v1832_v37, %v3320_v56  ;;  %v1862_v27 = vmul.f32 %v1860_v50, %v3320_v56 }
 0x28e   : > { %v1454_v4 = vadd.f32 %v1452_v63, %v1432_v58 }
 0x28f   : > { %v1453_v8 = vadd.f32 %v1451_v11, %v1431_v3  ;;  %v3334_v3 = vld [vmem:[#allocation2 + $0x6] sm:$0xff]  ;;  %v1888_v11 = vstv %s3324_s11 }
 0x290   : > { %1767 = vrot.lane.b32.xlu0 %v1762_v40, %s2270_s14  ;;  %1739 = vrot.lane.b32.xlu1 %v1734_v5, %s2269_s10 }
 0x291   : > { %1711 = vrot.lane.b32.xlu2 %v1706_v1, %s2268_s4  ;;  %v1889_v1 = vmul.f32 %v1888_v11, %v3334_v3 }
 0x292   : > { %v1414_v53 = vpop.permute.xlu1 %1413  ;;  %v1442_v38 = vpop.permute.xlu0 %1441 }
 0x293   : > { %v1418_v45 = vadd.f32 %v1414_v53, %v1390_v32  ;;  %v1470_v0 = vpop.permute.xlu2 %1469 }
 0x294   : > { %v1475_v17 = vadd.f32 %v1470_v0, %v1453_v8  ;;  %v1833_v8 = vmul.f32 %v1832_v37, %v3334_v3  ;;  %v3345_v0 = vld [vmem:[#allocation3 + $0xe] sm:$0xff] }
 0x295   : > { %v1446_v35 = vadd.f32 %v1442_v38, %v1418_v45 }
 0x297   : > { %v1462_v33 = vadd.f32 %v1460_v29, %v1446_v35 }
 0x298   : > { %1793 = vrot.lane.b32.xlu0 %v1789_v18, %s2271_s17  ;;  %1765 = vrot.lane.b32.xlu1 %v1761_v60, %s2270_s14  ;;  %v1876_v18 = vmul.f32 %v1874_v47, %v3345_v0 }
 0x299   : > { %1737 = vrot.lane.b32.xlu2 %v1733_v6, %s2269_s10  ;;  %v1848_v6 = vmul.f32 %v1846_v51, %v3345_v0 }
 0x29a   : > { %v1440_v31 = vpop.permute.xlu1 %1439  ;;  %v1484_v14 = vpop.permute.xlu0 %1483 }
 0x29b   : > { %v1445_v26 = vadd.f32 %v1440_v31, %v1417_v48  ;;  %v1486_v12 = vpop.permute.xlu2 %1485 }
 0x29c   : > { %v1490_v43 = vadd.f32 %v1486_v12, %v1462_v33  ;;  %v1930_v12 = vstv %s3349_s18 }
 0x29d   : > { %v1461_v21 = vadd.f32 %v1459_v16, %v1445_v26 }
 0x29f   : > { %v1489_v7 = vadd.f32 %v1484_v14, %v1461_v21  ;;  %v1875_v21 = vmul.f32 %v1874_v47, %v3309_v24 }
 0x2a0   : > { %1809 = vrot.lane.b32.xlu0 %v1804_v55, %s2271_s17  ;;  %1781 = vrot.lane.b32.xlu1 %v1776_v22, %s2270_s14  ;;  %v1634_v55 = vstv %s2175_s19 }
 0x2a1   : > { %1753 = vrot.lane.b32.xlu2 %v1748_v25, %s2269_s10  ;;  %v1636_v51 = vmul.f32 %v1634_v55, %v3221_v10 }
 0x2a2   : > { %v1472_v9 = vpop.permute.xlu1 %1471  ;;  %v1500_v30 = vpop.permute.xlu0 %1499 }
 0x2a3   : > { %v1476_v2 = vadd.f32 %v1472_v9, %v1454_v4  ;;  %v1512_v32 = vpop.permute.xlu2 %1511  ;;  %v1861_v4 = vmul.f32 %v1860_v50, %v3334_v3  ;;  %v1972_v50 = vstv %s3372_s22 }
 0x2a4   : > { %v1517_v62 = vadd.f32 %v1512_v32, %v1489_v7 }
 0x2a5   : > { %v1504_v44 = vadd.f32 %v1500_v30, %v1476_v2  ;;  %v1916_v30 = vstv %s3357_s20  ;;  %v1944_v2 = vstv %s3360_s21 }
 0x2a8   : > { %1851 = vrot.lane.b32.xlu0 %v1847_v34, %s2266_s27  ;;  %1807 = vrot.lane.b32.xlu1 %v1803_v39, %s2271_s17  ;;  %v1918_v34 = vmul.f32 %v1916_v30, %v3320_v56  ;;  %v1946_v39 = vmul.f32 %v1944_v2, %v3320_v56 }
 0x2a9   : > { %1779 = vrot.lane.b32.xlu2 %v1775_v41, %s2270_s14 }
 0x2aa   : > { %v1498_v46 = vpop.permute.xlu1 %1497  ;;  %v1526_v42 = vpop.permute.xlu0 %1525 }
 0x2ab   : > { %v1503_v48 = vadd.f32 %v1498_v46, %v1475_v17  ;;  %v1528_v13 = vpop.permute.xlu2 %1527  ;;  %v1902_v17 = vstv %s3337_s16  ;;  %v1890_v46 = vmul.f32 %v1888_v11, %v3320_v56 }
 0x2ac   : > { %v1532_v59 = vadd.f32 %v1528_v13, %v1504_v44  ;;  %v1904_v60 = vmul.f32 %v1902_v17, %v3345_v0  ;;  %v1903_v20 = vmul.f32 %v1902_v17, %v3309_v24  ;;  %v1635_v44 = vmul.f32 %v1634_v55, %v3235_v15 }
 0x2ad   : > { %v1531_v54 = vadd.f32 %v1526_v42, %v1503_v48 }
 0x2b0   : > { %1839 = vrot.lane.b32.xlu1 %v1834_v52, %s2266_s27  ;;  %1867 = vrot.lane.b32.xlu0 %v1862_v27, %s2267_s28  ;;  %v1945_v27 = vmul.f32 %v1944_v2, %v3334_v3 }
 0x2b1   : > { %1795 = vrot.lane.b32.xlu2 %v1790_v49, %s2271_s17  ;;  %v1973_v49 = vmul.f32 %v1972_v50, %v3334_v3 }
 0x2b2   : > { %v1514_v23 = vpop.permute.xlu1 %1513  ;;  %v1542_v36 = vpop.permute.xlu0 %1541 }
 0x2b3   : > { %v1518_v58 = vadd.f32 %v1514_v23, %v1490_v43  ;;  %v1554_v63 = vpop.permute.xlu2 %1553  ;;  %v1931_v43 = vmul.f32 %v1930_v12, %v3309_v24  ;;  %v1917_v23 = vmul.f32 %v1916_v30, %v3334_v3 }
 0x2b4   : > { %v1559_v40 = vadd.f32 %v1554_v63, %v1531_v54 }
 0x2b5   : > { %v1546_v5 = vadd.f32 %v1542_v36, %v1518_v58 }
 0x2b8   : > { %1865 = vrot.lane.b32.xlu1 %v1861_v4, %s2267_s28  ;;  %1893 = vrot.lane.b32.xlu0 %v1889_v1, %s2268_s4  ;;  %v1986_v4 = vstv %s3386_s23 }
 0x2b9   : > { %1837 = vrot.lane.b32.xlu2 %v1833_v8, %s2266_s27 }
 0x2ba   : > { %v1540_v53 = vpop.permute.xlu1 %1539  ;;  %v1568_v38 = vpop.permute.xlu0 %1567 }
 0x2bb   : > { %v1545_v19 = vadd.f32 %v1540_v53, %v1517_v62  ;;  %v1570_v45 = vpop.permute.xlu2 %1569 }
 0x2bc   : > { %v1574_v35 = vadd.f32 %v1570_v45, %v1546_v5  ;;  %v1932_v45 = vmul.f32 %v1930_v12, %v3345_v0 }
 0x2bd   : > { %v1573_v29 = vadd.f32 %v1568_v38, %v1545_v19  ;;  %v1988_v38 = vmul.f32 %v1986_v4, %v3345_v0 }
 0x2c0   : > { %1881 = vrot.lane.b32.xlu1 %v1876_v18, %s2267_s28  ;;  %1909 = vrot.lane.b32.xlu0 %v1904_v60, %s2268_s4  ;;  %v1987_v60 = vmul.f32 %v1986_v4, %v3309_v24 }
 0x2c1   : > { %1853 = vrot.lane.b32.xlu2 %v1848_v6, %s2266_s27  ;;  %s3368_s27 = sld [smem:[#allocation4 + $0x47]] }
 0x2c2   : > { %v1556_v33 = vpop.permute.xlu1 %1555  ;;  %v1584_v31 = vpop.permute.xlu0 %1583 }
 0x2c3   : > { %v1560_v14 = vadd.f32 %v1556_v33, %v1532_v59  ;;  %v1596_v26 = vpop.permute.xlu2 %1595 }
 0x2c4   : > { %v1601_v16 = vadd.f32 %v1596_v26, %v1573_v29 }
 0x2c5   : > { %v1588_v57 = vadd.f32 %v1584_v31, %v1560_v14 }
 0x2c7   : > { %v1642_v13 = vstv %s3368_s27 }
 0x2c8   : > { %1907 = vrot.lane.b32.xlu1 %v1903_v20, %s2268_s4  ;;  %1935 = vrot.lane.b32.xlu0 %v1931_v43, %s2269_s10  ;;  %v1644_v52 = vmul.f32 %v1642_v13, %v3246_v28  ;;  %v1643_v5 = vmul.f32 %v1642_v13, %v3210_v61 }
 0x2c9   : > { %1879 = vrot.lane.b32.xlu2 %v1875_v21, %s2267_s28  ;;  %s3383_s28 = sld [smem:[#allocation4 + $0x5f]] }
 0x2ca   : > { %v1582_v22 = vpop.permute.xlu1 %1581  ;;  %v1610_v7 = vpop.permute.xlu0 %1609 }
 0x2cb   : > { %v1587_v25 = vadd.f32 %v1582_v22, %v1559_v40  ;;  %v1612_v9 = vpop.permute.xlu2 %1611 }
 0x2cc   : > { %v1616_v32 = vadd.f32 %v1612_v9, %v1588_v57  ;;  %v1974_v57 = vmul.f32 %v1972_v50, %v3320_v56 }
 0x2cd   : > { %v1615_v62 = vadd.f32 %v1610_v7, %v1587_v25 }
 0x2ce   : > { %v1638_v41 = vadd.f32 %v1636_v51, %v1616_v32 }
 0x2cf   : > { %v1637_v42 = vadd.f32 %v1635_v44, %v1615_v62  ;;  %v1958_v28 = vstv %s3383_s28 }
 0x2d0   : > { %1923 = vrot.lane.b32.xlu1 %v1918_v34, %s2269_s10  ;;  %1951 = vrot.lane.b32.xlu0 %v1946_v39, %s2270_s14  ;;  %v1960_v53 = vmul.f32 %v1958_v28, %v3345_v0  ;;  %v1959_v6 = vmul.f32 %v1958_v28, %v3309_v24 }
 0x2d1   : > { %1895 = vrot.lane.b32.xlu2 %v1890_v46, %s2268_s4  ;;  %s2189_s4 = sld [smem:[#allocation4 + $0x54]] }
 0x2d2   : > { %v1598_v48 = vpop.permute.xlu1 %1597  ;;  %v1626_v10 = vpop.permute.xlu0 %1625 }
 0x2d3   : > { %v1602_v15 = vadd.f32 %v1598_v48, %v1574_v35  ;;  %v1654_v37 = vpop.permute.xlu2 %1653 }
 0x2d4   : > { %v1659_v59 = vadd.f32 %v1654_v37, %v1637_v42 }
 0x2d5   : > { %v1630_v54 = vadd.f32 %v1626_v10, %v1602_v15 }
 0x2d7   : > { %v1646_v36 = vadd.f32 %v1644_v52, %v1630_v54 }
 0x2d8   : > { %1949 = vrot.lane.b32.xlu1 %v1945_v27, %s2270_s14  ;;  %1977 = vrot.lane.b32.xlu0 %v1973_v49, %s2271_s17 }
 0x2d9   : > { %1921 = vrot.lane.b32.xlu2 %v1917_v23, %s2269_s10 }
 0x2da   : > { %v1624_v58 = vpop.permute.xlu1 %1623  ;;  %v1668_v63 = vpop.permute.xlu0 %1667 }
 0x2db   : > { %v1629_v11 = vadd.f32 %v1624_v58, %v1601_v16  ;;  %v1670_v40 = vpop.permute.xlu2 %1669 }
 0x2dc   : > { %v1674_v1 = vadd.f32 %v1670_v40, %v1646_v36 }
 0x2dd   : > { %v1645_v8 = vadd.f32 %v1643_v5, %v1629_v11 }
 0x2df   : > { %v1673_v19 = vadd.f32 %v1668_v63, %v1645_v8 }
 0x2e0   : > { %1965 = vrot.lane.b32.xlu1 %v1960_v53, %s2270_s14  ;;  %1993 = vrot.lane.b32.xlu0 %v1988_v38, %s2271_s17 }
 0x2e1   : > { %1937 = vrot.lane.b32.xlu2 %v1932_v45, %s2269_s10  ;;  %s2190_s10 = sld [smem:[#allocation4 + $0x55]] }
 0x2e2   : > { %v1656_v47 = vpop.permute.xlu1 %1655  ;;  %v1684_v17 = vpop.permute.xlu0 %1683 }
 0x2e3   : > { %v1660_v61 = vadd.f32 %v1656_v47, %v1638_v41  ;;  %v1696_v35 = vpop.permute.xlu2 %1695  ;;  %v1818_v41 = vstv %s2189_s4 }
 0x2e4   : > { %v1701_v29 = vadd.f32 %v1696_v35, %v1673_v19  ;;  %v1820_v15 = vmul.f32 %v1818_v41, %v3320_v56  ;;  %v1819_v50 = vmul.f32 %v1818_v41, %v3334_v3 }
 0x2e5   : > { %v1688_v18 = vadd.f32 %v1684_v17, %v1660_v61 }
 0x2e7   : > { %v1826_v23 = vstv %s2190_s10 }
 0x2e8   : > { %1991 = vrot.lane.b32.xlu1 %v1987_v60, %s2271_s17  ;;  %v1828_v11 = vmul.f32 %v1826_v23, %v3345_v0  ;;  %v1827_v8 = vmul.f32 %v1826_v23, %v3309_v24 }
 0x2e9   : > { %1963 = vrot.lane.b32.xlu2 %v1959_v6, %s2270_s14  ;;  %s2206_s14 = sshll.u32 %s3428_s13, 4 }
 0x2ea   : > { %v1682_v33 = vpop.permute.xlu1 %1681  ;;  %v1710_v31 = vpop.permute.xlu0 %1709  ;;  %s193_s25 = scalar_lea.vmem %s3426_s3, %s2206_s14 }
 0x2eb   : > { %v1687_v14 = vadd.f32 %v1682_v33, %v1659_v59  ;;  %v1712_v26 = vpop.permute.xlu2 %1711 }
 0x2ec   : > { %v1716_v12 = vadd.f32 %v1712_v26, %v1688_v18 }
 0x2ed   : > { %v1715_v16 = vadd.f32 %v1710_v31, %v1687_v14 }
 0x2f1   : > { %1979 = vrot.lane.b32.xlu2 %v1974_v57, %s2271_s17 }
 0x2f2   : > { %v1698_v20 = vpop.permute.xlu1 %1697  ;;  %v1726_v43 = vpop.permute.xlu0 %1725 }
 0x2f3   : > { %v1702_v21 = vadd.f32 %v1698_v20, %v1674_v1  ;;  %v1738_v55 = vpop.permute.xlu2 %1737 }
 0x2f4   : > { %v1743_v22 = vadd.f32 %v1738_v55, %v1715_v16 }
 0x2f5   : > { %v1730_v7 = vadd.f32 %v1726_v43, %v1702_v21 }
 0x2fa   : > { %v1724_v25 = vpop.permute.xlu1 %1723  ;;  %v1752_v9 = vpop.permute.xlu0 %1751 }
 0x2fb   : > { %v1729_v30 = vadd.f32 %v1724_v25, %v1701_v29  ;;  %v1754_v2 = vpop.permute.xlu2 %1753 }
 0x2fc   : > { %v1758_v52 = vadd.f32 %v1754_v2, %v1730_v7 }
 0x2fd   : > { %v1757_v32 = vadd.f32 %v1752_v9, %v1729_v30 }
 0x302   : > { %v1740_v51 = vpop.permute.xlu1 %1739  ;;  %v1768_v62 = vpop.permute.xlu0 %1767 }
 0x303   : > { %v1744_v44 = vadd.f32 %v1740_v51, %v1716_v12  ;;  %v1780_v34 = vpop.permute.xlu2 %1779 }
 0x304   : > { %v1785_v5 = vadd.f32 %v1780_v34, %v1757_v32 }
 0x305   : > { %v1772_v39 = vadd.f32 %v1768_v62, %v1744_v44 }
 0x30a   : > { %v1766_v46 = vpop.permute.xlu1 %1765  ;;  %v1794_v42 = vpop.permute.xlu0 %1793 }
 0x30b   : > { %v1771_v48 = vadd.f32 %v1766_v46, %v1743_v22  ;;  %v1796_v10 = vpop.permute.xlu2 %1795 }
 0x30c   : > { %v1800_v13 = vadd.f32 %v1796_v10, %v1772_v39 }
 0x30d   : > { %v1799_v37 = vadd.f32 %v1794_v42, %v1771_v48 }
 0x30e   : > { %v1822_v59 = vadd.f32 %v1820_v15, %v1800_v13 }
 0x30f   : > { %v1821_v54 = vadd.f32 %v1819_v50, %v1799_v37 }
 0x312   : > { %v1782_v27 = vpop.permute.xlu1 %1781  ;;  %v1810_v49 = vpop.permute.xlu0 %1809 }
 0x313   : > { %v1786_v36 = vadd.f32 %v1782_v27, %v1758_v52  ;;  %v1838_v58 = vpop.permute.xlu2 %1837 }
 0x314   : > { %v1843_v20 = vadd.f32 %v1838_v58, %v1821_v54 }
 0x315   : > { %v1814_v63 = vadd.f32 %v1810_v49, %v1786_v36 }
 0x317   : > { %v1830_v40 = vadd.f32 %v1828_v11, %v1814_v63 }
 0x31a   : > { %v1808_v28 = vpop.permute.xlu1 %1807  ;;  %v1852_v4 = vpop.permute.xlu0 %1851 }
 0x31b   : > { %v1813_v1 = vadd.f32 %v1808_v28, %v1785_v5  ;;  %v1854_v56 = vpop.permute.xlu2 %1853 }
 0x31c   : > { %v1858_v26 = vadd.f32 %v1854_v56, %v1830_v40 }
 0x31d   : > { %v1829_v3 = vadd.f32 %v1827_v8, %v1813_v1 }
 0x31f   : > { %v1857_v21 = vadd.f32 %v1852_v4, %v1829_v3 }
 0x322   : > { %v1840_v53 = vpop.permute.xlu1 %1839  ;;  %v1868_v38 = vpop.permute.xlu0 %1867 }
 0x323   : > { %v1880_v19 = vpop.permute.xlu2 %1879  ;;  %v1844_v31 = vadd.f32 %v1840_v53, %v1822_v59 }
 0x324   : > { %v1885_v25 = vadd.f32 %v1880_v19, %v1857_v21 }
 0x325   : > { %v1872_v16 = vadd.f32 %v1868_v38, %v1844_v31 }
 0x32a   : > { %v1866_v45 = vpop.permute.xlu1 %1865  ;;  %v1894_v47 = vpop.permute.xlu0 %1893 }
 0x32b   : > { %v1896_v17 = vpop.permute.xlu2 %1895  ;;  %v1871_v55 = vadd.f32 %v1866_v45, %v1843_v20 }
 0x32c   : > { %v1900_v43 = vadd.f32 %v1896_v17, %v1872_v16 }
 0x32d   : > { %v1899_v32 = vadd.f32 %v1894_v47, %v1871_v55 }
 0x332   : > { %v1882_v61 = vpop.permute.xlu1 %1881  ;;  %v1910_v35 = vpop.permute.xlu0 %1909 }
 0x333   : > { %v1922_v29 = vpop.permute.xlu2 %1921  ;;  %v1886_v57 = vadd.f32 %v1882_v61, %v1858_v26 }
 0x334   : > { %v1927_v39 = vadd.f32 %v1922_v29, %v1899_v32 }
 0x335   : > { %v1914_v22 = vadd.f32 %v1910_v35, %v1886_v57 }
 0x33a   : > { %v1908_v18 = vpop.permute.xlu1 %1907  ;;  %v1936_v0 = vpop.permute.xlu0 %1935 }
 0x33b   : > { %v1938_v60 = vpop.permute.xlu2 %1937  ;;  %v1913_v51 = vadd.f32 %v1908_v18, %v1885_v25 }
 0x33c   : > { %v1942_v9 = vadd.f32 %v1938_v60, %v1914_v22 }
 0x33d   : > { %v1941_v42 = vadd.f32 %v1936_v0, %v1913_v51 }
 0x342   : > { %v1924_v6 = vpop.permute.xlu1 %1923  ;;  %v1952_v33 = vpop.permute.xlu0 %1951 }
 0x343   : > { %v1964_v14 = vpop.permute.xlu2 %1963  ;;  %v1928_v7 = vadd.f32 %v1924_v6, %v1900_v43 }
 0x344   : > { %v1969_v13 = vadd.f32 %v1964_v14, %v1941_v42 }
 0x345   : > { %v1956_v62 = vadd.f32 %v1952_v33, %v1928_v7 }
 0x34a   : > { %v1950_v12 = vpop.permute.xlu1 %1949  ;;  %v1978_v24 = vpop.permute.xlu0 %1977 }
 0x34b   : > { %v1980_v30 = vpop.permute.xlu2 %1979  ;;  %v1955_v48 = vadd.f32 %v1950_v12, %v1927_v39 }
 0x34c   : > { %v1984_v41 = vadd.f32 %v1980_v30, %v1956_v62 }
 0x34d   : > { %v1983_v37 = vadd.f32 %v1978_v24, %v1955_v48 }
 0x352   : > { %v1966_v2 = vpop.permute.xlu1 %1965  ;;  %v1994_v34 = vpop.permute.xlu0 %1993 }
 0x353   : > { %v1970_v44 = vadd.f32 %v1966_v2, %v1942_v9 }
 0x355   : > { %v1998_v46 = vadd.f32 %v1994_v34, %v1970_v44 }
 0x357   : > { %v2000_v10 = vadd.f32 %v1998_v46, %v1984_v41 }
 0x359   : > { %2002 = vst.msk [vmem:[%s193_s25 + $0x8] sm:$0xff] %vm226_vm0, %v2000_v10 }
 0x35a   : > { %v1992_v15 = vpop.permute.xlu1 %1991 }
 0x35b   : > { %v1997_v50 = vadd.f32 %v1992_v15, %v1969_v13 }
 0x35d   : > { %v1999_v59 = vadd.f32 %v1997_v50, %v1983_v37 }
 0x35f   : > { %2001 = vst.msk [vmem:[%s193_s25] sm:$0xff] %vm226_vm0, %v1999_v59 }
 0x360 PF: > { %s15_s12 = sadd.s32 1, %s2261_s12  }
 0x361   : > { %p12_p7 = scmp.ge.s32.totalorder %s15_s12, 4  }
 0x363   :  { %14 = sbr.rel (!%p12_p7) target bundleno = 1 (0x1), region = 75 }
 0x368   :  { %2036 = vsyncpa [#allocation5], 1 }
 0x369   :  { %2038 = vsyncpa [#allocation5 + $0x1], 1 }

// kernel: bio_inspired_block.3
= control target key start
LH: loop header
LB: loop body
LE: loop exit
PB: predicated region body
PF: predicated region fallthrough
CT: control target
= control target key end

     0   :  { %s6101_s0 = inlined_call_operand.vmem [shape: f32[2,16,16,16], index: 0, kind: input, shape index: {}]   ;;  %s6102_s1 = inlined_call_operand.vmem [shape: f32[2,1,16], index: 1, kind: input, shape index: {}]   ;;  %s6103_s2 = inlined_call_operand.vmem [shape: f32[2,16,16,1], index: 2, kind: input, shape index: {}]   ;;  %s6104_s3 = inlined_call_operand.vmem [shape: f32[25], index: 3, kind: input, shape index: {}]   ;;  %s6105_s4 = inlined_call_operand.vmem [shape: f32[2,16,16,16], index: 4, kind: output, shape index: {}]  }
   0x1   :  { %6425 = sst [smem:[#allocation58_spill]] %s6101_s0 }
   0x2   :  { %9 = vsyncpa [#allocation4], 0  ;;  %s3501_s15 = smov 0   ;;  %s3503_s16 = smov 0  }
   0x3   :  { %s3505_s17 = smov 0  }
   0x4 LB: > { %s3344_s18 = sadd.s32 4294967295, %s3471_s17   ;;  %s27_s19 = sadd.s32 1, %s3467_s16  ;;  %s3471_s17 = sphi %s3505_s17, %s15_s17   ;;  %s3467_s16 = sphi %s3503_s16, %s6878_s16   ;;  %s3463_s15 = sphi %s3501_s15, %s6877_s15  }
   0x5   : > { %p29_p0 = scmp.ge.s32.totalorder %s27_s19, 2  ;;  %p3346_p1 = scmp.ge.s32.totalorder %s3471_s17, 1 }
   0x6   : > { %p163_p2 = scmp.lt.s32.totalorder %s3471_s17, 3  ;;  %p3394_p4 = scmp.eq.s32.totalorder %s3344_s18, 0 }
   0x7   : > { %s6880_s19 = smov (%p29_p0, %s27_s19), 0  ;;  %s175_s22 = sshll.u32 %s6104_s3, 4  ;;  %s176_s22 = int_to_ptr.vmem [resolvable:$true] %s175_s22 }
   0x8   : > { %p164_p3 = pnand %p3346_p1, %p163_p2  ;;  %s3473_s23 = smov [#allocation3]  }
   0xa   : > { %p3390_p5 = pneg %p164_p3  ;;  %216 = sbr.rel (%p164_p3) target bundleno = 552 (0x228), region = 36 }
   0xc   : > { %p3391_p6 = pnand %p3394_p4, %p3390_p5 }
   0xe   : > { %3393 = dma.vmem_to_smem (!%p3391_p6), %s176_s22, 16, %s3473_s23, [#allocation4]  }
   0xf   : > { %3458 = dma.done.wait (%p3394_p4), [#allocation4], 16  }
  0x10   : > { %3460 = vsyncadd (%p3394_p4), [#allocation4], 4294967280 }
  0x11   : > { %223 = sfence }
  0x12   : > { %p261_p7 = scmp.lt.s32.totalorder %s3463_s15, 1  ;;  %v3474_v0 = vmov 0   ;;  %vm288_vm0 = vcmask 130048   ;;  %v6112_v16 = vmov 0.0   ;;  %s3561_s5 = sld [smem:[#allocation3]]  ;;  %vm291_vm1 = vcmask 125952  }
  0x13   : > { %3425 = vset.pattern.permute.xlu2 %v3474_v0  ;;  %3424 = vset.pattern.permute.xlu1 %v3474_v0  ;;  %296 = vst.msk [vmem:[#allocation2 + $0x30] sm:$0xff] %vm288_vm0, %v6112_v16  ;;  %s3565_s6 = sld [smem:[#allocation3 + $0x1]] }
  0x14   : > { %3423 = vset.pattern.permute.xlu0 %v3474_v0  ;;  %s6882_s15 = smov (!%p261_p7, %s3463_s15), 1  ;;  %297 = vst.msk [vmem:[#allocation2 + $0x38] sm:$0xff] %vm288_vm0, %v6112_v16  ;;  %s3569_s7 = sld [smem:[#allocation3 + $0x2]] }
  0x15   : > { %s3523_s24 = sshll.u32 %s6882_s15, 8  ;;  %s3528_s27 = scalar_lea.vmem %s6102_s1, %s6882_s15  ;;  %299 = vst.msk [vmem:[#allocation2 + $0x48] sm:$0xff] %vm288_vm0, %v6112_v16 }
  0x16   : > { %s3534_s30 = scalar_lea.vmem %s6103_s2, %s3523_s24  ;;  %300 = vst.msk [vmem:[#allocation2 + $0x50] sm:$0xff] %vm288_vm0, %v6112_v16  ;;  %s3575_s8 = sld [smem:[#allocation3 + $0x3]] }
  0x17   : > { %v2908_v1 = vld [vmem:[%s3534_s30 + $0x20] sm:$0xff]  ;;  %v2906_v2 = vld [vmem:[%s3534_s30 + $0x10] sm:$0xff]  ;;  %v2909_v4 = vld [vmem:[%s3534_s30 + $0x28] sm:$0xff]  ;;  %302 = vst.msk [vmem:[#allocation2 + $0x60] sm:$0xff] %vm288_vm0, %v6112_v16  ;;  %s3580_s9 = sld [smem:[#allocation3 + $0x4]] }
  0x18   : > { %v2904_v3 = vld [vmem:[%s3534_s30] sm:$0xff]  ;;  %2958 = vperm.xlu2 %3425, %v2908_v1   ;;  %2948 = vperm.xlu1 %3424, %v2906_v2   ;;  %v2907_v5 = vld [vmem:[%s3534_s30 + $0x18] sm:$0xff]  ;;  %v2905_v6 = vld [vmem:[%s3534_s30 + $0x8] sm:$0xff]  ;;  %303 = vst.msk [vmem:[#allocation2 + $0x68] sm:$0xff] %vm288_vm0, %v6112_v16  ;;  %s6426_s0 = sld [smem:[#allocation58_spill]]  ;;  %v3659_v34 = vstv %s3561_s5 }
  0x19   : > { %2938 = vperm.xlu0 %3423, %v2904_v3   ;;  %v2912_v7 = vld [vmem:[%s3534_s30 + $0x40] sm:$0xff]  ;;  %v2911_v8 = vld [vmem:[%s3534_s30 + $0x38] sm:$0xff]  ;;  %v2910_v9 = vld [vmem:[%s3534_s30 + $0x30] sm:$0xff]  ;;  %305 = vst.msk [vmem:[#allocation2 + $0x78] sm:$0xff] %vm288_vm0, %v6112_v16  ;;  %s3590_s13 = sld [smem:[#allocation3 + $0x5]]  ;;  %v3662_v35 = vstv %s3565_s6 }
  0x1a   : > { %v2915_v10 = vld [vmem:[%s3534_s30 + $0x58] sm:$0xff]  ;;  %v2914_v11 = vld [vmem:[%s3534_s30 + $0x50] sm:$0xff]  ;;  %v2913_v12 = vld [vmem:[%s3534_s30 + $0x48] sm:$0xff]  ;;  %298 = vst.msk [vmem:[#allocation2 + $0x40] sm:$0xf] %vm291_vm1, %v6112_v16  ;;  %s3594_s14 = sld [smem:[#allocation3 + $0x6]]  ;;  %v3675_v40 = vstv %s3569_s7 }
  0x1b   : > { %v2918_v13 = vld [vmem:[%s3534_s30 + $0x70] sm:$0xff]  ;;  %v2917_v14 = vld [vmem:[%s3534_s30 + $0x68] sm:$0xff]  ;;  %v2916_v15 = vld [vmem:[%s3534_s30 + $0x60] sm:$0xff]  ;;  %301 = vst.msk [vmem:[#allocation2 + $0x58] sm:$0xf] %vm291_vm1, %v6112_v16  ;;  %s3598_s15 = sld [smem:[#allocation3 + $0x7]] }
  0x1c   : > { %v2921_v17 = vld [vmem:[%s3534_s30 + $0x88] sm:$0xff]  ;;  %v2920_v18 = vld [vmem:[%s3534_s30 + $0x80] sm:$0xff]  ;;  %v2919_v19 = vld [vmem:[%s3534_s30 + $0x78] sm:$0xff]  ;;  %304 = vst.msk [vmem:[#allocation2 + $0x70] sm:$0xf] %vm291_vm1, %v6112_v16  ;;  %s3602_s18 = sld [smem:[#allocation3 + $0x8]]  ;;  %v3689_v46 = vstv %s3575_s8 }
  0x1d   : > { %306 = vst.msk [vmem:[#allocation2 + $0x80] sm:$0xff] %vm288_vm0, %v6112_v16  ;;  %s3607_s20 = sld [smem:[#allocation3 + $0x9]]  ;;  %v2924_v22 = vld [vmem:[%s3534_s30 + $0xa0] sm:$0xff]  ;;  %v2923_v23 = vld [vmem:[%s3534_s30 + $0x98] sm:$0xff]  ;;  %v2922_v26 = vld [vmem:[%s3534_s30 + $0x90] sm:$0xff]  ;;  %v3707_v55 = vstv %s3580_s9 }
  0x1e   : > { %s3586_s12 = scalar_lea.vmem %s6426_s0, %s3523_s24  ;;  %307 = vst.msk [vmem:[#allocation2 + $0x88] sm:$0xf] %vm291_vm1, %v6112_v16  ;;  %s3613_s21 = sld [smem:[#allocation3 + $0xa]]  ;;  %v2927_v32 = vld [vmem:[%s3534_s30 + $0xb8] sm:$0xff]  ;;  %v2926_v39 = vld [vmem:[%s3534_s30 + $0xb0] sm:$0xff]  ;;  %v2925_v45 = vld [vmem:[%s3534_s30 + $0xa8] sm:$0xff] }
  0x1f   : > { %308 = vst.msk [vmem:[#allocation2 + $0x90] sm:$0xff] %vm288_vm0, %v6112_v16  ;;  %v350_v20 = vld [vmem:[%s3586_s12] sm:$0xff]  ;;  %v351_v21 = vld [vmem:[%s3586_s12 + $0x8] sm:$0xff]  ;;  %s3616_s22 = sld [smem:[#allocation3 + $0xb]]  ;;  %v3619_v24 = vld [vmem:[%s3586_s12 + $0x10] sm:$0xff]  ;;  %v3710_v56 = vstv %s3590_s13  ;;  %s4163_s13 = scalar_lea.vmem %s6105_s4, %s3523_s24 }
  0x20   : > { %2963 = vperm.xlu2 %3425, %v2909_v4   ;;  %2953 = vperm.xlu1 %3424, %v2907_v5   ;;  %309 = vst.msk [vmem:[#allocation2 + $0x98] sm:$0xff] %vm288_vm0, %v6112_v16  ;;  %v353_v25 = vld [vmem:[%s3586_s12 + $0x18] sm:$0xff]  ;;  %s3624_s23 = sld [smem:[#allocation3 + $0xc]]  ;;  %v3627_v27 = vld [vmem:[%s3586_s12 + $0x20] sm:$0xff]  ;;  %v3633_v28 = vld [vmem:[%s3586_s12 + $0x28] sm:$0xff]  ;;  %v3719_v58 = vstv %s3594_s14 }
  0x21   : > { %2943 = vperm.xlu0 %3423, %v2905_v6   ;;  %310 = vst.msk [vmem:[#allocation2 + $0xa0] sm:$0xf] %vm291_vm1, %v6112_v16  ;;  %s3630_s25 = sld [smem:[#allocation3 + $0xd]]  ;;  %v356_v29 = vld [vmem:[%s3586_s12 + $0x30] sm:$0xff]  ;;  %v357_v30 = vld [vmem:[%s3586_s12 + $0x38] sm:$0xff]  ;;  %v3649_v31 = vld [vmem:[%s3586_s12 + $0x40] sm:$0xff]  ;;  %v3722_v59 = vstv %s3598_s15 }
  0x22   : > { %6427 = vst [vmem:[#allocation6_spill] sm:$0xff] %v3619_v24  ;;  %s3637_s26 = sld [smem:[#allocation3 + $0xe]]  ;;  %v359_v33 = vld [vmem:[%s3586_s12 + $0x48] sm:$0xff]  ;;  %v3731_v63 = vstv %s3602_s18 }
  0x23   : > { %383 = vst.msk [vmem:[#allocation2 + $0x32] sm:$0xff] %vm288_vm0, %v350_v20  ;;  %s3641_s28 = sld [smem:[#allocation3 + $0xf]]  ;;  %v3734_v0 = vstv %s3607_s20 }
  0x24   : > { %6428 = vst [vmem:[#allocation7_spill] sm:$0xff] %v3627_v27  ;;  %s3646_s29 = sld [smem:[#allocation3 + $0x10]]  ;;  %v3742_v4 = vstv %s3613_s21 }
  0x25   : > { %384 = vst.msk [vmem:[#allocation2 + $0x3a] sm:$0xff] %vm288_vm0, %v351_v21  ;;  %s3654_s10 = sld [smem:[#allocation3 + $0x11]]  ;;  %v3745_v5 = vstv %s3616_s22 }
  0x26   : > { %385 = vst.msk [vmem:[#allocation2 + $0x4a] sm:$0xff] %vm288_vm0, %v3619_v24  ;;  %s3664_s11 = sld [smem:[#allocation3 + $0x12]] }
  0x27   : > { %386 = vst.msk [vmem:[#allocation2 + $0x52] sm:$0xff] %vm288_vm0, %v353_v25  ;;  %s3677_s0 = sld [smem:[#allocation3 + $0x13]] }
  0x28   : > { %2978 = vperm.xlu2 %3425, %v2912_v7   ;;  %2973 = vperm.xlu1 %3424, %v2911_v8   ;;  %387 = vst.msk [vmem:[#allocation2 + $0x62] sm:$0xff] %vm288_vm0, %v3627_v27  ;;  %s3691_s5 = sld [smem:[#allocation3 + $0x14]] }
  0x29   : > { %2968 = vperm.xlu0 %3423, %v2910_v9   ;;  %6429 = vst [vmem:[#allocation8_spill] sm:$0xff] %v3649_v31  ;;  %s3699_s6 = sld [smem:[#allocation3 + $0x15]]  ;;  %v3752_v9 = vstv %s3624_s23 }
  0x2a   : > { %388 = vst.msk [vmem:[#allocation2 + $0x6a] sm:$0xff] %vm288_vm0, %v3633_v28  ;;  %v3667_v36 = vld [vmem:[#allocation2 + $0x30] sm:$0xff]  ;;  %s3712_s7 = sld [smem:[#allocation3 + $0x16]] }
  0x2b   : > { %389 = vst.msk [vmem:[#allocation2 + $0x7a] sm:$0xff] %vm288_vm0, %v356_v29  ;;  %v3669_v37 = vld [vmem:[#allocation2 + $0x31] sm:$0xff]  ;;  %v453_v41 = vmul.f32 %v3659_v34, %v3667_v36  ;;  %s3724_s8 = sld [smem:[#allocation3 + $0x17]] }
  0x2c   : > { %6430 = vst [vmem:[#allocation9_spill] sm:$0xff] %v3659_v34  ;;  %v3671_v38 = vld [vmem:[#allocation2 + $0x32] sm:$0xff]  ;;  %v519_v42 = vmul.f32 %v3662_v35, %v3669_v37  ;;  %v585_v54 = vld [vmem:[#allocation2 + $0x3a] sm:$0xff]  ;;  %v3782_v25 = vstv %s3664_s11 }
  0x2d   : > { %6431 = vst [vmem:[#allocation10_spill] sm:$0xff] %v3662_v35  ;;  %v3685_v43 = vld [vmem:[#allocation2 + $0x33] sm:$0xff]  ;;  %v617_v47 = vmul.f32 %v3675_v40, %v3671_v38  ;;  %v3714_v57 = vld [vmem:[#allocation2 + $0x48] sm:$0xff]  ;;  %v683_v62 = vld [vmem:[#allocation2 + $0x3b] sm:$0xff]  ;;  %v618_v3 = vmul.f32 %v3675_v40, %v585_v54 }
  0x2e   : > { %390 = vst.msk [vmem:[#allocation2 + $0x82] sm:$0xff] %vm288_vm0, %v357_v30  ;;  %v421_v44 = vld [vmem:[#allocation2 + $0x38] sm:$0xff]  ;;  %v551_v51 = vadd.f32 %v519_v42, %v453_v41  ;;  %v715_v52 = vmul.f32 %v3689_v46, %v3685_v43  ;;  %v3736_v1 = vld [vmem:[#allocation2 + $0x49] sm:$0xff]  ;;  %v912_v7 = vmul.f32 %v3710_v56, %v3714_v57 }
  0x2f   : > { %6432 = vst [vmem:[#allocation11_spill] sm:$0xff] %v3667_v36  ;;  %v3696_v48 = vld [vmem:[#allocation2 + $0x34] sm:$0xff]  ;;  %v454_v49 = vmul.f32 %v3659_v34, %v421_v44  ;;  %v781_v8 = vld [vmem:[#allocation2 + $0x3c] sm:$0xff]  ;;  %v1010_v20 = vmul.f32 %v3719_v58, %v3736_v1 }
  0x30   : > { %2993 = vperm.xlu2 %3425, %v2915_v10   ;;  %2988 = vperm.xlu1 %3424, %v2914_v11   ;;  %6433 = vst [vmem:[#allocation12_spill] sm:$0xff] %v3669_v37  ;;  %v487_v50 = vld [vmem:[#allocation2 + $0x39] sm:$0xff]  ;;  %v649_v60 = vadd.f32 %v617_v47, %v551_v51  ;;  %v813_v61 = vmul.f32 %v3707_v55, %v3696_v48  ;;  %v3755_v10 = vstv %s3630_s25  ;;  %v3758_v11 = vstv %s3637_s26  ;;  %v880_v21 = vld [vmem:[#allocation2 + $0x50] sm:$0xff]  ;;  %v3811_v51 = vld [vmem:[#allocation2 + $0x62] sm:$0xff] }
  0x31   : > { %2983 = vperm.xlu0 %3423, %v2913_v12   ;;  %6434 = vst [vmem:[#allocation13_spill] sm:$0xff] %v3671_v38  ;;  %v520_v53 = vmul.f32 %v3662_v35, %v487_v50  ;;  %v3760_v12 = vld [vmem:[#allocation2 + $0x4a] sm:$0xff]  ;;  %v814_v30 = vmul.f32 %v3707_v55, %v781_v8  ;;  %v3797_v42 = vld [vmem:[#allocation2 + $0x60] sm:$0xff]  ;;  %v3805_v47 = vstv %s3712_s7  ;;  %v3817_v54 = vstv %s3724_s8 }
  0x32   : > { %391 = vst.msk [vmem:[#allocation2 + $0x92] sm:$0xff] %vm288_vm0, %v3649_v31  ;;  %v747_v6 = vadd.f32 %v715_v52, %v649_v60  ;;  %v1108_v41 = vmul.f32 %v3722_v59, %v3760_v12  ;;  %v978_v44 = vld [vmem:[#allocation2 + $0x51] sm:$0xff]  ;;  %v3809_v50 = vld [vmem:[#allocation2 + $0x61] sm:$0xff]  ;;  %v3839_v8 = vmul.f32 %v3752_v9, %v3811_v51 }
  0x33   : > { %6435 = vst [vmem:[#allocation14_spill] sm:$0xff] %v3685_v43  ;;  %v552_v2 = vadd.f32 %v520_v53, %v454_v49  ;;  %v3807_v49 = vld [vmem:[#allocation2 + $0x4c] sm:$0xff]  ;;  %v913_v53 = vmul.f32 %v3710_v56, %v880_v21 }
  0x34   : > { %6436 = vst [vmem:[#allocation15_spill] sm:$0xff] %v3689_v46  ;;  %v2933_v21 = vld [vmem:[%s3534_s30 + $0xe8] sm:$0xff] }
  0x35   : > { %392 = vst.msk [vmem:[#allocation2 + $0x9a] sm:$0xff] %vm288_vm0, %v359_v33  ;;  %v650_v29 = vadd.f32 %v618_v3, %v552_v2  ;;  %v3793_v33 = vstv %s3691_s5  ;;  %v3827_v2 = vld [vmem:[#allocation2 + $0x63] sm:$0xff]  ;;  %v3862_v31 = vld [vmem:[#allocation2 + $0x7b] sm:$0xff] }
  0x36   : > { %6437 = vst [vmem:[#allocation16_spill] sm:$0xff] %v3696_v48  ;;  %v3829_v3 = vld [vmem:[#allocation2 + $0x64] sm:$0xff]  ;;  %v3856_v24 = vmul.f32 %v3755_v10, %v3827_v2  ;;  %v3887_v38 = vmul.f32 %v3782_v25, %v3862_v31 }
  0x37   : > { %289 = vst.msk [vmem:[#allocation2] sm:$0xff] %vm288_vm0, %v6112_v16 }
  0x38   : > { %3008 = vperm.xlu2 %3425, %v2918_v13   ;;  %3003 = vperm.xlu1 %3424, %v2917_v14   ;;  %6438 = vst [vmem:[#allocation17_spill] sm:$0xff] %v3707_v55  ;;  %v716_v13 = vmul.f32 %v3689_v46, %v683_v62  ;;  %v2930_v14 = vld [vmem:[%s3534_s30 + $0xd0] sm:$0xff]  ;;  %v3825_v62 = vmul.f32 %v3742_v4, %v3797_v42 }
  0x39   : > { %2998 = vperm.xlu0 %3423, %v2916_v15   ;;  %6439 = vst [vmem:[#allocation18_spill] sm:$0xff] %v3710_v56  ;;  %v2929_v15 = vld [vmem:[%s3534_s30 + $0xc8] sm:$0xff]  ;;  %v3893_v36 = vld [vmem:[#allocation2 + $0x91] sm:$0xff] }
  0x3a   : > { %6440 = vst [vmem:[#allocation19_spill] sm:$0xff] %v3714_v57  ;;  %v748_v52 = vadd.f32 %v716_v13, %v650_v29  ;;  %v3841_v13 = vld [vmem:[#allocation2 + $0x78] sm:$0xff]  ;;  %v1370_v57 = vld [vmem:[#allocation2 + $0x68] sm:$0xff] }
  0x3b   : > { %290 = vst.msk [vmem:[#allocation2 + $0x8] sm:$0xff] %vm288_vm0, %v6112_v16 }
  0x3c   : > { %6441 = vst [vmem:[#allocation20_spill] sm:$0xff] %v3722_v59 }
  0x3d   : > { %292 = vst.msk [vmem:[#allocation2 + $0x10] sm:$0xf] %vm291_vm1, %v6112_v16 }
  0x3e   : > { %6442 = vst [vmem:[#allocation21_spill] sm:$0xff] %v3731_v63 }
  0x3f   : > { %6443 = vst [vmem:[#allocation22_spill] sm:$0xff] %v3736_v1  ;;  %v1272_v1 = vld [vmem:[#allocation2 + $0x54] sm:$0xff] }
  0x40   : > { %3023 = vperm.xlu2 %3425, %v2921_v17   ;;  %3018 = vperm.xlu1 %3424, %v2920_v18   ;;  %293 = vst.msk [vmem:[#allocation2 + $0x18] sm:$0xff] %vm288_vm0, %v6112_v16  ;;  %v3768_v17 = vstv %s3641_s28  ;;  %v3771_v18 = vstv %s3646_s29 }
  0x41   : > { %3013 = vperm.xlu0 %3423, %v2919_v19   ;;  %294 = vst.msk [vmem:[#allocation2 + $0x20] sm:$0xff] %vm288_vm0, %v6112_v16  ;;  %v845_v19 = vadd.f32 %v813_v61, %v747_v6  ;;  %v1076_v6 = vld [vmem:[#allocation2 + $0x52] sm:$0xff] }
  0x42   : > { %6444 = vst [vmem:[#allocation23_spill] sm:$0xff] %v3760_v12  ;;  %v1109_v12 = vmul.f32 %v3722_v59, %v1076_v6  ;;  %v2931_v6 = vld [vmem:[%s3534_s30 + $0xd8] sm:$0xff] }
  0x43   : > { %295 = vst.msk [vmem:[#allocation2 + $0x28] sm:$0xf] %vm291_vm1, %v6112_v16 }
  0x44   : > { %6445 = vst [vmem:[#allocation24_spill] sm:$0xff] %v3771_v18 }
  0x45   : > { %311 = vst.msk [vmem:[#allocation2 + $0xa8] sm:$0xff] %vm288_vm0, %v6112_v16 }
  0x46   : > { %312 = vst.msk [vmem:[#allocation2 + $0xb0] sm:$0xff] %vm288_vm0, %v6112_v16 }
  0x47   : > { %6448 = vst [vmem:[#allocation27_spill] sm:$0xff] %v3793_v33 }
  0x48   : > { %3038 = vperm.xlu2 %3425, %v2924_v22   ;;  %3033 = vperm.xlu1 %3424, %v2923_v23   ;;  %v2928_v22 = vld [vmem:[%s3534_s30 + $0xc0] sm:$0xff]  ;;  %v3779_v23 = vstv %s3654_s10  ;;  %6449 = vst [vmem:[#allocation28_spill] sm:$0xff] %v3797_v42 }
  0x49   : > { %3028 = vperm.xlu0 %3423, %v2922_v26   ;;  %v3784_v26 = vld [vmem:[#allocation2 + $0x4b] sm:$0xff]  ;;  %313 = vst.msk [vmem:[#allocation2 + $0xb8] sm:$0xf] %vm291_vm1, %v6112_v16 }
  0x4a   : > { %6446 = vst [vmem:[#allocation25_spill] sm:$0xff] %v3784_v26  ;;  %v1206_v61 = vmul.f32 %v3731_v63, %v3784_v26  ;;  %v3860_v26 = vmul.f32 %v3758_v11, %v3829_v3 }
  0x4b   : > { %6451 = vst [vmem:[#allocation30_spill] sm:$0xff] %v3805_v47 }
  0x4c   : > { %6452 = vst [vmem:[#allocation31_spill] sm:$0xff] %v3807_v49 }
  0x4d   : > { %6453 = vst [vmem:[#allocation32_spill] sm:$0xff] %v3809_v50 }
  0x4e   : > { %6454 = vst [vmem:[#allocation33_spill] sm:$0xff] %v3811_v51 }
  0x4f   : > { %314 = vst.msk [vmem:[#allocation2 + $0xc0] sm:$0xff] %vm288_vm0, %v6112_v16 }
  0x50   : > { %3053 = vperm.xlu2 %3425, %v2927_v32   ;;  %3048 = vperm.xlu1 %3424, %v2926_v39   ;;  %v3790_v32 = vstv %s3677_s0  ;;  %v944_v39 = vadd.f32 %v912_v7, %v845_v19  ;;  %6455 = vst [vmem:[#allocation34_spill] sm:$0xff] %v3817_v54  ;;  %s3819_s0 = sld [smem:[#allocation3 + $0x18]]  ;;  %v3835_v7 = vmul.f32 %v3745_v5, %v3809_v50 }
  0x51   : > { %3043 = vperm.xlu0 %3423, %v2925_v45   ;;  %6447 = vst [vmem:[#allocation26_spill] sm:$0xff] %v3790_v32  ;;  %v3802_v45 = vstv %s3699_s6  ;;  %v846_v19 = vadd.f32 %v814_v30, %v748_v52  ;;  %v6461_v30 = vmov 0.0  }
  0x52   : > { %6450 = vst [vmem:[#allocation29_spill] sm:$0xff] %v3802_v45  ;;  %v1042_v60 = vadd.f32 %v1010_v20, %v944_v39  ;;  %v1011_v20 = vmul.f32 %v3719_v58, %v978_v44  ;;  %v1304_v39 = vmul.f32 %v3734_v0, %v3807_v49  ;;  %v1174_v44 = vld [vmem:[#allocation2 + $0x53] sm:$0xff] }
  0x53   : > { %6456 = vst [vmem:[#allocation35_spill] sm:$0xff] %v3827_v2  ;;  %v945_v49 = vadd.f32 %v913_v53, %v846_v19  ;;  %v3897_v53 = vld [vmem:[#allocation2 + $0x18] sm:$0xff] }
  0x54   : > { %6457 = vst [vmem:[#allocation36_spill] sm:$0xff] %v3829_v3  ;;  %v1140_v29 = vadd.f32 %v1108_v41, %v1042_v60  ;;  %v3870_v41 = vmul.f32 %v3768_v17, %v3841_v13  ;;  %v3876_v60 = vld [vmem:[#allocation2 + $0x90] sm:$0xff] }
  0x55   : > { %315 = vst.msk [vmem:[#allocation2 + $0xc8] sm:$0xff] %vm288_vm0, %v6112_v16  ;;  %v3904_v19 = vmul.f32 %v3793_v33, %v3876_v60 }
  0x56   : > { %316 = vst.msk [vmem:[#allocation2 + $0xd0] sm:$0xf] %vm291_vm1, %v6112_v16  ;;  %v3864_v16 = vld [vmem:[#allocation2 + $0x7c] sm:$0xff]  ;;  %v1238_v48 = vadd.f32 %v1206_v61, %v1140_v29  ;;  %v3908_v29 = vmul.f32 %v3802_v45, %v3893_v36 }
  0x57   : > { %6459 = vst [vmem:[#allocation38_spill] sm:$0xff] %v3862_v31  ;;  %v3891_v37 = vmul.f32 %v3790_v32, %v3864_v16  ;;  %v3899_v61 = vld [vmem:[#allocation2 + $0x19] sm:$0xff]  ;;  %v1207_v31 = vmul.f32 %v3731_v63, %v1174_v44  ;;  %v451_v44 = vmul.f32 %v3659_v34, %v3897_v53 }
  0x58   : > { %3068 = vperm.xlu2 %3425, %v2930_v14   ;;  %3063 = vperm.xlu1 %3424, %v2929_v15   ;;  %v3843_v14 = vld [vmem:[#allocation2 + $0x79] sm:$0xff]  ;;  %6460 = vst [vmem:[#allocation39_spill] sm:$0xff] %v3864_v16 }
  0x59   : > { %3058 = vperm.xlu0 %3423, %v2928_v22   ;;  %v3845_v15 = vld [vmem:[#allocation2 + $0x7a] sm:$0xff]  ;;  %317 = vst.msk [vmem:[#allocation2 + $0xd8] sm:$0xff] %vm288_vm0, %v6461_v30  ;;  %v3874_v52 = vmul.f32 %v3771_v18, %v3843_v14  ;;  %v3910_v16 = vld [vmem:[#allocation2 + $0x92] sm:$0xff] }
  0x5a   : > { %6458 = vst [vmem:[#allocation37_spill] sm:$0xff] %v3845_v15  ;;  %v2932_v22 = vld [vmem:[%s3534_s30 + $0xe0] sm:$0xff]  ;;  %v3883_v43 = vmul.f32 %v3779_v23, %v3845_v15  ;;  %v1336_v15 = vadd.f32 %v1304_v39, %v1238_v48  ;;  %v1664_v39 = vld [vmem:[#allocation2 + $0x6b] sm:$0xff] }
  0x5b   : > { %6462 = vst [vmem:[#allocation40_spill] sm:$0xff] %v3876_v60  ;;  %v3920_v60 = vmul.f32 %v3805_v47, %v3910_v16 }
  0x5c   : > { %318 = vst.msk [vmem:[#allocation2 + $0xe0] sm:$0xff] %vm288_vm0, %v6461_v30 }
  0x5d   : > { %6463 = vst [vmem:[#allocation41_spill] sm:$0xff] %v3883_v43  ;;  %v3916_v43 = vld [vmem:[%s3528_s27] ss:$0 sm:$0xff] }
  0x5e   : > { %6464 = vst [vmem:[#allocation42_spill] sm:$0xff] %v3887_v38  ;;  %v1468_v38 = vld [vmem:[#allocation2 + $0x69] sm:$0xff] }
  0x5f   : > { %6465 = vst [vmem:[#allocation43_spill] sm:$0xff] %v3891_v37  ;;  %v1043_v37 = vadd.f32 %v1011_v20, %v945_v49  ;;  %v1403_v49 = vmul.f32 %v3742_v4, %v1370_v57  ;;  %v1566_v20 = vld [vmem:[#allocation2 + $0x6a] sm:$0xff]  ;;  %v1434_v57 = vadd.f32 %v3825_v62, %v1336_v15  ;;  %v3955_v62 = vmul.f32 %v3916_v43, %v3627_v27  ;;  %v1959_v27 = vld [vmem:[#allocation2 + $0x81] sm:$0xff] }
  0x60   : > { %6466 = vst [vmem:[#allocation44_spill] sm:$0xff] %v3893_v36  ;;  %3083 = vperm.xlu2 %3425, %v2933_v21   ;;  %3078 = vperm.xlu1 %3424, %v2932_v22   ;;  %v416_v36 = vld [vmem:[#allocation2] sm:$0xff]  ;;  %v1762_v22 = vld [vmem:[#allocation2 + $0x6c] sm:$0xff] }
  0x61   : > { %319 = vst.msk [vmem:[#allocation2 + $0xe8] sm:$0xf] %vm291_vm1, %v6461_v30  ;;  %v1141_v48 = vadd.f32 %v1109_v12, %v1043_v37  ;;  %3073 = vperm.xlu0 %3423, %v2931_v6   ;;  %v3944_v37 = vld [vmem:[#allocation2 + $0x94] sm:$0xff]  ;;  %v1501_v12 = vmul.f32 %v3745_v5, %v1468_v38  ;;  %v1532_v38 = vadd.f32 %v3835_v7, %v1434_v57 }
  0x62   : > { %6467 = vst [vmem:[#allocation45_spill] sm:$0xff] %v3897_v53  ;;  %v1599_v53 = vmul.f32 %v3752_v9, %v1566_v20  ;;  %v1795_v20 = vmul.f32 %v3758_v11, %v1762_v22  ;;  %v2935_v57 = vld [vmem:[%s3534_s30 + $0xf8] sm:$0xff]  ;;  %v3994_v22 = vmul.f32 %v3771_v18, %v1959_v27 }
  0x63   : > { %6468 = vst [vmem:[#allocation46_spill] sm:$0xff] %v3899_v61  ;;  %v1239_v15 = vadd.f32 %v1207_v31, %v1141_v48 }
  0x64   : > { %6469 = vst [vmem:[#allocation47_spill] sm:$0xff] %v3904_v19  ;;  %v3922_v19 = vld [vmem:[#allocation2 + $0x93] sm:$0xff] }
  0x65   : > { %6470 = vst [vmem:[#allocation48_spill] sm:$0xff] %v3908_v29  ;;  %v1305_v29 = vmul.f32 %v3734_v0, %v1272_v1  ;;  %v3937_v1 = vstv %s3819_s0  ;;  %v3942_v21 = vmul.f32 %v3817_v54, %v3922_v19 }
  0x66   : > { %6471 = vst [vmem:[#allocation49_spill] sm:$0xff] %v3910_v16  ;;  %v517_v16 = vmul.f32 %v3662_v35, %v3899_v61  ;;  %v482_v61 = vld [vmem:[#allocation2 + $0x1] sm:$0xff]  ;;  %v3951_v6 = vmul.f32 %v3937_v1, %v3944_v37 }
  0x67   : > { %320 = vst.msk [vmem:[#allocation2 + $0xf0] sm:$0xff] %vm288_vm0, %v6461_v30  ;;  %v1337_v31 = vadd.f32 %v1305_v29, %v1239_v15  ;;  %v3977_v48 = vmul.f32 %v3662_v35, %v482_v61  ;;  %v523_v29 = vmul.f32 %v3809_v50, %v3662_v35  ;;  %v2057_v15 = vld [vmem:[#allocation2 + $0x82] sm:$0xff] }
  0x68   : > { %6472 = vst [vmem:[#allocation50_spill] sm:$0xff] %v3920_v60  ;;  %v3934_v60 = vld [vmem:[#allocation2 + $0x1a] sm:$0xff]  ;;  %v549_v7 = vadd.f32 %v517_v16, %v451_v44  ;;  %v2934_v44 = vld [vmem:[%s3534_s30 + $0xf0] sm:$0xff]  ;;  %v2155_v50 = vld [vmem:[#allocation2 + $0x83] sm:$0xff]  ;;  %3093 = vperm.xlu1 %3424, %v2935_v57   ;;  %v817_v57 = vmul.f32 %v3829_v3, %v3707_v55 }
  0x69   : > { %321 = vst.msk [vmem:[#allocation2 + $0xf8] sm:$0xff] %vm288_vm0, %v6461_v30  ;;  %v1435_v61 = vadd.f32 %v1403_v49, %v1337_v31  ;;  %v719_v31 = vmul.f32 %v3827_v2, %v3689_v46  ;;  %3088 = vperm.xlu0 %3423, %v2934_v44  }
  0x6a   : > { %322 = vst.msk [vmem:[#allocation2 + $0x100] sm:$0xf] %vm291_vm1, %v6461_v30 }
  0x6b   : > { %6473 = vst [vmem:[#allocation51_spill] sm:$0xff] %v3934_v60  ;;  %v1533_v18 = vadd.f32 %v1501_v12, %v1435_v61 }
  0x6c   : > { %6474 = vst [vmem:[#allocation52_spill] sm:$0xff] %v3937_v1  ;;  %v3968_v1 = vmul.f32 %v3675_v40, %v3934_v60  ;;  %v1861_v60 = vld [vmem:[#allocation2 + $0x80] sm:$0xff] }
  0x6d   : > { %6475 = vst [vmem:[#allocation53_spill] sm:$0xff] %v3942_v21  ;;  %v3960_v21 = vld [vmem:[#allocation2 + $0x1b] sm:$0xff]  ;;  %v1631_v12 = vadd.f32 %v1599_v53, %v1533_v18  ;;  %v916_v53 = vmul.f32 %v3841_v13, %v3710_v56 }
  0x6e   : > { %6476 = vst [vmem:[#allocation54_spill] sm:$0xff] %v3944_v37  ;;  %v1697_v37 = vmul.f32 %v3755_v10, %v1664_v39  ;;  %v1630_v39 = vadd.f32 %v3839_v8, %v1532_v38  ;;  %v713_v16 = vmul.f32 %v3689_v46, %v3960_v21  ;;  %v1894_v8 = vmul.f32 %v3768_v17, %v1861_v60 }
  0x6f   : > { %323 = vst.msk [vmem:[#allocation2 + $0x108] sm:$0xff] %vm288_vm0, %v6461_v30  ;;  %v621_v38 = vmul.f32 %v3811_v51, %v3675_v40  ;;  %v4009_v51 = vmul.f32 %v3782_v25, %v2155_v50 }
  0x70   : > { %6477 = vst [vmem:[#allocation55_spill] sm:$0xff] %v3951_v6  ;;  %v3971_v6 = vmul.f32 %v3659_v34, %v416_v36  ;;  %v457_v36 = vmul.f32 %v3797_v42, %v3659_v34  ;;  %v1728_v42 = vadd.f32 %v3856_v24, %v1630_v39 }
  0x71   : > { %324 = vst.msk [vmem:[#allocation2 + $0x110] sm:$0xff] %vm288_vm0, %v6461_v30 }
  0x72   : > { %6478 = vst [vmem:[#allocation56_spill] sm:$0xff] %v3960_v21  ;;  %v4002_v21 = vmul.f32 %v3779_v23, %v2057_v15  ;;  %v555_v49 = vadd.f32 %v523_v29, %v457_v36  ;;  %v1826_v39 = vadd.f32 %v3860_v26, %v1728_v42  ;;  %v2352_v36 = vld [vmem:[#allocation2 + $0x98] sm:$0xff]  ;;  %v460_v42 = vmul.f32 %v1861_v60, %v3659_v34 }
  0x73   : > { %325 = vst.msk [vmem:[#allocation2 + $0x118] sm:$0xf] %vm291_vm1, %v6461_v30  ;;  %v2450_v29 = vld [vmem:[#allocation2 + $0x99] sm:$0xff]  ;;  %v4022_v61 = vmul.f32 %v3793_v33, %v2352_v36  ;;  %v4043_v60 = vmul.f32 %v3916_v43, %v3633_v28 }
  0x74   : > { %326 = vst.msk [vmem:[#allocation2 + $0x120] sm:$0xff] %vm288_vm0, %v6461_v30  ;;  %v653_v2 = vadd.f32 %v621_v38, %v555_v49  ;;  %v4025_v44 = vmul.f32 %v3802_v45, %v2450_v29  ;;  %v4027_v26 = vld [vmem:[#allocation2 + $0x9a] sm:$0xff]  ;;  %v1729_v49 = vadd.f32 %v1697_v37, %v1631_v12  ;;  %v647_v45 = vadd.f32 %v3968_v1, %v549_v7 }
  0x75   : > { %6479 = vst [vmem:[#allocation57_spill] sm:$0xff] %v3977_v48  ;;  %v2253_v48 = vld [vmem:[#allocation2 + $0x84] sm:$0xff]  ;;  %v4035_v38 = vmul.f32 %v3805_v47, %v4027_v26  ;;  %v4047_v34 = vld [vmem:[#allocation2 + $0x1c] sm:$0xff] }
  0x76   : > { %327 = vst.msk [vmem:[#allocation2 + $0x128] sm:$0xff] %vm288_vm0, %v6461_v30  ;;  %v4012_v24 = vmul.f32 %v3790_v32, %v2253_v48  ;;  %v1925_v32 = vadd.f32 %v3870_v41, %v1826_v39  ;;  %v751_v18 = vadd.f32 %v719_v31, %v653_v2  ;;  %v526_v41 = vmul.f32 %v1959_v27, %v3662_v35  ;;  %v6480_v37 = vld [vmem:[#allocation37_spill] sm:$0xff]  ;;  %v6483_v7 = vld [vmem:[#allocation42_spill] sm:$0xff] }
  0x77   : > { %328 = vst.msk [vmem:[#allocation2 + $0x130] sm:$0xf] %vm291_vm1, %v6461_v30  ;;  %v624_v39 = vmul.f32 %v2057_v15, %v3675_v40  ;;  %v1014_v31 = vmul.f32 %v3843_v14, %v3719_v58  ;;  %v1112_v12 = vmul.f32 %v6480_v37, %v3722_v59  ;;  %v1827_v27 = vadd.f32 %v1795_v20, %v1729_v49 }
  0x78   : > { %329 = vst.msk [vmem:[#allocation2 + $0x138] sm:$0xff] %vm288_vm0, %v6461_v30  ;;  %v2023_v47 = vadd.f32 %v3874_v52, %v1925_v32  ;;  %v849_v2 = vadd.f32 %v817_v57, %v751_v18  ;;  %v558_v35 = vadd.f32 %v526_v41, %v460_v42  ;;  %v722_v15 = vmul.f32 %v2155_v50, %v3689_v46  ;;  %v6481_v32 = vld [vmem:[#allocation41_spill] sm:$0xff]  ;;  %v6482_v50 = vld [vmem:[#allocation11_spill] sm:$0xff] }
  0x79   : > { %330 = vst.msk [vmem:[#allocation2 + $0x140] sm:$0xff] %vm288_vm0, %v6461_v30  ;;  %v820_v18 = vmul.f32 %v2253_v48, %v3707_v55  ;;  %v811_v37 = vmul.f32 %v3707_v55, %v4047_v34  ;;  %v1926_v20 = vadd.f32 %v1894_v8, %v1827_v27  ;;  %v745_v49 = vadd.f32 %v713_v16, %v647_v45  ;;  %v6484_v48 = vld [vmem:[#allocation38_spill] sm:$0xff]  ;;  %v6485_v8 = vld [vmem:[#allocation12_spill] sm:$0xff]  ;;  %v6486_v27 = vld [vmem:[#allocation43_spill] sm:$0xff] }
  0x7a   : > { %331 = vst.msk [vmem:[#allocation2 + $0x148] sm:$0xf] %vm291_vm1, %v6461_v30  ;;  %v2121_v52 = vadd.f32 %v6481_v32, %v2023_v47  ;;  %v948_v57 = vadd.f32 %v916_v53, %v849_v2  ;;  %v656_v42 = vadd.f32 %v624_v39, %v558_v35  ;;  %v910_v1 = vmul.f32 %v3710_v56, %v6482_v50  ;;  %v2959_v32 = vpop.permute.xlu2 %2958 }
  0x7b   : > { %332 = vst.msk [vmem:[#allocation2 + $0x150] sm:$0xff] %vm288_vm0, %v6461_v30  ;;  %v1210_v41 = vmul.f32 %v6484_v48, %v3731_v63  ;;  %v919_v2 = vmul.f32 %v2352_v36, %v3710_v56  ;;  %v2024_v35 = vadd.f32 %v3994_v22, %v1926_v20  ;;  %v843_v16 = vadd.f32 %v811_v37, %v745_v49  ;;  %v6488_v20 = vld [vmem:[#allocation13_spill] sm:$0xff]  ;;  %v6489_v49 = vld [vmem:[#allocation47_spill] sm:$0xff] }
  0x7c   : > { %333 = vst.msk [vmem:[#allocation2 + $0x158] sm:$0xff] %vm288_vm0, %v6461_v30  ;;  %v2219_v47 = vadd.f32 %v6483_v7, %v2121_v52  ;;  %v1046_v53 = vadd.f32 %v1014_v31, %v948_v57  ;;  %v754_v45 = vadd.f32 %v722_v15, %v656_v42  ;;  %v1008_v39 = vmul.f32 %v3719_v58, %v6485_v8  ;;  %v6487_v57 = vld [vmem:[#allocation39_spill] sm:$0xff] }
  0x7d   : > { %334 = vst.msk [vmem:[#allocation2 + $0x160] sm:$0xf] %vm291_vm1, %v6461_v30  ;;  %v1308_v36 = vmul.f32 %v6487_v57, %v3734_v0  ;;  %v1017_v7 = vmul.f32 %v2450_v29, %v3719_v58  ;;  %v2122_v22 = vadd.f32 %v4002_v21, %v2024_v35  ;;  %v942_v15 = vadd.f32 %v910_v1, %v843_v16  ;;  %v6491_v29 = vld [vmem:[#allocation44_spill] sm:$0xff]  ;;  %v6492_v35 = vld [vmem:[#allocation14_spill] sm:$0xff] }
  0x7e   : > { %335 = vst.msk [vmem:[#allocation2 + $0x168] sm:$0xff] %vm288_vm0, %v6461_v30  ;;  %v2317_v52 = vadd.f32 %v6486_v27, %v2219_v47  ;;  %v1144_v31 = vadd.f32 %v1112_v12, %v1046_v53  ;;  %v852_v37 = vadd.f32 %v820_v18, %v754_v45  ;;  %v1106_v42 = vmul.f32 %v3722_v59, %v6488_v20  ;;  %v6490_v53 = vld [vmem:[#allocation40_spill] sm:$0xff] }
  0x7f   : > { %336 = vst.msk [vmem:[#allocation2 + $0x170] sm:$0xff] %vm288_vm0, %v6461_v30  ;;  %v1406_v27 = vmul.f32 %v6490_v53, %v3742_v4  ;;  %v1504_v57 = vmul.f32 %v6491_v29, %v3745_v5  ;;  %v2220_v21 = vadd.f32 %v4009_v51, %v2122_v22  ;;  %v1040_v1 = vadd.f32 %v1008_v39, %v942_v15  ;;  %v6493_v16 = vld [vmem:[#allocation48_spill] sm:$0xff] }
  0x80   : > { %337 = vst.msk [vmem:[#allocation2 + $0x178] sm:$0xf] %vm291_vm1, %v6461_v30  ;;  %v2416_v47 = vadd.f32 %v6489_v49, %v2317_v52  ;;  %v1242_v12 = vadd.f32 %v1210_v41, %v1144_v31  ;;  %v951_v18 = vadd.f32 %v919_v2, %v852_v37  ;;  %v1204_v45 = vmul.f32 %v3731_v63, %v6492_v35  ;;  %v2646_v31 = vld [vmem:[#allocation2 + $0x9b] sm:$0xff]  ;;  %v6494_v22 = vld [vmem:[#allocation16_spill] sm:$0xff] }
  0x81   : > { %338 = vst.msk [vmem:[#allocation2 + $0x180] sm:$0xff] %vm288_vm0, %v6461_v30  ;;  %v3100_v41 = vmul.f32 %v2959_v32, %v3955_v62  ;;  %v1115_v53 = vmul.f32 %v4027_v26, %v3722_v59  ;;  %v2318_v51 = vadd.f32 %v4012_v24, %v2220_v21  ;;  %v1138_v39 = vadd.f32 %v1106_v42, %v1040_v1  ;;  %v6495_v62 = vld [vmem:[#allocation50_spill] sm:$0xff]  ;;  %v360_v15 = vld [vmem:[%s3586_s12 + $0x50] sm:$0xff]  ;;  %v6497_v1 = vld [vmem:[#allocation53_spill] sm:$0xff] }
  0x82   : > { %339 = vst.msk [vmem:[#allocation2 + $0x188] sm:$0xff] %vm288_vm0, %v6461_v30  ;;  %v2514_v52 = vadd.f32 %v6493_v16, %v2416_v47  ;;  %v1340_v49 = vadd.f32 %v1308_v36, %v1242_v12  ;;  %v1049_v2 = vadd.f32 %v1017_v7, %v951_v18  ;;  %v1302_v37 = vmul.f32 %v3734_v0, %v6494_v22  ;;  %v6496_v47 = vld [vmem:[#allocation49_spill] sm:$0xff]  ;;  %v580_v18 = vld [vmem:[#allocation2 + $0x2] sm:$0xff] }
  0x83   : > { %340 = vst.msk [vmem:[#allocation2 + $0x190] sm:$0xf] %vm291_vm1, %v6461_v30  ;;  %v2679_v36 = vmul.f32 %v3817_v54, %v2646_v31  ;;  %v1602_v12 = vmul.f32 %v6496_v47, %v3752_v9  ;;  %v2417_v24 = vadd.f32 %v4022_v61, %v2318_v51  ;;  %v4126_v7 = vld [vmem:[%s3586_s12 + $0x58] sm:$0xff]  ;;  %v1700_v42 = vmul.f32 %v3922_v19, %v3755_v10  ;;  %v6498_v16 = vld [vmem:[#allocation7_spill] sm:$0xff]  ;;  %v362_v51 = vld [vmem:[%s3586_s12 + $0x60] sm:$0xff] }
  0x84   : > { %341 = vst.msk [vmem:[#allocation2 + $0x198] sm:$0xff] %vm288_vm0, %v6461_v30  ;;  %v2612_v32 = vadd.f32 %v6495_v62, %v2514_v52  ;;  %v1438_v26 = vadd.f32 %v1406_v27, %v1340_v49  ;;  %v1213_v29 = vmul.f32 %v2646_v31, %v3731_v63  ;;  %v1236_v21 = vadd.f32 %v1204_v45, %v1138_v39  ;;  %v2964_v49 = vpop.permute.xlu2 %2963  ;;  %v2744_v61 = vld [vmem:[#allocation2 + $0x9c] sm:$0xff]  ;;  %v363_v31 = vld [vmem:[%s3586_s12 + $0x68] sm:$0xff] }
  0x85   : > { %342 = vst.msk [vmem:[#allocation2 + $0x1a0] sm:$0xff] %vm288_vm0, %v6461_v30  ;;  %v3132_v52 = vadd.f32 %v3100_v41, %v6498_v16  ;;  %v1147_v47 = vadd.f32 %v1115_v53, %v1049_v2  ;;  %v2515_v22 = vadd.f32 %v4025_v44, %v2417_v24  ;;  %v3101_v19 = vmul.f32 %v2964_v49, %v4043_v60  ;;  %v6499_v39 = vld [vmem:[#allocation19_spill] sm:$0xff]  ;;  %v6502_v53 = vld [vmem:[#allocation52_spill] sm:$0xff] }
  0x86   : > { %343 = vst.msk [vmem:[#allocation2 + $0x1a8] sm:$0xf] %vm291_vm1, %v6461_v30  ;;  %v2710_v27 = vadd.f32 %v6497_v1, %v2612_v32  ;;  %v1536_v62 = vadd.f32 %v1504_v57, %v1438_v26  ;;  %v1334_v45 = vadd.f32 %v1302_v37, %v1236_v21  ;;  %v1400_v41 = vmul.f32 %v3742_v4, %v6499_v39  ;;  %v6500_v32 = vld [vmem:[#allocation55_spill] sm:$0xff]  ;;  %v4146_v57 = vld [vmem:[%s3586_s12 + $0x70] sm:$0xff]  ;;  %v6503_v37 = vld [vmem:[#allocation54_spill] sm:$0xff] }
  0x87   : > { %344 = vst.msk [vmem:[#allocation2 + $0x1b0] sm:$0xff] %vm288_vm0, %v6461_v30  ;;  %v613_v44 = vmul.f32 %v3675_v40, %v580_v18  ;;  %v2613_v60 = vadd.f32 %v4035_v38, %v2515_v22  ;;  %v2777_v2 = vmul.f32 %v6502_v53, %v2744_v61  ;;  %v1311_v26 = vmul.f32 %v2744_v61, %v3734_v0  ;;  %v365_v21 = vld [vmem:[%s3586_s12 + $0x78] sm:$0xff]  ;;  %v678_v49 = vld [vmem:[#allocation2 + $0x3] sm:$0xff] }
  0x88   : > { %345 = vst.msk [vmem:[#allocation2 + $0x1b8] sm:$0xff] %vm288_vm0, %v6461_v30  ;;  %v2808_v1 = vadd.f32 %v6500_v32, %v2710_v27  ;;  %v1245_v27 = vadd.f32 %v1213_v29, %v1147_v47  ;;  %v6504_v18 = vld [vmem:[#allocation57_spill] sm:$0xff]  ;;  %v3133_v16 = vadd.f32 %v3101_v19, %v3633_v28  ;;  %v366_v61 = vld [vmem:[%s3586_s12 + $0x80] sm:$0xff]  ;;  %v368_v47 = vld [vmem:[%s3586_s12 + $0x90] sm:$0xff] }
  0x89   : > { %346 = vst.msk [vmem:[#allocation2 + $0x1c0] sm:$0xf] %vm291_vm1, %v6461_v30  ;;  %v547_v38 = vadd.f32 %v6504_v18, %v3971_v6  ;;  %v2711_v22 = vadd.f32 %v2679_v36, %v2613_v60  ;;  %v4174_v6 = vld [vmem:[%s3586_s12 + $0x88] sm:$0xff]  ;;  %v369_v18 = vld [vmem:[%s3586_s12 + $0x98] sm:$0xff] }
  0x8a   : > { %347 = vst.msk [vmem:[#allocation2 + $0x1c8] sm:$0xff] %vm288_vm0, %v6461_v30  ;;  %v3164_v24 = vadd.f32 %v3132_v52, %v2808_v1  ;;  %v1432_v52 = vadd.f32 %v1400_v41, %v1334_v45  ;;  %v6507_v36 = vld [vmem:[#allocation23_spill] sm:$0xff]  ;;  %v6508_v45 = vld [vmem:[#allocation8_spill] sm:$0xff]  ;;  %v1343_v32 = vadd.f32 %v1311_v26, %v1245_v27  ;;  %v6510_v27 = vld [vmem:[#allocation25_spill] sm:$0xff] }
  0x8b   : > { %348 = vst.msk [vmem:[#allocation2 + $0x1d0] sm:$0xff] %vm288_vm0, %v6461_v30  ;;  %v1596_v28 = vmul.f32 %v3752_v9, %v6507_v36  ;;  %v2880_v41 = vmul.f32 %v3916_v43, %v6508_v45  ;;  %v645_v1 = vadd.f32 %v613_v44, %v547_v38  ;;  %v1694_v38 = vmul.f32 %v3755_v10, %v6510_v27 }
  0x8c   : > { %349 = vst.msk [vmem:[#allocation2 + $0x1d8] sm:$0xf] %vm291_vm1, %v6461_v30  ;;  %v1634_v30 = vadd.f32 %v1602_v12, %v1536_v62 }
  0x8d   : > { %393 = vst.msk [vmem:[#allocation2 + $0xaa] sm:$0xff] %vm288_vm0, %v360_v15  ;;  %v1798_v15 = vmul.f32 %v6503_v37, %v3758_v11  ;;  %v6509_v37 = vld [vmem:[#allocation24_spill] sm:$0xff] }
  0x8e   : > { %394 = vst.msk [vmem:[#allocation2 + $0xb2] sm:$0xff] %vm288_vm0, %v4126_v7  ;;  %v1732_v12 = vadd.f32 %v1700_v42, %v1634_v30  ;;  %v6505_v42 = vld [vmem:[#allocation22_spill] sm:$0xff]  ;;  %v711_v30 = vmul.f32 %v3689_v46, %v678_v49  ;;  %v6512_v49 = vld [vmem:[#allocation28_spill] sm:$0xff] }
  0x8f   : > { %6501 = vst [vmem:[#allocation41_spill] sm:$0xff] %v4146_v57  ;;  %v1498_v29 = vmul.f32 %v3745_v5, %v6505_v42 }
  0x90   : > { %395 = vst.msk [vmem:[#allocation2 + $0xc2] sm:$0xff] %vm288_vm0, %v362_v51  ;;  %v2809_v51 = vadd.f32 %v2777_v2, %v2711_v22  ;;  %v1830_v62 = vadd.f32 %v1798_v15, %v1732_v12  ;;  %v6511_v22 = vld [vmem:[#allocation31_spill] sm:$0xff] }
  0x91   : > { %396 = vst.msk [vmem:[#allocation2 + $0xca] sm:$0xff] %vm288_vm0, %v363_v31  ;;  %v1530_v12 = vadd.f32 %v1498_v29, %v1432_v52 }
  0x92   : > { %397 = vst.msk [vmem:[#allocation2 + $0xda] sm:$0xff] %vm288_vm0, %v4146_v57  ;;  %v3165_v60 = vadd.f32 %v3133_v16, %v2809_v51  ;;  %v1792_v16 = vmul.f32 %v3758_v11, %v6511_v22  ;;  %v6514_v57 = vld [vmem:[#allocation33_spill] sm:$0xff] }
  0x93   : > { %3196 = vst.msk [vmem:[%s4163_s13 + $0x20] sm:$0xff] %vm288_vm0, %v3164_v24  ;;  %v4215_v27 = vmul.f32 %v3779_v23, %v6514_v57  ;;  %v1628_v48 = vadd.f32 %v1596_v28, %v1530_v12  ;;  %v6520_v12 = vld [vmem:[#allocation46_spill] sm:$0xff] }
  0x94   : > { %6506 = vst [vmem:[#allocation11_spill] sm:$0xff] %v4174_v6  ;;  %v4180_v19 = vld [vmem:[#allocation2 + $0xa8] sm:$0xff] }
  0x95   : > { %398 = vst.msk [vmem:[#allocation2 + $0xe2] sm:$0xff] %vm288_vm0, %v365_v21  ;;  %v4182_v31 = vld [vmem:[#allocation2 + $0xa9] sm:$0xff]  ;;  %v1897_v2 = vmul.f32 %v3768_v17, %v4180_v19  ;;  %v1474_v51 = vld [vmem:[#allocation2 + $0xb1] sm:$0xff] }
  0x96   : > { %399 = vst.msk [vmem:[#allocation2 + $0xf2] sm:$0xff] %vm288_vm0, %v366_v61  ;;  %v1995_v15 = vmul.f32 %v6509_v37, %v4182_v31  ;;  %v1376_v24 = vld [vmem:[#allocation2 + $0xb0] sm:$0xff]  ;;  %v776_v21 = vld [vmem:[#allocation2 + $0x4] sm:$0xff]  ;;  %v1891_v61 = vmul.f32 %v3768_v17, %v6512_v49 }
  0x97   : > { %400 = vst.msk [vmem:[#allocation2 + $0xfa] sm:$0xff] %vm288_vm0, %v4174_v6  ;;  %v4195_v44 = vld [vmem:[#allocation2 + $0xaa] sm:$0xff]  ;;  %v1409_v26 = vmul.f32 %v3742_v4, %v1376_v24  ;;  %v1929_v52 = vadd.f32 %v1897_v2, %v1830_v62  ;;  %v1572_v36 = vld [vmem:[#allocation2 + $0xb2] sm:$0xff]  ;;  %v743_v62 = vadd.f32 %v711_v30, %v645_v1  ;;  %v809_v2 = vmul.f32 %v3707_v55, %v776_v21  ;;  %v6518_v30 = vld [vmem:[#allocation26_spill] sm:$0xff] }
  0x98   : > { %401 = vst.msk [vmem:[#allocation2 + $0x10a] sm:$0xff] %vm288_vm0, %v368_v47  ;;  %v2093_v29 = vmul.f32 %v3779_v23, %v4195_v44  ;;  %v6513_v6 = vld [vmem:[#allocation32_spill] sm:$0xff]  ;;  %v1507_v47 = vmul.f32 %v3745_v5, %v1474_v51  ;;  %v1605_v39 = vmul.f32 %v3752_v9, %v1572_v36  ;;  %v6517_v51 = vld [vmem:[#allocation35_spill] sm:$0xff]  ;;  %v4234_v21 = vmul.f32 %v6518_v30, %v3829_v3 }
  0x99   : > { %3197 = vst.msk [vmem:[%s4163_s13 + $0x28] sm:$0xff] %vm288_vm0, %v3165_v60  ;;  %v4211_v24 = vmul.f32 %v6509_v37, %v6513_v6  ;;  %v4217_v22 = vld [vmem:[#allocation2 + $0xab] sm:$0xff]  ;;  %v1441_v49 = vadd.f32 %v1409_v26, %v1343_v32  ;;  %v1670_v60 = vld [vmem:[#allocation2 + $0xb3] sm:$0xff]  ;;  %v2027_v42 = vadd.f32 %v1995_v15, %v1929_v52  ;;  %v4230_v1 = vmul.f32 %v3782_v25, %v6517_v51  ;;  %v2979_v15 = vpop.permute.xlu2 %2978 }
  0x9a   : > { %6515 = vst [vmem:[#allocation42_spill] sm:$0xff] %v4217_v22  ;;  %v2191_v6 = vmul.f32 %v3782_v25, %v4217_v22  ;;  %v1768_v57 = vld [vmem:[#allocation2 + $0xb4] sm:$0xff]  ;;  %v4225_v46 = vld [vmem:[#allocation2 + $0xac] sm:$0xff]  ;;  %v1703_v26 = vmul.f32 %v3755_v10, %v1670_v60  ;;  %v3104_v60 = vmul.f32 %v2979_v15, %v2880_v41  ;;  %v841_v22 = vadd.f32 %v809_v2, %v743_v62 }
  0x9b   : > { %402 = vst.msk [vmem:[#allocation2 + $0x112] sm:$0xff] %vm288_vm0, %v369_v18  ;;  %v1539_v32 = vadd.f32 %v1507_v47, %v1441_v49  ;;  %v2125_v18 = vadd.f32 %v2093_v29, %v2027_v42  ;;  %v2289_v36 = vmul.f32 %v6518_v30, %v4225_v46  ;;  %v6519_v52 = vld [vmem:[#allocation45_spill] sm:$0xff]  ;;  %v1006_v49 = vmul.f32 %v3719_v58, %v6520_v12  ;;  %v4242_v47 = vld [vmem:[#allocation2 + $0xc0] sm:$0xff]  ;;  %v4247_v29 = vld [vmem:[#allocation2 + $0xc8] sm:$0xff] }
  0x9c   : > { %6516 = vst [vmem:[#allocation12_spill] sm:$0xff] %v4225_v46  ;;  %v908_v28 = vmul.f32 %v3710_v56, %v6519_v52  ;;  %v1801_v55 = vmul.f32 %v3758_v11, %v1768_v57  ;;  %v2388_v42 = vmul.f32 %v3793_v33, %v4242_v47  ;;  %v1726_v46 = vadd.f32 %v1694_v38, %v1628_v48  ;;  %v4253_v56 = vld [vmem:[#allocation2 + $0xc1] sm:$0xff]  ;;  %v6524_v2 = vld [vmem:[#allocation29_spill] sm:$0xff]  ;;  %v4263_v38 = vld [vmem:[#allocation2 + $0xc9] sm:$0xff] }
  0x9d   : > { %v1637_v51 = vadd.f32 %v1605_v39, %v1539_v32  ;;  %v2223_v3 = vadd.f32 %v2191_v6, %v2125_v18  ;;  %6521 = vst [vmem:[#allocation43_spill] sm:$0xff] %v4247_v29  ;;  %v4251_v52 = vmul.f32 %v3793_v33, %v3841_v13  ;;  %v1900_v39 = vmul.f32 %v3768_v17, %v4247_v29  ;;  %v6523_v6 = vld [vmem:[#allocation51_spill] sm:$0xff]  ;;  %v6526_v32 = vld [vmem:[#allocation56_spill] sm:$0xff] }
  0x9e   : > { %6522 = vst [vmem:[#allocation13_spill] sm:$0xff] %v4253_v56  ;;  %v2883_v57 = vmul.f32 %v3916_v43, %v4126_v7  ;;  %v1104_v41 = vmul.f32 %v3722_v59, %v6523_v6  ;;  %v2486_v48 = vmul.f32 %v6524_v2, %v4253_v56  ;;  %v1824_v13 = vadd.f32 %v1792_v16, %v1726_v46  ;;  %v6527_v59 = vld [vmem:[#allocation30_spill] sm:$0xff] }
  0x9f   : > { %v1735_v12 = vadd.f32 %v1703_v26, %v1637_v51  ;;  %v2321_v62 = vadd.f32 %v2289_v36, %v2223_v3  ;;  %6525 = vst [vmem:[#allocation47_spill] sm:$0xff] %v4263_v38  ;;  %v1202_v15 = vmul.f32 %v3731_v63, %v6526_v32  ;;  %v4267_v26 = vld [vmem:[#allocation2 + $0xc2] sm:$0xff]  ;;  %v3136_v18 = vadd.f32 %v3104_v60, %v6508_v45  ;;  %v4280_v32 = vld [vmem:[#allocation2 + $0xca] sm:$0xff] }
  0xa0   : > { %v4269_v51 = vld [vmem:[#allocation2 + $0xc3] sm:$0xff]  ;;  %v1998_v6 = vmul.f32 %v6509_v37, %v4263_v38  ;;  %v940_v3 = vadd.f32 %v908_v28, %v841_v22  ;;  %v2584_v56 = vmul.f32 %v6527_v59, %v4267_v26  ;;  %6529 = vst [vmem:[#allocation44_spill] sm:$0xff] %v4280_v32  ;;  %v1923_v63 = vadd.f32 %v1891_v61, %v1824_v13  ;;  %v4286_v22 = vld [vmem:[#allocation2 + $0xcb] sm:$0xff] }
  0xa1   : > { %v1833_v29 = vadd.f32 %v1801_v55, %v1735_v12  ;;  %v2420_v36 = vadd.f32 %v2388_v42, %v2321_v62  ;;  %v2682_v46 = vmul.f32 %v3817_v54, %v4269_v51  ;;  %v4278_v16 = vld [vmem:[#allocation2 + $0xc4] sm:$0xff]  ;;  %v2096_v60 = vmul.f32 %v3779_v23, %v4280_v32  ;;  %6530 = vst [vmem:[#allocation14_spill] sm:$0xff] %v4286_v22  ;;  %v4288_v28 = vld [vmem:[#allocation2 + $0xcc] sm:$0xff] }
  0xa2   : > { %6528 = vst [vmem:[#allocation40_spill] sm:$0xff] %v4278_v16  ;;  %v2780_v45 = vmul.f32 %v6502_v53, %v4278_v16  ;;  %v1038_v42 = vadd.f32 %v1006_v49, %v940_v3  ;;  %v2194_v62 = vmul.f32 %v3782_v25, %v4286_v22  ;;  %v2292_v38 = vmul.f32 %v6518_v30, %v4288_v28  ;;  %v4294_v61 = vld [vmem:[#allocation2 + $0xe0] sm:$0xff]  ;;  %v6536_v22 = vld [vmem:[#allocation37_spill] sm:$0xff] }
  0xa3   : > { %v1932_v55 = vadd.f32 %v1900_v39, %v1833_v29  ;;  %6531 = vst [vmem:[#allocation48_spill] sm:$0xff] %v4288_v28  ;;  %v2518_v12 = vadd.f32 %v2486_v48, %v2420_v36  ;;  %v2021_v13 = vadd.f32 %v4211_v24, %v1923_v63  ;;  %v2391_v39 = vmul.f32 %v3793_v33, %v4294_v61  ;;  %v4299_v32 = vld [vmem:[#allocation2 + $0xe1] sm:$0xff] }
  0xa4   : > { %6532 = vst [vmem:[#allocation50_spill] sm:$0xff] %v4294_v61  ;;  %v4301_v16 = vld [vmem:[#allocation2 + $0xe2] sm:$0xff]  ;;  %v1136_v49 = vadd.f32 %v1104_v41, %v1038_v42  ;;  %v1300_v48 = vmul.f32 %v3734_v0, %v4047_v34  ;;  %v2489_v36 = vmul.f32 %v6524_v2, %v4299_v32  ;;  %v1398_v34 = vmul.f32 %v3742_v4, %v6482_v50 }
  0xa5   : > { %v2030_v29 = vadd.f32 %v1998_v6, %v1932_v55  ;;  %6533 = vst [vmem:[#allocation49_spill] sm:$0xff] %v4299_v32  ;;  %v2616_v3 = vadd.f32 %v2584_v56, %v2518_v12  ;;  %v2587_v28 = vmul.f32 %v6527_v59, %v4301_v16  ;;  %v4309_v63 = vld [vmem:[#allocation2 + $0xe3] sm:$0xff]  ;;  %v2119_v24 = vadd.f32 %v4215_v27, %v2021_v13  ;;  %v2994_v6 = vpop.permute.xlu2 %2993 }
  0xa6   : > { %6534 = vst [vmem:[#allocation53_spill] sm:$0xff] %v4301_v16  ;;  %v2685_v61 = vmul.f32 %v3817_v54, %v4309_v63  ;;  %v1234_v41 = vadd.f32 %v1202_v15, %v1136_v49  ;;  %v3107_v42 = vmul.f32 %v2994_v6, %v2883_v57  ;;  %v2480_v16 = vmul.f32 %v6524_v2, %v3843_v14  ;;  %v6537_v49 = vld [vmem:[#allocation6_spill] sm:$0xff]  ;;  %v2949_v14 = vpop.permute.xlu1 %2948 }
  0xa7   : > { %6535 = vst [vmem:[#allocation7_spill] sm:$0xff] %v4309_v63  ;;  %v2128_v55 = vadd.f32 %v2096_v60, %v2030_v29  ;;  %v2714_v56 = vadd.f32 %v2682_v46, %v2616_v3  ;;  %v2217_v12 = vadd.f32 %v4230_v1, %v2119_v24  ;;  %v2578_v27 = vmul.f32 %v6527_v59, %v6536_v22 }
  0xa8   : > { %v1332_v13 = vadd.f32 %v1300_v48, %v1234_v41  ;;  %v1496_v60 = vmul.f32 %v3745_v5, %v6485_v8  ;;  %v2874_v50 = vmul.f32 %v3916_v43, %v6537_v49  ;;  %v1594_v1 = vmul.f32 %v3752_v9, %v6488_v20  ;;  %v6539_v48 = vld [vmem:[#allocation10_spill] sm:$0xff] }
  0xa9   : > { %v2226_v32 = vadd.f32 %v2194_v62, %v2128_v55  ;;  %v2812_v29 = vadd.f32 %v2780_v45, %v2714_v56  ;;  %v2315_v15 = vadd.f32 %v4234_v21, %v2217_v12  ;;  %v6538_v62 = vld [vmem:[#allocation9_spill] sm:$0xff]  ;;  %v529_v3 = vmul.f32 %v4182_v31, %v6539_v48  ;;  %v6541_v55 = vld [vmem:[#allocation42_spill] sm:$0xff] }
  0xaa   : > { %v1430_v46 = vadd.f32 %v1398_v34, %v1332_v13  ;;  %v463_v22 = vmul.f32 %v4180_v19, %v6538_v62  ;;  %v1692_v21 = vmul.f32 %v3755_v10, %v6492_v35  ;;  %v627_v24 = vmul.f32 %v4195_v44, %v3675_v40  ;;  %v6542_v34 = vld [vmem:[#allocation38_spill] sm:$0xff]  ;;  %v6545_v13 = vld [vmem:[#allocation17_spill] sm:$0xff] }
  0xab   : > { %v2324_v57 = vadd.f32 %v2292_v38, %v2226_v32  ;;  %v3168_v8 = vadd.f32 %v3136_v18, %v2812_v29  ;;  %v2414_v45 = vadd.f32 %v4251_v52, %v2315_v15  ;;  %v6540_v32 = vld [vmem:[#allocation15_spill] sm:$0xff]  ;;  %v2676_v31 = vmul.f32 %v3817_v54, %v6542_v34  ;;  %v6543_v52 = vld [vmem:[#allocation16_spill] sm:$0xff]  ;;  %v6551_v34 = vld [vmem:[#allocation13_spill] sm:$0xff] }
  0xac   : > { %v1528_v20 = vadd.f32 %v1496_v60, %v1430_v46  ;;  %v561_v38 = vadd.f32 %v529_v3, %v463_v22  ;;  %v725_v41 = vmul.f32 %v6541_v55, %v6540_v32  ;;  %v3098_v18 = vmul.f32 %v2949_v14, %v2874_v50  ;;  %v4345_v12 = vld [vmem:[#allocation2 + $0xe4] sm:$0xff]  ;;  %v6546_v60 = vld [vmem:[#allocation12_spill] sm:$0xff] }
  0xad   : > { %v2423_v6 = vadd.f32 %v2391_v39, %v2324_v57  ;;  %3200 = vst.msk [vmem:[%s4163_s13 + $0x40] sm:$0xff] %vm288_vm0, %v3168_v8  ;;  %v2512_v19 = vadd.f32 %v2480_v16, %v2414_v45  ;;  %v1790_v56 = vmul.f32 %v3758_v11, %v6543_v52  ;;  %v823_v29 = vmul.f32 %v6546_v60, %v6545_v13  ;;  %v6547_v16 = vld [vmem:[#allocation39_spill] sm:$0xff]  ;;  %v6549_v8 = vld [vmem:[#allocation18_spill] sm:$0xff] }
  0xae   : > { %6544 = vst [vmem:[#allocation55_spill] sm:$0xff] %v4345_v12  ;;  %v1626_v44 = vadd.f32 %v1594_v1, %v1528_v20  ;;  %v659_v39 = vadd.f32 %v627_v24, %v561_v38  ;;  %v2783_v15 = vmul.f32 %v6502_v53, %v4345_v12  ;;  %v2774_v46 = vmul.f32 %v6502_v53, %v6547_v16  ;;  %v6548_v22 = vld [vmem:[#allocation19_spill] sm:$0xff]  ;;  %v6550_v20 = vld [vmem:[#allocation22_spill] sm:$0xff] }
  0xaf   : > { %v2521_v35 = vadd.f32 %v2489_v36, %v2423_v6  ;;  %v2610_v57 = vadd.f32 %v2578_v27, %v2512_v19  ;;  %v1889_v50 = vmul.f32 %v3768_v17, %v6548_v22  ;;  %v922_v1 = vmul.f32 %v4242_v47, %v6549_v8 }
  0xb0   : > { %v1724_v3 = vadd.f32 %v1692_v21, %v1626_v44  ;;  %v757_v36 = vadd.f32 %v725_v41, %v659_v39  ;;  %v3139_v45 = vadd.f32 %v3107_v42, %v4126_v7  ;;  %v3130_v6 = vadd.f32 %v3098_v18, %v6537_v49  ;;  %v6552_v21 = vld [vmem:[#allocation23_spill] sm:$0xff]  ;;  %v6553_v42 = vld [vmem:[#allocation20_spill] sm:$0xff] }
  0xb1   : > { %v2619_v14 = vadd.f32 %v2587_v28, %v2521_v35  ;;  %v2708_v24 = vadd.f32 %v2676_v31, %v2610_v57  ;;  %v1987_v27 = vmul.f32 %v6509_v37, %v6550_v20  ;;  %v1020_v52 = vmul.f32 %v6551_v34, %v3719_v58  ;;  %v4367_v31 = vld [vmem:[#allocation2 + $0x20] sm:$0xff]  ;;  %v6555_v57 = vld [vmem:[#allocation21_spill] sm:$0xff]  ;;  %v371_v34 = vld [vmem:[%s3586_s12 + $0xa8] sm:$0xff] }
  0xb2   : > { %v1822_v55 = vadd.f32 %v1790_v56, %v1724_v3  ;;  %v855_v19 = vadd.f32 %v823_v29, %v757_v36  ;;  %v2085_v41 = vmul.f32 %v3779_v23, %v6552_v21  ;;  %v1118_v49 = vmul.f32 %v4267_v26, %v6553_v42  ;;  %v6554_v56 = vld [vmem:[#allocation25_spill] sm:$0xff]  ;;  %v4373_v39 = vld [vmem:[#allocation2 + $0x22] sm:$0xff]  ;;  %404 = vst.msk [vmem:[#allocation2 + $0x12a] sm:$0xff] %vm288_vm0, %v371_v34 }
  0xb3   : > { %v2717_v38 = vadd.f32 %v2685_v61, %v2619_v14  ;;  %v2806_v28 = vadd.f32 %v2774_v46, %v2708_v24  ;;  %v4369_v61 = vld [vmem:[#allocation2 + $0x21] sm:$0xff]  ;;  %v2183_v44 = vmul.f32 %v3782_v25, %v6554_v56  ;;  %v1216_v16 = vmul.f32 %v4269_v51, %v6555_v57 }
  0xb4   : > { %v1921_v35 = vadd.f32 %v1889_v50, %v1822_v55  ;;  %v954_v7 = vadd.f32 %v922_v1, %v855_v19  ;;  %v4377_v46 = vld [vmem:[#allocation2 + $0x23] sm:$0xff]  ;;  %v1379_v50 = vld [vmem:[#allocation2 + $0xd8] sm:$0xff]  ;;  %v452_v14 = vmul.f32 %v6538_v62, %v4367_v31  ;;  %v518_v3 = vmul.f32 %v6539_v48, %v4369_v61 }
  0xb5   : > { %v2815_v47 = vadd.f32 %v2783_v15, %v2717_v38  ;;  %v3162_v18 = vadd.f32 %v3130_v6, %v2806_v28  ;;  %v6556_v26 = vld [vmem:[#allocation31_spill] sm:$0xff]  ;;  %v2836_v51 = vld [vmem:[%s3586_s12] sm:$0xff]  ;;  %v616_v6 = vmul.f32 %v3675_v40, %v4373_v39  ;;  %v714_v55 = vmul.f32 %v6540_v32, %v4377_v46  ;;  %v6559_v28 = vld [vmem:[#allocation28_spill] sm:$0xff] }
  0xb6   : > { %v2019_v29 = vadd.f32 %v1987_v27, %v1921_v35  ;;  %v1052_v15 = vadd.f32 %v1020_v52, %v954_v7  ;;  %v2281_v22 = vmul.f32 %v6518_v30, %v6556_v26  ;;  %v4394_v20 = vld [vmem:[#allocation2 + $0x24] sm:$0xff]  ;;  %v1477_v27 = vld [vmem:[#allocation2 + $0xd9] sm:$0xff]  ;;  %v550_v38 = vadd.f32 %v518_v3, %v452_v14 }
  0xb7   : > { %v3171_v60 = vadd.f32 %v3139_v45, %v2815_v47  ;;  %3194 = vst.msk [vmem:[%s4163_s13 + $0x10] sm:$0xff] %vm288_vm0, %v3162_v18  ;;  %v6557_v45 = vld [vmem:[#allocation40_spill] sm:$0xff]  ;;  %v4399_v19 = vld [vmem:[%s3586_s12 + $0xa0] sm:$0xff]  ;;  %v2380_v21 = vmul.f32 %v3793_v33, %v6559_v28  ;;  %v1412_v47 = vmul.f32 %v3742_v4, %v1379_v50  ;;  %v4405_v35 = vld [vmem:[#allocation2 + $0x38] sm:$0xff]  ;;  %v2872_v7 = vmul.f32 %v3916_v43, %v2836_v51 }
  0xb8   : > { %v2117_v36 = vadd.f32 %v2085_v41, %v2019_v29  ;;  %v1150_v1 = vadd.f32 %v1118_v49, %v1052_v15  ;;  %v1314_v24 = vmul.f32 %v6557_v45, %v3734_v0  ;;  %6558 = vst [vmem:[#allocation54_spill] sm:$0xff] %v4399_v19  ;;  %v1575_v49 = vld [vmem:[#allocation2 + $0xda] sm:$0xff]  ;;  %v648_v18 = vadd.f32 %v616_v6, %v550_v38  ;;  %v6560_v29 = vld [vmem:[#allocation32_spill] sm:$0xff]  ;;  %v6562_v28 = vld [vmem:[#allocation35_spill] sm:$0xff] }
  0xb9   : > { %3203 = vst.msk [vmem:[%s4163_s13 + $0x58] sm:$0xff] %vm288_vm0, %v3171_v60  ;;  %v812_v56 = vmul.f32 %v6545_v13, %v4394_v20  ;;  %v2478_v15 = vmul.f32 %v6524_v2, %v6560_v29  ;;  %v1510_v26 = vmul.f32 %v3745_v5, %v1477_v27  ;;  %v4416_v50 = vld [vmem:[#allocation2 + $0x39] sm:$0xff]  ;;  %v2674_v27 = vmul.f32 %v3817_v54, %v6562_v28 }
  0xba   : > { %v2215_v52 = vadd.f32 %v2183_v44, %v2117_v36  ;;  %v1248_v41 = vadd.f32 %v1216_v16, %v1150_v1  ;;  %403 = vst.msk [vmem:[#allocation2 + $0x122] sm:$0xff] %vm288_vm0, %v4399_v19  ;;  %v2939_v44 = vpop.permute.xlu0 %2938  ;;  %v1673_v14 = vld [vmem:[#allocation2 + $0xdb] sm:$0xff]  ;;  %v746_v3 = vadd.f32 %v714_v55, %v648_v18  ;;  %v911_v36 = vmul.f32 %v6549_v8, %v4405_v35  ;;  %v483_v18 = vld [vmem:[#allocation2 + $0x9] sm:$0xff] }
  0xbb   : > { %v6561_v45 = vld [vmem:[#allocation33_spill] sm:$0xff]  ;;  %v1009_v55 = vmul.f32 %v3719_v58, %v4416_v50  ;;  %v6563_v19 = vld [vmem:[#allocation36_spill] sm:$0xff] }
  0xbc   : > { %v2313_v60 = vadd.f32 %v2281_v22, %v2215_v52  ;;  %v1346_v16 = vadd.f32 %v1314_v24, %v1248_v41  ;;  %v2576_v6 = vmul.f32 %v6527_v59, %v6561_v45  ;;  %v1608_v22 = vmul.f32 %v3752_v9, %v1575_v49  ;;  %v1771_v34 = vld [vmem:[#allocation2 + $0xdc] sm:$0xff]  ;;  %v417_v24 = vld [vmem:[#allocation2 + $0x8] sm:$0xff] }
  0xbd   : > { %v4423_v52 = vld [vmem:[#allocation2 + $0x3a] sm:$0xff]  ;;  %v3096_v41 = vmul.f32 %v2939_v44, %v2872_v7  ;;  %v844_v29 = vadd.f32 %v812_v56, %v746_v3  ;;  %v1706_v49 = vmul.f32 %v3755_v10, %v1673_v14  ;;  %v1804_v12 = vmul.f32 %v3758_v11, %v1771_v34  ;;  %v679_v44 = vld [vmem:[#allocation2 + $0xb] sm:$0xff] }
  0xbe   : > { %v2412_v1 = vadd.f32 %v2380_v21, %v2313_v60  ;;  %v1444_v38 = vadd.f32 %v1412_v47, %v1346_v16  ;;  %v581_v21 = vld [vmem:[#allocation2 + $0xa] sm:$0xff]  ;;  %v2772_v47 = vmul.f32 %v6502_v53, %v6563_v19  ;;  %v4432_v45 = vld [vmem:[#allocation2 + $0x3b] sm:$0xff]  ;;  %v1107_v7 = vmul.f32 %v6553_v42, %v4423_v52 }
  0xbf   : > { %v943_v63 = vadd.f32 %v911_v36, %v844_v29  ;;  %v450_v56 = vmul.f32 %v6538_v62, %v417_v24  ;;  %v516_v19 = vmul.f32 %v6539_v48, %v483_v18  ;;  %v3128_v14 = vadd.f32 %v3096_v41, %v2836_v51  ;;  %v777_v24 = vld [vmem:[#allocation2 + $0xc] sm:$0xff] }
  0xc0   : > { %v2510_v60 = vadd.f32 %v2478_v15, %v2412_v1  ;;  %v1542_v16 = vadd.f32 %v1510_v26, %v1444_v38  ;;  %v4438_v15 = vld [vmem:[#allocation2 + $0xf0] sm:$0xff]  ;;  %v4440_v1 = vld [vmem:[#allocation2 + $0x3c] sm:$0xff]  ;;  %v614_v26 = vmul.f32 %v3675_v40, %v581_v21  ;;  %v1205_v34 = vmul.f32 %v6555_v57, %v4432_v45 }
  0xc1   : > { %6564 = vst [vmem:[#allocation57_spill] sm:$0xff] %v4438_v15  ;;  %v1903_v36 = vmul.f32 %v3768_v17, %v4438_v15  ;;  %v1041_v38 = vadd.f32 %v1009_v55, %v943_v63  ;;  %v1303_v51 = vmul.f32 %v3734_v0, %v4440_v1  ;;  %v4455_v55 = vld [vmem:[#allocation2 + $0xf2] sm:$0xff] }
  0xc2   : > { %v2608_v3 = vadd.f32 %v2576_v6, %v2510_v60  ;;  %v1640_v28 = vadd.f32 %v1608_v22, %v1542_v16  ;;  %v4448_v22 = vld [vmem:[#allocation2 + $0xf1] sm:$0xff]  ;;  %v548_v60 = vadd.f32 %v516_v19, %v450_v56  ;;  %v712_v16 = vmul.f32 %v6540_v32, %v679_v44  ;;  %6566 = vst [vmem:[#allocation24_spill] sm:$0xff] %v4455_v55 }
  0xc3   : > { %6565 = vst [vmem:[#allocation8_spill] sm:$0xff] %v4448_v22  ;;  %v2001_v18 = vmul.f32 %v6509_v37, %v4448_v22  ;;  %v1139_v21 = vadd.f32 %v1107_v7, %v1041_v38  ;;  %v4457_v15 = vld [vmem:[#allocation2 + $0x50] sm:$0xff]  ;;  %v2099_v56 = vmul.f32 %v3779_v23, %v4455_v55  ;;  %v6567_v44 = vld [vmem:[#allocation41_spill] sm:$0xff] }
  0xc4   : > { %v2706_v29 = vadd.f32 %v2674_v27, %v2608_v3  ;;  %v1738_v6 = vadd.f32 %v1706_v49, %v1640_v28  ;;  %v646_v27 = vadd.f32 %v614_v26, %v548_v60  ;;  %v810_v49 = vmul.f32 %v6545_v13, %v777_v24  ;;  %v4466_v19 = vld [vmem:[#allocation2 + $0xf3] sm:$0xff]  ;;  %v4478_v60 = vld [vmem:[#allocation2 + $0x108] sm:$0xff] }
  0xc5   : > { %v2886_v3 = vmul.f32 %v3916_v43, %v6567_v44  ;;  %v1237_v7 = vadd.f32 %v1205_v34, %v1139_v21  ;;  %v1401_v28 = vmul.f32 %v3742_v4, %v4457_v15  ;;  %6568 = vst [vmem:[#allocation26_spill] sm:$0xff] %v4466_v19  ;;  %v4468_v38 = vld [vmem:[#allocation2 + $0xf4] sm:$0xff]  ;;  %v2197_v43 = vmul.f32 %v3782_v25, %v4466_v19  ;;  %v4502_v19 = vld [vmem:[#allocation2 + $0x10c] sm:$0xff] }
  0xc6   : > { %v2804_v41 = vadd.f32 %v2772_v47, %v2706_v29  ;;  %v1836_v63 = vadd.f32 %v1804_v12, %v1738_v6  ;;  %6569 = vst [vmem:[#allocation45_spill] sm:$0xff] %v4468_v38  ;;  %v4470_v26 = vld [vmem:[#allocation2 + $0x51] sm:$0xff]  ;;  %v744_v24 = vadd.f32 %v712_v16, %v646_v27  ;;  %v909_v29 = vmul.f32 %v6549_v8, %v4367_v31  ;;  %v3009_v6 = vpop.permute.xlu2 %3008  ;;  %v4486_v31 = vld [vmem:[#allocation2 + $0x109] sm:$0xff] }
  0xc7   : > { %v2295_v34 = vmul.f32 %v6518_v30, %v4468_v38  ;;  %6570 = vst [vmem:[#allocation46_spill] sm:$0xff] %v4478_v60  ;;  %v2394_v16 = vmul.f32 %v3793_v33, %v4478_v60  ;;  %v1007_v38 = vmul.f32 %v3719_v58, %v4369_v61  ;;  %v4500_v60 = vld [vmem:[#allocation2 + $0x10b] sm:$0xff]  ;;  %v3110_v55 = vmul.f32 %v3009_v6, %v2886_v3 }
  0xc8   : > { %v3160_v47 = vadd.f32 %v3128_v14, %v2804_v41  ;;  %v1935_v12 = vadd.f32 %v1903_v36, %v1836_v63  ;;  %v1335_v14 = vadd.f32 %v1303_v51, %v1237_v7  ;;  %v1499_v36 = vmul.f32 %v3745_v5, %v4470_v26  ;;  %6571 = vst [vmem:[#allocation51_spill] sm:$0xff] %v4486_v31  ;;  %v4488_v41 = vld [vmem:[#allocation2 + $0x10a] sm:$0xff]  ;;  %v4490_v63 = vld [vmem:[#allocation2 + $0x52] sm:$0xff] }
  0xc9   : > { %6572 = vst [vmem:[#allocation29_spill] sm:$0xff] %v4488_v41  ;;  %v842_v27 = vadd.f32 %v810_v49, %v744_v24  ;;  %v2492_v51 = vmul.f32 %v6524_v2, %v4486_v31  ;;  %v2590_v7 = vmul.f32 %v6527_v59, %v4488_v41  ;;  %v4504_v49 = vld [vmem:[#allocation2 + $0x53] sm:$0xff]  ;;  %v1105_v61 = vmul.f32 %v6553_v42, %v4373_v39 }
  0xca   : > { %3192 = vst.msk [vmem:[%s4163_s13] sm:$0xff] %vm288_vm0, %v3160_v47  ;;  %v2033_v21 = vadd.f32 %v2001_v18, %v1935_v12  ;;  %v1433_v18 = vadd.f32 %v1401_v28, %v1335_v14  ;;  %v1597_v47 = vmul.f32 %v3752_v9, %v4490_v63  ;;  %v2688_v31 = vmul.f32 %v3817_v54, %v4500_v60 }
  0xcb   : > { %6573 = vst [vmem:[#allocation56_spill] sm:$0xff] %v4500_v60  ;;  %v941_v24 = vadd.f32 %v909_v29, %v842_v27  ;;  %v4512_v28 = vmul.f32 %v6502_v53, %v4502_v19  ;;  %v1203_v39 = vmul.f32 %v6555_v57, %v4377_v46  ;;  %v6576_v60 = vld [vmem:[#allocation43_spill] sm:$0xff] }
  0xcc   : > { %v2131_v12 = vadd.f32 %v2099_v56, %v2033_v21  ;;  %6574 = vst [vmem:[#allocation37_spill] sm:$0xff] %v4502_v19  ;;  %v1531_v14 = vadd.f32 %v1499_v36, %v1433_v18  ;;  %v1695_v56 = vmul.f32 %v3755_v10, %v4504_v49  ;;  %v4516_v21 = vld [vmem:[#allocation2 + $0x54] sm:$0xff]  ;;  %v466_v41 = vmul.f32 %v6576_v60, %v6538_v62  ;;  %v6577_v19 = vld [vmem:[#allocation47_spill] sm:$0xff] }
  0xcd   : > { %6575 = vst [vmem:[#allocation6_spill] sm:$0xff] %v4516_v21  ;;  %v1793_v29 = vmul.f32 %v3758_v11, %v4516_v21  ;;  %v1039_v6 = vadd.f32 %v1007_v38, %v941_v24  ;;  %v532_v36 = vmul.f32 %v6577_v19, %v6539_v48  ;;  %v6578_v18 = vld [vmem:[#allocation44_spill] sm:$0xff]  ;;  %v1301_v38 = vmul.f32 %v3734_v0, %v4394_v20  ;;  %v6579_v24 = vld [vmem:[#allocation14_spill] sm:$0xff] }
  0xce   : > { %v2229_v3 = vadd.f32 %v2197_v43, %v2131_v12  ;;  %v1629_v27 = vadd.f32 %v1597_v47, %v1531_v14  ;;  %v630_v22 = vmul.f32 %v6578_v18, %v3675_v40  ;;  %v3142_v43 = vadd.f32 %v3110_v55, %v6567_v44  ;;  %v4529_v12 = vld [vmem:[#allocation2 + $0x68] sm:$0xff] }
  0xcf   : > { %v1137_v21 = vadd.f32 %v1105_v61, %v1039_v6  ;;  %v1892_v47 = vmul.f32 %v3768_v17, %v4529_v12  ;;  %v4535_v60 = vld [vmem:[#allocation2 + $0x69] sm:$0xff]  ;;  %v564_v19 = vadd.f32 %v532_v36, %v466_v41  ;;  %v728_v14 = vmul.f32 %v6579_v24, %v6540_v32 }
  0xd0   : > { %v2327_v53 = vadd.f32 %v2295_v34, %v2229_v3  ;;  %v1727_v46 = vadd.f32 %v1695_v56, %v1629_v27  ;;  %v1990_v55 = vmul.f32 %v6509_v37, %v4535_v60  ;;  %v4541_v44 = vld [vmem:[#allocation2 + $0x6a] sm:$0xff]  ;;  %v1399_v20 = vmul.f32 %v3742_v4, %v4405_v35 }
  0xd1   : > { %v1235_v61 = vadd.f32 %v1203_v39, %v1137_v21  ;;  %v2088_v3 = vmul.f32 %v3779_v23, %v4541_v44  ;;  %v4547_v6 = vld [vmem:[#allocation2 + $0x6b] sm:$0xff]  ;;  %v662_v41 = vadd.f32 %v630_v22, %v564_v19  ;;  %v4556_v21 = vld [vmem:[%s3586_s12 + $0x18] sm:$0xff] }
  0xd2   : > { %v2426_v34 = vadd.f32 %v2394_v16, %v2327_v53  ;;  %v1825_v56 = vadd.f32 %v1793_v29, %v1727_v46  ;;  %6580 = vst [vmem:[#allocation9_spill] sm:$0xff] %v4547_v6  ;;  %v6581_v27 = vld [vmem:[#allocation48_spill] sm:$0xff]  ;;  %v2186_v16 = vmul.f32 %v3782_v25, %v4547_v6  ;;  %v1497_v29 = vmul.f32 %v3745_v5, %v4416_v50  ;;  %v4562_v46 = vld [vmem:[#allocation2 + $0x80] sm:$0xff] }
  0xd3   : > { %v826_v36 = vmul.f32 %v6581_v27, %v6545_v13  ;;  %v4553_v18 = vld [vmem:[#allocation2 + $0x6c] sm:$0xff]  ;;  %v1333_v35 = vadd.f32 %v1301_v38, %v1235_v61  ;;  %6583 = vst [vmem:[#allocation42_spill] sm:$0xff] %v4562_v46  ;;  %v760_v19 = vadd.f32 %v728_v14, %v662_v41  ;;  %v2383_v27 = vmul.f32 %v3793_v33, %v4562_v46  ;;  %v4570_v50 = vld [vmem:[#allocation2 + $0x81] sm:$0xff]  ;;  %v6586_v41 = vld [vmem:[#allocation49_spill] sm:$0xff] }
  0xd4   : > { %v2524_v53 = vadd.f32 %v2492_v51, %v2426_v34  ;;  %6582 = vst [vmem:[#allocation15_spill] sm:$0xff] %v4553_v18  ;;  %v1924_v39 = vadd.f32 %v1892_v47, %v1825_v56  ;;  %v2284_v22 = vmul.f32 %v6518_v30, %v4553_v18  ;;  %v6584_v51 = vld [vmem:[#allocation50_spill] sm:$0xff]  ;;  %v1595_v38 = vmul.f32 %v3752_v9, %v4423_v52 }
  0xd5   : > { %v925_v24 = vmul.f32 %v6584_v51, %v6549_v8  ;;  %v1431_v6 = vadd.f32 %v1399_v20, %v1333_v35  ;;  %6585 = vst [vmem:[#allocation38_spill] sm:$0xff] %v4570_v50  ;;  %v4573_v47 = vld [vmem:[%s3528_s27] ss:$0 sm:$0xff]  ;;  %v858_v14 = vadd.f32 %v826_v36, %v760_v19  ;;  %v1023_v51 = vmul.f32 %v6586_v41, %v3719_v58  ;;  %v4581_v35 = vld [vmem:[#allocation2 + $0x82] sm:$0xff]  ;;  %v6588_v41 = vld [vmem:[#allocation53_spill] sm:$0xff] }
  0xd6   : > { %v2622_v34 = vadd.f32 %v2590_v7, %v2524_v53  ;;  %v2022_v61 = vadd.f32 %v1990_v55, %v1924_v39  ;;  %v2875_v56 = vmul.f32 %v4573_v47, %v4556_v21  ;;  %v2954_v53 = vpop.permute.xlu1 %2953  ;;  %v2481_v20 = vmul.f32 %v6524_v2, %v4570_v50  ;;  %6587 = vst [vmem:[#allocation16_spill] sm:$0xff] %v4581_v35  ;;  %v4587_v36 = vld [vmem:[#allocation2 + $0x83] sm:$0xff] }
  0xd7   : > { %v1529_v52 = vadd.f32 %v1497_v29, %v1431_v6  ;;  %v1693_v55 = vmul.f32 %v3755_v10, %v4432_v45  ;;  %v2579_v46 = vmul.f32 %v6527_v59, %v4581_v35  ;;  %v957_v19 = vadd.f32 %v925_v24, %v858_v14  ;;  %v372_v45 = vld [vmem:[%s3586_s12 + $0xb0] sm:$0xff]  ;;  %v6589_v24 = vld [vmem:[#allocation7_spill] sm:$0xff]  ;;  %v1382_v35 = vld [vmem:[#allocation2 + $0xf8] sm:$0xff] }
  0xd8   : > { %v2720_v7 = vadd.f32 %v2688_v31, %v2622_v34  ;;  %v2120_v39 = vadd.f32 %v2088_v3, %v2022_v61  ;;  %v1121_v31 = vmul.f32 %v6588_v41, %v6553_v42  ;;  %v2677_v50 = vmul.f32 %v3817_v54, %v4587_v36  ;;  %405 = vst.msk [vmem:[#allocation2 + $0x13a] sm:$0xff] %vm288_vm0, %v372_v45 }
  0xd9   : > { %v1627_v18 = vadd.f32 %v1595_v38, %v1529_v52  ;;  %v1791_v6 = vmul.f32 %v3758_v11, %v4440_v1  ;;  %v3099_v29 = vmul.f32 %v2954_v53, %v2875_v56  ;;  %v1055_v61 = vadd.f32 %v1023_v51, %v957_v19  ;;  %v1480_v51 = vld [vmem:[#allocation2 + $0xf9] sm:$0xff]  ;;  %v4618_v19 = vld [vmem:[#allocation2 + $0x84] sm:$0xff] }
  0xda   : > { %v2818_v34 = vadd.f32 %v4512_v28, %v2720_v7  ;;  %v2218_v3 = vadd.f32 %v2186_v16, %v2120_v39  ;;  %v1219_v14 = vmul.f32 %v6589_v24, %v6555_v57  ;;  %v1890_v38 = vmul.f32 %v3768_v17, %v4457_v15  ;;  %v6590_v16 = vld [vmem:[#allocation55_spill] sm:$0xff]  ;;  %v4609_v39 = vld [vmem:[%s3586_s12 + $0xb8] sm:$0xff] }
  0xdb   : > { %v1725_v7 = vadd.f32 %v1693_v55, %v1627_v18  ;;  %v456_v1 = vmul.f32 %v4457_v15, %v6538_v62  ;;  %v1153_v41 = vadd.f32 %v1121_v31, %v1055_v61  ;;  %v1317_v56 = vmul.f32 %v6590_v16, %v3734_v0  ;;  %6591 = vst [vmem:[#allocation17_spill] sm:$0xff] %v4609_v39  ;;  %v375_v16 = vld [vmem:[%s3586_s12 + $0xc8] sm:$0xff] }
  0xdc   : > { %v3174_v28 = vadd.f32 %v3142_v43, %v2818_v34  ;;  %v2316_v52 = vadd.f32 %v2284_v22, %v2218_v3  ;;  %v522_v53 = vmul.f32 %v4470_v26, %v6539_v48  ;;  %v1988_v18 = vmul.f32 %v6509_v37, %v4470_v26  ;;  %v1578_v34 = vld [vmem:[#allocation2 + $0xfa] sm:$0xff]  ;;  %406 = vst.msk [vmem:[#allocation2 + $0x142] sm:$0xff] %vm288_vm0, %v4609_v39  ;;  %v6592_v26 = vld [vmem:[#allocation52_spill] sm:$0xff] }
  0xdd   : > { %v1823_v43 = vadd.f32 %v1791_v6, %v1725_v7  ;;  %v1415_v55 = vmul.f32 %v3742_v4, %v1382_v35  ;;  %v620_v15 = vmul.f32 %v4490_v63, %v3675_v40  ;;  %v1251_v31 = vadd.f32 %v1219_v14, %v1153_v41  ;;  %v1676_v14 = vld [vmem:[#allocation2 + $0xfb] sm:$0xff]  ;;  %408 = vst.msk [vmem:[#allocation2 + $0x15a] sm:$0xff] %vm288_vm0, %v375_v16 }
  0xde   : > { %3206 = vst.msk [vmem:[%s4163_s13 + $0x70] sm:$0xff] %vm288_vm0, %v3174_v28  ;;  %v2415_v22 = vadd.f32 %v2383_v27, %v2316_v52  ;;  %v554_v45 = vadd.f32 %v522_v53, %v456_v1  ;;  %v718_v3 = vmul.f32 %v4504_v49, %v6540_v32  ;;  %v2775_v35 = vmul.f32 %v6592_v26, %v4618_v19  ;;  %v6593_v1 = vld [vmem:[#allocation6_spill] sm:$0xff] }
  0xdf   : > { %v1922_v6 = vadd.f32 %v1890_v38, %v1823_v43  ;;  %v2086_v27 = vmul.f32 %v3779_v23, %v4490_v63  ;;  %v1513_v61 = vmul.f32 %v3745_v5, %v1480_v51  ;;  %v1349_v28 = vadd.f32 %v1317_v56, %v1251_v31  ;;  %v374_v41 = vld [vmem:[%s3586_s12 + $0xc0] sm:$0xff]  ;;  %v2837_v31 = vld [vmem:[%s3586_s12 + $0x8] sm:$0xff] }
  0xe0   : > { %v2513_v24 = vadd.f32 %v2481_v20, %v2415_v22  ;;  %v652_v7 = vadd.f32 %v620_v15, %v554_v45  ;;  %v816_v52 = vmul.f32 %v6593_v1, %v6545_v13  ;;  %v3131_v53 = vadd.f32 %v3099_v29, %v4556_v21  ;;  %407 = vst.msk [vmem:[#allocation2 + $0x152] sm:$0xff] %vm288_vm0, %v374_v41  ;;  %v1774_v51 = vld [vmem:[#allocation2 + $0xfc] sm:$0xff] }
  0xe1   : > { %v2020_v39 = vadd.f32 %v1988_v18, %v1922_v6  ;;  %v2184_v38 = vmul.f32 %v3782_v25, %v4504_v49  ;;  %v1611_v63 = vmul.f32 %v3752_v9, %v1578_v34  ;;  %v1447_v56 = vadd.f32 %v1415_v55, %v1349_v28  ;;  %v422_v28 = vld [vmem:[#allocation2 + $0x48] sm:$0xff] }
  0xe2   : > { %v2611_v20 = vadd.f32 %v2579_v46, %v2513_v24  ;;  %v750_v43 = vadd.f32 %v718_v3, %v652_v7  ;;  %v915_v15 = vmul.f32 %v4529_v12, %v6549_v8  ;;  %v2282_v21 = vmul.f32 %v6518_v30, %v6593_v1  ;;  %v4654_v24 = vld [vmem:[#allocation2 + $0x110] sm:$0xff]  ;;  %v6595_v1 = vld [vmem:[#allocation9_spill] sm:$0xff] }
  0xe3   : > { %v2118_v22 = vadd.f32 %v2086_v27, %v2020_v39  ;;  %v2381_v49 = vmul.f32 %v3793_v33, %v4529_v12  ;;  %v1709_v29 = vmul.f32 %v3755_v10, %v1676_v14  ;;  %v1545_v46 = vadd.f32 %v1513_v61, %v1447_v56  ;;  %6594 = vst [vmem:[#allocation12_spill] sm:$0xff] %v4654_v24  ;;  %v488_v14 = vld [vmem:[#allocation2 + $0x49] sm:$0xff] }
  0xe4   : > { %v2709_v18 = vadd.f32 %v2677_v50, %v2611_v20  ;;  %v848_v55 = vadd.f32 %v816_v52, %v750_v43  ;;  %v1013_v34 = vmul.f32 %v4535_v60, %v3719_v58  ;;  %v2479_v3 = vmul.f32 %v6524_v2, %v4535_v60  ;;  %v4663_v20 = vld [vmem:[#allocation2 + $0x111] sm:$0xff] }
  0xe5   : > { %v2216_v45 = vadd.f32 %v2184_v38, %v2118_v22  ;;  %v2577_v39 = vmul.f32 %v6527_v59, %v4541_v44  ;;  %v1807_v6 = vmul.f32 %v3758_v11, %v1774_v51  ;;  %v1643_v12 = vadd.f32 %v1611_v63, %v1545_v46  ;;  %v2944_v38 = vpop.permute.xlu0 %2943  ;;  %6596 = vst [vmem:[#allocation39_spill] sm:$0xff] %v4663_v20  ;;  %v684_v51 = vld [vmem:[#allocation2 + $0x4b] sm:$0xff] }
  0xe6   : > { %v2807_v27 = vadd.f32 %v2775_v35, %v2709_v18  ;;  %v947_v50 = vadd.f32 %v915_v15, %v848_v55  ;;  %v1111_v61 = vmul.f32 %v4541_v44, %v6553_v42  ;;  %v2675_v60 = vmul.f32 %v3817_v54, %v6595_v1  ;;  %v586_v35 = vld [vmem:[#allocation2 + $0x4a] sm:$0xff] }
  0xe7   : > { %v2314_v7 = vadd.f32 %v2282_v21, %v2216_v45  ;;  %v2873_v52 = vmul.f32 %v4573_v47, %v2837_v31  ;;  %v1906_v41 = vmul.f32 %v3768_v17, %v4654_v24  ;;  %v1741_v63 = vadd.f32 %v1709_v29, %v1643_v12  ;;  %v6597_v29 = vld [vmem:[#allocation15_spill] sm:$0xff] }
  0xe8   : > { %v3163_v16 = vadd.f32 %v3131_v53, %v2807_v27  ;;  %v1045_v56 = vadd.f32 %v1013_v34, %v947_v50  ;;  %v1209_v44 = vmul.f32 %v6595_v1, %v6555_v57  ;;  %v2004_v15 = vmul.f32 %v6509_v37, %v4663_v20  ;;  %v782_v34 = vld [vmem:[#allocation2 + $0x4c] sm:$0xff]  ;;  %v881_v1 = vld [vmem:[#allocation2 + $0x60] sm:$0xff] }
  0xe9   : > { %v2413_v43 = vadd.f32 %v2381_v49, %v2314_v7  ;;  %v455_v22 = vmul.f32 %v6538_v62, %v422_v28  ;;  %v521_v21 = vmul.f32 %v6539_v48, %v488_v14  ;;  %v1839_v53 = vadd.f32 %v1807_v6, %v1741_v63  ;;  %v4676_v49 = vld [vmem:[#allocation2 + $0x112] sm:$0xff]  ;;  %v6599_v6 = vld [vmem:[#allocation42_spill] sm:$0xff] }
  0xea   : > { %3195 = vst.msk [vmem:[%s4163_s13 + $0x18] sm:$0xff] %vm288_vm0, %v3163_v16  ;;  %v1143_v18 = vadd.f32 %v1111_v61, %v1045_v56  ;;  %v1307_v46 = vmul.f32 %v6597_v29, %v3734_v0  ;;  %v619_v55 = vmul.f32 %v3675_v40, %v586_v35  ;;  %v3097_v27 = vmul.f32 %v2944_v38, %v2873_v52 }
  0xeb   : > { %v2511_v45 = vadd.f32 %v2479_v3, %v2413_v43  ;;  %6598 = vst [vmem:[#allocation19_spill] sm:$0xff] %v4676_v49  ;;  %v553_v12 = vadd.f32 %v521_v21, %v455_v22  ;;  %v717_v50 = vmul.f32 %v6540_v32, %v684_v51  ;;  %v1938_v28 = vadd.f32 %v1906_v41, %v1839_v53  ;;  %v4685_v3 = vld [vmem:[#allocation2 + $0x113] sm:$0xff]  ;;  %v979_v43 = vld [vmem:[#allocation2 + $0x61] sm:$0xff] }
  0xec   : > { %v2102_v14 = vmul.f32 %v3779_v23, %v4676_v49  ;;  %v1241_v7 = vadd.f32 %v1209_v44, %v1143_v18  ;;  %v1405_v61 = vmul.f32 %v6599_v6, %v3742_v4  ;;  %v2773_v35 = vmul.f32 %v6592_v26, %v6597_v29  ;;  %6600 = vst [vmem:[#allocation18_spill] sm:$0xff] %v4685_v3  ;;  %v6601_v44 = vld [vmem:[#allocation38_spill] sm:$0xff] }
  0xed   : > { %v2609_v16 = vadd.f32 %v2577_v39, %v2511_v45  ;;  %v651_v52 = vadd.f32 %v619_v55, %v553_v12  ;;  %v815_v38 = vmul.f32 %v6545_v13, %v782_v34  ;;  %v2036_v63 = vadd.f32 %v2004_v15, %v1938_v28  ;;  %v4692_v39 = vld [vmem:[#allocation2 + $0x114] sm:$0xff]  ;;  %v4699_v28 = vld [vmem:[#allocation2 + $0x128] sm:$0xff] }
  0xee   : > { %v2200_v41 = vmul.f32 %v3782_v25, %v4685_v3  ;;  %v1339_v56 = vadd.f32 %v1307_v46, %v1241_v7  ;;  %v1503_v51 = vmul.f32 %v6601_v44, %v3745_v5  ;;  %v3129_v21 = vadd.f32 %v3097_v27, %v2837_v31  ;;  %6602 = vst [vmem:[#allocation22_spill] sm:$0xff] %v4692_v39  ;;  %v6603_v34 = vld [vmem:[#allocation16_spill] sm:$0xff]  ;;  %v1077_v46 = vld [vmem:[#allocation2 + $0x62] sm:$0xff] }
  0xef   : > { %v2707_v22 = vadd.f32 %v2675_v60, %v2609_v16  ;;  %v749_v53 = vadd.f32 %v717_v50, %v651_v52  ;;  %v914_v18 = vmul.f32 %v6549_v8, %v881_v1  ;;  %v2134_v29 = vadd.f32 %v2102_v14, %v2036_v63  ;;  %6604 = vst [vmem:[#allocation13_spill] sm:$0xff] %v4699_v28  ;;  %v6605_v7 = vld [vmem:[#allocation11_spill] sm:$0xff]  ;;  %v3024_v50 = vpop.permute.xlu2 %3023 }
  0xf0   : > { %v2298_v55 = vmul.f32 %v6518_v30, %v4692_v39  ;;  %v1437_v15 = vadd.f32 %v1405_v61, %v1339_v56  ;;  %v1601_v45 = vmul.f32 %v6603_v34, %v3752_v9  ;;  %v2889_v31 = vmul.f32 %v4573_v47, %v6605_v7  ;;  %v4706_v61 = vld [vmem:[#allocation2 + $0x129] sm:$0xff] }
  0xf1   : > { %v2805_v12 = vadd.f32 %v2773_v35, %v2707_v22  ;;  %v847_v60 = vadd.f32 %v815_v38, %v749_v53  ;;  %v1012_v27 = vmul.f32 %v3719_v58, %v979_v43  ;;  %v2232_v6 = vadd.f32 %v2200_v41, %v2134_v29  ;;  %6606 = vst [vmem:[#allocation23_spill] sm:$0xff] %v4706_v61  ;;  %v1175_v35 = vld [vmem:[#allocation2 + $0x63] sm:$0xff]  ;;  %v4717_v22 = vld [vmem:[#allocation2 + $0x12b] sm:$0xff] }
  0xf2   : > { %v2397_v14 = vmul.f32 %v3793_v33, %v4699_v28  ;;  %v1535_v1 = vadd.f32 %v1503_v51, %v1437_v15  ;;  %v1699_v16 = vmul.f32 %v4587_v36, %v3755_v10  ;;  %v2495_v63 = vmul.f32 %v6524_v2, %v4706_v61  ;;  %v4712_v38 = vld [vmem:[#allocation2 + $0x12a] sm:$0xff]  ;;  %6608 = vst [vmem:[#allocation21_spill] sm:$0xff] %v4717_v22  ;;  %v2843_v61 = vld [vmem:[%s3586_s12 + $0x38] sm:$0xff] }
  0xf3   : > { %v3161_v52 = vadd.f32 %v3129_v21, %v2805_v12  ;;  %6607 = vst [vmem:[#allocation25_spill] sm:$0xff] %v4712_v38  ;;  %v946_v56 = vadd.f32 %v914_v18, %v847_v60  ;;  %v1110_v41 = vmul.f32 %v6553_v42, %v1077_v46  ;;  %v2330_v44 = vadd.f32 %v2298_v55, %v2232_v6  ;;  %v1273_v53 = vld [vmem:[#allocation2 + $0x64] sm:$0xff]  ;;  %v4725_v18 = vld [vmem:[#allocation2 + $0x98] sm:$0xff]  ;;  %v4732_v60 = vld [vmem:[#allocation2 + $0x12c] sm:$0xff] }
  0xf4   : > { %v2593_v43 = vmul.f32 %v6527_v59, %v4712_v38  ;;  %v1633_v51 = vadd.f32 %v1601_v45, %v1535_v1  ;;  %v1797_v36 = vmul.f32 %v4618_v19, %v3758_v11  ;;  %v2691_v21 = vmul.f32 %v3817_v54, %v4717_v22  ;;  %6609 = vst [vmem:[#allocation31_spill] sm:$0xff] %v4725_v18  ;;  %v6610_v12 = vld [vmem:[#allocation57_spill] sm:$0xff] }
  0xf5   : > { %3193 = vst.msk [vmem:[%s4163_s13 + $0x8] sm:$0xff] %vm288_vm0, %v3161_v52  ;;  %v3113_v29 = vmul.f32 %v3024_v50, %v2889_v31  ;;  %v1044_v15 = vadd.f32 %v1012_v27, %v946_v56  ;;  %v1208_v55 = vmul.f32 %v6555_v57, %v1175_v35  ;;  %v2429_v34 = vadd.f32 %v2397_v14, %v2330_v44  ;;  %v4734_v6 = vld [vmem:[#allocation2 + $0x99] sm:$0xff]  ;;  %v6613_v50 = vld [vmem:[#allocation8_spill] sm:$0xff] }
  0xf6   : > { %v1731_v46 = vadd.f32 %v1699_v16, %v1633_v51  ;;  %v1896_v45 = vmul.f32 %v3768_v17, %v4725_v18  ;;  %v469_v19 = vmul.f32 %v6610_v12, %v6538_v62  ;;  %6611 = vst [vmem:[#allocation40_spill] sm:$0xff] %v4732_v60  ;;  %v1306_v31 = vmul.f32 %v3734_v0, %v1273_v53  ;;  %v6614_v35 = vld [vmem:[#allocation24_spill] sm:$0xff]  ;;  %v1371_v51 = vld [vmem:[#allocation2 + $0x78] sm:$0xff] }
  0xf7   : > { %6612 = vst [vmem:[#allocation28_spill] sm:$0xff] %v4734_v6  ;;  %v1142_v1 = vadd.f32 %v1110_v41, %v1044_v15  ;;  %v535_v27 = vmul.f32 %v6613_v50, %v6539_v48  ;;  %v633_v14 = vmul.f32 %v6614_v35, %v3675_v40  ;;  %v2527_v16 = vadd.f32 %v2495_v63, %v2429_v34  ;;  %v4745_v12 = vld [vmem:[#allocation2 + $0x9a] sm:$0xff] }
  0xf8   : > { %v2789_v52 = vmul.f32 %v6592_v26, %v4732_v60  ;;  %v1829_v56 = vadd.f32 %v1797_v36, %v1731_v46  ;;  %v1994_v44 = vmul.f32 %v6509_v37, %v4734_v6  ;;  %6615 = vst [vmem:[#allocation32_spill] sm:$0xff] %v4745_v12  ;;  %v1404_v53 = vmul.f32 %v3742_v4, %v1371_v51  ;;  %v6616_v50 = vld [vmem:[#allocation26_spill] sm:$0xff]  ;;  %v4784_v6 = vld [vmem:[#allocation2 + $0xb3] sm:$0xff] }
  0xf9   : > { %v1240_v41 = vadd.f32 %v1208_v55, %v1142_v1  ;;  %v567_v15 = vadd.f32 %v535_v27, %v469_v19  ;;  %v731_v22 = vmul.f32 %v6616_v50, %v6540_v32  ;;  %v2625_v35 = vadd.f32 %v2593_v43, %v2527_v16  ;;  %v1469_v46 = vld [vmem:[#allocation2 + $0x79] sm:$0xff]  ;;  %6625 = vst [vmem:[#allocation47_spill] sm:$0xff] %v4784_v6 }
  0xfa   : > { %v3145_v63 = vadd.f32 %v3113_v29, %v6605_v7  ;;  %v1928_v34 = vadd.f32 %v1896_v45, %v1829_v56  ;;  %v2092_v36 = vmul.f32 %v3779_v23, %v4745_v12  ;;  %v4753_v60 = vld [vmem:[#allocation2 + $0x9b] sm:$0xff]  ;;  %v1502_v1 = vmul.f32 %v3745_v5, %v1469_v46  ;;  %v4765_v56 = vld [vmem:[#allocation2 + $0xb0] sm:$0xff] }
  0xfb   : > { %6617 = vst [vmem:[#allocation33_spill] sm:$0xff] %v4753_v60  ;;  %v4755_v38 = vld [vmem:[#allocation2 + $0x9c] sm:$0xff]  ;;  %v1338_v55 = vadd.f32 %v1306_v31, %v1240_v41  ;;  %v665_v19 = vadd.f32 %v633_v14, %v567_v15  ;;  %v2723_v43 = vadd.f32 %v2691_v21, %v2625_v35  ;;  %v2190_v7 = vmul.f32 %v3782_v25, %v4753_v60  ;;  %v4775_v60 = vld [vmem:[#allocation2 + $0xb2] sm:$0xff] }
  0xfc   : > { %6618 = vst [vmem:[#allocation35_spill] sm:$0xff] %v4755_v38  ;;  %v6619_v27 = vld [vmem:[#allocation45_spill] sm:$0xff]  ;;  %v2026_v16 = vadd.f32 %v1994_v44, %v1928_v34  ;;  %v2288_v29 = vmul.f32 %v6518_v30, %v4755_v38  ;;  %v6621_v14 = vld [vmem:[#allocation46_spill] sm:$0xff]  ;;  %v2387_v21 = vmul.f32 %v3793_v33, %v4765_v56  ;;  %v2879_v44 = vmul.f32 %v4573_v47, %v2843_v61  ;;  %v2974_v34 = vpop.permute.xlu1 %2973 }
  0xfd   : > { %v829_v50 = vmul.f32 %v6619_v27, %v6545_v13  ;;  %v1567_v45 = vld [vmem:[#allocation2 + $0x7a] sm:$0xff]  ;;  %6620 = vst [vmem:[#allocation36_spill] sm:$0xff] %v4765_v56  ;;  %v1436_v12 = vadd.f32 %v1404_v53, %v1338_v55  ;;  %v763_v41 = vadd.f32 %v731_v22, %v665_v19  ;;  %v928_v15 = vmul.f32 %v6621_v14, %v6549_v8  ;;  %v4773_v38 = vld [vmem:[#allocation2 + $0xb1] sm:$0xff]  ;;  %v6624_v19 = vld [vmem:[#allocation51_spill] sm:$0xff] }
  0xfe   : > { %v1600_v31 = vmul.f32 %v3752_v9, %v1567_v45  ;;  %v2821_v28 = vadd.f32 %v2789_v52, %v2723_v43  ;;  %v2124_v27 = vadd.f32 %v2092_v36, %v2026_v16  ;;  %v1665_v35 = vld [vmem:[#allocation2 + $0x7b] sm:$0xff]  ;;  %6622 = vst [vmem:[#allocation41_spill] sm:$0xff] %v4773_v38  ;;  %v1026_v52 = vmul.f32 %v6624_v19, %v3719_v58 }
  0xff   : > { %6623 = vst [vmem:[#allocation43_spill] sm:$0xff] %v4775_v60  ;;  %v1534_v53 = vadd.f32 %v1502_v1, %v1436_v12  ;;  %v1698_v22 = vmul.f32 %v3755_v10, %v1665_v35  ;;  %v861_v55 = vadd.f32 %v829_v50, %v763_v41  ;;  %v2485_v16 = vmul.f32 %v6524_v2, %v4773_v38  ;;  %v1763_v56 = vld [vmem:[#allocation2 + $0x7c] sm:$0xff] }
 0x100   : > { %v3177_v36 = vadd.f32 %v3145_v63, %v2821_v28  ;;  %v2222_v43 = vadd.f32 %v2190_v7, %v2124_v27  ;;  %v2583_v14 = vmul.f32 %v6527_v59, %v4775_v60  ;;  %v1796_v12 = vmul.f32 %v3758_v11, %v1763_v56  ;;  %v6626_v50 = vld [vmem:[#allocation29_spill] sm:$0xff]  ;;  %v4793_v27 = vld [vmem:[#allocation2 + $0x90] sm:$0xff] }
 0x101   : > { %v1632_v39 = vadd.f32 %v1600_v31, %v1534_v53  ;;  %v960_v1 = vadd.f32 %v928_v15, %v861_v55  ;;  %v1124_v41 = vmul.f32 %v6626_v50, %v6553_v42  ;;  %v2681_v63 = vmul.f32 %v3817_v54, %v4784_v6  ;;  %6627 = vst [vmem:[#allocation44_spill] sm:$0xff] %v4793_v27  ;;  %v4796_v60 = vld [vmem:[#allocation2 + $0xb4] sm:$0xff] }
 0x102   : > { %3209 = vst.msk [vmem:[%s4163_s13 + $0x88] sm:$0xff] %vm288_vm0, %v3177_v36  ;;  %v2320_v28 = vadd.f32 %v2288_v29, %v2222_v43  ;;  %v3103_v7 = vmul.f32 %v2974_v34, %v2879_v44  ;;  %v459_v19 = vmul.f32 %v1371_v51, %v6538_v62  ;;  %v1895_v15 = vmul.f32 %v3768_v17, %v4793_v27  ;;  %v6629_v55 = vld [vmem:[#allocation56_spill] sm:$0xff]  ;;  %v1385_v44 = vld [vmem:[#allocation2 + $0x120] sm:$0xff] }
 0x103   : > { %6628 = vst [vmem:[#allocation14_spill] sm:$0xff] %v4796_v60  ;;  %v1730_v31 = vadd.f32 %v1698_v22, %v1632_v39  ;;  %v1058_v53 = vadd.f32 %v1026_v52, %v960_v1  ;;  %v1222_v50 = vmul.f32 %v6629_v55, %v6555_v57  ;;  %v2779_v29 = vmul.f32 %v6592_v26, %v4796_v60  ;;  %v4804_v43 = vld [vmem:[#allocation2 + $0x91] sm:$0xff]  ;;  %v1483_v60 = vld [vmem:[#allocation2 + $0x121] sm:$0xff] }
 0x104   : > { %v2419_v36 = vadd.f32 %v2387_v21, %v2320_v28  ;;  %6630 = vst [vmem:[#allocation48_spill] sm:$0xff] %v4804_v43  ;;  %v525_v34 = vmul.f32 %v1469_v46, %v6539_v48  ;;  %v623_v51 = vmul.f32 %v1567_v45, %v3675_v40  ;;  %v1993_v39 = vmul.f32 %v6509_v37, %v4804_v43  ;;  %v6631_v52 = vld [vmem:[#allocation37_spill] sm:$0xff] }
 0x105   : > { %v1828_v6 = vadd.f32 %v1796_v12, %v1730_v31  ;;  %v1156_v22 = vadd.f32 %v1124_v41, %v1058_v53  ;;  %v1320_v1 = vmul.f32 %v6631_v52, %v3734_v0  ;;  %v3135_v28 = vadd.f32 %v3103_v7, %v2843_v61  ;;  %v4812_v55 = vld [vmem:[#allocation2 + $0x92] sm:$0xff]  ;;  %v1581_v61 = vld [vmem:[#allocation2 + $0x122] sm:$0xff] }
 0x106   : > { %v2517_v21 = vadd.f32 %v2485_v16, %v2419_v36  ;;  %v557_v38 = vadd.f32 %v525_v34, %v459_v19  ;;  %v721_v46 = vmul.f32 %v1665_v35, %v6540_v32  ;;  %v2091_v12 = vmul.f32 %v3779_v23, %v4812_v55  ;;  %v4817_v31 = vld [vmem:[#allocation2 + $0x93] sm:$0xff] }
 0x107   : > { %v1927_v45 = vadd.f32 %v1895_v15, %v1828_v6  ;;  %v4819_v41 = vld [vmem:[#allocation2 + $0x94] sm:$0xff]  ;;  %v1254_v53 = vadd.f32 %v1222_v50, %v1156_v22  ;;  %v1418_v16 = vmul.f32 %v3742_v4, %v1385_v44  ;;  %v2189_v36 = vmul.f32 %v3782_v25, %v4817_v31  ;;  %v4834_v50 = vld [vmem:[#allocation2 + $0xa8] sm:$0xff] }
 0x108   : > { %6632 = vst [vmem:[#allocation50_spill] sm:$0xff] %v4819_v41  ;;  %v2615_v7 = vadd.f32 %v2583_v14, %v2517_v21  ;;  %v4825_v52 = vld [vmem:[%s3586_s12 + $0x30] sm:$0xff]  ;;  %v655_v19 = vadd.f32 %v623_v51, %v557_v38  ;;  %v819_v6 = vmul.f32 %v1763_v56, %v6545_v13  ;;  %v377_v15 = vld [vmem:[%s3586_s12 + $0xd8] sm:$0xff]  ;;  %v2287_v18 = vmul.f32 %v6518_v30, %v4819_v41  ;;  %v1679_v56 = vld [vmem:[#allocation2 + $0x123] sm:$0xff] }
 0x109   : > { %v4829_v35 = vld [vmem:[%s3586_s12 + $0xd0] sm:$0xff]  ;;  %v2025_v34 = vadd.f32 %v1993_v39, %v1927_v45  ;;  %v1352_v44 = vadd.f32 %v1320_v1, %v1254_v53  ;;  %v1516_v14 = vmul.f32 %v3745_v5, %v1483_v60  ;;  %v2386_v38 = vmul.f32 %v3793_v33, %v4834_v50  ;;  %410 = vst.msk [vmem:[#allocation2 + $0x172] sm:$0xff] %vm288_vm0, %v377_v15 }
 0x10a   : > { %6633 = vst [vmem:[#allocation49_spill] sm:$0xff] %v4829_v35  ;;  %v2713_v22 = vadd.f32 %v2681_v63, %v2615_v7  ;;  %v753_v51 = vadd.f32 %v721_v46, %v655_v19  ;;  %v918_v39 = vmul.f32 %v4793_v27, %v6549_v8  ;;  %v4844_v45 = vld [vmem:[#allocation2 + $0xa9] sm:$0xff]  ;;  %v2878_v60 = vmul.f32 %v4573_v47, %v4825_v52  ;;  %v2969_v7 = vpop.permute.xlu0 %2968 }
 0x10b   : > { %409 = vst.msk [vmem:[#allocation2 + $0x16a] sm:$0xff] %vm288_vm0, %v4829_v35  ;;  %v2123_v21 = vadd.f32 %v2091_v12, %v2025_v34  ;;  %v1450_v1 = vadd.f32 %v1418_v16, %v1352_v44  ;;  %v1614_v53 = vmul.f32 %v3752_v9, %v1581_v61  ;;  %v2484_v35 = vmul.f32 %v6524_v2, %v4844_v45  ;;  %v4851_v46 = vld [vmem:[#allocation2 + $0xaa] sm:$0xff] }
 0x10c   : > { %v2811_v63 = vadd.f32 %v2779_v29, %v2713_v22  ;;  %6634 = vst [vmem:[#allocation53_spill] sm:$0xff] %v4851_v46  ;;  %v1777_v19 = vld [vmem:[#allocation2 + $0x124] sm:$0xff]  ;;  %v851_v27 = vadd.f32 %v819_v6, %v753_v51  ;;  %v1016_v12 = vmul.f32 %v4804_v43, %v3719_v58  ;;  %v2582_v34 = vmul.f32 %v6527_v59, %v4851_v46  ;;  %v4865_v59 = vld [vmem:[#allocation2 + $0x138] sm:$0xff] }
 0x10d   : > { %v2221_v15 = vadd.f32 %v2189_v36, %v2123_v21  ;;  %v4857_v16 = vld [vmem:[#allocation2 + $0xab] sm:$0xff]  ;;  %v1548_v61 = vadd.f32 %v1516_v14, %v1450_v1  ;;  %v1712_v29 = vmul.f32 %v3755_v10, %v1679_v56  ;;  %v1114_v6 = vmul.f32 %v4812_v55, %v6553_v42  ;;  %6636 = vst [vmem:[#allocation55_spill] sm:$0xff] %v4865_v59 }
 0x10e   : > { %6635 = vst [vmem:[#allocation7_spill] sm:$0xff] %v4857_v16  ;;  %v425_v44 = vld [vmem:[#allocation2 + $0x68] sm:$0xff]  ;;  %v3167_v22 = vadd.f32 %v3135_v28, %v2811_v63  ;;  %v2680_v3 = vmul.f32 %v3817_v54, %v4857_v16  ;;  %v950_v49 = vadd.f32 %v918_v39, %v851_v27  ;;  %v3102_v43 = vmul.f32 %v2969_v7, %v2878_v60 }
 0x10f   : > { %v491_v51 = vld [vmem:[#allocation2 + $0x69] sm:$0xff]  ;;  %v2319_v21 = vadd.f32 %v2287_v18, %v2221_v15  ;;  %v1646_v20 = vadd.f32 %v1614_v53, %v1548_v61  ;;  %v1810_v24 = vmul.f32 %v3758_v11, %v1777_v19  ;;  %v1909_v28 = vmul.f32 %v3768_v17, %v4865_v59  ;;  %v4876_v53 = vld [vmem:[#allocation2 + $0x139] sm:$0xff] }
 0x110   : > { %v589_v36 = vld [vmem:[#allocation2 + $0x6a] sm:$0xff]  ;;  %3199 = vst.msk [vmem:[%s4163_s13 + $0x38] sm:$0xff] %vm288_vm0, %v3167_v22  ;;  %v1048_v14 = vadd.f32 %v1016_v12, %v950_v49  ;;  %v1212_v27 = vmul.f32 %v4817_v31, %v6555_v57  ;;  %v458_v56 = vmul.f32 %v6538_v62, %v425_v44  ;;  %v524_v63 = vmul.f32 %v6539_v48, %v491_v51 }
 0x111   : > { %v687_v39 = vld [vmem:[#allocation2 + $0x6b] sm:$0xff]  ;;  %v2418_v1 = vadd.f32 %v2386_v38, %v2319_v21  ;;  %v1744_v60 = vadd.f32 %v1712_v29, %v1646_v20  ;;  %6638 = vst [vmem:[#allocation9_spill] sm:$0xff] %v4876_v53  ;;  %v622_v7 = vmul.f32 %v3675_v40, %v589_v36  ;;  %v2007_v49 = vmul.f32 %v6509_v37, %v4876_v53  ;;  %v4886_v20 = vld [vmem:[#allocation2 + $0x13a] sm:$0xff] }
 0x112   : > { %v4874_v18 = vld [vmem:[#allocation2 + $0xac] sm:$0xff]  ;;  %v1146_v12 = vadd.f32 %v1114_v6, %v1048_v14  ;;  %v1310_v15 = vmul.f32 %v4819_v41, %v3734_v0  ;;  %6639 = vst [vmem:[#allocation15_spill] sm:$0xff] %v4886_v20  ;;  %v556_v29 = vadd.f32 %v524_v63, %v458_v56  ;;  %v720_v22 = vmul.f32 %v6540_v32, %v687_v39  ;;  %v884_v14 = vld [vmem:[#allocation2 + $0x80] sm:$0xff] }
 0x113   : > { %6637 = vst [vmem:[#allocation6_spill] sm:$0xff] %v4874_v18  ;;  %v2778_v19 = vmul.f32 %v6592_v26, %v4874_v18  ;;  %v785_v38 = vld [vmem:[#allocation2 + $0x6c] sm:$0xff]  ;;  %v2516_v61 = vadd.f32 %v2484_v35, %v2418_v1  ;;  %v1842_v44 = vadd.f32 %v1810_v24, %v1744_v60  ;;  %v3134_v51 = vadd.f32 %v3102_v43, %v4825_v52  ;;  %v4894_v41 = vld [vmem:[#allocation2 + $0x13b] sm:$0xff] }
 0x114   : > { %v2105_v36 = vmul.f32 %v3779_v23, %v4886_v20  ;;  %v1244_v21 = vadd.f32 %v1212_v27, %v1146_v12  ;;  %v1408_v6 = vmul.f32 %v4834_v50, %v3742_v4  ;;  %6640 = vst [vmem:[#allocation42_spill] sm:$0xff] %v4894_v41  ;;  %v4896_v24 = vld [vmem:[#allocation2 + $0x13c] sm:$0xff]  ;;  %v654_v35 = vadd.f32 %v622_v7, %v556_v29  ;;  %v4905_v60 = vld [vmem:[#allocation2 + $0x150] sm:$0xff]  ;;  %v2989_v20 = vpop.permute.xlu1 %2988 }
 0x115   : > { %v2614_v53 = vadd.f32 %v2582_v34, %v2516_v61  ;;  %v1941_v59 = vadd.f32 %v1909_v28, %v1842_v44  ;;  %6641 = vst [vmem:[#allocation38_spill] sm:$0xff] %v4896_v24  ;;  %v818_v56 = vmul.f32 %v6545_v13, %v785_v38  ;;  %v2203_v43 = vmul.f32 %v3782_v25, %v4894_v41  ;;  %v982_v1 = vld [vmem:[#allocation2 + $0x81] sm:$0xff] }
 0x116   : > { %v2301_v52 = vmul.f32 %v6518_v30, %v4896_v24  ;;  %v1342_v27 = vadd.f32 %v1310_v15, %v1244_v21  ;;  %v1506_v39 = vmul.f32 %v4844_v45, %v3745_v5  ;;  %6642 = vst [vmem:[#allocation16_spill] sm:$0xff] %v4905_v60  ;;  %v752_v63 = vadd.f32 %v720_v22, %v654_v35  ;;  %v6643_v38 = vld [vmem:[#allocation54_spill] sm:$0xff]  ;;  %v3039_v24 = vpop.permute.xlu2 %3038 }
 0x117   : > { %v2712_v34 = vadd.f32 %v2680_v3, %v2614_v53  ;;  %v2039_v28 = vadd.f32 %v2007_v49, %v1941_v59  ;;  %v917_v7 = vmul.f32 %v6549_v8, %v884_v14  ;;  %v2400_v12 = vmul.f32 %v3793_v33, %v4905_v60  ;;  %v1080_v29 = vld [vmem:[#allocation2 + $0x82] sm:$0xff]  ;;  %v4914_v59 = vld [vmem:[#allocation2 + $0x151] sm:$0xff] }
 0x118   : > { %v2892_v61 = vmul.f32 %v4573_v47, %v6643_v38  ;;  %v1440_v44 = vadd.f32 %v1408_v6, %v1342_v27  ;;  %v1604_v15 = vmul.f32 %v4851_v46, %v3752_v9  ;;  %6644 = vst [vmem:[#allocation11_spill] sm:$0xff] %v4914_v59  ;;  %v4916_v53 = vld [vmem:[#allocation2 + $0x152] sm:$0xff]  ;;  %v850_v49 = vadd.f32 %v818_v56, %v752_v63  ;;  %v6646_v35 = vld [vmem:[#allocation30_spill] sm:$0xff] }
 0x119   : > { %v2810_v21 = vadd.f32 %v2778_v19, %v2712_v34  ;;  %v2137_v3 = vadd.f32 %v2105_v36, %v2039_v28  ;;  %6645 = vst [vmem:[#allocation57_spill] sm:$0xff] %v4916_v53  ;;  %v1015_v22 = vmul.f32 %v3719_v58, %v982_v1  ;;  %v2498_v14 = vmul.f32 %v6524_v2, %v4914_v59  ;;  %v1178_v34 = vld [vmem:[#allocation2 + $0x83] sm:$0xff]  ;;  %v4925_v60 = vld [vmem:[#allocation2 + $0x153] sm:$0xff] }
 0x11a   : > { %v2596_v6 = vmul.f32 %v6646_v35, %v4916_v53  ;;  %v1538_v27 = vadd.f32 %v1506_v39, %v1440_v44  ;;  %v1702_v19 = vmul.f32 %v4857_v16, %v3755_v10  ;;  %6647 = vst [vmem:[#allocation8_spill] sm:$0xff] %v4925_v60  ;;  %v949_v41 = vadd.f32 %v917_v7, %v850_v49  ;;  %v4932_v39 = vld [vmem:[#allocation2 + $0xc0] sm:$0xff] }
 0x11b   : > { %v3166_v36 = vadd.f32 %v3134_v51, %v2810_v21  ;;  %v2235_v28 = vadd.f32 %v2203_v43, %v2137_v3  ;;  %v1113_v56 = vmul.f32 %v6553_v42, %v1080_v29  ;;  %v2694_v1 = vmul.f32 %v3817_v54, %v4925_v60  ;;  %6648 = vst [vmem:[#allocation24_spill] sm:$0xff] %v4932_v39  ;;  %v1276_v44 = vld [vmem:[#allocation2 + $0x84] sm:$0xff]  ;;  %v4939_v21 = vld [vmem:[#allocation2 + $0x154] sm:$0xff] }
 0x11c   : > { %v3116_v63 = vmul.f32 %v3039_v24, %v2892_v61  ;;  %v1636_v59 = vadd.f32 %v1604_v15, %v1538_v27  ;;  %v1800_v53 = vmul.f32 %v4874_v18, %v3758_v11  ;;  %v1899_v43 = vmul.f32 %v3768_v17, %v4932_v39  ;;  %6649 = vst [vmem:[#allocation26_spill] sm:$0xff] %v4939_v21  ;;  %v6650_v24 = vld [vmem:[#allocation12_spill] sm:$0xff]  ;;  %v6651_v15 = vld [vmem:[#allocation39_spill] sm:$0xff]  ;;  %v4984_v18 = vld [vmem:[#allocation2 + $0xd9] sm:$0xff] }
 0x11d   : > { %3198 = vst.msk [vmem:[%s4163_s13 + $0x30] sm:$0xff] %vm288_vm0, %v3166_v36  ;;  %v2333_v51 = vadd.f32 %v2301_v52, %v2235_v28  ;;  %v1047_v7 = vadd.f32 %v1015_v22, %v949_v41  ;;  %v1211_v29 = vmul.f32 %v6555_v57, %v1178_v34  ;;  %v472_v61 = vmul.f32 %v6650_v24, %v6538_v62  ;;  %v6652_v27 = vld [vmem:[#allocation19_spill] sm:$0xff]  ;;  %v6654_v24 = vld [vmem:[#allocation18_spill] sm:$0xff] }
 0x11e   : > { %v1734_v3 = vadd.f32 %v1702_v19, %v1636_v59  ;;  %v538_v49 = vmul.f32 %v6651_v15, %v6539_v48  ;;  %v636_v60 = vmul.f32 %v6652_v27, %v3675_v40  ;;  %v2792_v52 = vmul.f32 %v6592_v26, %v4939_v21  ;;  %v4949_v28 = vld [vmem:[#allocation2 + $0xc1] sm:$0xff]  ;;  %6664 = vst [vmem:[#allocation37_spill] sm:$0xff] %v4984_v18 }
 0x11f   : > { %v2432_v36 = vadd.f32 %v2400_v12, %v2333_v51  ;;  %6653 = vst [vmem:[#allocation45_spill] sm:$0xff] %v4949_v28  ;;  %v1145_v41 = vadd.f32 %v1113_v56, %v1047_v7  ;;  %v1309_v22 = vmul.f32 %v3734_v0, %v1276_v44  ;;  %v1997_v59 = vmul.f32 %v6509_v37, %v4949_v28  ;;  %v4957_v51 = vld [vmem:[#allocation2 + $0xc2] sm:$0xff] }
 0x120   : > { %v1832_v34 = vadd.f32 %v1800_v53, %v1734_v3  ;;  %v570_v19 = vadd.f32 %v538_v49, %v472_v61  ;;  %v734_v15 = vmul.f32 %v6654_v24, %v6540_v32  ;;  %v3148_v12 = vadd.f32 %v3116_v63, %v6643_v38  ;;  %6655 = vst [vmem:[#allocation46_spill] sm:$0xff] %v4957_v51  ;;  %v6656_v21 = vld [vmem:[#allocation31_spill] sm:$0xff]  ;;  %v6658_v61 = vld [vmem:[#allocation22_spill] sm:$0xff]  ;;  %v2846_v63 = vld [vmem:[%s3586_s12 + $0x50] sm:$0xff] }
 0x121   : > { %v2530_v39 = vadd.f32 %v2498_v14, %v2432_v36  ;;  %v1243_v27 = vadd.f32 %v1211_v29, %v1145_v41  ;;  %v1407_v56 = vmul.f32 %v6656_v21, %v3742_v4  ;;  %v2095_v53 = vmul.f32 %v3779_v23, %v4957_v51  ;;  %v4963_v44 = vld [vmem:[#allocation2 + $0xc3] sm:$0xff]  ;;  %v6660_v36 = vld [vmem:[#allocation28_spill] sm:$0xff]  ;;  %v4976_v51 = vld [vmem:[#allocation2 + $0xd8] sm:$0xff] }
 0x122   : > { %v1931_v7 = vadd.f32 %v1899_v43, %v1832_v34  ;;  %6657 = vst [vmem:[#allocation51_spill] sm:$0xff] %v4963_v44  ;;  %v668_v3 = vadd.f32 %v636_v60, %v570_v19  ;;  %v832_v49 = vmul.f32 %v6658_v61, %v6545_v13  ;;  %v2193_v38 = vmul.f32 %v3782_v25, %v4963_v44  ;;  %v4969_v14 = vld [vmem:[#allocation2 + $0xc4] sm:$0xff]  ;;  %v6662_v19 = vld [vmem:[#allocation13_spill] sm:$0xff] }
 0x123   : > { %v2628_v24 = vadd.f32 %v2596_v6, %v2530_v39  ;;  %6659 = vst [vmem:[#allocation29_spill] sm:$0xff] %v4969_v14  ;;  %v1341_v29 = vadd.f32 %v1309_v22, %v1243_v27  ;;  %v1505_v43 = vmul.f32 %v6660_v36, %v3745_v5  ;;  %v2291_v34 = vmul.f32 %v6518_v30, %v4969_v14  ;;  %v6663_v22 = vld [vmem:[#allocation32_spill] sm:$0xff]  ;;  %v6665_v14 = vld [vmem:[#allocation23_spill] sm:$0xff] }
 0x124   : > { %v2029_v41 = vadd.f32 %v1997_v59, %v1931_v7  ;;  %6661 = vst [vmem:[#allocation56_spill] sm:$0xff] %v4976_v51  ;;  %v766_v60 = vadd.f32 %v734_v15, %v668_v3  ;;  %v931_v6 = vmul.f32 %v6662_v19, %v6549_v8  ;;  %v2390_v61 = vmul.f32 %v3793_v33, %v4976_v51 }
 0x125   : > { %v2726_v39 = vadd.f32 %v2694_v1, %v2628_v24  ;;  %v1439_v44 = vadd.f32 %v1407_v56, %v1341_v29  ;;  %v1603_v27 = vmul.f32 %v6663_v22, %v3752_v9  ;;  %v2882_v59 = vmul.f32 %v4573_v47, %v2846_v63  ;;  %v4991_v24 = vld [vmem:[#allocation2 + $0xda] sm:$0xff] }
 0x126   : > { %v2127_v28 = vadd.f32 %v2095_v53, %v2029_v41  ;;  %v864_v7 = vadd.f32 %v832_v49, %v766_v60  ;;  %v1029_v15 = vmul.f32 %v6665_v14, %v3719_v58  ;;  %v2488_v1 = vmul.f32 %v6524_v2, %v4984_v18  ;;  %6666 = vst [vmem:[#allocation54_spill] sm:$0xff] %v4991_v24  ;;  %v6667_v29 = vld [vmem:[#allocation33_spill] sm:$0xff] }
 0x127   : > { %v2824_v3 = vadd.f32 %v2792_v52, %v2726_v39  ;;  %v1537_v56 = vadd.f32 %v1505_v43, %v1439_v44  ;;  %v1701_v53 = vmul.f32 %v6667_v29, %v3755_v10  ;;  %v2586_v19 = vmul.f32 %v6646_v35, %v4991_v24  ;;  %v4997_v49 = vld [vmem:[#allocation2 + $0xdb] sm:$0xff]  ;;  %v6669_v44 = vld [vmem:[#allocation35_spill] sm:$0xff] }
 0x128   : > { %v2225_v41 = vadd.f32 %v2193_v38, %v2127_v28  ;;  %v963_v60 = vadd.f32 %v931_v6, %v864_v7  ;;  %v6668_v52 = vld [vmem:[#allocation25_spill] sm:$0xff]  ;;  %v2684_v18 = vmul.f32 %v3817_v54, %v4997_v49  ;;  %v1799_v43 = vmul.f32 %v6669_v44, %v3758_v11  ;;  %v6671_v7 = vld [vmem:[#allocation36_spill] sm:$0xff] }
 0x129   : > { %v1127_v14 = vmul.f32 %v6668_v52, %v6553_v42  ;;  %v3180_v39 = vadd.f32 %v3148_v12, %v2824_v3  ;;  %v1635_v51 = vadd.f32 %v1603_v27, %v1537_v56  ;;  %v3106_v46 = vmul.f32 %v2989_v20, %v2882_v59  ;;  %v6670_v38 = vld [vmem:[#allocation21_spill] sm:$0xff]  ;;  %v1388_v12 = vld [vmem:[#allocation2 + $0x140] sm:$0xff]  ;;  %v6672_v20 = vld [vmem:[#allocation40_spill] sm:$0xff] }
 0x12a   : > { %v2323_v16 = vadd.f32 %v2291_v34, %v2225_v41  ;;  %v1061_v28 = vadd.f32 %v1029_v15, %v963_v60  ;;  %v1225_v24 = vmul.f32 %v6670_v38, %v6555_v57  ;;  %v1898_v52 = vmul.f32 %v6671_v7, %v3768_v17  ;;  %v5019_v41 = vld [vmem:[#allocation2 + $0xdc] sm:$0xff] }
 0x12b   : > { %3212 = vst.msk [vmem:[%s4163_s13 + $0xa0] sm:$0xff] %vm288_vm0, %v3180_v39  ;;  %v1733_v6 = vadd.f32 %v1701_v53, %v1635_v51  ;;  %v462_v3 = vmul.f32 %v6656_v21, %v6538_v62  ;;  %v528_v27 = vmul.f32 %v6660_v36, %v6539_v48  ;;  %v1323_v59 = vmul.f32 %v6672_v20, %v3734_v0  ;;  %v6674_v53 = vld [vmem:[#allocation41_spill] sm:$0xff]  ;;  %v1486_v39 = vld [vmem:[#allocation2 + $0x141] sm:$0xff] }
 0x12c   : > { %v2422_v56 = vadd.f32 %v2390_v61, %v2323_v16  ;;  %v1159_v34 = vadd.f32 %v1127_v14, %v1061_v28  ;;  %v626_v15 = vmul.f32 %v6663_v22, %v3675_v40  ;;  %6673 = vst [vmem:[#allocation12_spill] sm:$0xff] %v5019_v41  ;;  %v1996_v60 = vmul.f32 %v6674_v53, %v6509_v37  ;;  %v6675_v28 = vld [vmem:[#allocation43_spill] sm:$0xff] }
 0x12d   : > { %v1831_v51 = vadd.f32 %v1799_v43, %v1733_v6  ;;  %v560_v38 = vadd.f32 %v528_v27, %v462_v3  ;;  %v724_v21 = vmul.f32 %v6667_v29, %v6540_v32  ;;  %v2782_v36 = vmul.f32 %v6592_v26, %v5019_v41  ;;  %v1584_v6 = vld [vmem:[#allocation2 + $0x142] sm:$0xff] }
 0x12e   : > { %v2520_v16 = vadd.f32 %v2488_v1, %v2422_v56  ;;  %v1257_v61 = vadd.f32 %v1225_v24, %v1159_v34  ;;  %v1421_v14 = vmul.f32 %v3742_v4, %v1388_v12  ;;  %v2094_v43 = vmul.f32 %v6675_v28, %v3779_v23  ;;  %v6676_v24 = vld [vmem:[#allocation47_spill] sm:$0xff] }
 0x12f   : > { %v1930_v22 = vadd.f32 %v1898_v52, %v1831_v51  ;;  %v658_v20 = vadd.f32 %v626_v15, %v560_v38  ;;  %v822_v3 = vmul.f32 %v6669_v44, %v6545_v13  ;;  %v3138_v29 = vadd.f32 %v3106_v46, %v2846_v63  ;;  %v5036_v52 = vld [vmem:[%s3586_s12 + $0x48] sm:$0xff]  ;;  %v6677_v44 = vld [vmem:[#allocation14_spill] sm:$0xff] }
 0x130   : > { %v2618_v27 = vadd.f32 %v2586_v19, %v2520_v16  ;;  %v1355_v1 = vadd.f32 %v1323_v59, %v1257_v61  ;;  %v1519_v56 = vmul.f32 %v3745_v5, %v1486_v39  ;;  %v2192_v12 = vmul.f32 %v6676_v24, %v3782_v25  ;;  %v1682_v34 = vld [vmem:[#allocation2 + $0x143] sm:$0xff] }
 0x131   : > { %v2028_v41 = vadd.f32 %v1996_v60, %v1930_v22  ;;  %v756_v51 = vadd.f32 %v724_v21, %v658_v20  ;;  %v921_v15 = vmul.f32 %v6671_v7, %v6549_v8  ;;  %v2290_v19 = vmul.f32 %v6677_v44, %v6518_v30  ;;  %v5042_v16 = vld [vmem:[#allocation2 + $0xc8] sm:$0xff]  ;;  %v378_v59 = vld [vmem:[%s3586_s12 + $0xe0] sm:$0xff] }
 0x132   : > { %v2716_v38 = vadd.f32 %v2684_v18, %v2618_v27  ;;  %v1453_v46 = vadd.f32 %v1421_v14, %v1355_v1  ;;  %v1617_v63 = vmul.f32 %v3752_v9, %v1584_v6  ;;  %v5047_v60 = vld [vmem:[%s3586_s12 + $0xe8] sm:$0xff]  ;;  %v2389_v61 = vmul.f32 %v3793_v33, %v5042_v16  ;;  %411 = vst.msk [vmem:[#allocation2 + $0x182] sm:$0xff] %vm288_vm0, %v378_v59  ;;  %v5074_v59 = vld [vmem:[#allocation2 + $0x158] sm:$0xff] }
 0x133   : > { %6678 = vst [vmem:[#allocation39_spill] sm:$0xff] %v5047_v60  ;;  %v2126_v39 = vadd.f32 %v2094_v43, %v2028_v41  ;;  %v1780_v21 = vld [vmem:[#allocation2 + $0x144] sm:$0xff]  ;;  %v854_v22 = vadd.f32 %v822_v3, %v756_v51  ;;  %v1019_v18 = vmul.f32 %v6674_v53, %v3719_v58  ;;  %v2881_v14 = vmul.f32 %v4573_v47, %v5036_v52  ;;  %v2984_v41 = vpop.permute.xlu0 %2983 }
 0x134   : > { %v2814_v7 = vadd.f32 %v2782_v36, %v2716_v38  ;;  %v5054_v20 = vld [vmem:[#allocation2 + $0xc9] sm:$0xff]  ;;  %v1551_v6 = vadd.f32 %v1519_v56, %v1453_v46  ;;  %v1715_v27 = vmul.f32 %v3755_v10, %v1682_v34  ;;  %412 = vst.msk [vmem:[#allocation2 + $0x18a] sm:$0xff] %vm288_vm0, %v5047_v60  ;;  %v1117_v1 = vmul.f32 %v6675_v28, %v6553_v42 }
 0x135   : > { %v2224_v43 = vadd.f32 %v2192_v12, %v2126_v39  ;;  %v2487_v53 = vmul.f32 %v6524_v2, %v5054_v20  ;;  %v5063_v3 = vld [vmem:[#allocation2 + $0xca] sm:$0xff]  ;;  %v953_v36 = vadd.f32 %v921_v15, %v854_v22  ;;  %v1813_v38 = vmul.f32 %v3758_v11, %v1780_v21  ;;  %6681 = vst [vmem:[#allocation31_spill] sm:$0xff] %v5074_v59 }
 0x136   : > { %6679 = vst [vmem:[#allocation19_spill] sm:$0xff] %v5063_v3  ;;  %v3170_v51 = vadd.f32 %v3138_v29, %v2814_v7  ;;  %v2585_v47 = vmul.f32 %v6646_v35, %v5063_v3  ;;  %v5069_v56 = vld [vmem:[#allocation2 + $0xcb] sm:$0xff]  ;;  %v1649_v34 = vadd.f32 %v1617_v63, %v1551_v6  ;;  %v1215_v15 = vmul.f32 %v6676_v24, %v6555_v57  ;;  %v5084_v7 = vld [vmem:[#allocation2 + $0x159] sm:$0xff] }
 0x137   : > { %6680 = vst [vmem:[#allocation18_spill] sm:$0xff] %v5069_v56  ;;  %v2322_v46 = vadd.f32 %v2290_v19, %v2224_v43  ;;  %v2683_v12 = vmul.f32 %v3817_v54, %v5069_v56  ;;  %v1051_v39 = vadd.f32 %v1019_v18, %v953_v36  ;;  %v3105_v28 = vmul.f32 %v2984_v41, %v2881_v14  ;;  %v6682_v63 = vld [vmem:[#allocation44_spill] sm:$0xff] }
 0x138   : > { %3202 = vst.msk [vmem:[%s4163_s13 + $0x50] sm:$0xff] %vm288_vm0, %v3170_v51  ;;  %v1747_v29 = vadd.f32 %v1715_v27, %v1649_v34  ;;  %v1912_v22 = vmul.f32 %v3768_v17, %v5074_v59  ;;  %v461_v21 = vmul.f32 %v6682_v63, %v6538_v62  ;;  %v1313_v18 = vmul.f32 %v6677_v44, %v3734_v0  ;;  %v6684_v43 = vld [vmem:[#allocation48_spill] sm:$0xff]  ;;  %v5098_v51 = vld [vmem:[#allocation2 + $0x15a] sm:$0xff] }
 0x139   : > { %v2421_v19 = vadd.f32 %v2389_v61, %v2322_v46  ;;  %6683 = vst [vmem:[#allocation22_spill] sm:$0xff] %v5084_v7  ;;  %v1149_v6 = vadd.f32 %v1117_v1, %v1051_v39  ;;  %v527_v24 = vmul.f32 %v6684_v43, %v6539_v48  ;;  %v2010_v27 = vmul.f32 %v6509_v37, %v5084_v7  ;;  %v5096_v1 = vld [vmem:[#allocation2 + $0xcc] sm:$0xff]  ;;  %v381_v63 = vld [vmem:[%s3586_s12 + $0xf8] sm:$0xff] }
 0x13a   : > { %v1845_v14 = vadd.f32 %v1813_v38, %v1747_v29  ;;  %v1411_v41 = vmul.f32 %v5042_v16, %v3742_v4  ;;  %v625_v61 = vmul.f32 %v4812_v55, %v3675_v40  ;;  %6685 = vst [vmem:[#allocation28_spill] sm:$0xff] %v5096_v1  ;;  %v723_v46 = vmul.f32 %v4817_v31, %v6540_v32  ;;  %v5110_v43 = vld [vmem:[#allocation2 + $0x15b] sm:$0xff] }
 0x13b   : > { %v2519_v36 = vadd.f32 %v2487_v53, %v2421_v19  ;;  %6686 = vst [vmem:[#allocation13_spill] sm:$0xff] %v5098_v51  ;;  %v1247_v44 = vadd.f32 %v1215_v15, %v1149_v6  ;;  %v559_v34 = vadd.f32 %v527_v24, %v461_v21  ;;  %v2781_v38 = vmul.f32 %v6592_v26, %v5096_v1  ;;  %v380_v53 = vld [vmem:[%s3586_s12 + $0xf0] sm:$0xff]  ;;  %v6688_v31 = vld [vmem:[#allocation50_spill] sm:$0xff] }
 0x13c   : > { %v1944_v39 = vadd.f32 %v1912_v22, %v1845_v14  ;;  %v2108_v29 = vmul.f32 %v3779_v23, %v5098_v51  ;;  %v1509_v55 = vmul.f32 %v5054_v20, %v3745_v5  ;;  %6687 = vst [vmem:[#allocation32_spill] sm:$0xff] %v5110_v43  ;;  %v821_v6 = vmul.f32 %v6688_v31, %v6545_v13  ;;  %v5210_v51 = vld [vmem:[#allocation2 + $0xf9] sm:$0xff] }
 0x13d   : > { %v2617_v19 = vadd.f32 %v2585_v47, %v2519_v36  ;;  %v1345_v15 = vadd.f32 %v1313_v18, %v1247_v44  ;;  %v657_v21 = vadd.f32 %v625_v61, %v559_v34  ;;  %413 = vst.msk [vmem:[#allocation2 + $0x19a] sm:$0xff] %vm288_vm0, %v380_v53  ;;  %v3137_v22 = vadd.f32 %v3105_v28, %v5036_v52  ;;  %v5121_v18 = vld [vmem:[#allocation2 + $0x15c] sm:$0xff] }
 0x13e   : > { %v2042_v24 = vadd.f32 %v2010_v27, %v1944_v39  ;;  %v2206_v14 = vmul.f32 %v3782_v25, %v5110_v43  ;;  %v1607_v60 = vmul.f32 %v5063_v3, %v3752_v9  ;;  %414 = vst.msk [vmem:[#allocation2 + $0x1a2] sm:$0xff] %vm288_vm0, %v381_v63  ;;  %v920_v44 = vmul.f32 %v4834_v50, %v6549_v8  ;;  %v5128_v28 = vld [vmem:[%s3528_s27] ss:$0 sm:$0xff]  ;;  %v6690_v27 = vld [vmem:[#allocation17_spill] sm:$0xff]  ;;  %v3054_v63 = vpop.permute.xlu2 %3053 }
 0x13f   : > { %v2715_v47 = vadd.f32 %v2683_v12, %v2617_v19  ;;  %6689 = vst [vmem:[#allocation23_spill] sm:$0xff] %v5121_v18  ;;  %v1443_v61 = vadd.f32 %v1411_v41, %v1345_v15  ;;  %v755_v36 = vadd.f32 %v723_v46, %v657_v21  ;;  %v2304_v52 = vmul.f32 %v6518_v30, %v5121_v18  ;;  %v5134_v19 = vld [vmem:[#allocation2 + $0x170] sm:$0xff] }
 0x140   : > { %v2140_v34 = vadd.f32 %v2108_v29, %v2042_v24  ;;  %v2895_v39 = vmul.f32 %v5128_v28, %v6690_v27  ;;  %v1705_v53 = vmul.f32 %v5069_v56, %v3755_v10  ;;  %6691 = vst [vmem:[#allocation33_spill] sm:$0xff] %v5134_v19  ;;  %v5136_v41 = vld [vmem:[#allocation2 + $0x171] sm:$0xff]  ;;  %v1018_v29 = vmul.f32 %v4844_v45, %v3719_v58 }
 0x141   : > { %v2813_v12 = vadd.f32 %v2781_v38, %v2715_v47  ;;  %6692 = vst [vmem:[#allocation25_spill] sm:$0xff] %v5136_v41  ;;  %v1541_v46 = vadd.f32 %v1509_v55, %v1443_v61  ;;  %v853_v50 = vadd.f32 %v821_v6, %v755_v36  ;;  %v2403_v21 = vmul.f32 %v3793_v33, %v5134_v19  ;;  %v5146_v47 = vld [vmem:[#allocation2 + $0x172] sm:$0xff]  ;;  %v5156_v19 = vld [vmem:[#allocation2 + $0xe0] sm:$0xff] }
 0x142   : > { %v2238_v15 = vadd.f32 %v2206_v14, %v2140_v34  ;;  %v2501_v31 = vmul.f32 %v6524_v2, %v5136_v41  ;;  %v1803_v38 = vmul.f32 %v5096_v1, %v3758_v11  ;;  %6693 = vst [vmem:[#allocation35_spill] sm:$0xff] %v5146_v47  ;;  %v5148_v18 = vld [vmem:[#allocation2 + $0x173] sm:$0xff]  ;;  %v2599_v36 = vmul.f32 %v6646_v35, %v5146_v47  ;;  %v5180_v47 = vld [vmem:[#allocation2 + $0xe2] sm:$0xff] }
 0x143   : > { %v3169_v24 = vadd.f32 %v3137_v22, %v2813_v12  ;;  %6694 = vst [vmem:[#allocation21_spill] sm:$0xff] %v5148_v18  ;;  %v1639_v55 = vadd.f32 %v1607_v60, %v1541_v46  ;;  %v952_v6 = vadd.f32 %v920_v44, %v853_v50  ;;  %v6695_v45 = vld [vmem:[#allocation53_spill] sm:$0xff]  ;;  %v2697_v34 = vmul.f32 %v3817_v54, %v5148_v18  ;;  %v6697_v12 = vld [vmem:[#allocation7_spill] sm:$0xff] }
 0x144   : > { %v1116_v61 = vmul.f32 %v6695_v45, %v6553_v42  ;;  %v2336_v14 = vadd.f32 %v2304_v52, %v2238_v15  ;;  %v3119_v41 = vmul.f32 %v3054_v63, %v2895_v39  ;;  %6696 = vst [vmem:[#allocation36_spill] sm:$0xff] %v5156_v19  ;;  %v1902_v60 = vmul.f32 %v3768_v17, %v5156_v19  ;;  %v5164_v50 = vld [vmem:[#allocation2 + $0xe1] sm:$0xff]  ;;  %v6700_v39 = vld [vmem:[#allocation9_spill] sm:$0xff] }
 0x145   : > { %3201 = vst.msk [vmem:[%s4163_s13 + $0x48] sm:$0xff] %vm288_vm0, %v3169_v24  ;;  %v1737_v22 = vadd.f32 %v1705_v53, %v1639_v55  ;;  %v1050_v44 = vadd.f32 %v1018_v29, %v952_v6  ;;  %v1214_v46 = vmul.f32 %v6697_v12, %v6555_v57  ;;  %v6699_v15 = vld [vmem:[#allocation55_spill] sm:$0xff]  ;;  %v541_v63 = vmul.f32 %v6700_v39, %v6539_v48  ;;  %v5172_v53 = vld [vmem:[#allocation2 + $0x174] sm:$0xff] }
 0x146   : > { %v2435_v52 = vadd.f32 %v2403_v21, %v2336_v14  ;;  %6698 = vst [vmem:[#allocation40_spill] sm:$0xff] %v5164_v50  ;;  %v475_v45 = vmul.f32 %v6699_v15, %v6538_v62  ;;  %v6701_v18 = vld [vmem:[#allocation15_spill] sm:$0xff]  ;;  %v2000_v29 = vmul.f32 %v6509_v37, %v5164_v50  ;;  %v6703_v21 = vld [vmem:[#allocation6_spill] sm:$0xff]  ;;  %v2795_v15 = vmul.f32 %v6592_v26, %v5172_v53 }
 0x147   : > { %v639_v24 = vmul.f32 %v6701_v18, %v3675_v40  ;;  %6702 = vst [vmem:[#allocation41_spill] sm:$0xff] %v5172_v53  ;;  %v1835_v55 = vadd.f32 %v1803_v38, %v1737_v22  ;;  %v1148_v6 = vadd.f32 %v1116_v61, %v1050_v44  ;;  %v1312_v14 = vmul.f32 %v6703_v21, %v3734_v0  ;;  %v6705_v18 = vld [vmem:[#allocation42_spill] sm:$0xff]  ;;  %v6706_v61 = vld [vmem:[#allocation24_spill] sm:$0xff] }
 0x148   : > { %v2533_v12 = vadd.f32 %v2501_v31, %v2435_v52  ;;  %6704 = vst [vmem:[#allocation43_spill] sm:$0xff] %v5180_v47  ;;  %v573_v39 = vadd.f32 %v541_v63, %v475_v45  ;;  %v737_v43 = vmul.f32 %v6705_v18, %v6540_v32  ;;  %v2098_v38 = vmul.f32 %v3779_v23, %v5180_v47  ;;  %v5189_v52 = vld [vmem:[#allocation2 + $0xe3] sm:$0xff] }
 0x149   : > { %v1934_v19 = vadd.f32 %v1902_v60, %v1835_v55  ;;  %v1246_v22 = vadd.f32 %v1214_v46, %v1148_v6  ;;  %v1410_v44 = vmul.f32 %v6706_v61, %v3742_v4  ;;  %v3151_v31 = vadd.f32 %v3119_v41, %v6690_v27  ;;  %6707 = vst [vmem:[#allocation47_spill] sm:$0xff] %v5189_v52  ;;  %v6708_v50 = vld [vmem:[#allocation38_spill] sm:$0xff]  ;;  %v2849_v18 = vld [vmem:[%s3586_s12 + $0x68] sm:$0xff]  ;;  %v6710_v6 = vld [vmem:[#allocation45_spill] sm:$0xff] }
 0x14a   : > { %v2631_v21 = vadd.f32 %v2599_v36, %v2533_v12  ;;  %v671_v53 = vadd.f32 %v639_v24, %v573_v39  ;;  %v835_v45 = vmul.f32 %v6708_v50, %v6545_v13  ;;  %v2196_v60 = vmul.f32 %v3782_v25, %v5189_v52  ;;  %v5195_v55 = vld [vmem:[#allocation2 + $0xe4] sm:$0xff]  ;;  %v5202_v41 = vld [vmem:[#allocation2 + $0xf8] sm:$0xff]  ;;  %v6712_v50 = vld [vmem:[#allocation16_spill] sm:$0xff]  ;;  %6714 = vst [vmem:[#allocation48_spill] sm:$0xff] %v5210_v51 }
 0x14b   : > { %v2032_v63 = vadd.f32 %v2000_v29, %v1934_v19  ;;  %6709 = vst [vmem:[#allocation14_spill] sm:$0xff] %v5195_v55  ;;  %v1344_v46 = vadd.f32 %v1312_v14, %v1246_v22  ;;  %v1508_v47 = vmul.f32 %v6710_v6, %v3745_v5  ;;  %v2294_v27 = vmul.f32 %v6518_v30, %v5195_v55  ;;  %v6713_v14 = vld [vmem:[#allocation46_spill] sm:$0xff]  ;;  %v6715_v55 = vld [vmem:[#allocation11_spill] sm:$0xff] }
 0x14c   : > { %v2729_v36 = vadd.f32 %v2697_v34, %v2631_v21  ;;  %6711 = vst [vmem:[#allocation44_spill] sm:$0xff] %v5202_v41  ;;  %v769_v24 = vadd.f32 %v737_v43, %v671_v53  ;;  %v934_v19 = vmul.f32 %v6712_v50, %v6549_v8  ;;  %v2393_v12 = vmul.f32 %v3793_v33, %v5202_v41  ;;  %v3004_v53 = vpop.permute.xlu1 %3003 }
 0x14d   : > { %v2130_v29 = vadd.f32 %v2098_v38, %v2032_v63  ;;  %v1442_v39 = vadd.f32 %v1410_v44, %v1344_v46  ;;  %v1606_v22 = vmul.f32 %v6713_v14, %v3752_v9  ;;  %v2885_v34 = vmul.f32 %v5128_v28, %v2849_v18  ;;  %v5217_v63 = vld [vmem:[#allocation2 + $0xfa] sm:$0xff]  ;;  %v6717_v46 = vld [vmem:[#allocation51_spill] sm:$0xff] }
 0x14e   : > { %v2827_v52 = vadd.f32 %v2795_v15, %v2729_v36  ;;  %v867_v21 = vadd.f32 %v835_v45, %v769_v24  ;;  %v1032_v43 = vmul.f32 %v6715_v55, %v3719_v58  ;;  %v2491_v38 = vmul.f32 %v6524_v2, %v5210_v51  ;;  %6716 = vst [vmem:[#allocation50_spill] sm:$0xff] %v5217_v63  ;;  %v5223_v45 = vld [vmem:[#allocation2 + $0xfb] sm:$0xff] }
 0x14f   : > { %v2228_v50 = vadd.f32 %v2196_v60, %v2130_v29  ;;  %v1540_v44 = vadd.f32 %v1508_v47, %v1442_v39  ;;  %v1704_v15 = vmul.f32 %v6717_v46, %v3755_v10  ;;  %v2589_v41 = vmul.f32 %v6646_v35, %v5217_v63  ;;  %6718 = vst [vmem:[#allocation17_spill] sm:$0xff] %v5223_v45  ;;  %v6719_v55 = vld [vmem:[#allocation57_spill] sm:$0xff] }
 0x150   : > { %v3183_v36 = vadd.f32 %v3151_v31, %v2827_v52  ;;  %v966_v24 = vadd.f32 %v934_v19, %v867_v21  ;;  %v1130_v7 = vmul.f32 %v6719_v55, %v6553_v42  ;;  %v2687_v29 = vmul.f32 %v3817_v54, %v5223_v45  ;;  %v6720_v47 = vld [vmem:[#allocation29_spill] sm:$0xff]  ;;  %v6721_v52 = vld [vmem:[#allocation56_spill] sm:$0xff] }
 0x151   : > { %v2326_v60 = vadd.f32 %v2294_v27, %v2228_v50  ;;  %v1638_v51 = vadd.f32 %v1606_v22, %v1540_v44  ;;  %v1802_v39 = vmul.f32 %v6720_v47, %v3758_v11  ;;  %v3109_v31 = vmul.f32 %v3004_v53, %v2885_v34  ;;  %v6722_v19 = vld [vmem:[#allocation8_spill] sm:$0xff]  ;;  %v1391_v27 = vld [vmem:[#allocation2 + $0x168] sm:$0xff]  ;;  %v6723_v44 = vld [vmem:[#allocation37_spill] sm:$0xff] }
 0x152   : > { %3215 = vst.msk [vmem:[%s4163_s13 + $0xb8] sm:$0xff] %vm288_vm0, %v3183_v36  ;;  %v1901_v63 = vmul.f32 %v6721_v52, %v3768_v17  ;;  %v1064_v1 = vadd.f32 %v1032_v43, %v966_v24  ;;  %v1228_v21 = vmul.f32 %v6722_v19, %v6555_v57  ;;  %v465_v50 = vmul.f32 %v6706_v61, %v6538_v62  ;;  %v6724_v53 = vld [vmem:[#allocation26_spill] sm:$0xff] }
 0x153   : > { %v2425_v59 = vadd.f32 %v2393_v12, %v2326_v60  ;;  %v1736_v55 = vadd.f32 %v1704_v15, %v1638_v51  ;;  %v531_v22 = vmul.f32 %v6710_v6, %v6539_v48  ;;  %v1999_v36 = vmul.f32 %v6723_v44, %v6509_v37  ;;  %v5247_v51 = vld [vmem:[#allocation2 + $0xfc] sm:$0xff]  ;;  %v1489_v60 = vld [vmem:[#allocation2 + $0x169] sm:$0xff] }
 0x154   : > { %v1162_v34 = vadd.f32 %v1130_v7, %v1064_v1  ;;  %v1326_v43 = vmul.f32 %v6724_v53, %v3734_v0  ;;  %v629_v24 = vmul.f32 %v6713_v14, %v3675_v40  ;;  %6725 = vst [vmem:[#allocation53_spill] sm:$0xff] %v5247_v51  ;;  %v727_v6 = vmul.f32 %v6717_v46, %v6540_v32  ;;  %v6726_v7 = vld [vmem:[#allocation54_spill] sm:$0xff] }
 0x155   : > { %v2523_v12 = vadd.f32 %v2491_v38, %v2425_v59  ;;  %v1834_v15 = vadd.f32 %v1802_v39, %v1736_v55  ;;  %v563_v61 = vadd.f32 %v531_v22, %v465_v50  ;;  %v2785_v19 = vmul.f32 %v6592_v26, %v5247_v51  ;;  %v5257_v59 = vld [vmem:[%s3586_s12 + $0x60] sm:$0xff]  ;;  %v1587_v38 = vld [vmem:[#allocation2 + $0x16a] sm:$0xff] }
 0x156   : > { %v2097_v1 = vmul.f32 %v6726_v7, %v3779_v23  ;;  %v1260_v45 = vadd.f32 %v1228_v21, %v1162_v34  ;;  %v1424_v53 = vmul.f32 %v3742_v4, %v1391_v27  ;;  %v825_v55 = vmul.f32 %v6720_v47, %v6545_v13  ;;  %v1685_v34 = vld [vmem:[#allocation2 + $0x16b] sm:$0xff] }
 0x157   : > { %v2621_v56 = vadd.f32 %v2589_v41, %v2523_v12  ;;  %v1933_v14 = vadd.f32 %v1901_v63, %v1834_v15  ;;  %v661_v39 = vadd.f32 %v629_v24, %v563_v61  ;;  %v3141_v50 = vadd.f32 %v3109_v31, %v2849_v18  ;;  %v6727_v63 = vld [vmem:[#allocation12_spill] sm:$0xff]  ;;  %v2999_v15 = vpop.permute.xlu0 %2998 }
 0x158   : > { %v2195_v46 = vmul.f32 %v4997_v49, %v3782_v25  ;;  %v1358_v22 = vadd.f32 %v1326_v43, %v1260_v45  ;;  %v1522_v51 = vmul.f32 %v3745_v5, %v1489_v60  ;;  %v924_v41 = vmul.f32 %v6721_v52, %v6549_v8  ;;  %v5271_v43 = vld [vmem:[#allocation2 + $0xf0] sm:$0xff] }
 0x159   : > { %v2719_v3 = vadd.f32 %v2687_v29, %v2621_v56  ;;  %v2031_v21 = vadd.f32 %v1999_v36, %v1933_v14  ;;  %v759_v27 = vadd.f32 %v727_v6, %v661_v39  ;;  %v2293_v24 = vmul.f32 %v6727_v63, %v6518_v30  ;;  %v5273_v56 = vld [vmem:[#allocation2 + $0xf1] sm:$0xff]  ;;  %v1882_v39 = vld [vmem:[#allocation2 + $0x180] sm:$0xff] }
 0x15a   : > { %v2884_v47 = vmul.f32 %v5128_v28, %v5257_v59  ;;  %v1456_v18 = vadd.f32 %v1424_v53, %v1358_v22  ;;  %v1620_v31 = vmul.f32 %v3752_v9, %v1587_v38  ;;  %v1783_v29 = vld [vmem:[#allocation2 + $0x16c] sm:$0xff]  ;;  %v1022_v52 = vmul.f32 %v6723_v44, %v3719_v58 }
 0x15b   : > { %v2817_v12 = vadd.f32 %v2785_v19, %v2719_v3  ;;  %v2129_v45 = vadd.f32 %v2097_v1, %v2031_v21  ;;  %v857_v36 = vadd.f32 %v825_v55, %v759_v27  ;;  %v2392_v60 = vmul.f32 %v3793_v33, %v5271_v43  ;;  %v5281_v6 = vld [vmem:[#allocation2 + $0xf2] sm:$0xff] }
 0x15c   : > { %v2490_v61 = vmul.f32 %v6524_v2, %v5273_v56  ;;  %6728 = vst [vmem:[#allocation7_spill] sm:$0xff] %v5281_v6  ;;  %v1554_v3 = vadd.f32 %v1522_v51, %v1456_v18  ;;  %v1718_v19 = vmul.f32 %v3755_v10, %v1685_v34  ;;  %v431_v1 = vld [vmem:[#allocation2 + $0xb0] sm:$0xff]  ;;  %v1120_v55 = vmul.f32 %v6726_v7, %v6553_v42 }
 0x15d   : > { %v3173_v53 = vadd.f32 %v3141_v50, %v2817_v12  ;;  %v2227_v14 = vadd.f32 %v2195_v46, %v2129_v45  ;;  %v5284_v38 = vld [vmem:[#allocation2 + $0xf3] sm:$0xff]  ;;  %v956_v44 = vadd.f32 %v924_v41, %v857_v36  ;;  %v2588_v21 = vmul.f32 %v6646_v35, %v5281_v6  ;;  %v1980_v12 = vld [vmem:[#allocation2 + $0x181] sm:$0xff] }
 0x15e   : > { %6729 = vst [vmem:[#allocation55_spill] sm:$0xff] %v5284_v38  ;;  %v497_v22 = vld [vmem:[#allocation2 + $0xb1] sm:$0xff]  ;;  %v2686_v27 = vmul.f32 %v3817_v54, %v5284_v38  ;;  %v1652_v51 = vadd.f32 %v1620_v31, %v1554_v3  ;;  %v1816_v34 = vmul.f32 %v3758_v11, %v1783_v29  ;;  %v3108_v46 = vmul.f32 %v2999_v15, %v2884_v47  ;;  %v2078_v29 = vld [vmem:[#allocation2 + $0x182] sm:$0xff] }
 0x15f   : > { %v595_v18 = vld [vmem:[#allocation2 + $0xb2] sm:$0xff]  ;;  %3205 = vst.msk [vmem:[%s4163_s13 + $0x68] sm:$0xff] %vm288_vm0, %v3173_v53  ;;  %v2325_v50 = vadd.f32 %v2293_v24, %v2227_v14  ;;  %v1054_v41 = vadd.f32 %v1022_v52, %v956_v44  ;;  %v1218_v7 = vmul.f32 %v4997_v49, %v6555_v57  ;;  %v1915_v35 = vmul.f32 %v3768_v17, %v1882_v39  ;;  %v2176_v39 = vld [vmem:[#allocation2 + $0x183] sm:$0xff] }
 0x160   : > { %v693_v45 = vld [vmem:[#allocation2 + $0xb3] sm:$0xff]  ;;  %v1750_v36 = vadd.f32 %v1718_v19, %v1652_v51  ;;  %v464_v42 = vmul.f32 %v6538_v62, %v431_v1  ;;  %v530_v31 = vmul.f32 %v6539_v48, %v497_v22  ;;  %v1316_v24 = vmul.f32 %v6727_v63, %v3734_v0  ;;  %v2274_v51 = vld [vmem:[#allocation2 + $0x184] sm:$0xff] }
 0x161   : > { %v2424_v3 = vadd.f32 %v2392_v60, %v2325_v50  ;;  %v1152_v54 = vadd.f32 %v1120_v55, %v1054_v41  ;;  %v628_v47 = vmul.f32 %v3675_v40, %v595_v18  ;;  %v791_v52 = vld [vmem:[#allocation2 + $0xb4] sm:$0xff]  ;;  %v2013_v19 = vmul.f32 %v6509_v37, %v1980_v12 }
 0x162   : > { %v5303_v15 = vld [vmem:[#allocation2 + $0xf4] sm:$0xff]  ;;  %v1848_v49 = vadd.f32 %v1816_v34, %v1750_v36  ;;  %v562_v53 = vadd.f32 %v530_v31, %v464_v42  ;;  %v726_v14 = vmul.f32 %v6540_v32, %v693_v45  ;;  %v1414_v63 = vmul.f32 %v5271_v43, %v3742_v4 }
 0x163   : > { %6730 = vst [vmem:[#allocation9_spill] sm:$0xff] %v5303_v15  ;;  %v2522_v1 = vadd.f32 %v2490_v61, %v2424_v3  ;;  %v2784_v60 = vmul.f32 %v6592_v26, %v5303_v15  ;;  %v1250_v44 = vadd.f32 %v1218_v7, %v1152_v54  ;;  %v2111_v22 = vmul.f32 %v3779_v23, %v2078_v29  ;;  %v2373_v7 = vld [vmem:[#allocation2 + $0x198] sm:$0xff] }
 0x164   : > { %v1947_v55 = vadd.f32 %v1915_v35, %v1848_v49  ;;  %v660_v18 = vadd.f32 %v628_v47, %v562_v53  ;;  %v824_v34 = vmul.f32 %v6545_v13, %v791_v52  ;;  %v3140_v42 = vadd.f32 %v3108_v46, %v5257_v59  ;;  %v2471_v3 = vld [vmem:[#allocation2 + $0x199] sm:$0xff]  ;;  %v3069_v53 = vpop.permute.xlu2 %3068 }
 0x165   : > { %v2620_v50 = vadd.f32 %v2588_v21, %v2522_v1  ;;  %v1348_v12 = vadd.f32 %v1316_v24, %v1250_v44  ;;  %v1512_v61 = vmul.f32 %v5273_v56, %v3745_v5  ;;  %v2209_v54 = vmul.f32 %v3782_v25, %v2176_v39  ;;  %v2569_v46 = vld [vmem:[#allocation2 + $0x19a] sm:$0xff] }
 0x166   : > { %v2045_v41 = vadd.f32 %v2013_v19, %v1947_v55  ;;  %v758_v45 = vadd.f32 %v726_v14, %v660_v18  ;;  %v923_v35 = vmul.f32 %v5042_v16, %v6549_v8  ;;  %v2307_v31 = vmul.f32 %v6518_v30, %v2274_v51  ;;  %v6731_v24 = vld [vmem:[#allocation49_spill] sm:$0xff]  ;;  %v6732_v55 = vld [vmem:[#allocation20_spill] sm:$0xff] }
 0x167   : > { %v2718_v36 = vadd.f32 %v2686_v27, %v2620_v50  ;;  %v1446_v29 = vadd.f32 %v1414_v63, %v1348_v12  ;;  %v1610_v59 = vmul.f32 %v5281_v6, %v3752_v9  ;;  %v2898_v47 = vmul.f32 %v5128_v28, %v6731_v24  ;;  %v2667_v44 = vld [vmem:[#allocation2 + $0x19b] sm:$0xff]  ;;  %v5438_v6 = vld [vmem:[#allocation2 + $0x18a] sm:$0xff] }
 0x168   : > { %v2143_v21 = vadd.f32 %v2111_v22, %v2045_v41  ;;  %v856_v52 = vadd.f32 %v824_v34, %v758_v45  ;;  %v1021_v49 = vmul.f32 %v5054_v20, %v3719_v58  ;;  %v2406_v16 = vmul.f32 %v3793_v33, %v2373_v7  ;;  %v6733_v22 = vld [vmem:[#allocation19_spill] sm:$0xff]  ;;  %v6734_v34 = vld [vmem:[#allocation30_spill] sm:$0xff]  ;;  %6768 = vst [vmem:[#allocation56_spill] sm:$0xff] %v5438_v6 }
 0x169   : > { %v2816_v19 = vadd.f32 %v2784_v60, %v2718_v36  ;;  %v1544_v27 = vadd.f32 %v1512_v61, %v1446_v29  ;;  %v1708_v14 = vmul.f32 %v5284_v38, %v3755_v10  ;;  %v2504_v39 = vmul.f32 %v6524_v2, %v2471_v3  ;;  %v2765_v60 = vld [vmem:[#allocation2 + $0x19c] sm:$0xff]  ;;  %v5335_v7 = vld [vmem:[#allocation2 + $0x108] sm:$0xff] }
 0x16a   : > { %v2241_v1 = vadd.f32 %v2209_v54, %v2143_v21  ;;  %v955_v63 = vadd.f32 %v923_v35, %v856_v52  ;;  %v1119_v51 = vmul.f32 %v6733_v22, %v6732_v55  ;;  %v2602_v20 = vmul.f32 %v6734_v34, %v2569_v46  ;;  %6735 = vst [vmem:[#allocation15_spill] sm:$0xff] %v5335_v7  ;;  %v6736_v45 = vld [vmem:[#allocation18_spill] sm:$0xff] }
 0x16b   : > { %v3172_v18 = vadd.f32 %v3140_v42, %v2816_v19  ;;  %v1642_v50 = vadd.f32 %v1610_v59, %v1544_v27  ;;  %v1806_v12 = vmul.f32 %v5303_v15, %v3758_v11  ;;  %v3122_v41 = vmul.f32 %v3069_v53, %v2898_v47  ;;  %v6737_v35 = vld [vmem:[#allocation34_spill] sm:$0xff]  ;;  %v6738_v59 = vld [vmem:[#allocation31_spill] sm:$0xff] }
 0x16c   : > { %v2339_v61 = vadd.f32 %v2307_v31, %v2241_v1  ;;  %v1053_v54 = vadd.f32 %v1021_v49, %v955_v63  ;;  %v1217_v36 = vmul.f32 %v6736_v45, %v6555_v57  ;;  %v2700_v3 = vmul.f32 %v6737_v35, %v2667_v44  ;;  %v5347_v47 = vld [vmem:[#allocation2 + $0x109] sm:$0xff]  ;;  %v6742_v44 = vld [vmem:[#allocation13_spill] sm:$0xff] }
 0x16d   : > { %3204 = vst.msk [vmem:[%s4163_s13 + $0x60] sm:$0xff] %vm288_vm0, %v3172_v18  ;;  %v1740_v42 = vadd.f32 %v1708_v14, %v1642_v50  ;;  %v1905_v29 = vmul.f32 %v3768_v17, %v5335_v7  ;;  %v478_v21 = vmul.f32 %v6738_v59, %v6538_v62  ;;  %v2798_v31 = vmul.f32 %v6592_v26, %v2765_v60  ;;  %v6740_v49 = vld [vmem:[#allocation28_spill] sm:$0xff]  ;;  %v6741_v14 = vld [vmem:[#allocation22_spill] sm:$0xff] }
 0x16e   : > { %v2438_v46 = vadd.f32 %v2406_v16, %v2339_v61  ;;  %6739 = vst [vmem:[#allocation6_spill] sm:$0xff] %v5347_v47  ;;  %v1151_v52 = vadd.f32 %v1119_v51, %v1053_v54  ;;  %v1315_v19 = vmul.f32 %v6740_v49, %v3734_v0  ;;  %v2003_v27 = vmul.f32 %v6509_v37, %v5347_v47  ;;  %v5358_v18 = vld [vmem:[#allocation2 + $0x10a] sm:$0xff] }
 0x16f   : > { %v1838_v53 = vadd.f32 %v1806_v12, %v1740_v42  ;;  %v544_v1 = vmul.f32 %v6741_v14, %v6539_v48  ;;  %v642_v63 = vmul.f32 %v6742_v44, %v3675_v40  ;;  %v3154_v16 = vadd.f32 %v3122_v41, %v6731_v24  ;;  %6743 = vst [vmem:[#allocation42_spill] sm:$0xff] %v5358_v18  ;;  %v6744_v60 = vld [vmem:[#allocation36_spill] sm:$0xff] }
 0x170   : > { %v2536_v22 = vadd.f32 %v2504_v39, %v2438_v46  ;;  %v1249_v51 = vadd.f32 %v1217_v36, %v1151_v52  ;;  %v1413_v50 = vmul.f32 %v6744_v60, %v3742_v4  ;;  %v2101_v61 = vmul.f32 %v3779_v23, %v5358_v18  ;;  %v5364_v54 = vld [vmem:[#allocation2 + $0x10b] sm:$0xff] }
 0x171   : > { %v1937_v12 = vadd.f32 %v1905_v29, %v1838_v53  ;;  %6745 = vst [vmem:[#allocation24_spill] sm:$0xff] %v5364_v54  ;;  %v576_v45 = vadd.f32 %v544_v1, %v478_v21  ;;  %v6746_v42 = vld [vmem:[#allocation32_spill] sm:$0xff]  ;;  %v2199_v24 = vmul.f32 %v3782_v25, %v5364_v54  ;;  %v5376_v53 = vld [vmem:[#allocation2 + $0x120] sm:$0xff]  ;;  %v6750_v1 = vld [vmem:[#allocation23_spill] sm:$0xff] }
 0x172   : > { %v740_v59 = vmul.f32 %v6746_v42, %v6540_v32  ;;  %v2634_v39 = vadd.f32 %v2602_v20, %v2536_v22  ;;  %v5370_v41 = vld [vmem:[#allocation2 + $0x10c] sm:$0xff]  ;;  %v1347_v36 = vadd.f32 %v1315_v19, %v1249_v51  ;;  %6749 = vst [vmem:[#allocation45_spill] sm:$0xff] %v5376_v53  ;;  %v2852_v21 = vld [vmem:[%s3586_s12 + $0x80] sm:$0xff]  ;;  %v838_v20 = vmul.f32 %v6750_v1, %v6545_v13 }
 0x173   : > { %6747 = vst [vmem:[#allocation38_spill] sm:$0xff] %v5370_v41  ;;  %v6748_v46 = vld [vmem:[#allocation40_spill] sm:$0xff]  ;;  %v2035_v29 = vadd.f32 %v2003_v27, %v1937_v12  ;;  %v2297_v49 = vmul.f32 %v6518_v30, %v5370_v41  ;;  %v674_v14 = vadd.f32 %v642_v63, %v576_v45  ;;  %v2396_v22 = vmul.f32 %v3793_v33, %v5376_v53  ;;  %v5383_v42 = vld [vmem:[#allocation2 + $0x121] sm:$0xff]  ;;  %v6753_v63 = vld [vmem:[#allocation33_spill] sm:$0xff] }
 0x174   : > { %v1511_v52 = vmul.f32 %v6748_v46, %v3745_v5  ;;  %v2732_v44 = vadd.f32 %v2700_v3, %v2634_v39  ;;  %6751 = vst [vmem:[#allocation16_spill] sm:$0xff] %v5383_v42  ;;  %v1445_v19 = vadd.f32 %v1413_v50, %v1347_v36  ;;  %v6752_v51 = vld [vmem:[#allocation43_spill] sm:$0xff]  ;;  %v2494_v41 = vmul.f32 %v6524_v2, %v5383_v42  ;;  %v3019_v36 = vpop.permute.xlu1 %3018  ;;  %v6759_v42 = vld [vmem:[#allocation14_spill] sm:$0xff] }
 0x175   : > { %v1609_v27 = vmul.f32 %v6752_v51, %v3752_v9  ;;  %v2133_v12 = vadd.f32 %v2101_v61, %v2035_v29  ;;  %v772_v54 = vadd.f32 %v740_v59, %v674_v14  ;;  %v937_v45 = vmul.f32 %v6753_v63, %v6549_v8  ;;  %v5391_v1 = vld [vmem:[#allocation2 + $0x122] sm:$0xff]  ;;  %v6757_v14 = vld [vmem:[#allocation25_spill] sm:$0xff] }
 0x176   : > { %v2830_v18 = vadd.f32 %v2798_v31, %v2732_v44  ;;  %6754 = vst [vmem:[#allocation46_spill] sm:$0xff] %v5391_v1  ;;  %v2888_v3 = vmul.f32 %v5128_v28, %v2852_v21  ;;  %v1543_v39 = vadd.f32 %v1511_v52, %v1445_v19  ;;  %v6755_v53 = vld [vmem:[#allocation47_spill] sm:$0xff]  ;;  %v2592_v61 = vmul.f32 %v6734_v34, %v5391_v1 }
 0x177   : > { %v1707_v50 = vmul.f32 %v6755_v53, %v3755_v10  ;;  %v2231_v15 = vadd.f32 %v2199_v24, %v2133_v12  ;;  %v5398_v29 = vld [vmem:[#allocation2 + $0x123] sm:$0xff]  ;;  %v870_v59 = vadd.f32 %v838_v20, %v772_v54  ;;  %v1035_v31 = vmul.f32 %v6757_v14, %v3719_v58  ;;  %v6761_v14 = vld [vmem:[#allocation44_spill] sm:$0xff] }
 0x178   : > { %6756 = vst [vmem:[#allocation11_spill] sm:$0xff] %v5398_v29  ;;  %v3186_v44 = vadd.f32 %v3154_v16, %v2830_v18  ;;  %v2690_v63 = vmul.f32 %v6737_v35, %v5398_v29  ;;  %v5404_v52 = vld [vmem:[#allocation2 + $0x124] sm:$0xff]  ;;  %v1641_v19 = vadd.f32 %v1609_v27, %v1543_v39  ;;  %v1805_v47 = vmul.f32 %v6759_v42, %v3758_v11 }
 0x179   : > { %6758 = vst [vmem:[#allocation51_spill] sm:$0xff] %v5404_v52  ;;  %v2329_v24 = vadd.f32 %v2297_v49, %v2231_v15  ;;  %v2788_v12 = vmul.f32 %v6592_v26, %v5404_v52  ;;  %v969_v1 = vadd.f32 %v937_v45, %v870_v59  ;;  %v6760_v54 = vld [vmem:[#allocation35_spill] sm:$0xff]  ;;  %v3112_v16 = vmul.f32 %v3019_v36, %v2888_v3  ;;  %v6762_v15 = vld [vmem:[#allocation21_spill] sm:$0xff]  ;;  %v6764_v3 = vld [vmem:[#allocation48_spill] sm:$0xff] }
 0x17a   : > { %v1133_v20 = vmul.f32 %v6760_v54, %v6732_v55  ;;  %3218 = vst.msk [vmem:[%s4163_s13 + $0xd0] sm:$0xff] %vm288_vm0, %v3186_v44  ;;  %v1739_v18 = vadd.f32 %v1707_v50, %v1641_v19  ;;  %v1904_v29 = vmul.f32 %v6761_v14, %v3768_v17  ;;  %v468_v27 = vmul.f32 %v6744_v60, %v6538_v62  ;;  %v5420_v52 = vld [vmem:[#allocation2 + $0x188] sm:$0xff]  ;;  %v6765_v36 = vld [vmem:[#allocation41_spill] sm:$0xff] }
 0x17b   : > { %v2428_v39 = vadd.f32 %v2396_v22, %v2329_v24  ;;  %v1067_v7 = vadd.f32 %v1035_v31, %v969_v1  ;;  %v1231_v49 = vmul.f32 %v6762_v15, %v6555_v57  ;;  %6763 = vst [vmem:[#allocation57_spill] sm:$0xff] %v5420_v52  ;;  %v534_v45 = vmul.f32 %v6748_v46, %v6539_v48  ;;  %v5430_v31 = vld [vmem:[#allocation2 + $0x189] sm:$0xff] }
 0x17c   : > { %v1837_v59 = vadd.f32 %v1805_v47, %v1739_v18  ;;  %v2002_v50 = vmul.f32 %v6764_v3, %v6509_v37  ;;  %v1329_v44 = vmul.f32 %v6765_v36, %v3734_v0  ;;  %v632_v60 = vmul.f32 %v6752_v51, %v3675_v40  ;;  %6766 = vst [vmem:[#allocation29_spill] sm:$0xff] %v5430_v31  ;;  %v6767_v47 = vld [vmem:[#allocation50_spill] sm:$0xff] }
 0x17d   : > { %v2526_v22 = vadd.f32 %v2494_v41, %v2428_v39  ;;  %v1165_v1 = vadd.f32 %v1133_v20, %v1067_v7  ;;  %v566_v19 = vadd.f32 %v534_v45, %v468_v27  ;;  %v730_v24 = vmul.f32 %v6755_v53, %v6540_v32  ;;  %v6769_v20 = vld [vmem:[#allocation17_spill] sm:$0xff]  ;;  %v5452_v45 = vld [vmem:[#allocation2 + $0x18b] sm:$0xff] }
 0x17e   : > { %v3144_v54 = vadd.f32 %v3112_v16, %v2852_v21  ;;  %v1936_v46 = vadd.f32 %v1904_v29, %v1837_v59  ;;  %v2100_v18 = vmul.f32 %v6767_v47, %v3779_v23  ;;  %v1427_v15 = vmul.f32 %v3742_v4, %v5420_v52  ;;  %v6770_v21 = vld [vmem:[#allocation53_spill] sm:$0xff]  ;;  %6771 = vst [vmem:[#allocation8_spill] sm:$0xff] %v5452_v45 }
 0x17f   : > { %v2624_v36 = vadd.f32 %v2592_v61, %v2526_v22  ;;  %v1263_v38 = vadd.f32 %v1231_v49, %v1165_v1  ;;  %v664_v41 = vadd.f32 %v632_v60, %v566_v19  ;;  %v828_v7 = vmul.f32 %v6759_v42, %v6545_v13  ;;  %v5448_v61 = vld [vmem:[#allocation2 + $0x110] sm:$0xff] }
 0x180   : > { %v2034_v51 = vadd.f32 %v2002_v50, %v1936_v46  ;;  %v2198_v53 = vmul.f32 %v6769_v20, %v3782_v25  ;;  %v2296_v29 = vmul.f32 %v6770_v21, %v6518_v30  ;;  %v1525_v16 = vmul.f32 %v3745_v5, %v5430_v31  ;;  %v5450_v39 = vld [vmem:[#allocation2 + $0x111] sm:$0xff] }
 0x181   : > { %v2722_v27 = vadd.f32 %v2690_v63, %v2624_v36  ;;  %v1361_v49 = vadd.f32 %v1329_v44, %v1263_v38  ;;  %v762_v42 = vadd.f32 %v730_v24, %v664_v41  ;;  %v927_v59 = vmul.f32 %v6761_v14, %v6549_v8  ;;  %v5460_v1 = vld [vmem:[#allocation2 + $0x112] sm:$0xff] }
 0x182   : > { %v2132_v50 = vadd.f32 %v2100_v18, %v2034_v51  ;;  %v2395_v60 = vmul.f32 %v3793_v33, %v5448_v61  ;;  %v2493_v22 = vmul.f32 %v6524_v2, %v5450_v39  ;;  %v1623_v63 = vmul.f32 %v3752_v9, %v5438_v6  ;;  %v5464_v38 = vld [vmem:[#allocation2 + $0x113] sm:$0xff] }
 0x183   : > { %v2820_v19 = vadd.f32 %v2788_v12, %v2722_v27  ;;  %6772 = vst [vmem:[#allocation37_spill] sm:$0xff] %v5464_v38  ;;  %v2851_v44 = vld [vmem:[%s3586_s12 + $0x78] sm:$0xff]  ;;  %v1459_v46 = vadd.f32 %v1427_v15, %v1361_v49  ;;  %v860_v36 = vadd.f32 %v828_v7, %v762_v42  ;;  %v1025_v14 = vmul.f32 %v6764_v3, %v3719_v58  ;;  %v5475_v27 = vld [vmem:[#allocation2 + $0x18c] sm:$0xff] }
 0x184   : > { %v2376_v24 = vld [vmem:[#allocation2 + $0x1b8] sm:$0xff]  ;;  %v2230_v18 = vadd.f32 %v2198_v53, %v2132_v50  ;;  %v2591_v41 = vmul.f32 %v6734_v34, %v5460_v1  ;;  %v2689_v51 = vmul.f32 %v6737_v35, %v5464_v38  ;;  %v1721_v12 = vmul.f32 %v3755_v10, %v5452_v45  ;;  %6773 = vst [vmem:[#allocation26_spill] sm:$0xff] %v5475_v27  ;;  %v1885_v34 = vld [vmem:[#allocation2 + $0x1a0] sm:$0xff] }
 0x185   : > { %v434_v6 = vld [vmem:[#allocation2 + $0xd8] sm:$0xff]  ;;  %v3176_v31 = vadd.f32 %v3144_v54, %v2820_v19  ;;  %v1557_v7 = vadd.f32 %v1525_v16, %v1459_v46  ;;  %v959_v49 = vadd.f32 %v927_v59, %v860_v36  ;;  %v1123_v3 = vmul.f32 %v6767_v47, %v6732_v55  ;;  %v3014_v54 = vpop.permute.xlu0 %3013  ;;  %v1983_v36 = vld [vmem:[#allocation2 + $0x1a1] sm:$0xff] }
 0x186   : > { %v5477_v15 = vld [vmem:[#allocation2 + $0x114] sm:$0xff]  ;;  %v2328_v50 = vadd.f32 %v2296_v29, %v2230_v18  ;;  %v2887_v35 = vmul.f32 %v5128_v28, %v2851_v44  ;;  %v5485_v45 = vmul.f32 %v3793_v33, %v2376_v24  ;;  %v1819_v59 = vmul.f32 %v3758_v11, %v5475_v27 }
 0x187   : > { %6774 = vst [vmem:[#allocation54_spill] sm:$0xff] %v5477_v15  ;;  %v500_v53 = vld [vmem:[#allocation2 + $0xd9] sm:$0xff]  ;;  %v2787_v52 = vmul.f32 %v6592_v26, %v5477_v15  ;;  %v1655_v16 = vadd.f32 %v1623_v63, %v1557_v7  ;;  %v1057_v47 = vadd.f32 %v1025_v14, %v959_v49  ;;  %v1221_v29 = vmul.f32 %v6769_v20, %v6555_v57 }
 0x188   : > { %v598_v42 = vld [vmem:[#allocation2 + $0xda] sm:$0xff]  ;;  %6775 = vst [vmem:[#allocation12_spill] sm:$0xff] %v5485_v45  ;;  %v2427_v46 = vadd.f32 %v2395_v60, %v2328_v50  ;;  %v467_v18 = vmul.f32 %v6538_v62, %v434_v6  ;;  %v533_v24 = vmul.f32 %v6539_v48, %v500_v53  ;;  %v1918_v63 = vmul.f32 %v3768_v17, %v1885_v34  ;;  %v2081_v45 = vld [vmem:[#allocation2 + $0x1a2] sm:$0xff] }
 0x189   : > { %3208 = vst.msk [vmem:[%s4163_s13 + $0x80] sm:$0xff] %vm288_vm0, %v3176_v31  ;;  %v696_v19 = vld [vmem:[#allocation2 + $0xdb] sm:$0xff]  ;;  %v631_v33 = vmul.f32 %v3675_v40, %v598_v42  ;;  %v1753_v31 = vadd.f32 %v1721_v12, %v1655_v16  ;;  %v1155_v7 = vadd.f32 %v1123_v3, %v1057_v47  ;;  %v1319_v14 = vmul.f32 %v6770_v21, %v3734_v0  ;;  %v2179_v3 = vld [vmem:[#allocation2 + $0x1a3] sm:$0xff] }
 0x18a   : > { %v2474_v26 = vld [vmem:[#allocation2 + $0x1b9] sm:$0xff]  ;;  %v2525_v27 = vadd.f32 %v2493_v22, %v2427_v46  ;;  %v3111_v20 = vmul.f32 %v3014_v54, %v2887_v35  ;;  %v565_v60 = vadd.f32 %v533_v24, %v467_v18  ;;  %v729_v50 = vmul.f32 %v6540_v32, %v696_v19  ;;  %v6776_v24 = vld [vmem:[#allocation39_spill] sm:$0xff] }
 0x18b   : > { %v794_v49 = vld [vmem:[#allocation2 + $0xdc] sm:$0xff]  ;;  %v1851_v6 = vadd.f32 %v1819_v59, %v1753_v31  ;;  %v2016_v53 = vmul.f32 %v6509_v37, %v1983_v36  ;;  %v1253_v48 = vadd.f32 %v1221_v29, %v1155_v7  ;;  %v1417_v12 = vmul.f32 %v5448_v61, %v3742_v4  ;;  %v2277_v29 = vld [vmem:[#allocation2 + $0x1a4] sm:$0xff] }
 0x18c   : > { %v2623_v42 = vadd.f32 %v2591_v41, %v2525_v27  ;;  %v2507_v34 = vmul.f32 %v6524_v2, %v2474_v26  ;;  %v663_v16 = vadd.f32 %v631_v33, %v565_v60  ;;  %v827_v21 = vmul.f32 %v6545_v13, %v794_v49  ;;  %v2572_v27 = vld [vmem:[#allocation2 + $0x1ba] sm:$0xff] }
 0x18d   : > { %v1950_v22 = vadd.f32 %v1918_v63, %v1851_v6  ;;  %v2114_v35 = vmul.f32 %v3779_v23, %v2081_v45  ;;  %v1351_v54 = vadd.f32 %v1319_v14, %v1253_v48  ;;  %v1515_v59 = vmul.f32 %v5450_v39, %v3745_v5  ;;  %v2670_v48 = vld [vmem:[#allocation2 + $0x1bb] sm:$0xff]  ;;  %v3084_v63 = vpop.permute.xlu2 %3083  ;;  %v6778_v6 = vld [vmem:[#allocation7_spill] sm:$0xff] }
 0x18e   : > { %v2721_v47 = vadd.f32 %v2689_v51, %v2623_v42  ;;  %v3143_v19 = vadd.f32 %v3111_v20, %v2851_v44  ;;  %v761_v46 = vadd.f32 %v729_v50, %v663_v16  ;;  %v926_v41 = vmul.f32 %v5271_v43, %v6549_v8  ;;  %v6777_v60 = vld [vmem:[#allocation30_spill] sm:$0xff] }
 0x18f   : > { %v2048_v26 = vadd.f32 %v2016_v53, %v1950_v22  ;;  %v2212_v33 = vmul.f32 %v3782_v25, %v2179_v3  ;;  %v1449_v36 = vadd.f32 %v1417_v12, %v1351_v54  ;;  %v1613_v18 = vmul.f32 %v5460_v1, %v3752_v9  ;;  %v6779_v12 = vld [vmem:[#allocation34_spill] sm:$0xff] }
 0x190   : > { %v2819_v45 = vadd.f32 %v2787_v52, %v2721_v47  ;;  %v2901_v31 = vmul.f32 %v5128_v28, %v6776_v24  ;;  %v859_v51 = vadd.f32 %v827_v21, %v761_v46  ;;  %v1024_v44 = vmul.f32 %v5273_v56, %v3719_v58  ;;  %v5526_v21 = vld [vmem:[#allocation2 + $0x128] sm:$0xff] }
 0x191   : > { %v2146_v43 = vadd.f32 %v2114_v35, %v2048_v26  ;;  %v2310_v7 = vmul.f32 %v6518_v30, %v2277_v29  ;;  %v1547_v14 = vadd.f32 %v1515_v59, %v1449_v36  ;;  %v1711_v49 = vmul.f32 %v5464_v38, %v3755_v10  ;;  %6780 = vst [vmem:[#allocation49_spill] sm:$0xff] %v5526_v21  ;;  %v6781_v59 = vld [vmem:[#allocation55_spill] sm:$0xff]  ;;  %v6785_v36 = vld [vmem:[#allocation6_spill] sm:$0xff] }
 0x192   : > { %v3175_v20 = vadd.f32 %v3143_v19, %v2819_v45  ;;  %v2605_v52 = vmul.f32 %v6777_v60, %v2572_v27  ;;  %v958_v50 = vadd.f32 %v926_v41, %v859_v51  ;;  %v1122_v53 = vmul.f32 %v6778_v6, %v6732_v55  ;;  %v2768_v19 = vld [vmem:[#allocation2 + $0x1bc] sm:$0xff]  ;;  %v5534_v41 = vld [vmem:[#allocation2 + $0x129] sm:$0xff] }
 0x193   : > { %v2703_v42 = vmul.f32 %v6779_v12, %v2670_v48  ;;  %v2244_v3 = vadd.f32 %v2212_v33, %v2146_v43  ;;  %v1645_v16 = vadd.f32 %v1613_v18, %v1547_v14  ;;  %v1809_v56 = vmul.f32 %v5477_v15, %v3758_v11  ;;  %6782 = vst [vmem:[#allocation20_spill] sm:$0xff] %v5534_v41  ;;  %v6783_v27 = vld [vmem:[#allocation15_spill] sm:$0xff]  ;;  %v6784_v33 = vld [vmem:[#allocation10_spill] sm:$0xff]  ;;  %v6788_v43 = vld [vmem:[#allocation12_spill] sm:$0xff] }
 0x194   : > { %3207 = vst.msk [vmem:[%s4163_s13 + $0x78] sm:$0xff] %vm288_vm0, %v3175_v20  ;;  %v3125_v22 = vmul.f32 %v3084_v63, %v2901_v31  ;;  %v1908_v35 = vmul.f32 %v3768_v17, %v5526_v21  ;;  %v1056_v54 = vadd.f32 %v1024_v44, %v958_v50  ;;  %v1220_v47 = vmul.f32 %v6781_v59, %v6555_v57  ;;  %v6786_v31 = vld [vmem:[#allocation9_spill] sm:$0xff]  ;;  %v6787_v44 = vld [vmem:[#allocation42_spill] sm:$0xff]  ;;  %v6790_v50 = vld [vmem:[#allocation24_spill] sm:$0xff] }
 0x195   : > { %v2342_v29 = vadd.f32 %v2310_v7, %v2244_v3  ;;  %v1743_v46 = vadd.f32 %v1711_v49, %v1645_v16  ;;  %v471_v26 = vmul.f32 %v6783_v27, %v6538_v62  ;;  %v537_v18 = vmul.f32 %v6785_v36, %v6784_v33  ;;  %v5547_v49 = vld [vmem:[#allocation2 + $0x12a] sm:$0xff] }
 0x196   : > { %v2006_v45 = vmul.f32 %v6509_v37, %v5534_v41  ;;  %v1154_v48 = vadd.f32 %v1122_v53, %v1056_v54  ;;  %v1318_v51 = vmul.f32 %v6786_v31, %v3734_v0  ;;  %v635_v63 = vmul.f32 %v6787_v44, %v3675_v40  ;;  %6789 = vst [vmem:[#allocation19_spill] sm:$0xff] %v5547_v49  ;;  %v6791_v3 = vld [vmem:[#allocation52_spill] sm:$0xff] }
 0x197   : > { %v2441_v7 = vadd.f32 %v6788_v43, %v2342_v29  ;;  %v1841_v14 = vadd.f32 %v1809_v56, %v1743_v46  ;;  %v569_v20 = vadd.f32 %v537_v18, %v471_v26  ;;  %v733_v6 = vmul.f32 %v6790_v50, %v6540_v32  ;;  %v5556_v29 = vld [vmem:[#allocation2 + $0x12b] sm:$0xff]  ;;  %v6793_v46 = vld [vmem:[#allocation38_spill] sm:$0xff] }
 0x198   : > { %v2801_v16 = vmul.f32 %v6791_v3, %v2768_v19  ;;  %v2104_v53 = vmul.f32 %v3779_v23, %v5547_v49  ;;  %v1252_v54 = vadd.f32 %v1220_v47, %v1154_v48  ;;  %v1416_v59 = vmul.f32 %v6783_v27, %v3742_v4  ;;  %6792 = vst [vmem:[#allocation18_spill] sm:$0xff] %v5556_v29  ;;  %v5565_v27 = vld [vmem:[#allocation2 + $0x12c] sm:$0xff] }
 0x199   : > { %v2539_v31 = vadd.f32 %v2507_v34, %v2441_v7  ;;  %v1940_v15 = vadd.f32 %v1908_v35, %v1841_v14  ;;  %v667_v56 = vadd.f32 %v635_v63, %v569_v20  ;;  %v831_v26 = vmul.f32 %v6793_v46, %v6545_v13  ;;  %6794 = vst [vmem:[#allocation31_spill] sm:$0xff] %v5565_v27  ;;  %v5567_v34 = vld [vmem:[#allocation2 + $0x140] sm:$0xff]  ;;  %v5570_v35 = vld [vmem:[%s3586_s12 + $0x98] sm:$0xff] }
 0x19a   : > { %v3157_v18 = vadd.f32 %v3125_v22, %v6776_v24  ;;  %v2202_v19 = vmul.f32 %v3782_v25, %v5556_v29  ;;  %v1350_v43 = vadd.f32 %v1318_v51, %v1252_v54  ;;  %v1514_v47 = vmul.f32 %v6785_v36, %v3745_v5  ;;  %6795 = vst [vmem:[#allocation28_spill] sm:$0xff] %v5567_v34  ;;  %v6796_v7 = vld [vmem:[#allocation45_spill] sm:$0xff]  ;;  %v6797_v22 = vld [vmem:[#allocation27_spill] sm:$0xff] }
 0x19b   : > { %v2637_v48 = vadd.f32 %v2605_v52, %v2539_v31  ;;  %v2038_v49 = vadd.f32 %v2006_v45, %v1940_v15  ;;  %v765_v63 = vadd.f32 %v733_v6, %v667_v56  ;;  %v930_v14 = vmul.f32 %v6796_v7, %v6549_v8  ;;  %v5580_v45 = vld [vmem:[#allocation2 + $0x141] sm:$0xff]  ;;  %v6799_v6 = vld [vmem:[#allocation16_spill] sm:$0xff] }
 0x19c   : > { %v2300_v24 = vmul.f32 %v6518_v30, %v5565_v27  ;;  %v2399_v51 = vmul.f32 %v6797_v22, %v5567_v34  ;;  %v1448_v20 = vadd.f32 %v1416_v59, %v1350_v43  ;;  %v1612_v15 = vmul.f32 %v6787_v44, %v3752_v9  ;;  %6798 = vst [vmem:[#allocation22_spill] sm:$0xff] %v5580_v45  ;;  %v3034_v44 = vpop.permute.xlu1 %3033  ;;  %v437_v34 = vld [vmem:[#allocation2 + $0xf8] sm:$0xff] }
 0x19d   : > { %v2735_v52 = vadd.f32 %v2703_v42, %v2637_v48  ;;  %v2136_v36 = vadd.f32 %v2104_v53, %v2038_v49  ;;  %v863_v54 = vadd.f32 %v831_v26, %v765_v63  ;;  %v1028_v31 = vmul.f32 %v6799_v6, %v3719_v58  ;;  %v5590_v49 = vld [vmem:[#allocation2 + $0x142] sm:$0xff] }
 0x19e   : > { %v2497_v56 = vmul.f32 %v6524_v2, %v5580_v45  ;;  %v2891_v27 = vmul.f32 %v5128_v28, %v5570_v35  ;;  %v1546_v29 = vadd.f32 %v1514_v47, %v1448_v20  ;;  %v1710_v59 = vmul.f32 %v6790_v50, %v3755_v10  ;;  %6800 = vst [vmem:[#allocation13_spill] sm:$0xff] %v5590_v49  ;;  %v5592_v53 = vld [vmem:[#allocation2 + $0x143] sm:$0xff]  ;;  %v601_v45 = vld [vmem:[#allocation2 + $0xfa] sm:$0xff] }
 0x19f   : > { %v2833_v43 = vadd.f32 %v2801_v16, %v2735_v52  ;;  %v2234_v42 = vadd.f32 %v2202_v19, %v2136_v36  ;;  %6801 = vst [vmem:[#allocation36_spill] sm:$0xff] %v5592_v53  ;;  %v962_v26 = vadd.f32 %v930_v14, %v863_v54  ;;  %v6802_v48 = vld [vmem:[#allocation46_spill] sm:$0xff]  ;;  %v2595_v28 = vmul.f32 %v6777_v60, %v5590_v49  ;;  %v6803_v14 = vld [vmem:[#allocation11_spill] sm:$0xff] }
 0x1a0   : > { %v1126_v63 = vmul.f32 %v6802_v48, %v6732_v55  ;;  %v2693_v47 = vmul.f32 %v6779_v12, %v5592_v53  ;;  %v1644_v50 = vadd.f32 %v1612_v15, %v1546_v29  ;;  %v1808_v16 = vmul.f32 %v6793_v46, %v3758_v11  ;;  %v503_v19 = vld [vmem:[#allocation2 + $0xf9] sm:$0xff] }
 0x1a1   : > { %v3189_v20 = vadd.f32 %v3157_v18, %v2833_v43  ;;  %v2332_v52 = vadd.f32 %v2300_v24, %v2234_v42  ;;  %v1060_v36 = vadd.f32 %v1028_v31, %v962_v26  ;;  %v1224_v54 = vmul.f32 %v6803_v14, %v6555_v57  ;;  %v699_v53 = vld [vmem:[#allocation2 + $0xfb] sm:$0xff]  ;;  %v6804_v24 = vld [vmem:[#allocation51_spill] sm:$0xff] }
 0x1a2   : > { %v3115_v41 = vmul.f32 %v3034_v44, %v2891_v27  ;;  %v1742_v21 = vadd.f32 %v1710_v59, %v1644_v50  ;;  %v1907_v49 = vmul.f32 %v6796_v7, %v3768_v17  ;;  %v470_v38 = vmul.f32 %v6538_v62, %v437_v34  ;;  %v5609_v46 = vld [vmem:[#allocation2 + $0x138] sm:$0xff]  ;;  %v5619_v44 = vld [vmem:[#allocation2 + $0x144] sm:$0xff] }
 0x1a3   : > { %3221 = vst.msk [vmem:[%s4163_s13 + $0xe8] sm:$0xff] %vm288_vm0, %v3189_v20  ;;  %v2431_v29 = vadd.f32 %v2399_v51, %v2332_v52  ;;  %v1158_v18 = vadd.f32 %v1126_v63, %v1060_v36  ;;  %v1322_v15 = vmul.f32 %v6804_v24, %v3734_v0  ;;  %v536_v31 = vmul.f32 %v6784_v33, %v503_v19  ;;  %v797_v59 = vld [vmem:[#allocation2 + $0xfc] sm:$0xff]  ;;  %v2854_v20 = vld [vmem:[%s3586_s12 + $0x90] sm:$0xff] }
 0x1a4   : > { %v1840_v43 = vadd.f32 %v1808_v16, %v1742_v21  ;;  %v2005_v27 = vmul.f32 %v6799_v6, %v6509_v37  ;;  %v1420_v34 = vmul.f32 %v5609_v46, %v3742_v4  ;;  %v634_v7 = vmul.f32 %v3675_v40, %v601_v45  ;;  %v5621_v42 = vld [vmem:[#allocation2 + $0x139] sm:$0xff] }
 0x1a5   : > { %v2529_v51 = vadd.f32 %v2497_v56, %v2431_v29  ;;  %v1256_v26 = vadd.f32 %v1224_v54, %v1158_v18  ;;  %v568_v63 = vadd.f32 %v536_v31, %v470_v38  ;;  %v732_v50 = vmul.f32 %v6540_v32, %v699_v53  ;;  %v5630_v56 = vld [vmem:[#allocation2 + $0x13a] sm:$0xff] }
 0x1a6   : > { %v2791_v21 = vmul.f32 %v6791_v3, %v5619_v44  ;;  %v1939_v6 = vadd.f32 %v1907_v49, %v1840_v43  ;;  %v2103_v16 = vmul.f32 %v6802_v48, %v3779_v23  ;;  %v1518_v45 = vmul.f32 %v5621_v42, %v3745_v5  ;;  %v5639_v18 = vld [vmem:[#allocation2 + $0x13b] sm:$0xff] }
 0x1a7   : > { %v2627_v19 = vadd.f32 %v2595_v28, %v2529_v51  ;;  %v1354_v52 = vadd.f32 %v1322_v15, %v1256_v26  ;;  %v666_v36 = vadd.f32 %v634_v7, %v568_v63  ;;  %v830_v38 = vmul.f32 %v6545_v13, %v797_v59  ;;  %v5651_v59 = vld [vmem:[#allocation2 + $0x13c] sm:$0xff] }
 0x1a8   : > { %v3147_v53 = vadd.f32 %v3115_v41, %v5570_v35  ;;  %v2037_v54 = vadd.f32 %v2005_v27, %v1939_v6  ;;  %v2201_v49 = vmul.f32 %v6803_v14, %v3782_v25  ;;  %v1616_v48 = vmul.f32 %v5630_v56, %v3752_v9  ;;  %v5646_v41 = vld [vmem:[%s3528_s27] ss:$0 sm:$0xff]  ;;  %6805 = vst [vmem:[#allocation32_spill] sm:$0xff] %v5651_v59 }
 0x1a9   : > { %v2725_v29 = vadd.f32 %v2693_v47, %v2627_v19  ;;  %v1452_v28 = vadd.f32 %v1420_v34, %v1354_v52  ;;  %v764_v31 = vadd.f32 %v732_v50, %v666_v36  ;;  %v929_v15 = vmul.f32 %v5448_v61, %v6549_v8  ;;  %v3029_v47 = vpop.permute.xlu0 %3028 }
 0x1aa   : > { %v2135_v43 = vadd.f32 %v2103_v16, %v2037_v54  ;;  %v2299_v7 = vmul.f32 %v6804_v24, %v6518_v30  ;;  %v2890_v35 = vmul.f32 %v5646_v41, %v2854_v20  ;;  %v1714_v14 = vmul.f32 %v5639_v18, %v3755_v10 }
 0x1ab   : > { %v2823_v27 = vadd.f32 %v2791_v21, %v2725_v29  ;;  %v1550_v34 = vadd.f32 %v1518_v45, %v1452_v28  ;;  %v862_v51 = vadd.f32 %v830_v38, %v764_v31  ;;  %v1027_v61 = vmul.f32 %v5450_v39, %v3719_v58  ;;  %v5667_v38 = vld [vmem:[#allocation2 + $0x150] sm:$0xff]  ;;  %v6809_v31 = vld [vmem:[#allocation49_spill] sm:$0xff] }
 0x1ac   : > { %v2233_v26 = vadd.f32 %v2201_v49, %v2135_v43  ;;  %v2398_v24 = vmul.f32 %v6797_v22, %v5609_v46  ;;  %v2496_v63 = vmul.f32 %v6524_v2, %v5621_v42  ;;  %v1812_v50 = vmul.f32 %v5651_v59, %v3758_v11  ;;  %6806 = vst [vmem:[#allocation40_spill] sm:$0xff] %v5667_v38  ;;  %v5675_v28 = vld [vmem:[#allocation2 + $0x151] sm:$0xff] }
 0x1ad   : > { %v3179_v21 = vadd.f32 %v3147_v53, %v2823_v27  ;;  %v1648_v6 = vadd.f32 %v1616_v48, %v1550_v34  ;;  %v961_v16 = vadd.f32 %v929_v15, %v862_v51  ;;  %v1125_v45 = vmul.f32 %v5460_v1, %v6732_v55  ;;  %v6807_v48 = vld [vmem:[#allocation37_spill] sm:$0xff]  ;;  %6808 = vst [vmem:[#allocation23_spill] sm:$0xff] %v5675_v28  ;;  %v6810_v43 = vld [vmem:[#allocation20_spill] sm:$0xff]  ;;  %v6812_v51 = vld [vmem:[#allocation54_spill] sm:$0xff] }
 0x1ae   : > { %v2331_v19 = vadd.f32 %v2299_v7, %v2233_v26  ;;  %v2594_v39 = vmul.f32 %v6777_v60, %v5630_v56  ;;  %v2692_v52 = vmul.f32 %v6779_v12, %v5639_v18  ;;  %v3114_v36 = vmul.f32 %v3029_v47, %v2890_v35  ;;  %v6811_v35 = vld [vmem:[#allocation19_spill] sm:$0xff] }
 0x1af   : > { %3211 = vst.msk [vmem:[%s4163_s13 + $0x98] sm:$0xff] %vm288_vm0, %v3179_v21  ;;  %v1746_v54 = vadd.f32 %v1714_v14, %v1648_v6  ;;  %v1911_v53 = vmul.f32 %v3768_v17, %v5667_v38  ;;  %v1059_v49 = vadd.f32 %v1027_v61, %v961_v16  ;;  %v1223_v1 = vmul.f32 %v6807_v48, %v6555_v57  ;;  %v5689_v21 = vld [vmem:[#allocation2 + $0x152] sm:$0xff]  ;;  %v6814_v16 = vld [vmem:[#allocation18_spill] sm:$0xff] }
 0x1b0   : > { %v2430_v29 = vadd.f32 %v2398_v24, %v2331_v19  ;;  %v474_v15 = vmul.f32 %v6809_v31, %v6538_v62  ;;  %v540_v7 = vmul.f32 %v6810_v43, %v6784_v33  ;;  %v638_v27 = vmul.f32 %v6811_v35, %v3675_v40  ;;  %6813 = vst [vmem:[#allocation43_spill] sm:$0xff] %v5689_v21  ;;  %v702_v38 = vld [vmem:[#allocation2 + $0x123] sm:$0xff] }
 0x1b1   : > { %v1844_v14 = vadd.f32 %v1812_v50, %v1746_v54  ;;  %v2009_v47 = vmul.f32 %v6509_v37, %v5675_v28  ;;  %v1157_v34 = vadd.f32 %v1125_v45, %v1059_v49  ;;  %v1321_v61 = vmul.f32 %v6812_v51, %v3734_v0 }
 0x1b2   : > { %v2528_v26 = vadd.f32 %v2496_v63, %v2430_v29  ;;  %v2790_v24 = vmul.f32 %v6791_v3, %v5651_v59  ;;  %v572_v6 = vadd.f32 %v540_v7, %v474_v15  ;;  %v736_v19 = vmul.f32 %v6814_v16, %v6540_v32  ;;  %v5697_v29 = vld [vmem:[#allocation2 + $0x153] sm:$0xff]  ;;  %v6816_v59 = vld [vmem:[#allocation31_spill] sm:$0xff] }
 0x1b3   : > { %v1943_v48 = vadd.f32 %v1911_v53, %v1844_v14  ;;  %v2107_v50 = vmul.f32 %v3779_v23, %v5689_v21  ;;  %v1255_v54 = vadd.f32 %v1223_v1, %v1157_v34  ;;  %v1419_v45 = vmul.f32 %v6809_v31, %v3742_v4  ;;  %6815 = vst [vmem:[#allocation33_spill] sm:$0xff] %v5697_v29  ;;  %v5703_v53 = vld [vmem:[#allocation2 + $0x154] sm:$0xff] }
 0x1b4   : > { %v2626_v49 = vadd.f32 %v2594_v39, %v2528_v26  ;;  %v3146_v63 = vadd.f32 %v3114_v36, %v2854_v20  ;;  %v670_v51 = vadd.f32 %v638_v27, %v572_v6  ;;  %v834_v28 = vmul.f32 %v6816_v59, %v6545_v13  ;;  %6817 = vst [vmem:[#allocation47_spill] sm:$0xff] %v5703_v53  ;;  %v5706_v14 = vld [vmem:[%s3586_s12 + $0xb0] sm:$0xff]  ;;  %v5712_v36 = vld [vmem:[#allocation2 + $0x168] sm:$0xff] }
 0x1b5   : > { %v2041_v15 = vadd.f32 %v2009_v47, %v1943_v48  ;;  %v2205_v7 = vmul.f32 %v3782_v25, %v5697_v29  ;;  %v1353_v1 = vadd.f32 %v1321_v61, %v1255_v54  ;;  %v1517_v31 = vmul.f32 %v6810_v43, %v3745_v5  ;;  %6818 = vst [vmem:[#allocation25_spill] sm:$0xff] %v5712_v36  ;;  %v6819_v47 = vld [vmem:[#allocation28_spill] sm:$0xff] }
 0x1b6   : > { %v2724_v39 = vadd.f32 %v2692_v52, %v2626_v49  ;;  %v2303_v20 = vmul.f32 %v6518_v30, %v5703_v53  ;;  %v768_v27 = vadd.f32 %v736_v19, %v670_v51  ;;  %v933_v34 = vmul.f32 %v6819_v47, %v6549_v8  ;;  %v5720_v43 = vld [vmem:[#allocation2 + $0x169] sm:$0xff]  ;;  %v6821_v19 = vld [vmem:[#allocation22_spill] sm:$0xff]  ;;  %v3049_v53 = vpop.permute.xlu1 %3048 }
 0x1b7   : > { %v2139_v26 = vadd.f32 %v2107_v50, %v2041_v15  ;;  %v2402_v6 = vmul.f32 %v6797_v22, %v5712_v36  ;;  %v1451_v48 = vadd.f32 %v1419_v45, %v1353_v1  ;;  %v1615_v61 = vmul.f32 %v6811_v35, %v3752_v9  ;;  %6820 = vst [vmem:[#allocation14_spill] sm:$0xff] %v5720_v43  ;;  %v5728_v45 = vld [vmem:[#allocation2 + $0x16a] sm:$0xff]  ;;  %v506_v36 = vld [vmem:[#allocation2 + $0x121] sm:$0xff] }
 0x1b8   : > { %v2822_v54 = vadd.f32 %v2790_v24, %v2724_v39  ;;  %v2894_v52 = vmul.f32 %v5646_v41, %v5706_v14  ;;  %v866_v49 = vadd.f32 %v834_v28, %v768_v27  ;;  %v1031_v51 = vmul.f32 %v6821_v19, %v3719_v58  ;;  %6822 = vst [vmem:[#allocation35_spill] sm:$0xff] %v5728_v45  ;;  %v5734_v28 = vld [vmem:[#allocation2 + $0x16b] sm:$0xff]  ;;  %v6824_v27 = vld [vmem:[#allocation13_spill] sm:$0xff] }
 0x1b9   : > { %v2237_v29 = vadd.f32 %v2205_v7, %v2139_v26  ;;  %v2500_v50 = vmul.f32 %v6524_v2, %v5720_v43  ;;  %v1549_v15 = vadd.f32 %v1517_v31, %v1451_v48  ;;  %v1713_v35 = vmul.f32 %v6814_v16, %v3755_v10  ;;  %6823 = vst [vmem:[#allocation44_spill] sm:$0xff] %v5734_v28  ;;  %v440_v26 = vld [vmem:[#allocation2 + $0x120] sm:$0xff] }
 0x1ba   : > { %v3178_v24 = vadd.f32 %v3146_v63, %v2822_v54  ;;  %v2598_v1 = vmul.f32 %v6777_v60, %v5728_v45  ;;  %v965_v39 = vadd.f32 %v933_v34, %v866_v49  ;;  %v1129_v7 = vmul.f32 %v6824_v27, %v6732_v55  ;;  %v604_v63 = vld [vmem:[#allocation2 + $0x122] sm:$0xff]  ;;  %v6825_v49 = vld [vmem:[#allocation36_spill] sm:$0xff] }
 0x1bb   : > { %v2335_v43 = vadd.f32 %v2303_v20, %v2237_v29  ;;  %v2696_v21 = vmul.f32 %v6779_v12, %v5734_v28  ;;  %v1647_v31 = vadd.f32 %v1615_v61, %v1549_v15  ;;  %v1811_v16 = vmul.f32 %v6816_v59, %v3758_v11 }
 0x1bc   : > { %3210 = vst.msk [vmem:[%s4163_s13 + $0x90] sm:$0xff] %vm288_vm0, %v3178_v24  ;;  %v3118_v48 = vmul.f32 %v3049_v53, %v2894_v52  ;;  %v1910_v34 = vmul.f32 %v6819_v47, %v3768_v17  ;;  %v1063_v54 = vadd.f32 %v1031_v51, %v965_v39  ;;  %v1227_v45 = vmul.f32 %v6825_v49, %v6555_v57  ;;  %v800_v51 = vld [vmem:[#allocation2 + $0x124] sm:$0xff]  ;;  %v5755_v39 = vld [vmem:[#allocation2 + $0x16c] sm:$0xff] }
 0x1bd   : > { %v2434_v29 = vadd.f32 %v2402_v6, %v2335_v43  ;;  %v1745_v20 = vadd.f32 %v1713_v35, %v1647_v31  ;;  %v473_v28 = vmul.f32 %v6538_v62, %v440_v26  ;;  %v539_v61 = vmul.f32 %v6784_v33, %v506_v36  ;;  %v5757_v6 = vld [vmem:[#allocation2 + $0x158] sm:$0xff] }
 0x1be   : > { %v2008_v59 = vmul.f32 %v6821_v19, %v6509_v37  ;;  %v1161_v15 = vadd.f32 %v1129_v7, %v1063_v54  ;;  %v1325_v53 = vmul.f32 %v5619_v44, %v3734_v0  ;;  %v637_v52 = vmul.f32 %v3675_v40, %v604_v63  ;;  %v5766_v54 = vld [vmem:[#allocation2 + $0x159] sm:$0xff] }
 0x1bf   : > { %v2532_v24 = vadd.f32 %v2500_v50, %v2434_v29  ;;  %v1843_v47 = vadd.f32 %v1811_v16, %v1745_v20  ;;  %v571_v43 = vadd.f32 %v539_v61, %v473_v28  ;;  %v735_v35 = vmul.f32 %v6540_v32, %v702_v38 }
 0x1c0   : > { %v2794_v36 = vmul.f32 %v6791_v3, %v5755_v39  ;;  %v2106_v7 = vmul.f32 %v6824_v27, %v3779_v23  ;;  %v1259_v26 = vadd.f32 %v1227_v45, %v1161_v15  ;;  %v1423_v31 = vmul.f32 %v5757_v6, %v3742_v4  ;;  %v5774_v27 = vld [vmem:[#allocation2 + $0x15a] sm:$0xff] }
 0x1c1   : > { %v2630_v50 = vadd.f32 %v2598_v1, %v2532_v24  ;;  %v1942_v63 = vadd.f32 %v1910_v34, %v1843_v47  ;;  %v669_v16 = vadd.f32 %v637_v52, %v571_v43  ;;  %v833_v28 = vmul.f32 %v6545_v13, %v800_v51  ;;  %6826 = vst [vmem:[#allocation21_spill] sm:$0xff] %v5774_v27  ;;  %v2857_v1 = vld [vmem:[%s3586_s12 + $0xa8] sm:$0xff] }
 0x1c2   : > { %v3150_v38 = vadd.f32 %v3118_v48, %v5706_v14  ;;  %v2204_v29 = vmul.f32 %v6825_v49, %v3782_v25  ;;  %v1357_v20 = vadd.f32 %v1325_v53, %v1259_v26  ;;  %v1521_v61 = vmul.f32 %v5766_v54, %v3745_v5 }
 0x1c3   : > { %v2728_v45 = vadd.f32 %v2696_v21, %v2630_v50  ;;  %v2040_v15 = vadd.f32 %v2008_v59, %v1942_v63  ;;  %v767_v47 = vadd.f32 %v735_v35, %v669_v16  ;;  %v932_v34 = vmul.f32 %v5609_v46, %v6549_v8  ;;  %v5785_v59 = vld [vmem:[#allocation2 + $0x15b] sm:$0xff] }
 0x1c4   : > { %v2302_v52 = vmul.f32 %v5619_v44, %v6518_v30  ;;  %v2401_v14 = vmul.f32 %v6797_v22, %v5757_v6  ;;  %v1455_v48 = vadd.f32 %v1423_v31, %v1357_v20  ;;  %v1619_v53 = vmul.f32 %v5774_v27, %v3752_v9  ;;  %6827 = vst [vmem:[#allocation48_spill] sm:$0xff] %v5785_v59 }
 0x1c5   : > { %v2826_v51 = vadd.f32 %v2794_v36, %v2728_v45  ;;  %v2138_v21 = vadd.f32 %v2106_v7, %v2040_v15  ;;  %v865_v24 = vadd.f32 %v833_v28, %v767_v47  ;;  %v1030_v43 = vmul.f32 %v5621_v42, %v3719_v58  ;;  %v5794_v36 = vld [vmem:[#allocation2 + $0x15c] sm:$0xff]  ;;  %v3044_v28 = vpop.permute.xlu0 %3043  ;;  %v5808_v15 = vld [vmem:[#allocation2 + $0x170] sm:$0xff] }
 0x1c6   : > { %v2499_v46 = vmul.f32 %v6524_v2, %v5766_v54  ;;  %v2893_v35 = vmul.f32 %v5646_v41, %v2857_v1  ;;  %v1553_v26 = vadd.f32 %v1521_v61, %v1455_v48  ;;  %v1717_v31 = vmul.f32 %v5785_v59, %v3755_v10  ;;  %6828 = vst [vmem:[#allocation41_spill] sm:$0xff] %v5794_v36 }
 0x1c7   : > { %v3182_v50 = vadd.f32 %v3150_v38, %v2826_v51  ;;  %v2236_v63 = vadd.f32 %v2204_v29, %v2138_v21  ;;  %v964_v7 = vadd.f32 %v932_v34, %v865_v24  ;;  %v1128_v16 = vmul.f32 %v5630_v56, %v6732_v55  ;;  %6829 = vst [vmem:[#allocation50_spill] sm:$0xff] %v5808_v15  ;;  %v6831_v21 = vld [vmem:[#allocation23_spill] sm:$0xff] }
 0x1c8   : > { %v2597_v42 = vmul.f32 %v6777_v60, %v5774_v27  ;;  %v2695_v20 = vmul.f32 %v6779_v12, %v5785_v59  ;;  %v1651_v45 = vadd.f32 %v1619_v53, %v1553_v26  ;;  %v1815_v61 = vmul.f32 %v5794_v36, %v3758_v11  ;;  %v6830_v53 = vld [vmem:[#allocation40_spill] sm:$0xff] }
 0x1c9   : > { %3214 = vst.msk [vmem:[%s4163_s13 + $0xb0] sm:$0xff] %vm288_vm0, %v3182_v50  ;;  %v2334_v38 = vadd.f32 %v2302_v52, %v2236_v63  ;;  %v2793_v29 = vmul.f32 %v6791_v3, %v5794_v36  ;;  %v1062_v56 = vadd.f32 %v1030_v43, %v964_v7  ;;  %v1226_v47 = vmul.f32 %v5639_v18, %v6555_v57  ;;  %v5818_v50 = vld [vmem:[#allocation2 + $0x171] sm:$0xff] }
 0x1ca   : > { %v1749_v34 = vadd.f32 %v1717_v31, %v1651_v45  ;;  %v1914_v48 = vmul.f32 %v3768_v17, %v5808_v15  ;;  %v477_v51 = vmul.f32 %v6830_v53, %v6538_v62  ;;  %v543_v24 = vmul.f32 %v6831_v21, %v6784_v33  ;;  %6832 = vst [vmem:[#allocation17_spill] sm:$0xff] %v5818_v50  ;;  %v6833_v43 = vld [vmem:[#allocation32_spill] sm:$0xff]  ;;  %v6834_v45 = vld [vmem:[#allocation43_spill] sm:$0xff] }
 0x1cb   : > { %v2433_v52 = vadd.f32 %v2401_v14, %v2334_v38  ;;  %v3117_v26 = vmul.f32 %v3044_v28, %v2893_v35  ;;  %v1160_v63 = vadd.f32 %v1128_v16, %v1062_v56  ;;  %v1324_v7 = vmul.f32 %v6833_v43, %v3734_v0  ;;  %v5826_v27 = vld [vmem:[#allocation2 + $0x172] sm:$0xff] }
 0x1cc   : > { %v1847_v36 = vadd.f32 %v1815_v61, %v1749_v34  ;;  %v2012_v18 = vmul.f32 %v6509_v37, %v5818_v50  ;;  %v575_v31 = vadd.f32 %v543_v24, %v477_v51  ;;  %v641_v15 = vmul.f32 %v6834_v45, %v3675_v40  ;;  %6835 = vst [vmem:[#allocation53_spill] sm:$0xff] %v5826_v27  ;;  %v6836_v16 = vld [vmem:[#allocation33_spill] sm:$0xff]  ;;  %v6837_v34 = vld [vmem:[#allocation47_spill] sm:$0xff] }
 0x1cd   : > { %v2531_v59 = vadd.f32 %v2499_v46, %v2433_v52  ;;  %v1258_v14 = vadd.f32 %v1226_v47, %v1160_v63  ;;  %v1422_v35 = vmul.f32 %v6830_v53, %v3742_v4  ;;  %v739_v28 = vmul.f32 %v6836_v16, %v6540_v32  ;;  %v5836_v52 = vld [vmem:[#allocation2 + $0x173] sm:$0xff] }
 0x1ce   : > { %v1946_v38 = vadd.f32 %v1914_v48, %v1847_v36  ;;  %v2110_v61 = vmul.f32 %v3779_v23, %v5826_v27  ;;  %v673_v56 = vadd.f32 %v641_v15, %v575_v31  ;;  %v837_v51 = vmul.f32 %v6837_v34, %v6545_v13  ;;  %6838 = vst [vmem:[#allocation39_spill] sm:$0xff] %v5836_v52  ;;  %v5842_v36 = vld [vmem:[#allocation2 + $0x174] sm:$0xff]  ;;  %v2861_v48 = vld [vmem:[%s3586_s12 + $0xc8] sm:$0xff] }
 0x1cf   : > { %v2629_v24 = vadd.f32 %v2597_v42, %v2531_v59  ;;  %v3149_v46 = vadd.f32 %v3117_v26, %v2857_v1  ;;  %v1356_v43 = vadd.f32 %v1324_v7, %v1258_v14  ;;  %v1520_v47 = vmul.f32 %v6831_v21, %v3745_v5  ;;  %6839 = vst [vmem:[#allocation30_spill] sm:$0xff] %v5842_v36  ;;  %v6840_v15 = vld [vmem:[#allocation25_spill] sm:$0xff]  ;;  %v6842_v14 = vld [vmem:[#allocation14_spill] sm:$0xff] }
 0x1d0   : > { %v2044_v53 = vadd.f32 %v2012_v18, %v1946_v38  ;;  %v2208_v63 = vmul.f32 %v3782_v25, %v5836_v52  ;;  %v771_v27 = vadd.f32 %v739_v28, %v673_v56  ;;  %v936_v31 = vmul.f32 %v6840_v15, %v6549_v8  ;;  %v6841_v26 = vld [vmem:[#allocation57_spill] sm:$0xff]  ;;  %v6846_v52 = vld [vmem:[#allocation8_spill] sm:$0xff] }
 0x1d1   : > { %v2727_v50 = vadd.f32 %v2695_v20, %v2629_v24  ;;  %v2306_v1 = vmul.f32 %v6518_v30, %v5842_v36  ;;  %v1454_v59 = vadd.f32 %v1422_v35, %v1356_v43  ;;  %v1618_v42 = vmul.f32 %v6834_v45, %v3752_v9  ;;  %v3064_v35 = vpop.permute.xlu1 %3063  ;;  %v6843_v36 = vld [vmem:[#allocation29_spill] sm:$0xff] }
 0x1d2   : > { %v2142_v21 = vadd.f32 %v2110_v61, %v2044_v53  ;;  %v2405_v7 = vmul.f32 %v6797_v22, %v6841_v26  ;;  %v869_v18 = vadd.f32 %v837_v51, %v771_v27  ;;  %v1034_v38 = vmul.f32 %v6842_v14, %v3719_v58  ;;  %v6844_v53 = vld [vmem:[#allocation35_spill] sm:$0xff]  ;;  %v6845_v26 = vld [vmem:[#allocation56_spill] sm:$0xff] }
 0x1d3   : > { %v2825_v28 = vadd.f32 %v2793_v29, %v2727_v50  ;;  %v2897_v56 = vmul.f32 %v5646_v41, %v2861_v48  ;;  %v1552_v20 = vadd.f32 %v1520_v47, %v1454_v59  ;;  %v1716_v24 = vmul.f32 %v6836_v16, %v3755_v10 }
 0x1d4   : > { %v2240_v43 = vadd.f32 %v2208_v63, %v2142_v21  ;;  %v2503_v45 = vmul.f32 %v6524_v2, %v6843_v36  ;;  %v968_v61 = vadd.f32 %v936_v31, %v869_v18  ;;  %v1132_v27 = vmul.f32 %v6844_v53, %v6732_v55  ;;  %v6847_v21 = vld [vmem:[#allocation44_spill] sm:$0xff] }
 0x1d5   : > { %v3181_v51 = vadd.f32 %v3149_v46, %v2825_v28  ;;  %v2601_v29 = vmul.f32 %v6777_v60, %v6845_v26  ;;  %v1650_v50 = vadd.f32 %v1618_v42, %v1552_v20  ;;  %v1814_v47 = vmul.f32 %v6837_v34, %v3758_v11  ;;  %v5876_v34 = vld [vmem:[#allocation2 + $0x180] sm:$0xff] }
 0x1d6   : > { %v2338_v59 = vadd.f32 %v2306_v1, %v2240_v43  ;;  %v2699_v16 = vmul.f32 %v6779_v12, %v6846_v52  ;;  %v1066_v63 = vadd.f32 %v1034_v38, %v968_v61  ;;  %v1230_v36 = vmul.f32 %v6847_v21, %v6555_v57  ;;  %v6848_v52 = vld [vmem:[#allocation28_spill] sm:$0xff]  ;;  %v5888_v61 = vld [vmem:[#allocation2 + $0x181] sm:$0xff] }
 0x1d7   : > { %3213 = vst.msk [vmem:[%s4163_s13 + $0xa8] sm:$0xff] %vm288_vm0, %v3181_v51  ;;  %v3121_v31 = vmul.f32 %v3064_v35, %v2897_v56  ;;  %v1748_v18 = vadd.f32 %v1716_v24, %v1650_v50  ;;  %v1913_v46 = vmul.f32 %v6840_v15, %v3768_v17  ;;  %v1328_v42 = vmul.f32 %v5755_v39, %v3734_v0  ;;  %v6849_v24 = vld [vmem:[#allocation13_spill] sm:$0xff]  ;;  %v6850_v50 = vld [vmem:[#allocation26_spill] sm:$0xff] }
 0x1d8   : > { %v2437_v28 = vadd.f32 %v2405_v7, %v2338_v59  ;;  %v1164_v1 = vadd.f32 %v1132_v27, %v1066_v63  ;;  %v476_v38 = vmul.f32 %v6848_v52, %v6538_v62  ;;  %v542_v20 = vmul.f32 %v6821_v19, %v6784_v33 }
 0x1d9   : > { %v1846_v43 = vadd.f32 %v1814_v47, %v1748_v18  ;;  %v2011_v56 = vmul.f32 %v6842_v14, %v6509_v37  ;;  %v1426_v15 = vmul.f32 %v5876_v34, %v3742_v4  ;;  %v640_v35 = vmul.f32 %v6849_v24, %v3675_v40  ;;  %v5898_v18 = vld [vmem:[#allocation2 + $0x182] sm:$0xff] }
 0x1da   : > { %v2535_v7 = vadd.f32 %v2503_v45, %v2437_v28  ;;  %v1262_v27 = vadd.f32 %v1230_v36, %v1164_v1  ;;  %v574_v51 = vadd.f32 %v542_v20, %v476_v38  ;;  %v738_v26 = vmul.f32 %v6825_v49, %v6540_v32  ;;  %v5906_v38 = vld [vmem:[#allocation2 + $0x183] sm:$0xff] }
 0x1db   : > { %v2797_v19 = vmul.f32 %v6791_v3, %v6850_v50  ;;  %v1945_v47 = vadd.f32 %v1913_v46, %v1846_v43  ;;  %v2109_v14 = vmul.f32 %v6844_v53, %v3779_v23  ;;  %v1524_v59 = vmul.f32 %v5888_v61, %v3745_v5 }
 0x1dc   : > { %v2633_v63 = vadd.f32 %v2601_v29, %v2535_v7  ;;  %v1360_v45 = vadd.f32 %v1328_v42, %v1262_v27  ;;  %v672_v28 = vadd.f32 %v640_v35, %v574_v51  ;;  %v836_v36 = vmul.f32 %v5619_v44, %v6545_v13 }
 0x1dd   : > { %v3153_v49 = vadd.f32 %v3121_v31, %v2861_v48  ;;  %v2043_v1 = vadd.f32 %v2011_v56, %v1945_v47  ;;  %v2207_v46 = vmul.f32 %v6847_v21, %v3782_v25  ;;  %v1622_v53 = vmul.f32 %v5898_v18, %v3752_v9  ;;  %v5914_v21 = vld [vmem:[#allocation2 + $0x184] sm:$0xff] }
 0x1de   : > { %v2731_v52 = vadd.f32 %v2699_v16, %v2633_v63  ;;  %v1458_v29 = vadd.f32 %v1426_v15, %v1360_v45  ;;  %v770_v20 = vadd.f32 %v738_v26, %v672_v28  ;;  %v935_v42 = vmul.f32 %v5757_v6, %v6549_v8  ;;  %v2860_v56 = vld [vmem:[%s3586_s12 + $0xc0] sm:$0xff]  ;;  %v6851_v26 = vld [vmem:[#allocation21_spill] sm:$0xff] }
 0x1df   : > { %v2141_v43 = vadd.f32 %v2109_v14, %v2043_v1  ;;  %v2305_v44 = vmul.f32 %v5755_v39, %v6518_v30  ;;  %v1720_v48 = vmul.f32 %v5906_v38, %v3755_v10  ;;  %v1033_v15 = vmul.f32 %v5766_v54, %v3719_v58  ;;  %v5928_v54 = vld [vmem:[#allocation2 + $0x198] sm:$0xff] }
 0x1e0   : > { %v2829_v31 = vadd.f32 %v2797_v19, %v2731_v52  ;;  %v1556_v16 = vadd.f32 %v1524_v59, %v1458_v29  ;;  %v868_v24 = vadd.f32 %v836_v36, %v770_v20  ;;  %v2404_v6 = vmul.f32 %v6797_v22, %v5876_v34  ;;  %v3059_v59 = vpop.permute.xlu0 %3058  ;;  %v6852_v36 = vld [vmem:[#allocation48_spill] sm:$0xff] }
 0x1e1   : > { %v2239_v35 = vadd.f32 %v2207_v46, %v2141_v43  ;;  %v1818_v39 = vmul.f32 %v5914_v21, %v3758_v11  ;;  %v1131_v50 = vmul.f32 %v6851_v26, %v6732_v55  ;;  %v2502_v47 = vmul.f32 %v6524_v2, %v5888_v61 }
 0x1e2   : > { %v3185_v7 = vadd.f32 %v3153_v49, %v2829_v31  ;;  %v1654_v27 = vadd.f32 %v1622_v53, %v1556_v16  ;;  %v967_v51 = vadd.f32 %v935_v42, %v868_v24  ;;  %v2896_v14 = vmul.f32 %v5646_v41, %v2860_v56  ;;  %v5938_v53 = vld [vmem:[#allocation2 + $0x199] sm:$0xff] }
 0x1e3   : > { %v2337_v19 = vadd.f32 %v2305_v44, %v2239_v35  ;;  %v1917_v45 = vmul.f32 %v3768_v17, %v5928_v54  ;;  %v1229_v49 = vmul.f32 %v6852_v36, %v6555_v57  ;;  %v2600_v46 = vmul.f32 %v6777_v60, %v5898_v18  ;;  %6853 = vst [vmem:[#allocation7_spill] sm:$0xff] %v5938_v53  ;;  %v6854_v42 = vld [vmem:[#allocation41_spill] sm:$0xff] }
 0x1e4   : > { %3217 = vst.msk [vmem:[%s4163_s13 + $0xc8] sm:$0xff] %vm288_vm0, %v3185_v7  ;;  %v1752_v63 = vadd.f32 %v1720_v48, %v1654_v27  ;;  %v1065_v28 = vadd.f32 %v1033_v15, %v967_v51  ;;  %v2015_v29 = vmul.f32 %v6509_v37, %v5938_v53  ;;  %v1327_v43 = vmul.f32 %v6854_v42, %v3734_v0  ;;  %v5948_v24 = vld [vmem:[#allocation2 + $0x19a] sm:$0xff] }
 0x1e5   : > { %v2436_v1 = vadd.f32 %v2404_v6, %v2337_v19  ;;  %v2698_v48 = vmul.f32 %v6779_v12, %v5906_v38  ;;  %v2796_v31 = vmul.f32 %v6791_v3, %v5914_v21  ;;  %v3120_v16 = vmul.f32 %v3059_v59, %v2896_v14  ;;  %6855 = vst [vmem:[#allocation34_spill] sm:$0xff] %v5948_v24  ;;  %v5954_v51 = vld [vmem:[#allocation2 + $0x19b] sm:$0xff] }
 0x1e6   : > { %v1850_v52 = vadd.f32 %v1818_v39, %v1752_v63  ;;  %v1163_v20 = vadd.f32 %v1131_v50, %v1065_v28  ;;  %v2113_v35 = vmul.f32 %v3779_v23, %v5948_v24  ;;  %v6856_v39 = vld [vmem:[#allocation50_spill] sm:$0xff]  ;;  %6857 = vst [vmem:[#allocation55_spill] sm:$0xff] %v5954_v51  ;;  %v6858_v50 = vld [vmem:[#allocation17_spill] sm:$0xff]  ;;  %v2211_v63 = vmul.f32 %v3782_v25, %v5954_v51 }
 0x1e7   : > { %v2534_v44 = vadd.f32 %v2502_v47, %v2436_v1  ;;  %v1425_v7 = vmul.f32 %v6856_v39, %v3742_v4  ;;  %v480_v26 = vmul.f32 %v6856_v39, %v6538_v62  ;;  %v546_v19 = vmul.f32 %v6858_v50, %v6784_v33  ;;  %v6859_v47 = vld [vmem:[#allocation53_spill] sm:$0xff] }
 0x1e8   : > { %v1949_v15 = vadd.f32 %v1917_v45, %v1850_v52  ;;  %v1261_v6 = vadd.f32 %v1229_v49, %v1163_v20  ;;  %v644_v14 = vmul.f32 %v6859_v47, %v3675_v40  ;;  %v1523_v28 = vmul.f32 %v6858_v50, %v3745_v5  ;;  %v5966_v1 = vld [vmem:[#allocation2 + $0x19c] sm:$0xff]  ;;  %v6861_v52 = vld [vmem:[#allocation39_spill] sm:$0xff]  ;;  %v6007_v51 = vld [vmem:[#allocation2 + $0x1b4] sm:$0xff] }
 0x1e9   : > { %v2632_v27 = vadd.f32 %v2600_v46, %v2534_v44  ;;  %v3152_v49 = vadd.f32 %v3120_v16, %v2860_v56  ;;  %6860 = vst [vmem:[#allocation15_spill] sm:$0xff] %v5966_v1  ;;  %v578_v46 = vadd.f32 %v546_v19, %v480_v26  ;;  %v742_v20 = vmul.f32 %v6861_v52, %v6540_v32  ;;  %v6863_v16 = vld [vmem:[#allocation30_spill] sm:$0xff]  ;;  %v1981_v19 = vld [vmem:[#allocation2 + $0x189] sm:$0xff] }
 0x1ea   : > { %v2047_v59 = vadd.f32 %v2015_v29, %v1949_v15  ;;  %v1359_v45 = vadd.f32 %v1327_v43, %v1261_v6  ;;  %v2309_v44 = vmul.f32 %v6518_v30, %v5966_v1  ;;  %v5973_v29 = vld [vmem:[%s3586_s12 + $0xe0] sm:$0xff]  ;;  %v1621_v43 = vmul.f32 %v6859_v47, %v3752_v9  ;;  %v1883_v6 = vld [vmem:[#allocation2 + $0x188] sm:$0xff]  ;;  %v5985_v47 = vld [vmem:[#allocation2 + $0x1b1] sm:$0xff]  ;;  %6867 = vst [vmem:[#allocation12_spill] sm:$0xff] %v6007_v51 }
 0x1eb   : > { %v2730_v36 = vadd.f32 %v2698_v48, %v2632_v27  ;;  %v5977_v48 = vld [vmem:[#allocation2 + $0x1b0] sm:$0xff]  ;;  %v676_v56 = vadd.f32 %v644_v14, %v578_v46  ;;  %v840_v27 = vmul.f32 %v6863_v16, %v6545_v13  ;;  %6864 = vst [vmem:[#allocation6_spill] sm:$0xff] %v5985_v47  ;;  %v3079_v46 = vpop.permute.xlu1 %3078  ;;  %v2014_v53 = vmul.f32 %v6509_v37, %v1981_v19 }
 0x1ec   : > { %v2145_v42 = vadd.f32 %v2113_v35, %v2047_v59  ;;  %v1457_v15 = vadd.f32 %v1425_v7, %v1359_v45  ;;  %6862 = vst [vmem:[#allocation10_spill] sm:$0xff] %v5977_v48  ;;  %v2408_v35 = vmul.f32 %v6797_v22, %v5977_v48  ;;  %v1719_v7 = vmul.f32 %v6861_v52, %v3755_v10  ;;  %v2079_v52 = vld [vmem:[#allocation2 + $0x18a] sm:$0xff] }
 0x1ed   : > { %v2828_v39 = vadd.f32 %v2796_v31, %v2730_v36  ;;  %v2900_v31 = vmul.f32 %v5646_v41, %v5973_v29  ;;  %v774_v14 = vadd.f32 %v742_v20, %v676_v56  ;;  %v939_v45 = vmul.f32 %v1883_v6, %v6549_v8  ;;  %v446_v20 = vld [vmem:[#allocation2 + $0x168] sm:$0xff]  ;;  %v6001_v56 = vld [vmem:[#allocation2 + $0x1b3] sm:$0xff] }
 0x1ee   : > { %v2243_v26 = vadd.f32 %v2211_v63, %v2145_v42  ;;  %v1555_v50 = vadd.f32 %v1523_v28, %v1457_v15  ;;  %v2506_v36 = vmul.f32 %v6524_v2, %v5985_v47  ;;  %v1817_v28 = vmul.f32 %v6863_v16, %v3758_v11  ;;  %6866 = vst [vmem:[#allocation42_spill] sm:$0xff] %v6001_v56  ;;  %v512_v16 = vld [vmem:[#allocation2 + $0x169] sm:$0xff] }
 0x1ef   : > { %v3184_v59 = vadd.f32 %v3152_v49, %v2828_v39  ;;  %v5996_v49 = vld [vmem:[#allocation2 + $0x1b2] sm:$0xff]  ;;  %v872_v42 = vadd.f32 %v840_v27, %v774_v14  ;;  %v1037_v15 = vmul.f32 %v1981_v19, %v3719_v58  ;;  %v1135_v27 = vmul.f32 %v2079_v52, %v6732_v55  ;;  %v610_v14 = vld [vmem:[#allocation2 + $0x16a] sm:$0xff] }
 0x1f0   : > { %v2341_v48 = vadd.f32 %v2309_v44, %v2243_v26  ;;  %v1653_v63 = vadd.f32 %v1621_v43, %v1555_v50  ;;  %6865 = vst [vmem:[#allocation9_spill] sm:$0xff] %v5996_v49  ;;  %v2604_v39 = vmul.f32 %v6777_v60, %v5996_v49  ;;  %v1916_v43 = vmul.f32 %v3768_v17, %v1883_v6  ;;  %v2177_v26 = vld [vmem:[#allocation2 + $0x18b] sm:$0xff] }
 0x1f1   : > { %3216 = vst.msk [vmem:[%s4163_s13 + $0xc0] sm:$0xff] %vm288_vm0, %v3184_v59  ;;  %v2702_v50 = vmul.f32 %v6779_v12, %v6001_v56  ;;  %v3124_v59 = vmul.f32 %v3079_v46, %v2900_v31  ;;  %v971_v1 = vadd.f32 %v939_v45, %v872_v42  ;;  %v708_v6 = vld [vmem:[#allocation2 + $0x16b] sm:$0xff]  ;;  %v1233_v31 = vmul.f32 %v2177_v26, %v6555_v57 }
 0x1f2   : > { %v2440_v47 = vadd.f32 %v2408_v35, %v2341_v48  ;;  %v1751_v44 = vadd.f32 %v1719_v7, %v1653_v63  ;;  %v2275_v48 = vld [vmem:[#allocation2 + $0x18c] sm:$0xff]  ;;  %v479_v35 = vmul.f32 %v6538_v62, %v446_v20  ;;  %v2800_v7 = vmul.f32 %v6791_v3, %v6007_v51 }
 0x1f3   : > { %v1069_v63 = vadd.f32 %v1037_v15, %v971_v1  ;;  %v545_v45 = vmul.f32 %v6784_v33, %v512_v16  ;;  %v2112_v56 = vmul.f32 %v3779_v23, %v2079_v52  ;;  %v806_v19 = vld [vmem:[#allocation2 + $0x16c] sm:$0xff]  ;;  %v1331_v62 = vmul.f32 %v2275_v48, %v3734_v0 }
 0x1f4   : > { %v2538_v24 = vadd.f32 %v2506_v36, %v2440_v47  ;;  %v1849_v49 = vadd.f32 %v1817_v28, %v1751_v44  ;;  %v2374_v47 = vld [vmem:[#allocation2 + $0x1a0] sm:$0xff]  ;;  %v643_v36 = vmul.f32 %v3675_v40, %v610_v14  ;;  %v741_v44 = vmul.f32 %v6540_v32, %v708_v6  ;;  %v2863_v32 = vld [vmem:[%s3586_s12 + $0xd8] sm:$0xff] }
 0x1f5   : > { %v1167_v28 = vadd.f32 %v1135_v27, %v1069_v63  ;;  %v577_v20 = vadd.f32 %v545_v45, %v479_v35  ;;  %v3156_v15 = vadd.f32 %v3124_v59, %v5973_v29  ;;  %v2210_v33 = vmul.f32 %v3782_v25, %v2177_v26  ;;  %v2570_v14 = vld [vmem:[#allocation2 + $0x1a2] sm:$0xff] }
 0x1f6   : > { %v2636_v46 = vadd.f32 %v2604_v39, %v2538_v24  ;;  %v1948_v42 = vadd.f32 %v1916_v43, %v1849_v49  ;;  %v2472_v24 = vld [vmem:[#allocation2 + $0x1a1] sm:$0xff]  ;;  %v1429_v52 = vmul.f32 %v2374_v47, %v3742_v4  ;;  %v839_v40 = vmul.f32 %v6545_v13, %v806_v19 }
 0x1f7   : > { %v1265_v49 = vadd.f32 %v1233_v31, %v1167_v28  ;;  %v675_v39 = vadd.f32 %v643_v36, %v577_v20  ;;  %v2308_v27 = vmul.f32 %v6518_v30, %v2275_v48  ;;  %v1527_v29 = vmul.f32 %v2472_v24, %v3745_v5  ;;  %v2668_v63 = vld [vmem:[#allocation2 + $0x1a3] sm:$0xff] }
 0x1f8   : > { %v2734_v1 = vadd.f32 %v2702_v50, %v2636_v46  ;;  %v2046_v51 = vadd.f32 %v2014_v53, %v1948_v42  ;;  %v938_v26 = vmul.f32 %v5876_v34, %v6549_v8  ;;  %v2407_v6 = vmul.f32 %v6797_v22, %v2374_v47  ;;  %v2766_v45 = vld [vmem:[#allocation2 + $0x1a4] sm:$0xff]  ;;  %v3074_v34 = vpop.permute.xlu0 %3073 }
 0x1f9   : > { %v1363_v50 = vadd.f32 %v1331_v62, %v1265_v49  ;;  %v773_v53 = vadd.f32 %v741_v44, %v675_v39  ;;  %v1036_v48 = vmul.f32 %v5888_v61, %v3719_v58  ;;  %v2505_v31 = vmul.f32 %v6524_v2, %v2472_v24  ;;  %v1887_v58 = vld [vmem:[#allocation2 + $0x1b8] sm:$0xff] }
 0x1fa   : > { %v2832_v43 = vadd.f32 %v2800_v7, %v2734_v1  ;;  %v2144_v16 = vadd.f32 %v2112_v56, %v2046_v51  ;;  %v1625_v51 = vmul.f32 %v2570_v14, %v3752_v9  ;;  %v2899_v8 = vmul.f32 %v5646_v41, %v2863_v32  ;;  %v1985_v24 = vld [vmem:[#allocation2 + $0x1b9] sm:$0xff] }
 0x1fb   : > { %v1461_v13 = vadd.f32 %v1429_v52, %v1363_v50  ;;  %v871_v56 = vadd.f32 %v839_v40, %v773_v53  ;;  %v1723_v42 = vmul.f32 %v2668_v63, %v3755_v10  ;;  %v1134_v36 = vmul.f32 %v5898_v18, %v6732_v55 }
 0x1fc   : > { %v3188_v59 = vadd.f32 %v3156_v15, %v2832_v43  ;;  %v2242_v35 = vadd.f32 %v2210_v33, %v2144_v16  ;;  %v2603_v28 = vmul.f32 %v6777_v60, %v2570_v14  ;;  %v1821_v62 = vmul.f32 %v2766_v45, %v3758_v11  ;;  %v2083_v43 = vld [vmem:[#allocation2 + $0x1ba] sm:$0xff] }
 0x1fd   : > { %v1559_v46 = vadd.f32 %v1527_v29, %v1461_v13  ;;  %v970_v47 = vadd.f32 %v938_v26, %v871_v56  ;;  %v1232_v44 = vmul.f32 %v5906_v38, %v6555_v57  ;;  %v2701_v15 = vmul.f32 %v6779_v12, %v2668_v63  ;;  %v2181_v29 = vld [vmem:[#allocation2 + $0x1bb] sm:$0xff]  ;;  %v2378_v56 = vld [vmem:[#allocation2 + $0x1d0] sm:$0xff] }
 0x1fe   : > { %3220 = vst.msk [vmem:[%s4163_s13 + $0xe0] sm:$0xff] %vm288_vm0, %v3188_v59  ;;  %v2340_v7 = vadd.f32 %v2308_v27, %v2242_v35  ;;  %v3123_v33 = vmul.f32 %v3074_v34, %v2899_v8  ;;  %v1920_v49 = vmul.f32 %v3768_v17, %v1887_v58  ;;  %v1330_v18 = vmul.f32 %v5914_v21, %v3734_v0  ;;  %v6868_v0 = vld [vmem:[#allocation7_spill] sm:$0xff]  ;;  %v2672_v58 = vld [vmem:[#allocation2 + $0x1d3] sm:$0xff] }
 0x1ff   : > { %v1657_v61 = vadd.f32 %v1625_v51, %v1559_v46  ;;  %v1068_v20 = vadd.f32 %v1036_v48, %v970_v47  ;;  %v2799_v40 = vmul.f32 %v6791_v3, %v2766_v45  ;;  %v2018_v16 = vmul.f32 %v6509_v37, %v1985_v24  ;;  %v6870_v8 = vld [vmem:[#allocation55_spill] sm:$0xff]  ;;  %v6873_v24 = vld [vmem:[#allocation6_spill] sm:$0xff] }
 0x200   : > { %v2439_v19 = vadd.f32 %v2407_v6, %v2340_v7  ;;  %v1428_v38 = vmul.f32 %v5928_v54, %v3742_v4  ;;  %v3155_v50 = vadd.f32 %v3123_v33, %v2863_v32  ;;  %v2116_v53 = vmul.f32 %v3779_v23, %v2083_v43  ;;  %v2279_v6 = vld [vmem:[#allocation2 + $0x1bc] sm:$0xff]  ;;  %v2476_v7 = vld [vmem:[#allocation2 + $0x1d1] sm:$0xff] }
 0x201   : > { %v1755_v52 = vadd.f32 %v1723_v42, %v1657_v61  ;;  %v1166_v55 = vadd.f32 %v1134_v36, %v1068_v20  ;;  %v1526_v21 = vmul.f32 %v6868_v0, %v3745_v5  ;;  %v2214_v63 = vmul.f32 %v3782_v25, %v2181_v29  ;;  %v6869_v4 = vld [vmem:[#allocation34_spill] sm:$0xff]  ;;  %v2867_v5 = vld [vmem:[%s3586_s12 + $0xf8] sm:$0xff]  ;;  %v6871_v36 = vld [vmem:[#allocation15_spill] sm:$0xff] }
 0x202   : > { %v2537_v1 = vadd.f32 %v2505_v31, %v2439_v19  ;;  %v1624_v54 = vmul.f32 %v6869_v4, %v3752_v9  ;;  %v2312_v48 = vmul.f32 %v6518_v30, %v2279_v6  ;;  %v1722_v34 = vmul.f32 %v6870_v8, %v3755_v10  ;;  %v6872_v20 = vld [vmem:[#allocation10_spill] sm:$0xff]  ;;  %v2475_v0 = vld [vmem:[#allocation2 + $0x1c9] sm:$0xff] }
 0x203   : > { %v1853_v27 = vadd.f32 %v1821_v62, %v1755_v52  ;;  %v1264_v57 = vadd.f32 %v1232_v44, %v1166_v55  ;;  %v2411_v46 = vmul.f32 %v6797_v22, %v2378_v56  ;;  %v1820_v9 = vmul.f32 %v6871_v36, %v3758_v11  ;;  %v2770_v55 = vld [vmem:[#allocation2 + $0x1d4] sm:$0xff] }
 0x204   : > { %v2635_v39 = vadd.f32 %v2603_v28, %v2537_v1  ;;  %v2509_v19 = vmul.f32 %v6524_v2, %v2476_v7  ;;  %v2574_v28 = vld [vmem:[#allocation2 + $0x1d2] sm:$0xff]  ;;  %v2903_v62 = vmul.f32 %v5646_v41, %v2867_v5  ;;  %v1919_v10 = vmul.f32 %v6872_v20, %v3768_v17  ;;  %v3094_v1 = vpop.permute.xlu1 %3093 }
 0x205   : > { %v1952_v26 = vadd.f32 %v1920_v49, %v1853_v27  ;;  %v1362_v59 = vadd.f32 %v1330_v18, %v1264_v57  ;;  %v2017_v49 = vmul.f32 %v6873_v24, %v6509_v37  ;;  %v2705_v11 = vmul.f32 %v6779_v12, %v2672_v58  ;;  %v6875_v57 = vld [vmem:[#allocation42_spill] sm:$0xff] }
 0x206   : > { %v2733_v14 = vadd.f32 %v2701_v15, %v2635_v39  ;;  %v2607_v15 = vmul.f32 %v6777_v60, %v2574_v28  ;;  %v3127_v39 = vmul.f32 %v3094_v1, %v2903_v62  ;;  %v2803_v17 = vmul.f32 %v6791_v3, %v2770_v55 }
 0x207   : > { %v2050_v13 = vadd.f32 %v2018_v16, %v1952_v26  ;;  %v1460_v51 = vadd.f32 %v1428_v38, %v1362_v59  ;;  %v2213_v38 = vmul.f32 %v6875_v57, %v3782_v25 }
 0x208   : > { %v2831_v35 = vadd.f32 %v2799_v40, %v2733_v14  ;;  %v6874_v40 = vld [vmem:[#allocation9_spill] sm:$0xff]  ;;  %v3159_v29 = vadd.f32 %v3127_v39, %v2867_v5 }
 0x209   : > { %v2148_v31 = vadd.f32 %v2116_v53, %v2050_v13  ;;  %v1558_v45 = vadd.f32 %v1526_v21, %v1460_v51  ;;  %v2115_v43 = vmul.f32 %v6874_v40, %v3779_v23  ;;  %v6876_v53 = vld [vmem:[#allocation12_spill] sm:$0xff]  ;;  %v2508_v51 = vmul.f32 %v6524_v2, %v2475_v0 }
 0x20a   : > { %v3187_v32 = vadd.f32 %v3155_v50, %v2831_v35  ;;  %v2377_v50 = vld [vmem:[#allocation2 + $0x1c8] sm:$0xff]  ;;  %v2311_v26 = vmul.f32 %v6876_v53, %v6518_v30  ;;  %v2866_v21 = vld [vmem:[%s3586_s12 + $0xf0] sm:$0xff] }
 0x20b   : > { %v2246_v42 = vadd.f32 %v2214_v63, %v2148_v31  ;;  %v1656_v47 = vadd.f32 %v1624_v54, %v1558_v45  ;;  %v2410_v23 = vmul.f32 %v6797_v22, %v2377_v50  ;;  %v2573_v63 = vld [vmem:[#allocation2 + $0x1ca] sm:$0xff]  ;;  %v2902_v4 = vmul.f32 %v5646_v41, %v2866_v21 }
 0x20c   : > { %3219 = vst.msk [vmem:[%s4163_s13 + $0xd8] sm:$0xff] %vm288_vm0, %v3187_v32  ;;  %v2671_v54 = vld [vmem:[#allocation2 + $0x1cb] sm:$0xff]  ;;  %v3089_v32 = vpop.permute.xlu0 %3088  ;;  %v2606_v30 = vmul.f32 %v6777_v60, %v2573_v63 }
 0x20d   : > { %v2344_v61 = vadd.f32 %v2312_v48, %v2246_v42  ;;  %v1754_v44 = vadd.f32 %v1722_v34, %v1656_v47  ;;  %v2769_v48 = vld [vmem:[#allocation2 + $0x1cc] sm:$0xff]  ;;  %v2704_v7 = vmul.f32 %v6779_v12, %v2671_v54  ;;  %v3126_v31 = vmul.f32 %v3089_v32, %v2902_v4 }
 0x20e   : > { %v2802_v45 = vmul.f32 %v6791_v3, %v2769_v48 }
 0x20f   : > { %v2443_v33 = vadd.f32 %v2411_v46, %v2344_v61  ;;  %v1852_v52 = vadd.f32 %v1820_v9, %v1754_v44  ;;  %v3158_v34 = vadd.f32 %v3126_v31, %v2866_v21 }
 0x211   : > { %v2541_v18 = vadd.f32 %v2509_v19, %v2443_v33  ;;  %v1951_v16 = vadd.f32 %v1919_v10, %v1852_v52 }
 0x213   : > { %v2639_v27 = vadd.f32 %v2607_v15, %v2541_v18  ;;  %v2049_v14 = vadd.f32 %v2017_v49, %v1951_v16 }
 0x215   : > { %v2737_v37 = vadd.f32 %v2705_v11, %v2639_v27  ;;  %v2147_v59 = vadd.f32 %v2115_v43, %v2049_v14 }
 0x217   : > { %v2835_v35 = vadd.f32 %v2803_v17, %v2737_v37  ;;  %v2245_v6 = vadd.f32 %v2213_v38, %v2147_v59 }
 0x219   : > { %v3191_v13 = vadd.f32 %v3159_v29, %v2835_v35  ;;  %v2343_v25 = vadd.f32 %v2311_v26, %v2245_v6 }
 0x21b   : > { %3223 = vst.msk [vmem:[%s4163_s13 + $0xf8] sm:$0xff] %vm288_vm0, %v3191_v13  ;;  %v2442_v56 = vadd.f32 %v2410_v23, %v2343_v25 }
 0x21d   : > { %v2540_v22 = vadd.f32 %v2508_v51, %v2442_v56 }
 0x21f   : > { %v2638_v8 = vadd.f32 %v2606_v30, %v2540_v22 }
 0x221   : > { %v2736_v2 = vadd.f32 %v2704_v7, %v2638_v8 }
 0x223   : > { %v2834_v5 = vadd.f32 %v2802_v45, %v2736_v2 }
 0x225   : > { %v3190_v41 = vadd.f32 %v3158_v34, %v2834_v5 }
 0x227   : > { %3222 = vst.msk [vmem:[%s4163_s13 + $0xf0] sm:$0xff] %vm288_vm0, %v3190_v41 }
 0x228 PF: > { %s15_s17 = sadd.s32 1, %s3471_s17   ;;  %s6877_s15 = smov %s3467_s16 }
 0x229   : > { %p12_p8 = scmp.ge.s32.totalorder %s15_s17, 4   ;;  %s6878_s16 = smov %s6880_s19 }
 0x22b   :  { %14 = sbr.rel (!%p12_p8) target bundleno = 4 (0x4), region = 81 }
 0x230   :  { %3251 = vsyncpa [#allocation4], 1 }
 0x231   :  { %3253 = vsyncpa [#allocation4 + $0x1], 1 }

</bundles_post_ra>
